<compile_context>
chip_gen: v7x
topology: tpu7x:2x2x1
jax: 0.10.0
libtpu: 0.0.40
codegen_flags: <defaults>
</compile_context>

<pallas_src>
import functools
import numpy as np
import jax
import jax.numpy as jnp
from jax.experimental import pallas as pl
from jax.experimental.pallas import tpu as pltpu

VMEM = pltpu.MemorySpace.VMEM
_vspec = pl.BlockSpec(memory_space=VMEM)

# Synthetic KAMNET_PARAMS (the original module reads these from a global dict).
KAMNET_PARAMS = dict(
    s2_1=8, so3_2=8, so3_3=8, so3_4=8,
    fc_max=64,
    s1=4, s2=4,
    first_filter=3, second_filter=3,
    ftype='SO3I',
    last_bw=4,
    do=0.1, sdo=0.1,
)
TIME_CHANNEL = (4, 16)   # (time steps, spherical grid size = 2 * b_in)

# 3x3 conv offsets, fixed order (di, dj) in {-1,0,1}^2.
_OFFSETS = tuple((di, dj) for di in (-1, 0, 1) for dj in (-1, 0, 1))


# ------------------------------ fused kernel --------------------------------

def kamnet_kernel(x_ref, mask_ref,
                  wx1_ref, wh1_ref, b1_ref,
                  wx2_ref, wh2_ref, b2_ref,
                  k1_ref, m1_ref, s1_ref,
                  k2_ref, m2_ref, s2_ref,
                  k3_ref, m3_ref, s3_ref,
                  k4_ref, m4_ref, s4_ref,
                  wq_ref,
                  fw1_ref, fs1_ref, fw2_ref, fs2_ref, fw3_ref, fs3_ref,
                  fw4_ref, fs4_ref, fw5_ref, fs5_ref, fw6_ref, fs6_ref,
                  out_ref,
                  xstk_ref, h1stk_ref, h2stk_ref,
                  *, t_steps, hw, width, r1, r2):
    """Whole KamNet forward, everything in (feature*batch, spatial) layout.

    x_ref   : (B, T*H*W) f32 input sequence (per-timestep contiguous columns)
    mask_ref: (9, H*W)  f32 border-validity mask per 3x3 offset
    wx/wh   : kron(W_stacked, I_B) gate weights, b*: (4*ch*B, 1) gate bias
    kL      : (n_{L-1}, n_L) separable-resize operator (single image)
    mL      : kron(BN_scale * W_mix, I_B) channel mix, sL: folded shift
    wq      : (n4, 1) beta-quadrature column (alpha sum + gamma extent folded)
    fwL/fsL : kron(BN_scale * W_fc, I_B) FC weights / folded shifts
    out_ref : (B, 1)
    *stk_ref: VMEM scratch for the stacked 3x3 neighbourhoods
    """
    n = hw
    masks = mask_ref[...]                                    # (9, n)

    def build_stack(v, stk_ref):
        """Write the 9 shifted/masked copies of v into stk_ref, lane-dense."""
        rows = v.shape[0]
        for k, (di, dj) in enumerate(_OFFSETS):
            s = di * width + dj
            if s == 0:
                shifted = v
            else:
                # result[p] = v[p + s]; out-of-bounds neighbours zeroed by mask
                shifted = pltpu.roll(v, shift=(n - s) % n, axis=1)
                shifted = shifted * masks[k:k + 1, :]
            stk_ref[k * rows:(k + 1) * rows, :] = shifted
        return stk_ref[...]

    def lstm_update(gates, c, r):
        i = jax.nn.sigmoid(gates[0 * r:1 * r, :])
        f = jax.nn.sigmoid(gates[1 * r:2 * r, :])
        o = jax.nn.sigmoid(gates[2 * r:3 * r, :])
        g = jnp.tanh(gates[3 * r:4 * r, :])
        c_new = f * c + i * g
        return o * jnp.tanh(c_new), c_new

    # ---- 2-layer ConvLSTM over all T timesteps (state kept in registers) ----
    wx1 = wx1_ref[...]; wh1 = wh1_ref[...]; b1 = b1_ref[...]
    wx2 = wx2_ref[...]; wh2 = wh2_ref[...]; b2 = b2_ref[...]

    fill = jnp.float32(0.1)                                  # fill_value=0.1
    h1 = jnp.full((r1, n), fill, jnp.float32)
    c1 = jnp.full((r1, n), fill, jnp.float32)
    h2 = jnp.full((r2, n), fill, jnp.float32)
    c2 = jnp.full((r2, n), fill, jnp.float32)
    h1s = build_stack(h1, h1stk_ref)
    h2s = build_stack(h2, h2stk_ref)

    for t in range(t_steps):                                 # static, T = 4
        xs = build_stack(x_ref[:, t * n:(t + 1) * n], xstk_ref)   # (9*B, n)
        g1 = (jnp.dot(wx1, xs, preferred_element_type=jnp.float32)
              + jnp.dot(wh1, h1s, preferred_element_type=jnp.float32) + b1)
        h1, c1 = lstm_update(g1, c1, r1)
        h1s = build_stack(h1, h1stk_ref)                     # reused as W_h input at t+1
        g2 = (jnp.dot(wx2, h1s, preferred_element_type=jnp.float32)
              + jnp.dot(wh2, h2s, preferred_element_type=jnp.float32) + b2)
        h2, c2 = lstm_update(g2, c2, r2)
        if t < t_steps - 1:
            h2s = build_stack(h2, h2stk_ref)

    # ---- spherical chain: conv1..conv4 + BN3d + ReLU (sdo = identity) -------
    z = h2                                                   # (s2*B, n0)
    for k_ref, m_ref, s_ref in ((k1_ref, m1_ref, s1_ref),
                                (k2_ref, m2_ref, s2_ref),
                                (k3_ref, m3_ref, s3_ref),
                                (k4_ref, m4_ref, s4_ref)):
        # bandwidth resize (separable bilinear), single-image operator
        zr = jnp.dot(z, k_ref[...], preferred_element_type=jnp.float32)
        # channel mix with BN scale + bias folded in, then ReLU
        z = jnp.maximum(
            jnp.dot(m_ref[...], zr, preferred_element_type=jnp.float32)
            + s_ref[...], 0.0)

    # ---- so3_integrate: one quadrature dot over the grid --------------------
    z = jnp.dot(z, wq_ref[...], preferred_element_type=jnp.float32)  # (so3_4*B, 1)

    # ---- FC head: 6 layers, BN1d + ReLU after 1..5 (do = identity) ----------
    fcs = ((fw1_ref, fs1_ref), (fw2_ref, fs2_ref), (fw3_ref, fs3_ref),
           (fw4_ref, fs4_ref), (fw5_ref, fs5_ref), (fw6_ref, fs6_ref))
    for l, (w_ref, s_ref) in enumerate(fcs):
        z = jnp.dot(w_ref[...], z, preferred_element_type=jnp.float32) + s_ref[...]
        if l < len(fcs) - 1:
            z = jnp.maximum(z, 0.0)

    out_ref[...] = z                                         # (B, 1)


# ------------------------------ parameters ----------------------------------

def _uniform(key, shape, bound):
    return jax.random.uniform(key, shape, jnp.float32, minval=-bound, maxval=bound)


def _bn_affine(key, c, eps=1e-5):
    k1, k2, k3, k4 = jax.random.split(key, 4)
    gamma = 1.0 + 0.1 * jax.random.normal(k1, (c,), jnp.float32)
    beta = 0.1 * jax.random.normal(k2, (c,), jnp.float32)
    mean = 0.1 * jax.random.normal(k3, (c,), jnp.float32)
    var = 1.0 + 0.1 * jnp.abs(jax.random.normal(k4, (c,), jnp.float32))
    scale = gamma / jnp.sqrt(var + eps)
    shift = beta - mean * scale
    return scale, shift


def _s3_quadrature_weights(b):
    """Driscoll-Healy / SOFT quadrature weights over beta (as in s2cnn)."""
    k = np.arange(b)
    w = np.zeros(2 * b, dtype=np.float64)
    for j in range(2 * b):
        w[j] = (2.0 / b) * np.sin(np.pi * (2 * j + 1) / (4.0 * b)) * np.sum(
            np.sin((2 * j + 1) * (2 * k + 1) * np.pi / (4.0 * b)) / (2 * k + 1))
    return w.astype(np.float32)


def _shift_masks(h, w):
    """Validity mask per 3x3 offset for the roll-based im2col (one image)."""
    ii, jj = np.meshgrid(np.arange(h), np.arange(w), indexing='ij')
    masks = np.zeros((len(_OFFSETS), h * w), np.float32)
    for k, (di, dj) in enumerate(_OFFSETS):
        valid = ((ii + di >= 0) & (ii + di < h) & (jj + dj >= 0) & (jj + dj < w))
        masks[k] = valid.reshape(-1).astype(np.float32)
    return jnp.asarray(masks)


def _resize_block(d_in, d_out):
    """Separable bilinear resize (d_in,d_in)->(d_out,d_out) on a row-major
    flattened grid as a single (d_in^2, d_out^2) matrix: y_row = x_row @ K."""
    a = jax.image.resize(jnp.eye(d_in, dtype=jnp.float32), (d_out, d_in),
                         method='linear')                     # (d_out, d_in)
    return jnp.transpose(jnp.kron(a, a))                      # (d_in^2, d_out^2)


def _kron_batch(w, batch):
    """kron(W, I_B): applies W identically per batch in (c*B + b) row layout."""
    return jnp.kron(jnp.asarray(w, jnp.float32), jnp.eye(batch, dtype=jnp.float32))


def init_params(key, batch):
    p = KAMNET_PARAMS
    assert p['first_filter'] == 3 and p['second_filter'] == 3
    h = w = TIME_CHANNEL[1]
    bw = np.linspace(TIME_CHANNEL[1] // 2, p['last_bw'], 5).astype(int)  # [8,7,6,5,4]
    dims = [2 * int(b) for b in bw]                                      # [16,14,12,10,8]

    keys = iter(jax.random.split(key, 64))

    # ConvLSTM: 2 layers, input channel 1, hidden dims [s1, s2].
    # Gate weights stored stacked over the 9 offsets and split into W_x / W_h,
    # then kron'd with I_B for the (c*B + b) row layout.
    convlstm = []
    cin = 1
    for ch in (p['s1'], p['s2']):
        bnd = 1.0 / np.sqrt((cin + ch) * 9)
        wx = _uniform(next(keys), (4 * ch, 9 * cin), bnd)     # (4ch, 9*cin)
        wh = _uniform(next(keys), (4 * ch, 9 * ch), bnd)      # (4ch, 9*ch)
        bg = _uniform(next(keys), (4 * ch,), bnd)
        convlstm.append((
            _kron_batch(wx, batch),                           # (4ch*B, 9*cin*B)
            _kron_batch(wh, batch),                           # (4ch*B, 9*ch*B)
            jnp.repeat(bg, batch).reshape(-1, 1),             # (4ch*B, 1)
        ))
        cin = ch

    # Spherical blocks (S2 conv + 3x SO3 conv): single-image resize operator,
    # channel mix with BN3d scale + conv bias folded in (batch via kron I_B).
    sph = []
    chans = [p['s2'], p['s2_1'], p['so3_2'], p['so3_3'], p['so3_4']]
    for l in range(4):
        cin_, cout_ = chans[l], chans[l + 1]
        kmat = _resize_block(dims[l], dims[l + 1])            # (n_in, n_out) f32
        bnd = 1.0 / np.sqrt(cin_)
        wt = _uniform(next(keys), (cout_, cin_), bnd)
        bb = _uniform(next(keys), (cout_,), bnd)
        sc, sh = _bn_affine(next(keys), cout_)
        wfold = wt * sc[:, None]                              # fold BN scale
        shift = sc * bb + sh                                  # fold conv bias
        sph.append((kmat,
                    _kron_batch(wfold, batch),                # (cout*B, cin*B)
                    jnp.repeat(shift, batch).reshape(-1, 1))) # (cout*B, 1)

    # so3_integrate quadrature column: beta weights, alpha sum implicit,
    # gamma extent folded in (approximated signal is constant along gamma).
    d_last = dims[-1]
    wb = _s3_quadrature_weights(d_last // 2)                  # (d_last,)
    wq = jnp.asarray((np.repeat(wb, d_last) * float(d_last))
                     .reshape(d_last * d_last, 1), jnp.float32)

    # FC head (6 layers), channel-major-with-batch: kron(BN_scale*W, I_B),
    # linear biases folded into the BN shifts.
    fc_dims = [p['so3_4'], int(p['fc_max']), int(p['fc_max'] * 0.8),
               int(p['fc_max'] * 0.4), int(p['fc_max'] * 0.2),
               int(p['fc_max'] * 0.05), 1]
    fcs = []
    for l in range(6):
        din, dout = fc_dims[l], fc_dims[l + 1]
        bnd = 1.0 / np.sqrt(din)
        wt = _uniform(next(keys), (dout, din), bnd)           # y = W z + b
        bl = _uniform(next(keys), (dout,), bnd)
        if l < 5:
            sc, sh = _bn_affine(next(keys), dout)
        else:
            sc = jnp.ones((dout,), jnp.float32)
            sh = jnp.zeros((dout,), jnp.float32)
        wfold = wt * sc[:, None]
        shift = sc * bl + sh
        fcs.append((_kron_batch(wfold, batch),                # (dout*B, din*B)
                    jnp.repeat(shift, batch).reshape(-1, 1))) # (dout*B, 1)

    masks = _shift_masks(h, w)
    return dict(convlstm=convlstm, sph=sph, wq=wq, fc=fcs, masks=masks)


# ------------------------------ forward pass ---------------------------------

def kamnet_forward(x, params):
    # x: (B, T, H, W); PyTorch unsqueeze(2) -> single input channel.
    b, t, h, w = x.shape
    hw = h * w
    x2d = x.reshape(b, t * hw).astype(jnp.float32)            # free reshape

    (wx1, wh1, b1), (wx2, wh2, b2) = params['convlstm']
    args = [x2d, params['masks'], wx1, wh1, b1, wx2, wh2, b2]
    for (kmat, wm, sh) in params['sph']:
        args.extend([kmat, wm, sh])
    args.append(params['wq'])
    for (wk, sh) in params['fc']:
        args.extend([wk, sh])

    r1 = wx1.shape[0] // 4                                    # s1 * B
    r2 = wx2.shape[0] // 4                                    # s2 * B
    kern = functools.partial(kamnet_kernel, t_steps=t, hw=hw, width=w,
                             r1=r1, r2=r2)
    # Note: resize-operator DMA could be overlapped with the ConvLSTM via
    # memory_space=pl.ANY + pltpu.make_async_copy; kept in plain VMEM specs
    # for robustness since the single-block operators are only ~0.4 MB total.
    return pl.pallas_call(
        kern,
        out_shape=jax.ShapeDtypeStruct((b, 1), jnp.float32),
        in_specs=[_vspec] * len(args),
        out_specs=_vspec,
        scratch_shapes=[
            pltpu.VMEM((9 * b, hw), jnp.float32),             # x-stack   (cin=1)
            pltpu.VMEM((9 * r1, hw), jnp.float32),            # h1-stack
            pltpu.VMEM((9 * r2, hw), jnp.float32),            # h2-stack
        ],
    )(*args)


if __name__ == "__main__":
    key = jax.random.PRNGKey(0)
    kx, kp = jax.random.split(key)
    B, T, G = 2, TIME_CHANNEL[0], TIME_CHANNEL[1]
    x = jax.random.normal(kx, (B, T, G, G), jnp.float32)
    params = init_params(kp, batch=B)
    fwd = jax.jit(kamnet_forward)
    out = jax.block_until_ready(fwd(x, params))
    assert out.shape == (B, 1), out.shape
    assert bool(jnp.all(jnp.isfinite(out)))
    print("KERNEL_OK")
</pallas_src>

<mosaic_0001>
module attributes {stable_mosaic.version = 11 : i64} {
  func.func @kamnet_kernel(%arg0: memref<2x1024xf32, #tpu.memory_space<vmem>>, %arg1: memref<9x256xf32, #tpu.memory_space<vmem>>, %arg2: memref<32x18xf32, #tpu.memory_space<vmem>>, %arg3: memref<32x72xf32, #tpu.memory_space<vmem>>, %arg4: memref<32x1xf32, #tpu.memory_space<vmem>>, %arg5: memref<32x72xf32, #tpu.memory_space<vmem>>, %arg6: memref<32x72xf32, #tpu.memory_space<vmem>>, %arg7: memref<32x1xf32, #tpu.memory_space<vmem>>, %arg8: memref<256x196xf32, #tpu.memory_space<vmem>>, %arg9: memref<16x8xf32, #tpu.memory_space<vmem>>, %arg10: memref<16x1xf32, #tpu.memory_space<vmem>>, %arg11: memref<196x144xf32, #tpu.memory_space<vmem>>, %arg12: memref<16x16xf32, #tpu.memory_space<vmem>>, %arg13: memref<16x1xf32, #tpu.memory_space<vmem>>, %arg14: memref<144x100xf32, #tpu.memory_space<vmem>>, %arg15: memref<16x16xf32, #tpu.memory_space<vmem>>, %arg16: memref<16x1xf32, #tpu.memory_space<vmem>>, %arg17: memref<100x64xf32, #tpu.memory_space<vmem>>, %arg18: memref<16x16xf32, #tpu.memory_space<vmem>>, %arg19: memref<16x1xf32, #tpu.memory_space<vmem>>, %arg20: memref<64x1xf32, #tpu.memory_space<vmem>>, %arg21: memref<128x16xf32, #tpu.memory_space<vmem>>, %arg22: memref<128x1xf32, #tpu.memory_space<vmem>>, %arg23: memref<102x128xf32, #tpu.memory_space<vmem>>, %arg24: memref<102x1xf32, #tpu.memory_space<vmem>>, %arg25: memref<50x102xf32, #tpu.memory_space<vmem>>, %arg26: memref<50x1xf32, #tpu.memory_space<vmem>>, %arg27: memref<24x50xf32, #tpu.memory_space<vmem>>, %arg28: memref<24x1xf32, #tpu.memory_space<vmem>>, %arg29: memref<6x24xf32, #tpu.memory_space<vmem>>, %arg30: memref<6x1xf32, #tpu.memory_space<vmem>>, %arg31: memref<2x6xf32, #tpu.memory_space<vmem>>, %arg32: memref<2x1xf32, #tpu.memory_space<vmem>>, %arg33: memref<2x1xf32, #tpu.memory_space<vmem>>, %arg34: memref<18x256xf32, #tpu.memory_space<vmem>>, %arg35: memref<72x256xf32, #tpu.memory_space<vmem>>, %arg36: memref<72x256xf32, #tpu.memory_space<vmem>>) attributes {dimension_semantics = [], scalar_prefetch = 0 : i64, scratch_operands = 3 : i64, tpu.core_type = #tpu.core_type<tc>} {
    %c0 = arith.constant 0 : index
    %c0_0 = arith.constant 0 : index
    %0 = vector.load %arg1[%c0, %c0_0] : memref<9x256xf32, #tpu.memory_space<vmem>>, vector<9x256xf32>
    %c0_1 = arith.constant 0 : index
    %c0_2 = arith.constant 0 : index
    %1 = vector.load %arg2[%c0_1, %c0_2] : memref<32x18xf32, #tpu.memory_space<vmem>>, vector<32x18xf32>
    %c0_3 = arith.constant 0 : index
    %c0_4 = arith.constant 0 : index
    %2 = vector.load %arg3[%c0_3, %c0_4] : memref<32x72xf32, #tpu.memory_space<vmem>>, vector<32x72xf32>
    %c0_5 = arith.constant 0 : index
    %c0_6 = arith.constant 0 : index
    %3 = vector.load %arg4[%c0_5, %c0_6] : memref<32x1xf32, #tpu.memory_space<vmem>>, vector<32x1xf32>
    %c0_7 = arith.constant 0 : index
    %c0_8 = arith.constant 0 : index
    %4 = vector.load %arg5[%c0_7, %c0_8] : memref<32x72xf32, #tpu.memory_space<vmem>>, vector<32x72xf32>
    %c0_9 = arith.constant 0 : index
    %c0_10 = arith.constant 0 : index
    %5 = vector.load %arg6[%c0_9, %c0_10] : memref<32x72xf32, #tpu.memory_space<vmem>>, vector<32x72xf32>
    %c0_11 = arith.constant 0 : index
    %c0_12 = arith.constant 0 : index
    %6 = vector.load %arg7[%c0_11, %c0_12] : memref<32x1xf32, #tpu.memory_space<vmem>>, vector<32x1xf32>
    %cst = arith.constant 1.000000e-01 : f32
    %7 = vector.broadcast %cst : f32 to vector<8x256xf32>
    %cst_13 = arith.constant 1.000000e-01 : f32
    %8 = vector.broadcast %cst_13 : f32 to vector<8x256xf32>
    %cst_14 = arith.constant 1.000000e-01 : f32
    %9 = vector.broadcast %cst_14 : f32 to vector<8x256xf32>
    %cst_15 = arith.constant 1.000000e-01 : f32
    %10 = vector.broadcast %cst_15 : f32 to vector<8x256xf32>
    %c17_i32 = arith.constant 17 : i32
    %11 = tpu.dynamic_rotate %7 by %c17_i32 dim 1 : vector<8x256xf32>, i32 -> vector<8x256xf32>
    %12 = vector.extract_strided_slice %0 {offsets = [0, 0], sizes = [1, 256], strides = [1, 1]} : vector<9x256xf32> to vector<1x256xf32>
    %13 = vector.broadcast %12 : vector<1x256xf32> to vector<8x256xf32>
    %14 = arith.mulf %11, %13 : vector<8x256xf32>
    %c0_16 = arith.constant 0 : index
    %c0_17 = arith.constant 0 : index
    %15 = vector.load %arg35[%c0_16, %c0_17] : memref<72x256xf32, #tpu.memory_space<vmem>>, vector<8x256xf32>
    tpu.vector_store %arg35[%c0_16, %c0_17], %14 {strides = array<i32>} : memref<72x256xf32, #tpu.memory_space<vmem>>, vector<8x256xf32>,
    %c16_i32 = arith.constant 16 : i32
    %16 = tpu.dynamic_rotate %7 by %c16_i32 dim 1 : vector<8x256xf32>, i32 -> vector<8x256xf32>
    %17 = vector.extract_strided_slice %0 {offsets = [1, 0], sizes = [1, 256], strides = [1, 1]} : vector<9x256xf32> to vector<1x256xf32>
    %18 = vector.broadcast %17 : vector<1x256xf32> to vector<8x256xf32>
    %19 = arith.mulf %16, %18 : vector<8x256xf32>
    %c8 = arith.constant 8 : index
    %c0_18 = arith.constant 0 : index
    %20 = vector.load %arg35[%c8, %c0_18] : memref<72x256xf32, #tpu.memory_space<vmem>>, vector<8x256xf32>
    tpu.vector_store %arg35[%c8, %c0_18], %19 {strides = array<i32>} : memref<72x256xf32, #tpu.memory_space<vmem>>, vector<8x256xf32>,
    %c15_i32 = arith.constant 15 : i32
    %21 = tpu.dynamic_rotate %7 by %c15_i32 dim 1 : vector<8x256xf32>, i32 -> vector<8x256xf32>
    %22 = vector.extract_strided_slice %0 {offsets = [2, 0], sizes = [1, 256], strides = [1, 1]} : vector<9x256xf32> to vector<1x256xf32>
    %23 = vector.broadcast %22 : vector<1x256xf32> to vector<8x256xf32>
    %24 = arith.mulf %21, %23 : vector<8x256xf32>
    %c16 = arith.constant 16 : index
    %c0_19 = arith.constant 0 : index
    %25 = vector.load %arg35[%c16, %c0_19] : memref<72x256xf32, #tpu.memory_space<vmem>>, vector<8x256xf32>
    tpu.vector_store %arg35[%c16, %c0_19], %24 {strides = array<i32>} : memref<72x256xf32, #tpu.memory_space<vmem>>, vector<8x256xf32>,
    %c1_i32 = arith.constant 1 : i32
    %26 = tpu.dynamic_rotate %7 by %c1_i32 dim 1 : vector<8x256xf32>, i32 -> vector<8x256xf32>
    %27 = vector.extract_strided_slice %0 {offsets = [3, 0], sizes = [1, 256], strides = [1, 1]} : vector<9x256xf32> to vector<1x256xf32>
    %28 = vector.broadcast %27 : vector<1x256xf32> to vector<8x256xf32>
    %29 = arith.mulf %26, %28 : vector<8x256xf32>
    %c24 = arith.constant 24 : index
    %c0_20 = arith.constant 0 : index
    %30 = vector.load %arg35[%c24, %c0_20] : memref<72x256xf32, #tpu.memory_space<vmem>>, vector<8x256xf32>
    tpu.vector_store %arg35[%c24, %c0_20], %29 {strides = array<i32>} : memref<72x256xf32, #tpu.memory_space<vmem>>, vector<8x256xf32>,
    %c32 = arith.constant 32 : index
    %c0_21 = arith.constant 0 : index
    %31 = vector.load %arg35[%c32, %c0_21] : memref<72x256xf32, #tpu.memory_space<vmem>>, vector<8x256xf32>
    tpu.vector_store %arg35[%c32, %c0_21], %7 {strides = array<i32>} : memref<72x256xf32, #tpu.memory_space<vmem>>, vector<8x256xf32>,
    %c255_i32 = arith.constant 255 : i32
    %32 = tpu.dynamic_rotate %7 by %c255_i32 dim 1 : vector<8x256xf32>, i32 -> vector<8x256xf32>
    %33 = vector.extract_strided_slice %0 {offsets = [5, 0], sizes = [1, 256], strides = [1, 1]} : vector<9x256xf32> to vector<1x256xf32>
    %34 = vector.broadcast %33 : vector<1x256xf32> to vector<8x256xf32>
    %35 = arith.mulf %32, %34 : vector<8x256xf32>
    %c40 = arith.constant 40 : index
    %c0_22 = arith.constant 0 : index
    %36 = vector.load %arg35[%c40, %c0_22] : memref<72x256xf32, #tpu.memory_space<vmem>>, vector<8x256xf32>
    tpu.vector_store %arg35[%c40, %c0_22], %35 {strides = array<i32>} : memref<72x256xf32, #tpu.memory_space<vmem>>, vector<8x256xf32>,
    %c241_i32 = arith.constant 241 : i32
    %37 = tpu.dynamic_rotate %7 by %c241_i32 dim 1 : vector<8x256xf32>, i32 -> vector<8x256xf32>
    %38 = vector.extract_strided_slice %0 {offsets = [6, 0], sizes = [1, 256], strides = [1, 1]} : vector<9x256xf32> to vector<1x256xf32>
    %39 = vector.broadcast %38 : vector<1x256xf32> to vector<8x256xf32>
    %40 = arith.mulf %37, %39 : vector<8x256xf32>
    %c48 = arith.constant 48 : index
    %c0_23 = arith.constant 0 : index
    %41 = vector.load %arg35[%c48, %c0_23] : memref<72x256xf32, #tpu.memory_space<vmem>>, vector<8x256xf32>
    tpu.vector_store %arg35[%c48, %c0_23], %40 {strides = array<i32>} : memref<72x256xf32, #tpu.memory_space<vmem>>, vector<8x256xf32>,
    %c240_i32 = arith.constant 240 : i32
    %42 = tpu.dynamic_rotate %7 by %c240_i32 dim 1 : vector<8x256xf32>, i32 -> vector<8x256xf32>
    %43 = vector.extract_strided_slice %0 {offsets = [7, 0], sizes = [1, 256], strides = [1, 1]} : vector<9x256xf32> to vector<1x256xf32>
    %44 = vector.broadcast %43 : vector<1x256xf32> to vector<8x256xf32>
    %45 = arith.mulf %42, %44 : vector<8x256xf32>
    %c56 = arith.constant 56 : index
    %c0_24 = arith.constant 0 : index
    %46 = vector.load %arg35[%c56, %c0_24] : memref<72x256xf32, #tpu.memory_space<vmem>>, vector<8x256xf32>
    tpu.vector_store %arg35[%c56, %c0_24], %45 {strides = array<i32>} : memref<72x256xf32, #tpu.memory_space<vmem>>, vector<8x256xf32>,
    %c239_i32 = arith.constant 239 : i32
    %47 = tpu.dynamic_rotate %7 by %c239_i32 dim 1 : vector<8x256xf32>, i32 -> vector<8x256xf32>
    %48 = vector.extract_strided_slice %0 {offsets = [8, 0], sizes = [1, 256], strides = [1, 1]} : vector<9x256xf32> to vector<1x256xf32>
    %49 = vector.broadcast %48 : vector<1x256xf32> to vector<8x256xf32>
    %50 = arith.mulf %47, %49 : vector<8x256xf32>
    %c64 = arith.constant 64 : index
    %c0_25 = arith.constant 0 : index
    %51 = vector.load %arg35[%c64, %c0_25] : memref<72x256xf32, #tpu.memory_space<vmem>>, vector<8x256xf32>
    tpu.vector_store %arg35[%c64, %c0_25], %50 {strides = array<i32>} : memref<72x256xf32, #tpu.memory_space<vmem>>, vector<8x256xf32>,
    %c0_26 = arith.constant 0 : index
    %c0_27 = arith.constant 0 : index
    %52 = vector.load %arg35[%c0_26, %c0_27] : memref<72x256xf32, #tpu.memory_space<vmem>>, vector<72x256xf32>
    %c17_i32_28 = arith.constant 17 : i32
    %53 = tpu.dynamic_rotate %9 by %c17_i32_28 dim 1 : vector<8x256xf32>, i32 -> vector<8x256xf32>
    %54 = vector.extract_strided_slice %0 {offsets = [0, 0], sizes = [1, 256], strides = [1, 1]} : vector<9x256xf32> to vector<1x256xf32>
    %55 = vector.broadcast %54 : vector<1x256xf32> to vector<8x256xf32>
    %56 = arith.mulf %53, %55 : vector<8x256xf32>
    %c0_29 = arith.constant 0 : index
    %c0_30 = arith.constant 0 : index
    %57 = vector.load %arg36[%c0_29, %c0_30] : memref<72x256xf32, #tpu.memory_space<vmem>>, vector<8x256xf32>
    tpu.vector_store %arg36[%c0_29, %c0_30], %56 {strides = array<i32>} : memref<72x256xf32, #tpu.memory_space<vmem>>, vector<8x256xf32>,
    %c16_i32_31 = arith.constant 16 : i32
    %58 = tpu.dynamic_rotate %9 by %c16_i32_31 dim 1 : vector<8x256xf32>, i32 -> vector<8x256xf32>
    %59 = vector.extract_strided_slice %0 {offsets = [1, 0], sizes = [1, 256], strides = [1, 1]} : vector<9x256xf32> to vector<1x256xf32>
    %60 = vector.broadcast %59 : vector<1x256xf32> to vector<8x256xf32>
    %61 = arith.mulf %58, %60 : vector<8x256xf32>
    %c8_32 = arith.constant 8 : index
    %c0_33 = arith.constant 0 : index
    %62 = vector.load %arg36[%c8_32, %c0_33] : memref<72x256xf32, #tpu.memory_space<vmem>>, vector<8x256xf32>
    tpu.vector_store %arg36[%c8_32, %c0_33], %61 {strides = array<i32>} : memref<72x256xf32, #tpu.memory_space<vmem>>, vector<8x256xf32>,
    %c15_i32_34 = arith.constant 15 : i32
    %63 = tpu.dynamic_rotate %9 by %c15_i32_34 dim 1 : vector<8x256xf32>, i32 -> vector<8x256xf32>
    %64 = vector.extract_strided_slice %0 {offsets = [2, 0], sizes = [1, 256], strides = [1, 1]} : vector<9x256xf32> to vector<1x256xf32>
    %65 = vector.broadcast %64 : vector<1x256xf32> to vector<8x256xf32>
    %66 = arith.mulf %63, %65 : vector<8x256xf32>
    %c16_35 = arith.constant 16 : index
    %c0_36 = arith.constant 0 : index
    %67 = vector.load %arg36[%c16_35, %c0_36] : memref<72x256xf32, #tpu.memory_space<vmem>>, vector<8x256xf32>
    tpu.vector_store %arg36[%c16_35, %c0_36], %66 {strides = array<i32>} : memref<72x256xf32, #tpu.memory_space<vmem>>, vector<8x256xf32>,
    %c1_i32_37 = arith.constant 1 : i32
    %68 = tpu.dynamic_rotate %9 by %c1_i32_37 dim 1 : vector<8x256xf32>, i32 -> vector<8x256xf32>
    %69 = vector.extract_strided_slice %0 {offsets = [3, 0], sizes = [1, 256], strides = [1, 1]} : vector<9x256xf32> to vector<1x256xf32>
    %70 = vector.broadcast %69 : vector<1x256xf32> to vector<8x256xf32>
    %71 = arith.mulf %68, %70 : vector<8x256xf32>
    %c24_38 = arith.constant 24 : index
    %c0_39 = arith.constant 0 : index
    %72 = vector.load %arg36[%c24_38, %c0_39] : memref<72x256xf32, #tpu.memory_space<vmem>>, vector<8x256xf32>
    tpu.vector_store %arg36[%c24_38, %c0_39], %71 {strides = array<i32>} : memref<72x256xf32, #tpu.memory_space<vmem>>, vector<8x256xf32>,
    %c32_40 = arith.constant 32 : index
    %c0_41 = arith.constant 0 : index
    %73 = vector.load %arg36[%c32_40, %c0_41] : memref<72x256xf32, #tpu.memory_space<vmem>>, vector<8x256xf32>
    tpu.vector_store %arg36[%c32_40, %c0_41], %9 {strides = array<i32>} : memref<72x256xf32, #tpu.memory_space<vmem>>, vector<8x256xf32>,
    %c255_i32_42 = arith.constant 255 : i32
    %74 = tpu.dynamic_rotate %9 by %c255_i32_42 dim 1 : vector<8x256xf32>, i32 -> vector<8x256xf32>
    %75 = vector.extract_strided_slice %0 {offsets = [5, 0], sizes = [1, 256], strides = [1, 1]} : vector<9x256xf32> to vector<1x256xf32>
    %76 = vector.broadcast %75 : vector<1x256xf32> to vector<8x256xf32>
    %77 = arith.mulf %74, %76 : vector<8x256xf32>
    %c40_43 = arith.constant 40 : index
    %c0_44 = arith.constant 0 : index
    %78 = vector.load %arg36[%c40_43, %c0_44] : memref<72x256xf32, #tpu.memory_space<vmem>>, vector<8x256xf32>
    tpu.vector_store %arg36[%c40_43, %c0_44], %77 {strides = array<i32>} : memref<72x256xf32, #tpu.memory_space<vmem>>, vector<8x256xf32>,
    %c241_i32_45 = arith.constant 241 : i32
    %79 = tpu.dynamic_rotate %9 by %c241_i32_45 dim 1 : vector<8x256xf32>, i32 -> vector<8x256xf32>
    %80 = vector.extract_strided_slice %0 {offsets = [6, 0], sizes = [1, 256], strides = [1, 1]} : vector<9x256xf32> to vector<1x256xf32>
    %81 = vector.broadcast %80 : vector<1x256xf32> to vector<8x256xf32>
    %82 = arith.mulf %79, %81 : vector<8x256xf32>
    %c48_46 = arith.constant 48 : index
    %c0_47 = arith.constant 0 : index
    %83 = vector.load %arg36[%c48_46, %c0_47] : memref<72x256xf32, #tpu.memory_space<vmem>>, vector<8x256xf32>
    tpu.vector_store %arg36[%c48_46, %c0_47], %82 {strides = array<i32>} : memref<72x256xf32, #tpu.memory_space<vmem>>, vector<8x256xf32>,
    %c240_i32_48 = arith.constant 240 : i32
    %84 = tpu.dynamic_rotate %9 by %c240_i32_48 dim 1 : vector<8x256xf32>, i32 -> vector<8x256xf32>
    %85 = vector.extract_strided_slice %0 {offsets = [7, 0], sizes = [1, 256], strides = [1, 1]} : vector<9x256xf32> to vector<1x256xf32>
    %86 = vector.broadcast %85 : vector<1x256xf32> to vector<8x256xf32>
    %87 = arith.mulf %84, %86 : vector<8x256xf32>
    %c56_49 = arith.constant 56 : index
    %c0_50 = arith.constant 0 : index
    %88 = vector.load %arg36[%c56_49, %c0_50] : memref<72x256xf32, #tpu.memory_space<vmem>>, vector<8x256xf32>
    tpu.vector_store %arg36[%c56_49, %c0_50], %87 {strides = array<i32>} : memref<72x256xf32, #tpu.memory_space<vmem>>, vector<8x256xf32>,
    %c239_i32_51 = arith.constant 239 : i32
    %89 = tpu.dynamic_rotate %9 by %c239_i32_51 dim 1 : vector<8x256xf32>, i32 -> vector<8x256xf32>
    %90 = vector.extract_strided_slice %0 {offsets = [8, 0], sizes = [1, 256], strides = [1, 1]} : vector<9x256xf32> to vector<1x256xf32>
    %91 = vector.broadcast %90 : vector<1x256xf32> to vector<8x256xf32>
    %92 = arith.mulf %89, %91 : vector<8x256xf32>
    %c64_52 = arith.constant 64 : index
    %c0_53 = arith.constant 0 : index
    %93 = vector.load %arg36[%c64_52, %c0_53] : memref<72x256xf32, #tpu.memory_space<vmem>>, vector<8x256xf32>
    tpu.vector_store %arg36[%c64_52, %c0_53], %92 {strides = array<i32>} : memref<72x256xf32, #tpu.memory_space<vmem>>, vector<8x256xf32>,
    %c0_54 = arith.constant 0 : index
    %c0_55 = arith.constant 0 : index
    %94 = vector.load %arg36[%c0_54, %c0_55] : memref<72x256xf32, #tpu.memory_space<vmem>>, vector<72x256xf32>
    %c0_56 = arith.constant 0 : index
    %c0_57 = arith.constant 0 : index
    %95 = vector.load %arg0[%c0_56, %c0_57] : memref<2x1024xf32, #tpu.memory_space<vmem>>, vector<2x256xf32>
    %c17_i32_58 = arith.constant 17 : i32
    %96 = tpu.dynamic_rotate %95 by %c17_i32_58 dim 1 : vector<2x256xf32>, i32 -> vector<2x256xf32>
    %97 = vector.extract_strided_slice %0 {offsets = [0, 0], sizes = [1, 256], strides = [1, 1]} : vector<9x256xf32> to vector<1x256xf32>
    %98 = vector.broadcast %97 : vector<1x256xf32> to vector<2x256xf32>
    %99 = arith.mulf %96, %98 : vector<2x256xf32>
    %c0_59 = arith.constant 0 : index
    %c0_60 = arith.constant 0 : index
    %100 = vector.load %arg34[%c0_59, %c0_60] : memref<18x256xf32, #tpu.memory_space<vmem>>, vector<2x256xf32>
    tpu.vector_store %arg34[%c0_59, %c0_60], %99 {strides = array<i32>} : memref<18x256xf32, #tpu.memory_space<vmem>>, vector<2x256xf32>,
    %c16_i32_61 = arith.constant 16 : i32
    %101 = tpu.dynamic_rotate %95 by %c16_i32_61 dim 1 : vector<2x256xf32>, i32 -> vector<2x256xf32>
    %102 = vector.extract_strided_slice %0 {offsets = [1, 0], sizes = [1, 256], strides = [1, 1]} : vector<9x256xf32> to vector<1x256xf32>
    %103 = vector.broadcast %102 : vector<1x256xf32> to vector<2x256xf32>
    %104 = arith.mulf %101, %103 : vector<2x256xf32>
    %c2 = arith.constant 2 : index
    %c0_62 = arith.constant 0 : index
    %105 = vector.load %arg34[%c2, %c0_62] : memref<18x256xf32, #tpu.memory_space<vmem>>, vector<2x256xf32>
    tpu.vector_store %arg34[%c2, %c0_62], %104 {strides = array<i32>} : memref<18x256xf32, #tpu.memory_space<vmem>>, vector<2x256xf32>,
    %c15_i32_63 = arith.constant 15 : i32
    %106 = tpu.dynamic_rotate %95 by %c15_i32_63 dim 1 : vector<2x256xf32>, i32 -> vector<2x256xf32>
    %107 = vector.extract_strided_slice %0 {offsets = [2, 0], sizes = [1, 256], strides = [1, 1]} : vector<9x256xf32> to vector<1x256xf32>
    %108 = vector.broadcast %107 : vector<1x256xf32> to vector<2x256xf32>
    %109 = arith.mulf %106, %108 : vector<2x256xf32>
    %c4 = arith.constant 4 : index
    %c0_64 = arith.constant 0 : index
    %110 = vector.load %arg34[%c4, %c0_64] : memref<18x256xf32, #tpu.memory_space<vmem>>, vector<2x256xf32>
    tpu.vector_store %arg34[%c4, %c0_64], %109 {strides = array<i32>} : memref<18x256xf32, #tpu.memory_space<vmem>>, vector<2x256xf32>,
    %c1_i32_65 = arith.constant 1 : i32
    %111 = tpu.dynamic_rotate %95 by %c1_i32_65 dim 1 : vector<2x256xf32>, i32 -> vector<2x256xf32>
    %112 = vector.extract_strided_slice %0 {offsets = [3, 0], sizes = [1, 256], strides = [1, 1]} : vector<9x256xf32> to vector<1x256xf32>
    %113 = vector.broadcast %112 : vector<1x256xf32> to vector<2x256xf32>
    %114 = arith.mulf %111, %113 : vector<2x256xf32>
    %c6 = arith.constant 6 : index
    %c0_66 = arith.constant 0 : index
    %115 = vector.load %arg34[%c6, %c0_66] : memref<18x256xf32, #tpu.memory_space<vmem>>, vector<2x256xf32>
    tpu.vector_store %arg34[%c6, %c0_66], %114 {strides = array<i32>} : memref<18x256xf32, #tpu.memory_space<vmem>>, vector<2x256xf32>,
    %c8_67 = arith.constant 8 : index
    %c0_68 = arith.constant 0 : index
    %116 = vector.load %arg34[%c8_67, %c0_68] : memref<18x256xf32, #tpu.memory_space<vmem>>, vector<2x256xf32>
    tpu.vector_store %arg34[%c8_67, %c0_68], %95 {strides = array<i32>} : memref<18x256xf32, #tpu.memory_space<vmem>>, vector<2x256xf32>,
    %c255_i32_69 = arith.constant 255 : i32
    %117 = tpu.dynamic_rotate %95 by %c255_i32_69 dim 1 : vector<2x256xf32>, i32 -> vector<2x256xf32>
    %118 = vector.extract_strided_slice %0 {offsets = [5, 0], sizes = [1, 256], strides = [1, 1]} : vector<9x256xf32> to vector<1x256xf32>
    %119 = vector.broadcast %118 : vector<1x256xf32> to vector<2x256xf32>
    %120 = arith.mulf %117, %119 : vector<2x256xf32>
    %c10 = arith.constant 10 : index
    %c0_70 = arith.constant 0 : index
    %121 = vector.load %arg34[%c10, %c0_70] : memref<18x256xf32, #tpu.memory_space<vmem>>, vector<2x256xf32>
    tpu.vector_store %arg34[%c10, %c0_70], %120 {strides = array<i32>} : memref<18x256xf32, #tpu.memory_space<vmem>>, vector<2x256xf32>,
    %c241_i32_71 = arith.constant 241 : i32
    %122 = tpu.dynamic_rotate %95 by %c241_i32_71 dim 1 : vector<2x256xf32>, i32 -> vector<2x256xf32>
    %123 = vector.extract_strided_slice %0 {offsets = [6, 0], sizes = [1, 256], strides = [1, 1]} : vector<9x256xf32> to vector<1x256xf32>
    %124 = vector.broadcast %123 : vector<1x256xf32> to vector<2x256xf32>
    %125 = arith.mulf %122, %124 : vector<2x256xf32>
    %c12 = arith.constant 12 : index
    %c0_72 = arith.constant 0 : index
    %126 = vector.load %arg34[%c12, %c0_72] : memref<18x256xf32, #tpu.memory_space<vmem>>, vector<2x256xf32>
    tpu.vector_store %arg34[%c12, %c0_72], %125 {strides = array<i32>} : memref<18x256xf32, #tpu.memory_space<vmem>>, vector<2x256xf32>,
    %c240_i32_73 = arith.constant 240 : i32
    %127 = tpu.dynamic_rotate %95 by %c240_i32_73 dim 1 : vector<2x256xf32>, i32 -> vector<2x256xf32>
    %128 = vector.extract_strided_slice %0 {offsets = [7, 0], sizes = [1, 256], strides = [1, 1]} : vector<9x256xf32> to vector<1x256xf32>
    %129 = vector.broadcast %128 : vector<1x256xf32> to vector<2x256xf32>
    %130 = arith.mulf %127, %129 : vector<2x256xf32>
    %c14 = arith.constant 14 : index
    %c0_74 = arith.constant 0 : index
    %131 = vector.load %arg34[%c14, %c0_74] : memref<18x256xf32, #tpu.memory_space<vmem>>, vector<2x256xf32>
    tpu.vector_store %arg34[%c14, %c0_74], %130 {strides = array<i32>} : memref<18x256xf32, #tpu.memory_space<vmem>>, vector<2x256xf32>,
    %c239_i32_75 = arith.constant 239 : i32
    %132 = tpu.dynamic_rotate %95 by %c239_i32_75 dim 1 : vector<2x256xf32>, i32 -> vector<2x256xf32>
    %133 = vector.extract_strided_slice %0 {offsets = [8, 0], sizes = [1, 256], strides = [1, 1]} : vector<9x256xf32> to vector<1x256xf32>
    %134 = vector.broadcast %133 : vector<1x256xf32> to vector<2x256xf32>
    %135 = arith.mulf %132, %134 : vector<2x256xf32>
    %c16_76 = arith.constant 16 : index
    %c0_77 = arith.constant 0 : index
    %136 = vector.load %arg34[%c16_76, %c0_77] : memref<18x256xf32, #tpu.memory_space<vmem>>, vector<2x256xf32>
    tpu.vector_store %arg34[%c16_76, %c0_77], %135 {strides = array<i32>} : memref<18x256xf32, #tpu.memory_space<vmem>>, vector<2x256xf32>,
    %c0_78 = arith.constant 0 : index
    %c0_79 = arith.constant 0 : index
    %137 = vector.load %arg34[%c0_78, %c0_79] : memref<18x256xf32, #tpu.memory_space<vmem>>, vector<18x256xf32>
    %cst_80 = arith.constant dense<0.000000e+00> : vector<32x256xf32>
    %138 = tpu.matmul %1, %137, %cst_80 {dimension_numbers = #tpu.dot_dimension_numbers<[1], [0], [0], [1], [0, 0, 1, 1], [], []>} : vector<32x18xf32>, vector<18x256xf32>, vector<32x256xf32> -> vector<32x256xf32>
    %cst_81 = arith.constant dense<0.000000e+00> : vector<32x256xf32>
    %139 = tpu.matmul %2, %52, %cst_81 {dimension_numbers = #tpu.dot_dimension_numbers<[1], [0], [0], [1], [0, 0, 1, 1], [], []>} : vector<32x72xf32>, vector<72x256xf32>, vector<32x256xf32> -> vector<32x256xf32>
    %140 = arith.addf %138, %139 : vector<32x256xf32>
    %141 = vector.broadcast %3 : vector<32x1xf32> to vector<32x256xf32>
    %142 = arith.addf %140, %141 : vector<32x256xf32>
    %143 = vector.extract_strided_slice %142 {offsets = [0, 0], sizes = [8, 256], strides = [1, 1]} : vector<32x256xf32> to vector<8x256xf32>
    %144 = arith.negf %143 : vector<8x256xf32>
    %145 = math.exp %144 : vector<8x256xf32>
    %cst_82 = arith.constant 1.000000e+00 : f32
    %146 = vector.broadcast %cst_82 : f32 to vector<8x256xf32>
    %147 = arith.addf %146, %145 : vector<8x256xf32>
    %148 = arith.divf %146, %147 : vector<8x256xf32>
    %149 = vector.extract_strided_slice %142 {offsets = [8, 0], sizes = [8, 256], strides = [1, 1]} : vector<32x256xf32> to vector<8x256xf32>
    %150 = arith.negf %149 : vector<8x256xf32>
    %151 = math.exp %150 : vector<8x256xf32>
    %cst_83 = arith.constant 1.000000e+00 : f32
    %152 = vector.broadcast %cst_83 : f32 to vector<8x256xf32>
    %153 = arith.addf %152, %151 : vector<8x256xf32>
    %154 = arith.divf %152, %153 : vector<8x256xf32>
    %155 = vector.extract_strided_slice %142 {offsets = [16, 0], sizes = [8, 256], strides = [1, 1]} : vector<32x256xf32> to vector<8x256xf32>
    %156 = arith.negf %155 : vector<8x256xf32>
    %157 = math.exp %156 : vector<8x256xf32>
    %cst_84 = arith.constant 1.000000e+00 : f32
    %158 = vector.broadcast %cst_84 : f32 to vector<8x256xf32>
    %159 = arith.addf %158, %157 : vector<8x256xf32>
    %160 = arith.divf %158, %159 : vector<8x256xf32>
    %161 = vector.extract_strided_slice %142 {offsets = [24, 0], sizes = [8, 256], strides = [1, 1]} : vector<32x256xf32> to vector<8x256xf32>
    %162 = math.tanh %161 : vector<8x256xf32>
    %163 = arith.mulf %154, %8 : vector<8x256xf32>
    %164 = arith.mulf %148, %162 : vector<8x256xf32>
    %165 = arith.addf %163, %164 : vector<8x256xf32>
    %166 = math.tanh %165 : vector<8x256xf32>
    %167 = arith.mulf %160, %166 : vector<8x256xf32>
    %c17_i32_85 = arith.constant 17 : i32
    %168 = tpu.dynamic_rotate %167 by %c17_i32_85 dim 1 : vector<8x256xf32>, i32 -> vector<8x256xf32>
    %169 = vector.extract_strided_slice %0 {offsets = [0, 0], sizes = [1, 256], strides = [1, 1]} : vector<9x256xf32> to vector<1x256xf32>
    %170 = vector.broadcast %169 : vector<1x256xf32> to vector<8x256xf32>
    %171 = arith.mulf %168, %170 : vector<8x256xf32>
    %c0_86 = arith.constant 0 : index
    %c0_87 = arith.constant 0 : index
    %172 = vector.load %arg35[%c0_86, %c0_87] : memref<72x256xf32, #tpu.memory_space<vmem>>, vector<8x256xf32>
    tpu.vector_store %arg35[%c0_86, %c0_87], %171 {strides = array<i32>} : memref<72x256xf32, #tpu.memory_space<vmem>>, vector<8x256xf32>,
    %c16_i32_88 = arith.constant 16 : i32
    %173 = tpu.dynamic_rotate %167 by %c16_i32_88 dim 1 : vector<8x256xf32>, i32 -> vector<8x256xf32>
    %174 = vector.extract_strided_slice %0 {offsets = [1, 0], sizes = [1, 256], strides = [1, 1]} : vector<9x256xf32> to vector<1x256xf32>
    %175 = vector.broadcast %174 : vector<1x256xf32> to vector<8x256xf32>
    %176 = arith.mulf %173, %175 : vector<8x256xf32>
    %c8_89 = arith.constant 8 : index
    %c0_90 = arith.constant 0 : index
    %177 = vector.load %arg35[%c8_89, %c0_90] : memref<72x256xf32, #tpu.memory_space<vmem>>, vector<8x256xf32>
    tpu.vector_store %arg35[%c8_89, %c0_90], %176 {strides = array<i32>} : memref<72x256xf32, #tpu.memory_space<vmem>>, vector<8x256xf32>,
    %c15_i32_91 = arith.constant 15 : i32
    %178 = tpu.dynamic_rotate %167 by %c15_i32_91 dim 1 : vector<8x256xf32>, i32 -> vector<8x256xf32>
    %179 = vector.extract_strided_slice %0 {offsets = [2, 0], sizes = [1, 256], strides = [1, 1]} : vector<9x256xf32> to vector<1x256xf32>
    %180 = vector.broadcast %179 : vector<1x256xf32> to vector<8x256xf32>
    %181 = arith.mulf %178, %180 : vector<8x256xf32>
    %c16_92 = arith.constant 16 : index
    %c0_93 = arith.constant 0 : index
    %182 = vector.load %arg35[%c16_92, %c0_93] : memref<72x256xf32, #tpu.memory_space<vmem>>, vector<8x256xf32>
    tpu.vector_store %arg35[%c16_92, %c0_93], %181 {strides = array<i32>} : memref<72x256xf32, #tpu.memory_space<vmem>>, vector<8x256xf32>,
    %c1_i32_94 = arith.constant 1 : i32
    %183 = tpu.dynamic_rotate %167 by %c1_i32_94 dim 1 : vector<8x256xf32>, i32 -> vector<8x256xf32>
    %184 = vector.extract_strided_slice %0 {offsets = [3, 0], sizes = [1, 256], strides = [1, 1]} : vector<9x256xf32> to vector<1x256xf32>
    %185 = vector.broadcast %184 : vector<1x256xf32> to vector<8x256xf32>
    %186 = arith.mulf %183, %185 : vector<8x256xf32>
    %c24_95 = arith.constant 24 : index
    %c0_96 = arith.constant 0 : index
    %187 = vector.load %arg35[%c24_95, %c0_96] : memref<72x256xf32, #tpu.memory_space<vmem>>, vector<8x256xf32>
    tpu.vector_store %arg35[%c24_95, %c0_96], %186 {strides = array<i32>} : memref<72x256xf32, #tpu.memory_space<vmem>>, vector<8x256xf32>,
    %c32_97 = arith.constant 32 : index
    %c0_98 = arith.constant 0 : index
    %188 = vector.load %arg35[%c32_97, %c0_98] : memref<72x256xf32, #tpu.memory_space<vmem>>, vector<8x256xf32>
    tpu.vector_store %arg35[%c32_97, %c0_98], %167 {strides = array<i32>} : memref<72x256xf32, #tpu.memory_space<vmem>>, vector<8x256xf32>,
    %c255_i32_99 = arith.constant 255 : i32
    %189 = tpu.dynamic_rotate %167 by %c255_i32_99 dim 1 : vector<8x256xf32>, i32 -> vector<8x256xf32>
    %190 = vector.extract_strided_slice %0 {offsets = [5, 0], sizes = [1, 256], strides = [1, 1]} : vector<9x256xf32> to vector<1x256xf32>
    %191 = vector.broadcast %190 : vector<1x256xf32> to vector<8x256xf32>
    %192 = arith.mulf %189, %191 : vector<8x256xf32>
    %c40_100 = arith.constant 40 : index
    %c0_101 = arith.constant 0 : index
    %193 = vector.load %arg35[%c40_100, %c0_101] : memref<72x256xf32, #tpu.memory_space<vmem>>, vector<8x256xf32>
    tpu.vector_store %arg35[%c40_100, %c0_101], %192 {strides = array<i32>} : memref<72x256xf32, #tpu.memory_space<vmem>>, vector<8x256xf32>,
    %c241_i32_102 = arith.constant 241 : i32
    %194 = tpu.dynamic_rotate %167 by %c241_i32_102 dim 1 : vector<8x256xf32>, i32 -> vector<8x256xf32>
    %195 = vector.extract_strided_slice %0 {offsets = [6, 0], sizes = [1, 256], strides = [1, 1]} : vector<9x256xf32> to vector<1x256xf32>
    %196 = vector.broadcast %195 : vector<1x256xf32> to vector<8x256xf32>
    %197 = arith.mulf %194, %196 : vector<8x256xf32>
    %c48_103 = arith.constant 48 : index
    %c0_104 = arith.constant 0 : index
    %198 = vector.load %arg35[%c48_103, %c0_104] : memref<72x256xf32, #tpu.memory_space<vmem>>, vector<8x256xf32>
    tpu.vector_store %arg35[%c48_103, %c0_104], %197 {strides = array<i32>} : memref<72x256xf32, #tpu.memory_space<vmem>>, vector<8x256xf32>,
    %c240_i32_105 = arith.constant 240 : i32
    %199 = tpu.dynamic_rotate %167 by %c240_i32_105 dim 1 : vector<8x256xf32>, i32 -> vector<8x256xf32>
    %200 = vector.extract_strided_slice %0 {offsets = [7, 0], sizes = [1, 256], strides = [1, 1]} : vector<9x256xf32> to vector<1x256xf32>
    %201 = vector.broadcast %200 : vector<1x256xf32> to vector<8x256xf32>
    %202 = arith.mulf %199, %201 : vector<8x256xf32>
    %c56_106 = arith.constant 56 : index
    %c0_107 = arith.constant 0 : index
    %203 = vector.load %arg35[%c56_106, %c0_107] : memref<72x256xf32, #tpu.memory_space<vmem>>, vector<8x256xf32>
    tpu.vector_store %arg35[%c56_106, %c0_107], %202 {strides = array<i32>} : memref<72x256xf32, #tpu.memory_space<vmem>>, vector<8x256xf32>,
    %c239_i32_108 = arith.constant 239 : i32
    %204 = tpu.dynamic_rotate %167 by %c239_i32_108 dim 1 : vector<8x256xf32>, i32 -> vector<8x256xf32>
    %205 = vector.extract_strided_slice %0 {offsets = [8, 0], sizes = [1, 256], strides = [1, 1]} : vector<9x256xf32> to vector<1x256xf32>
    %206 = vector.broadcast %205 : vector<1x256xf32> to vector<8x256xf32>
    %207 = arith.mulf %204, %206 : vector<8x256xf32>
    %c64_109 = arith.constant 64 : index
    %c0_110 = arith.constant 0 : index
    %208 = vector.load %arg35[%c64_109, %c0_110] : memref<72x256xf32, #tpu.memory_space<vmem>>, vector<8x256xf32>
    tpu.vector_store %arg35[%c64_109, %c0_110], %207 {strides = array<i32>} : memref<72x256xf32, #tpu.memory_space<vmem>>, vector<8x256xf32>,
    %c0_111 = arith.constant 0 : index
    %c0_112 = arith.constant 0 : index
    %209 = vector.load %arg35[%c0_111, %c0_112] : memref<72x256xf32, #tpu.memory_space<vmem>>, vector<72x256xf32>
    %cst_113 = arith.constant dense<0.000000e+00> : vector<32x256xf32>
    %210 = tpu.matmul %4, %209, %cst_113 {dimension_numbers = #tpu.dot_dimension_numbers<[1], [0], [0], [1], [0, 0, 1, 1], [], []>} : vector<32x72xf32>, vector<72x256xf32>, vector<32x256xf32> -> vector<32x256xf32>
    %cst_114 = arith.constant dense<0.000000e+00> : vector<32x256xf32>
    %211 = tpu.matmul %5, %94, %cst_114 {dimension_numbers = #tpu.dot_dimension_numbers<[1], [0], [0], [1], [0, 0, 1, 1], [], []>} : vector<32x72xf32>, vector<72x256xf32>, vector<32x256xf32> -> vector<32x256xf32>
    %212 = arith.addf %210, %211 : vector<32x256xf32>
    %213 = vector.broadcast %6 : vector<32x1xf32> to vector<32x256xf32>
    %214 = arith.addf %212, %213 : vector<32x256xf32>
    %215 = vector.extract_strided_slice %214 {offsets = [0, 0], sizes = [8, 256], strides = [1, 1]} : vector<32x256xf32> to vector<8x256xf32>
    %216 = arith.negf %215 : vector<8x256xf32>
    %217 = math.exp %216 : vector<8x256xf32>
    %cst_115 = arith.constant 1.000000e+00 : f32
    %218 = vector.broadcast %cst_115 : f32 to vector<8x256xf32>
    %219 = arith.addf %218, %217 : vector<8x256xf32>
    %220 = arith.divf %218, %219 : vector<8x256xf32>
    %221 = vector.extract_strided_slice %214 {offsets = [8, 0], sizes = [8, 256], strides = [1, 1]} : vector<32x256xf32> to vector<8x256xf32>
    %222 = arith.negf %221 : vector<8x256xf32>
    %223 = math.exp %222 : vector<8x256xf32>
    %cst_116 = arith.constant 1.000000e+00 : f32
    %224 = vector.broadcast %cst_116 : f32 to vector<8x256xf32>
    %225 = arith.addf %224, %223 : vector<8x256xf32>
    %226 = arith.divf %224, %225 : vector<8x256xf32>
    %227 = vector.extract_strided_slice %214 {offsets = [16, 0], sizes = [8, 256], strides = [1, 1]} : vector<32x256xf32> to vector<8x256xf32>
    %228 = arith.negf %227 : vector<8x256xf32>
    %229 = math.exp %228 : vector<8x256xf32>
    %cst_117 = arith.constant 1.000000e+00 : f32
    %230 = vector.broadcast %cst_117 : f32 to vector<8x256xf32>
    %231 = arith.addf %230, %229 : vector<8x256xf32>
    %232 = arith.divf %230, %231 : vector<8x256xf32>
    %233 = vector.extract_strided_slice %214 {offsets = [24, 0], sizes = [8, 256], strides = [1, 1]} : vector<32x256xf32> to vector<8x256xf32>
    %234 = math.tanh %233 : vector<8x256xf32>
    %235 = arith.mulf %226, %10 : vector<8x256xf32>
    %236 = arith.mulf %220, %234 : vector<8x256xf32>
    %237 = arith.addf %235, %236 : vector<8x256xf32>
    %238 = math.tanh %237 : vector<8x256xf32>
    %239 = arith.mulf %232, %238 : vector<8x256xf32>
    %c17_i32_118 = arith.constant 17 : i32
    %240 = tpu.dynamic_rotate %239 by %c17_i32_118 dim 1 : vector<8x256xf32>, i32 -> vector<8x256xf32>
    %241 = vector.extract_strided_slice %0 {offsets = [0, 0], sizes = [1, 256], strides = [1, 1]} : vector<9x256xf32> to vector<1x256xf32>
    %242 = vector.broadcast %241 : vector<1x256xf32> to vector<8x256xf32>
    %243 = arith.mulf %240, %242 : vector<8x256xf32>
    %c0_119 = arith.constant 0 : index
    %c0_120 = arith.constant 0 : index
    %244 = vector.load %arg36[%c0_119, %c0_120] : memref<72x256xf32, #tpu.memory_space<vmem>>, vector<8x256xf32>
    tpu.vector_store %arg36[%c0_119, %c0_120], %243 {strides = array<i32>} : memref<72x256xf32, #tpu.memory_space<vmem>>, vector<8x256xf32>,
    %c16_i32_121 = arith.constant 16 : i32
    %245 = tpu.dynamic_rotate %239 by %c16_i32_121 dim 1 : vector<8x256xf32>, i32 -> vector<8x256xf32>
    %246 = vector.extract_strided_slice %0 {offsets = [1, 0], sizes = [1, 256], strides = [1, 1]} : vector<9x256xf32> to vector<1x256xf32>
    %247 = vector.broadcast %246 : vector<1x256xf32> to vector<8x256xf32>
    %248 = arith.mulf %245, %247 : vector<8x256xf32>
    %c8_122 = arith.constant 8 : index
    %c0_123 = arith.constant 0 : index
    %249 = vector.load %arg36[%c8_122, %c0_123] : memref<72x256xf32, #tpu.memory_space<vmem>>, vector<8x256xf32>
    tpu.vector_store %arg36[%c8_122, %c0_123], %248 {strides = array<i32>} : memref<72x256xf32, #tpu.memory_space<vmem>>, vector<8x256xf32>,
    %c15_i32_124 = arith.constant 15 : i32
    %250 = tpu.dynamic_rotate %239 by %c15_i32_124 dim 1 : vector<8x256xf32>, i32 -> vector<8x256xf32>
    %251 = vector.extract_strided_slice %0 {offsets = [2, 0], sizes = [1, 256], strides = [1, 1]} : vector<9x256xf32> to vector<1x256xf32>
    %252 = vector.broadcast %251 : vector<1x256xf32> to vector<8x256xf32>
    %253 = arith.mulf %250, %252 : vector<8x256xf32>
    %c16_125 = arith.constant 16 : index
    %c0_126 = arith.constant 0 : index
    %254 = vector.load %arg36[%c16_125, %c0_126] : memref<72x256xf32, #tpu.memory_space<vmem>>, vector<8x256xf32>
    tpu.vector_store %arg36[%c16_125, %c0_126], %253 {strides = array<i32>} : memref<72x256xf32, #tpu.memory_space<vmem>>, vector<8x256xf32>,
    %c1_i32_127 = arith.constant 1 : i32
    %255 = tpu.dynamic_rotate %239 by %c1_i32_127 dim 1 : vector<8x256xf32>, i32 -> vector<8x256xf32>
    %256 = vector.extract_strided_slice %0 {offsets = [3, 0], sizes = [1, 256], strides = [1, 1]} : vector<9x256xf32> to vector<1x256xf32>
    %257 = vector.broadcast %256 : vector<1x256xf32> to vector<8x256xf32>
    %258 = arith.mulf %255, %257 : vector<8x256xf32>
    %c24_128 = arith.constant 24 : index
    %c0_129 = arith.constant 0 : index
    %259 = vector.load %arg36[%c24_128, %c0_129] : memref<72x256xf32, #tpu.memory_space<vmem>>, vector<8x256xf32>
    tpu.vector_store %arg36[%c24_128, %c0_129], %258 {strides = array<i32>} : memref<72x256xf32, #tpu.memory_space<vmem>>, vector<8x256xf32>,
    %c32_130 = arith.constant 32 : index
    %c0_131 = arith.constant 0 : index
    %260 = vector.load %arg36[%c32_130, %c0_131] : memref<72x256xf32, #tpu.memory_space<vmem>>, vector<8x256xf32>
    tpu.vector_store %arg36[%c32_130, %c0_131], %239 {strides = array<i32>} : memref<72x256xf32, #tpu.memory_space<vmem>>, vector<8x256xf32>,
    %c255_i32_132 = arith.constant 255 : i32
    %261 = tpu.dynamic_rotate %239 by %c255_i32_132 dim 1 : vector<8x256xf32>, i32 -> vector<8x256xf32>
    %262 = vector.extract_strided_slice %0 {offsets = [5, 0], sizes = [1, 256], strides = [1, 1]} : vector<9x256xf32> to vector<1x256xf32>
    %263 = vector.broadcast %262 : vector<1x256xf32> to vector<8x256xf32>
    %264 = arith.mulf %261, %263 : vector<8x256xf32>
    %c40_133 = arith.constant 40 : index
    %c0_134 = arith.constant 0 : index
    %265 = vector.load %arg36[%c40_133, %c0_134] : memref<72x256xf32, #tpu.memory_space<vmem>>, vector<8x256xf32>
    tpu.vector_store %arg36[%c40_133, %c0_134], %264 {strides = array<i32>} : memref<72x256xf32, #tpu.memory_space<vmem>>, vector<8x256xf32>,
    %c241_i32_135 = arith.constant 241 : i32
    %266 = tpu.dynamic_rotate %239 by %c241_i32_135 dim 1 : vector<8x256xf32>, i32 -> vector<8x256xf32>
    %267 = vector.extract_strided_slice %0 {offsets = [6, 0], sizes = [1, 256], strides = [1, 1]} : vector<9x256xf32> to vector<1x256xf32>
    %268 = vector.broadcast %267 : vector<1x256xf32> to vector<8x256xf32>
    %269 = arith.mulf %266, %268 : vector<8x256xf32>
    %c48_136 = arith.constant 48 : index
    %c0_137 = arith.constant 0 : index
    %270 = vector.load %arg36[%c48_136, %c0_137] : memref<72x256xf32, #tpu.memory_space<vmem>>, vector<8x256xf32>
    tpu.vector_store %arg36[%c48_136, %c0_137], %269 {strides = array<i32>} : memref<72x256xf32, #tpu.memory_space<vmem>>, vector<8x256xf32>,
    %c240_i32_138 = arith.constant 240 : i32
    %271 = tpu.dynamic_rotate %239 by %c240_i32_138 dim 1 : vector<8x256xf32>, i32 -> vector<8x256xf32>
    %272 = vector.extract_strided_slice %0 {offsets = [7, 0], sizes = [1, 256], strides = [1, 1]} : vector<9x256xf32> to vector<1x256xf32>
    %273 = vector.broadcast %272 : vector<1x256xf32> to vector<8x256xf32>
    %274 = arith.mulf %271, %273 : vector<8x256xf32>
    %c56_139 = arith.constant 56 : index
    %c0_140 = arith.constant 0 : index
    %275 = vector.load %arg36[%c56_139, %c0_140] : memref<72x256xf32, #tpu.memory_space<vmem>>, vector<8x256xf32>
    tpu.vector_store %arg36[%c56_139, %c0_140], %274 {strides = array<i32>} : memref<72x256xf32, #tpu.memory_space<vmem>>, vector<8x256xf32>,
    %c239_i32_141 = arith.constant 239 : i32
    %276 = tpu.dynamic_rotate %239 by %c239_i32_141 dim 1 : vector<8x256xf32>, i32 -> vector<8x256xf32>
    %277 = vector.extract_strided_slice %0 {offsets = [8, 0], sizes = [1, 256], strides = [1, 1]} : vector<9x256xf32> to vector<1x256xf32>
    %278 = vector.broadcast %277 : vector<1x256xf32> to vector<8x256xf32>
    %279 = arith.mulf %276, %278 : vector<8x256xf32>
    %c64_142 = arith.constant 64 : index
    %c0_143 = arith.constant 0 : index
    %280 = vector.load %arg36[%c64_142, %c0_143] : memref<72x256xf32, #tpu.memory_space<vmem>>, vector<8x256xf32>
    tpu.vector_store %arg36[%c64_142, %c0_143], %279 {strides = array<i32>} : memref<72x256xf32, #tpu.memory_space<vmem>>, vector<8x256xf32>,
    %c0_144 = arith.constant 0 : index
    %c0_145 = arith.constant 0 : index
    %281 = vector.load %arg36[%c0_144, %c0_145] : memref<72x256xf32, #tpu.memory_space<vmem>>, vector<72x256xf32>
    %c0_146 = arith.constant 0 : index
    %c256 = arith.constant 256 : index
    %282 = vector.load %arg0[%c0_146, %c256] : memref<2x1024xf32, #tpu.memory_space<vmem>>, vector<2x256xf32>
    %c17_i32_147 = arith.constant 17 : i32
    %283 = tpu.dynamic_rotate %282 by %c17_i32_147 dim 1 : vector<2x256xf32>, i32 -> vector<2x256xf32>
    %284 = vector.extract_strided_slice %0 {offsets = [0, 0], sizes = [1, 256], strides = [1, 1]} : vector<9x256xf32> to vector<1x256xf32>
    %285 = vector.broadcast %284 : vector<1x256xf32> to vector<2x256xf32>
    %286 = arith.mulf %283, %285 : vector<2x256xf32>
    %c0_148 = arith.constant 0 : index
    %c0_149 = arith.constant 0 : index
    %287 = vector.load %arg34[%c0_148, %c0_149] : memref<18x256xf32, #tpu.memory_space<vmem>>, vector<2x256xf32>
    tpu.vector_store %arg34[%c0_148, %c0_149], %286 {strides = array<i32>} : memref<18x256xf32, #tpu.memory_space<vmem>>, vector<2x256xf32>,
    %c16_i32_150 = arith.constant 16 : i32
    %288 = tpu.dynamic_rotate %282 by %c16_i32_150 dim 1 : vector<2x256xf32>, i32 -> vector<2x256xf32>
    %289 = vector.extract_strided_slice %0 {offsets = [1, 0], sizes = [1, 256], strides = [1, 1]} : vector<9x256xf32> to vector<1x256xf32>
    %290 = vector.broadcast %289 : vector<1x256xf32> to vector<2x256xf32>
    %291 = arith.mulf %288, %290 : vector<2x256xf32>
    %c2_151 = arith.constant 2 : index
    %c0_152 = arith.constant 0 : index
    %292 = vector.load %arg34[%c2_151, %c0_152] : memref<18x256xf32, #tpu.memory_space<vmem>>, vector<2x256xf32>
    tpu.vector_store %arg34[%c2_151, %c0_152], %291 {strides = array<i32>} : memref<18x256xf32, #tpu.memory_space<vmem>>, vector<2x256xf32>,
    %c15_i32_153 = arith.constant 15 : i32
    %293 = tpu.dynamic_rotate %282 by %c15_i32_153 dim 1 : vector<2x256xf32>, i32 -> vector<2x256xf32>
    %294 = vector.extract_strided_slice %0 {offsets = [2, 0], sizes = [1, 256], strides = [1, 1]} : vector<9x256xf32> to vector<1x256xf32>
    %295 = vector.broadcast %294 : vector<1x256xf32> to vector<2x256xf32>
    %296 = arith.mulf %293, %295 : vector<2x256xf32>
    %c4_154 = arith.constant 4 : index
    %c0_155 = arith.constant 0 : index
    %297 = vector.load %arg34[%c4_154, %c0_155] : memref<18x256xf32, #tpu.memory_space<vmem>>, vector<2x256xf32>
    tpu.vector_store %arg34[%c4_154, %c0_155], %296 {strides = array<i32>} : memref<18x256xf32, #tpu.memory_space<vmem>>, vector<2x256xf32>,
    %c1_i32_156 = arith.constant 1 : i32
    %298 = tpu.dynamic_rotate %282 by %c1_i32_156 dim 1 : vector<2x256xf32>, i32 -> vector<2x256xf32>
    %299 = vector.extract_strided_slice %0 {offsets = [3, 0], sizes = [1, 256], strides = [1, 1]} : vector<9x256xf32> to vector<1x256xf32>
    %300 = vector.broadcast %299 : vector<1x256xf32> to vector<2x256xf32>
    %301 = arith.mulf %298, %300 : vector<2x256xf32>
    %c6_157 = arith.constant 6 : index
    %c0_158 = arith.constant 0 : index
    %302 = vector.load %arg34[%c6_157, %c0_158] : memref<18x256xf32, #tpu.memory_space<vmem>>, vector<2x256xf32>
    tpu.vector_store %arg34[%c6_157, %c0_158], %301 {strides = array<i32>} : memref<18x256xf32, #tpu.memory_space<vmem>>, vector<2x256xf32>,
    %c8_159 = arith.constant 8 : index
    %c0_160 = arith.constant 0 : index
    %303 = vector.load %arg34[%c8_159, %c0_160] : memref<18x256xf32, #tpu.memory_space<vmem>>, vector<2x256xf32>
    tpu.vector_store %arg34[%c8_159, %c0_160], %282 {strides = array<i32>} : memref<18x256xf32, #tpu.memory_space<vmem>>, vector<2x256xf32>,
    %c255_i32_161 = arith.constant 255 : i32
    %304 = tpu.dynamic_rotate %282 by %c255_i32_161 dim 1 : vector<2x256xf32>, i32 -> vector<2x256xf32>
    %305 = vector.extract_strided_slice %0 {offsets = [5, 0], sizes = [1, 256], strides = [1, 1]} : vector<9x256xf32> to vector<1x256xf32>
    %306 = vector.broadcast %305 : vector<1x256xf32> to vector<2x256xf32>
    %307 = arith.mulf %304, %306 : vector<2x256xf32>
    %c10_162 = arith.constant 10 : index
    %c0_163 = arith.constant 0 : index
    %308 = vector.load %arg34[%c10_162, %c0_163] : memref<18x256xf32, #tpu.memory_space<vmem>>, vector<2x256xf32>
    tpu.vector_store %arg34[%c10_162, %c0_163], %307 {strides = array<i32>} : memref<18x256xf32, #tpu.memory_space<vmem>>, vector<2x256xf32>,
    %c241_i32_164 = arith.constant 241 : i32
    %309 = tpu.dynamic_rotate %282 by %c241_i32_164 dim 1 : vector<2x256xf32>, i32 -> vector<2x256xf32>
    %310 = vector.extract_strided_slice %0 {offsets = [6, 0], sizes = [1, 256], strides = [1, 1]} : vector<9x256xf32> to vector<1x256xf32>
    %311 = vector.broadcast %310 : vector<1x256xf32> to vector<2x256xf32>
    %312 = arith.mulf %309, %311 : vector<2x256xf32>
    %c12_165 = arith.constant 12 : index
    %c0_166 = arith.constant 0 : index
    %313 = vector.load %arg34[%c12_165, %c0_166] : memref<18x256xf32, #tpu.memory_space<vmem>>, vector<2x256xf32>
    tpu.vector_store %arg34[%c12_165, %c0_166], %312 {strides = array<i32>} : memref<18x256xf32, #tpu.memory_space<vmem>>, vector<2x256xf32>,
    %c240_i32_167 = arith.constant 240 : i32
    %314 = tpu.dynamic_rotate %282 by %c240_i32_167 dim 1 : vector<2x256xf32>, i32 -> vector<2x256xf32>
    %315 = vector.extract_strided_slice %0 {offsets = [7, 0], sizes = [1, 256], strides = [1, 1]} : vector<9x256xf32> to vector<1x256xf32>
    %316 = vector.broadcast %315 : vector<1x256xf32> to vector<2x256xf32>
    %317 = arith.mulf %314, %316 : vector<2x256xf32>
    %c14_168 = arith.constant 14 : index
    %c0_169 = arith.constant 0 : index
    %318 = vector.load %arg34[%c14_168, %c0_169] : memref<18x256xf32, #tpu.memory_space<vmem>>, vector<2x256xf32>
    tpu.vector_store %arg34[%c14_168, %c0_169], %317 {strides = array<i32>} : memref<18x256xf32, #tpu.memory_space<vmem>>, vector<2x256xf32>,
    %c239_i32_170 = arith.constant 239 : i32
    %319 = tpu.dynamic_rotate %282 by %c239_i32_170 dim 1 : vector<2x256xf32>, i32 -> vector<2x256xf32>
    %320 = vector.extract_strided_slice %0 {offsets = [8, 0], sizes = [1, 256], strides = [1, 1]} : vector<9x256xf32> to vector<1x256xf32>
    %321 = vector.broadcast %320 : vector<1x256xf32> to vector<2x256xf32>
    %322 = arith.mulf %319, %321 : vector<2x256xf32>
    %c16_171 = arith.constant 16 : index
    %c0_172 = arith.constant 0 : index
    %323 = vector.load %arg34[%c16_171, %c0_172] : memref<18x256xf32, #tpu.memory_space<vmem>>, vector<2x256xf32>
    tpu.vector_store %arg34[%c16_171, %c0_172], %322 {strides = array<i32>} : memref<18x256xf32, #tpu.memory_space<vmem>>, vector<2x256xf32>,
    %c0_173 = arith.constant 0 : index
    %c0_174 = arith.constant 0 : index
    %324 = vector.load %arg34[%c0_173, %c0_174] : memref<18x256xf32, #tpu.memory_space<vmem>>, vector<18x256xf32>
    %cst_175 = arith.constant dense<0.000000e+00> : vector<32x256xf32>
    %325 = tpu.matmul %1, %324, %cst_175 {dimension_numbers = #tpu.dot_dimension_numbers<[1], [0], [0], [1], [0, 0, 1, 1], [], []>} : vector<32x18xf32>, vector<18x256xf32>, vector<32x256xf32> -> vector<32x256xf32>
    %cst_176 = arith.constant dense<0.000000e+00> : vector<32x256xf32>
    %326 = tpu.matmul %2, %209, %cst_176 {dimension_numbers = #tpu.dot_dimension_numbers<[1], [0], [0], [1], [0, 0, 1, 1], [], []>} : vector<32x72xf32>, vector<72x256xf32>, vector<32x256xf32> -> vector<32x256xf32>
    %327 = arith.addf %325, %326 : vector<32x256xf32>
    %328 = vector.broadcast %3 : vector<32x1xf32> to vector<32x256xf32>
    %329 = arith.addf %327, %328 : vector<32x256xf32>
    %330 = vector.extract_strided_slice %329 {offsets = [0, 0], sizes = [8, 256], strides = [1, 1]} : vector<32x256xf32> to vector<8x256xf32>
    %331 = arith.negf %330 : vector<8x256xf32>
    %332 = math.exp %331 : vector<8x256xf32>
    %cst_177 = arith.constant 1.000000e+00 : f32
    %333 = vector.broadcast %cst_177 : f32 to vector<8x256xf32>
    %334 = arith.addf %333, %332 : vector<8x256xf32>
    %335 = arith.divf %333, %334 : vector<8x256xf32>
    %336 = vector.extract_strided_slice %329 {offsets = [8, 0], sizes = [8, 256], strides = [1, 1]} : vector<32x256xf32> to vector<8x256xf32>
    %337 = arith.negf %336 : vector<8x256xf32>
    %338 = math.exp %337 : vector<8x256xf32>
    %cst_178 = arith.constant 1.000000e+00 : f32
    %339 = vector.broadcast %cst_178 : f32 to vector<8x256xf32>
    %340 = arith.addf %339, %338 : vector<8x256xf32>
    %341 = arith.divf %339, %340 : vector<8x256xf32>
    %342 = vector.extract_strided_slice %329 {offsets = [16, 0], sizes = [8, 256], strides = [1, 1]} : vector<32x256xf32> to vector<8x256xf32>
    %343 = arith.negf %342 : vector<8x256xf32>
    %344 = math.exp %343 : vector<8x256xf32>
    %cst_179 = arith.constant 1.000000e+00 : f32
    %345 = vector.broadcast %cst_179 : f32 to vector<8x256xf32>
    %346 = arith.addf %345, %344 : vector<8x256xf32>
    %347 = arith.divf %345, %346 : vector<8x256xf32>
    %348 = vector.extract_strided_slice %329 {offsets = [24, 0], sizes = [8, 256], strides = [1, 1]} : vector<32x256xf32> to vector<8x256xf32>
    %349 = math.tanh %348 : vector<8x256xf32>
    %350 = arith.mulf %341, %165 : vector<8x256xf32>
    %351 = arith.mulf %335, %349 : vector<8x256xf32>
    %352 = arith.addf %350, %351 : vector<8x256xf32>
    %353 = math.tanh %352 : vector<8x256xf32>
    %354 = arith.mulf %347, %353 : vector<8x256xf32>
    %c17_i32_180 = arith.constant 17 : i32
    %355 = tpu.dynamic_rotate %354 by %c17_i32_180 dim 1 : vector<8x256xf32>, i32 -> vector<8x256xf32>
    %356 = vector.extract_strided_slice %0 {offsets = [0, 0], sizes = [1, 256], strides = [1, 1]} : vector<9x256xf32> to vector<1x256xf32>
    %357 = vector.broadcast %356 : vector<1x256xf32> to vector<8x256xf32>
    %358 = arith.mulf %355, %357 : vector<8x256xf32>
    %c0_181 = arith.constant 0 : index
    %c0_182 = arith.constant 0 : index
    %359 = vector.load %arg35[%c0_181, %c0_182] : memref<72x256xf32, #tpu.memory_space<vmem>>, vector<8x256xf32>
    tpu.vector_store %arg35[%c0_181, %c0_182], %358 {strides = array<i32>} : memref<72x256xf32, #tpu.memory_space<vmem>>, vector<8x256xf32>,
    %c16_i32_183 = arith.constant 16 : i32
    %360 = tpu.dynamic_rotate %354 by %c16_i32_183 dim 1 : vector<8x256xf32>, i32 -> vector<8x256xf32>
    %361 = vector.extract_strided_slice %0 {offsets = [1, 0], sizes = [1, 256], strides = [1, 1]} : vector<9x256xf32> to vector<1x256xf32>
    %362 = vector.broadcast %361 : vector<1x256xf32> to vector<8x256xf32>
    %363 = arith.mulf %360, %362 : vector<8x256xf32>
    %c8_184 = arith.constant 8 : index
    %c0_185 = arith.constant 0 : index
    %364 = vector.load %arg35[%c8_184, %c0_185] : memref<72x256xf32, #tpu.memory_space<vmem>>, vector<8x256xf32>
    tpu.vector_store %arg35[%c8_184, %c0_185], %363 {strides = array<i32>} : memref<72x256xf32, #tpu.memory_space<vmem>>, vector<8x256xf32>,
    %c15_i32_186 = arith.constant 15 : i32
    %365 = tpu.dynamic_rotate %354 by %c15_i32_186 dim 1 : vector<8x256xf32>, i32 -> vector<8x256xf32>
    %366 = vector.extract_strided_slice %0 {offsets = [2, 0], sizes = [1, 256], strides = [1, 1]} : vector<9x256xf32> to vector<1x256xf32>
    %367 = vector.broadcast %366 : vector<1x256xf32> to vector<8x256xf32>
    %368 = arith.mulf %365, %367 : vector<8x256xf32>
    %c16_187 = arith.constant 16 : index
    %c0_188 = arith.constant 0 : index
    %369 = vector.load %arg35[%c16_187, %c0_188] : memref<72x256xf32, #tpu.memory_space<vmem>>, vector<8x256xf32>
    tpu.vector_store %arg35[%c16_187, %c0_188], %368 {strides = array<i32>} : memref<72x256xf32, #tpu.memory_space<vmem>>, vector<8x256xf32>,
    %c1_i32_189 = arith.constant 1 : i32
    %370 = tpu.dynamic_rotate %354 by %c1_i32_189 dim 1 : vector<8x256xf32>, i32 -> vector<8x256xf32>
    %371 = vector.extract_strided_slice %0 {offsets = [3, 0], sizes = [1, 256], strides = [1, 1]} : vector<9x256xf32> to vector<1x256xf32>
    %372 = vector.broadcast %371 : vector<1x256xf32> to vector<8x256xf32>
    %373 = arith.mulf %370, %372 : vector<8x256xf32>
    %c24_190 = arith.constant 24 : index
    %c0_191 = arith.constant 0 : index
    %374 = vector.load %arg35[%c24_190, %c0_191] : memref<72x256xf32, #tpu.memory_space<vmem>>, vector<8x256xf32>
    tpu.vector_store %arg35[%c24_190, %c0_191], %373 {strides = array<i32>} : memref<72x256xf32, #tpu.memory_space<vmem>>, vector<8x256xf32>,
    %c32_192 = arith.constant 32 : index
    %c0_193 = arith.constant 0 : index
    %375 = vector.load %arg35[%c32_192, %c0_193] : memref<72x256xf32, #tpu.memory_space<vmem>>, vector<8x256xf32>
    tpu.vector_store %arg35[%c32_192, %c0_193], %354 {strides = array<i32>} : memref<72x256xf32, #tpu.memory_space<vmem>>, vector<8x256xf32>,
    %c255_i32_194 = arith.constant 255 : i32
    %376 = tpu.dynamic_rotate %354 by %c255_i32_194 dim 1 : vector<8x256xf32>, i32 -> vector<8x256xf32>
    %377 = vector.extract_strided_slice %0 {offsets = [5, 0], sizes = [1, 256], strides = [1, 1]} : vector<9x256xf32> to vector<1x256xf32>
    %378 = vector.broadcast %377 : vector<1x256xf32> to vector<8x256xf32>
    %379 = arith.mulf %376, %378 : vector<8x256xf32>
    %c40_195 = arith.constant 40 : index
    %c0_196 = arith.constant 0 : index
    %380 = vector.load %arg35[%c40_195, %c0_196] : memref<72x256xf32, #tpu.memory_space<vmem>>, vector<8x256xf32>
    tpu.vector_store %arg35[%c40_195, %c0_196], %379 {strides = array<i32>} : memref<72x256xf32, #tpu.memory_space<vmem>>, vector<8x256xf32>,
    %c241_i32_197 = arith.constant 241 : i32
    %381 = tpu.dynamic_rotate %354 by %c241_i32_197 dim 1 : vector<8x256xf32>, i32 -> vector<8x256xf32>
    %382 = vector.extract_strided_slice %0 {offsets = [6, 0], sizes = [1, 256], strides = [1, 1]} : vector<9x256xf32> to vector<1x256xf32>
    %383 = vector.broadcast %382 : vector<1x256xf32> to vector<8x256xf32>
    %384 = arith.mulf %381, %383 : vector<8x256xf32>
    %c48_198 = arith.constant 48 : index
    %c0_199 = arith.constant 0 : index
    %385 = vector.load %arg35[%c48_198, %c0_199] : memref<72x256xf32, #tpu.memory_space<vmem>>, vector<8x256xf32>
    tpu.vector_store %arg35[%c48_198, %c0_199], %384 {strides = array<i32>} : memref<72x256xf32, #tpu.memory_space<vmem>>, vector<8x256xf32>,
    %c240_i32_200 = arith.constant 240 : i32
    %386 = tpu.dynamic_rotate %354 by %c240_i32_200 dim 1 : vector<8x256xf32>, i32 -> vector<8x256xf32>
    %387 = vector.extract_strided_slice %0 {offsets = [7, 0], sizes = [1, 256], strides = [1, 1]} : vector<9x256xf32> to vector<1x256xf32>
    %388 = vector.broadcast %387 : vector<1x256xf32> to vector<8x256xf32>
    %389 = arith.mulf %386, %388 : vector<8x256xf32>
    %c56_201 = arith.constant 56 : index
    %c0_202 = arith.constant 0 : index
    %390 = vector.load %arg35[%c56_201, %c0_202] : memref<72x256xf32, #tpu.memory_space<vmem>>, vector<8x256xf32>
    tpu.vector_store %arg35[%c56_201, %c0_202], %389 {strides = array<i32>} : memref<72x256xf32, #tpu.memory_space<vmem>>, vector<8x256xf32>,
    %c239_i32_203 = arith.constant 239 : i32
    %391 = tpu.dynamic_rotate %354 by %c239_i32_203 dim 1 : vector<8x256xf32>, i32 -> vector<8x256xf32>
    %392 = vector.extract_strided_slice %0 {offsets = [8, 0], sizes = [1, 256], strides = [1, 1]} : vector<9x256xf32> to vector<1x256xf32>
    %393 = vector.broadcast %392 : vector<1x256xf32> to vector<8x256xf32>
    %394 = arith.mulf %391, %393 : vector<8x256xf32>
    %c64_204 = arith.constant 64 : index
    %c0_205 = arith.constant 0 : index
    %395 = vector.load %arg35[%c64_204, %c0_205] : memref<72x256xf32, #tpu.memory_space<vmem>>, vector<8x256xf32>
    tpu.vector_store %arg35[%c64_204, %c0_205], %394 {strides = array<i32>} : memref<72x256xf32, #tpu.memory_space<vmem>>, vector<8x256xf32>,
    %c0_206 = arith.constant 0 : index
    %c0_207 = arith.constant 0 : index
    %396 = vector.load %arg35[%c0_206, %c0_207] : memref<72x256xf32, #tpu.memory_space<vmem>>, vector<72x256xf32>
    %cst_208 = arith.constant dense<0.000000e+00> : vector<32x256xf32>
    %397 = tpu.matmul %4, %396, %cst_208 {dimension_numbers = #tpu.dot_dimension_numbers<[1], [0], [0], [1], [0, 0, 1, 1], [], []>} : vector<32x72xf32>, vector<72x256xf32>, vector<32x256xf32> -> vector<32x256xf32>
    %cst_209 = arith.constant dense<0.000000e+00> : vector<32x256xf32>
    %398 = tpu.matmul %5, %281, %cst_209 {dimension_numbers = #tpu.dot_dimension_numbers<[1], [0], [0], [1], [0, 0, 1, 1], [], []>} : vector<32x72xf32>, vector<72x256xf32>, vector<32x256xf32> -> vector<32x256xf32>
    %399 = arith.addf %397, %398 : vector<32x256xf32>
    %400 = vector.broadcast %6 : vector<32x1xf32> to vector<32x256xf32>
    %401 = arith.addf %399, %400 : vector<32x256xf32>
    %402 = vector.extract_strided_slice %401 {offsets = [0, 0], sizes = [8, 256], strides = [1, 1]} : vector<32x256xf32> to vector<8x256xf32>
    %403 = arith.negf %402 : vector<8x256xf32>
    %404 = math.exp %403 : vector<8x256xf32>
    %cst_210 = arith.constant 1.000000e+00 : f32
    %405 = vector.broadcast %cst_210 : f32 to vector<8x256xf32>
    %406 = arith.addf %405, %404 : vector<8x256xf32>
    %407 = arith.divf %405, %406 : vector<8x256xf32>
    %408 = vector.extract_strided_slice %401 {offsets = [8, 0], sizes = [8, 256], strides = [1, 1]} : vector<32x256xf32> to vector<8x256xf32>
    %409 = arith.negf %408 : vector<8x256xf32>
    %410 = math.exp %409 : vector<8x256xf32>
    %cst_211 = arith.constant 1.000000e+00 : f32
    %411 = vector.broadcast %cst_211 : f32 to vector<8x256xf32>
    %412 = arith.addf %411, %410 : vector<8x256xf32>
    %413 = arith.divf %411, %412 : vector<8x256xf32>
    %414 = vector.extract_strided_slice %401 {offsets = [16, 0], sizes = [8, 256], strides = [1, 1]} : vector<32x256xf32> to vector<8x256xf32>
    %415 = arith.negf %414 : vector<8x256xf32>
    %416 = math.exp %415 : vector<8x256xf32>
    %cst_212 = arith.constant 1.000000e+00 : f32
    %417 = vector.broadcast %cst_212 : f32 to vector<8x256xf32>
    %418 = arith.addf %417, %416 : vector<8x256xf32>
    %419 = arith.divf %417, %418 : vector<8x256xf32>
    %420 = vector.extract_strided_slice %401 {offsets = [24, 0], sizes = [8, 256], strides = [1, 1]} : vector<32x256xf32> to vector<8x256xf32>
    %421 = math.tanh %420 : vector<8x256xf32>
    %422 = arith.mulf %413, %237 : vector<8x256xf32>
    %423 = arith.mulf %407, %421 : vector<8x256xf32>
    %424 = arith.addf %422, %423 : vector<8x256xf32>
    %425 = math.tanh %424 : vector<8x256xf32>
    %426 = arith.mulf %419, %425 : vector<8x256xf32>
    %c17_i32_213 = arith.constant 17 : i32
    %427 = tpu.dynamic_rotate %426 by %c17_i32_213 dim 1 : vector<8x256xf32>, i32 -> vector<8x256xf32>
    %428 = vector.extract_strided_slice %0 {offsets = [0, 0], sizes = [1, 256], strides = [1, 1]} : vector<9x256xf32> to vector<1x256xf32>
    %429 = vector.broadcast %428 : vector<1x256xf32> to vector<8x256xf32>
    %430 = arith.mulf %427, %429 : vector<8x256xf32>
    %c0_214 = arith.constant 0 : index
    %c0_215 = arith.constant 0 : index
    %431 = vector.load %arg36[%c0_214, %c0_215] : memref<72x256xf32, #tpu.memory_space<vmem>>, vector<8x256xf32>
    tpu.vector_store %arg36[%c0_214, %c0_215], %430 {strides = array<i32>} : memref<72x256xf32, #tpu.memory_space<vmem>>, vector<8x256xf32>,
    %c16_i32_216 = arith.constant 16 : i32
    %432 = tpu.dynamic_rotate %426 by %c16_i32_216 dim 1 : vector<8x256xf32>, i32 -> vector<8x256xf32>
    %433 = vector.extract_strided_slice %0 {offsets = [1, 0], sizes = [1, 256], strides = [1, 1]} : vector<9x256xf32> to vector<1x256xf32>
    %434 = vector.broadcast %433 : vector<1x256xf32> to vector<8x256xf32>
    %435 = arith.mulf %432, %434 : vector<8x256xf32>
    %c8_217 = arith.constant 8 : index
    %c0_218 = arith.constant 0 : index
    %436 = vector.load %arg36[%c8_217, %c0_218] : memref<72x256xf32, #tpu.memory_space<vmem>>, vector<8x256xf32>
    tpu.vector_store %arg36[%c8_217, %c0_218], %435 {strides = array<i32>} : memref<72x256xf32, #tpu.memory_space<vmem>>, vector<8x256xf32>,
    %c15_i32_219 = arith.constant 15 : i32
    %437 = tpu.dynamic_rotate %426 by %c15_i32_219 dim 1 : vector<8x256xf32>, i32 -> vector<8x256xf32>
    %438 = vector.extract_strided_slice %0 {offsets = [2, 0], sizes = [1, 256], strides = [1, 1]} : vector<9x256xf32> to vector<1x256xf32>
    %439 = vector.broadcast %438 : vector<1x256xf32> to vector<8x256xf32>
    %440 = arith.mulf %437, %439 : vector<8x256xf32>
    %c16_220 = arith.constant 16 : index
    %c0_221 = arith.constant 0 : index
    %441 = vector.load %arg36[%c16_220, %c0_221] : memref<72x256xf32, #tpu.memory_space<vmem>>, vector<8x256xf32>
    tpu.vector_store %arg36[%c16_220, %c0_221], %440 {strides = array<i32>} : memref<72x256xf32, #tpu.memory_space<vmem>>, vector<8x256xf32>,
    %c1_i32_222 = arith.constant 1 : i32
    %442 = tpu.dynamic_rotate %426 by %c1_i32_222 dim 1 : vector<8x256xf32>, i32 -> vector<8x256xf32>
    %443 = vector.extract_strided_slice %0 {offsets = [3, 0], sizes = [1, 256], strides = [1, 1]} : vector<9x256xf32> to vector<1x256xf32>
    %444 = vector.broadcast %443 : vector<1x256xf32> to vector<8x256xf32>
    %445 = arith.mulf %442, %444 : vector<8x256xf32>
    %c24_223 = arith.constant 24 : index
    %c0_224 = arith.constant 0 : index
    %446 = vector.load %arg36[%c24_223, %c0_224] : memref<72x256xf32, #tpu.memory_space<vmem>>, vector<8x256xf32>
    tpu.vector_store %arg36[%c24_223, %c0_224], %445 {strides = array<i32>} : memref<72x256xf32, #tpu.memory_space<vmem>>, vector<8x256xf32>,
    %c32_225 = arith.constant 32 : index
    %c0_226 = arith.constant 0 : index
    %447 = vector.load %arg36[%c32_225, %c0_226] : memref<72x256xf32, #tpu.memory_space<vmem>>, vector<8x256xf32>
    tpu.vector_store %arg36[%c32_225, %c0_226], %426 {strides = array<i32>} : memref<72x256xf32, #tpu.memory_space<vmem>>, vector<8x256xf32>,
    %c255_i32_227 = arith.constant 255 : i32
    %448 = tpu.dynamic_rotate %426 by %c255_i32_227 dim 1 : vector<8x256xf32>, i32 -> vector<8x256xf32>
    %449 = vector.extract_strided_slice %0 {offsets = [5, 0], sizes = [1, 256], strides = [1, 1]} : vector<9x256xf32> to vector<1x256xf32>
    %450 = vector.broadcast %449 : vector<1x256xf32> to vector<8x256xf32>
    %451 = arith.mulf %448, %450 : vector<8x256xf32>
    %c40_228 = arith.constant 40 : index
    %c0_229 = arith.constant 0 : index
    %452 = vector.load %arg36[%c40_228, %c0_229] : memref<72x256xf32, #tpu.memory_space<vmem>>, vector<8x256xf32>
    tpu.vector_store %arg36[%c40_228, %c0_229], %451 {strides = array<i32>} : memref<72x256xf32, #tpu.memory_space<vmem>>, vector<8x256xf32>,
    %c241_i32_230 = arith.constant 241 : i32
    %453 = tpu.dynamic_rotate %426 by %c241_i32_230 dim 1 : vector<8x256xf32>, i32 -> vector<8x256xf32>
    %454 = vector.extract_strided_slice %0 {offsets = [6, 0], sizes = [1, 256], strides = [1, 1]} : vector<9x256xf32> to vector<1x256xf32>
    %455 = vector.broadcast %454 : vector<1x256xf32> to vector<8x256xf32>
    %456 = arith.mulf %453, %455 : vector<8x256xf32>
    %c48_231 = arith.constant 48 : index
    %c0_232 = arith.constant 0 : index
    %457 = vector.load %arg36[%c48_231, %c0_232] : memref<72x256xf32, #tpu.memory_space<vmem>>, vector<8x256xf32>
    tpu.vector_store %arg36[%c48_231, %c0_232], %456 {strides = array<i32>} : memref<72x256xf32, #tpu.memory_space<vmem>>, vector<8x256xf32>,
    %c240_i32_233 = arith.constant 240 : i32
    %458 = tpu.dynamic_rotate %426 by %c240_i32_233 dim 1 : vector<8x256xf32>, i32 -> vector<8x256xf32>
    %459 = vector.extract_strided_slice %0 {offsets = [7, 0], sizes = [1, 256], strides = [1, 1]} : vector<9x256xf32> to vector<1x256xf32>
    %460 = vector.broadcast %459 : vector<1x256xf32> to vector<8x256xf32>
    %461 = arith.mulf %458, %460 : vector<8x256xf32>
    %c56_234 = arith.constant 56 : index
    %c0_235 = arith.constant 0 : index
    %462 = vector.load %arg36[%c56_234, %c0_235] : memref<72x256xf32, #tpu.memory_space<vmem>>, vector<8x256xf32>
    tpu.vector_store %arg36[%c56_234, %c0_235], %461 {strides = array<i32>} : memref<72x256xf32, #tpu.memory_space<vmem>>, vector<8x256xf32>,
    %c239_i32_236 = arith.constant 239 : i32
    %463 = tpu.dynamic_rotate %426 by %c239_i32_236 dim 1 : vector<8x256xf32>, i32 -> vector<8x256xf32>
    %464 = vector.extract_strided_slice %0 {offsets = [8, 0], sizes = [1, 256], strides = [1, 1]} : vector<9x256xf32> to vector<1x256xf32>
    %465 = vector.broadcast %464 : vector<1x256xf32> to vector<8x256xf32>
    %466 = arith.mulf %463, %465 : vector<8x256xf32>
    %c64_237 = arith.constant 64 : index
    %c0_238 = arith.constant 0 : index
    %467 = vector.load %arg36[%c64_237, %c0_238] : memref<72x256xf32, #tpu.memory_space<vmem>>, vector<8x256xf32>
    tpu.vector_store %arg36[%c64_237, %c0_238], %466 {strides = array<i32>} : memref<72x256xf32, #tpu.memory_space<vmem>>, vector<8x256xf32>,
    %c0_239 = arith.constant 0 : index
    %c0_240 = arith.constant 0 : index
    %468 = vector.load %arg36[%c0_239, %c0_240] : memref<72x256xf32, #tpu.memory_space<vmem>>, vector<72x256xf32>
    %c0_241 = arith.constant 0 : index
    %c512 = arith.constant 512 : index
    %469 = vector.load %arg0[%c0_241, %c512] : memref<2x1024xf32, #tpu.memory_space<vmem>>, vector<2x256xf32>
    %c17_i32_242 = arith.constant 17 : i32
    %470 = tpu.dynamic_rotate %469 by %c17_i32_242 dim 1 : vector<2x256xf32>, i32 -> vector<2x256xf32>
    %471 = vector.extract_strided_slice %0 {offsets = [0, 0], sizes = [1, 256], strides = [1, 1]} : vector<9x256xf32> to vector<1x256xf32>
    %472 = vector.broadcast %471 : vector<1x256xf32> to vector<2x256xf32>
    %473 = arith.mulf %470, %472 : vector<2x256xf32>
    %c0_243 = arith.constant 0 : index
    %c0_244 = arith.constant 0 : index
    %474 = vector.load %arg34[%c0_243, %c0_244] : memref<18x256xf32, #tpu.memory_space<vmem>>, vector<2x256xf32>
    tpu.vector_store %arg34[%c0_243, %c0_244], %473 {strides = array<i32>} : memref<18x256xf32, #tpu.memory_space<vmem>>, vector<2x256xf32>,
    %c16_i32_245 = arith.constant 16 : i32
    %475 = tpu.dynamic_rotate %469 by %c16_i32_245 dim 1 : vector<2x256xf32>, i32 -> vector<2x256xf32>
    %476 = vector.extract_strided_slice %0 {offsets = [1, 0], sizes = [1, 256], strides = [1, 1]} : vector<9x256xf32> to vector<1x256xf32>
    %477 = vector.broadcast %476 : vector<1x256xf32> to vector<2x256xf32>
    %478 = arith.mulf %475, %477 : vector<2x256xf32>
    %c2_246 = arith.constant 2 : index
    %c0_247 = arith.constant 0 : index
    %479 = vector.load %arg34[%c2_246, %c0_247] : memref<18x256xf32, #tpu.memory_space<vmem>>, vector<2x256xf32>
    tpu.vector_store %arg34[%c2_246, %c0_247], %478 {strides = array<i32>} : memref<18x256xf32, #tpu.memory_space<vmem>>, vector<2x256xf32>,
    %c15_i32_248 = arith.constant 15 : i32
    %480 = tpu.dynamic_rotate %469 by %c15_i32_248 dim 1 : vector<2x256xf32>, i32 -> vector<2x256xf32>
    %481 = vector.extract_strided_slice %0 {offsets = [2, 0], sizes = [1, 256], strides = [1, 1]} : vector<9x256xf32> to vector<1x256xf32>
    %482 = vector.broadcast %481 : vector<1x256xf32> to vector<2x256xf32>
    %483 = arith.mulf %480, %482 : vector<2x256xf32>
    %c4_249 = arith.constant 4 : index
    %c0_250 = arith.constant 0 : index
    %484 = vector.load %arg34[%c4_249, %c0_250] : memref<18x256xf32, #tpu.memory_space<vmem>>, vector<2x256xf32>
    tpu.vector_store %arg34[%c4_249, %c0_250], %483 {strides = array<i32>} : memref<18x256xf32, #tpu.memory_space<vmem>>, vector<2x256xf32>,
    %c1_i32_251 = arith.constant 1 : i32
    %485 = tpu.dynamic_rotate %469 by %c1_i32_251 dim 1 : vector<2x256xf32>, i32 -> vector<2x256xf32>
    %486 = vector.extract_strided_slice %0 {offsets = [3, 0], sizes = [1, 256], strides = [1, 1]} : vector<9x256xf32> to vector<1x256xf32>
    %487 = vector.broadcast %486 : vector<1x256xf32> to vector<2x256xf32>
    %488 = arith.mulf %485, %487 : vector<2x256xf32>
    %c6_252 = arith.constant 6 : index
    %c0_253 = arith.constant 0 : index
    %489 = vector.load %arg34[%c6_252, %c0_253] : memref<18x256xf32, #tpu.memory_space<vmem>>, vector<2x256xf32>
    tpu.vector_store %arg34[%c6_252, %c0_253], %488 {strides = array<i32>} : memref<18x256xf32, #tpu.memory_space<vmem>>, vector<2x256xf32>,
    %c8_254 = arith.constant 8 : index
    %c0_255 = arith.constant 0 : index
    %490 = vector.load %arg34[%c8_254, %c0_255] : memref<18x256xf32, #tpu.memory_space<vmem>>, vector<2x256xf32>
    tpu.vector_store %arg34[%c8_254, %c0_255], %469 {strides = array<i32>} : memref<18x256xf32, #tpu.memory_space<vmem>>, vector<2x256xf32>,
    %c255_i32_256 = arith.constant 255 : i32
    %491 = tpu.dynamic_rotate %469 by %c255_i32_256 dim 1 : vector<2x256xf32>, i32 -> vector<2x256xf32>
    %492 = vector.extract_strided_slice %0 {offsets = [5, 0], sizes = [1, 256], strides = [1, 1]} : vector<9x256xf32> to vector<1x256xf32>
    %493 = vector.broadcast %492 : vector<1x256xf32> to vector<2x256xf32>
    %494 = arith.mulf %491, %493 : vector<2x256xf32>
    %c10_257 = arith.constant 10 : index
    %c0_258 = arith.constant 0 : index
    %495 = vector.load %arg34[%c10_257, %c0_258] : memref<18x256xf32, #tpu.memory_space<vmem>>, vector<2x256xf32>
    tpu.vector_store %arg34[%c10_257, %c0_258], %494 {strides = array<i32>} : memref<18x256xf32, #tpu.memory_space<vmem>>, vector<2x256xf32>,
    %c241_i32_259 = arith.constant 241 : i32
    %496 = tpu.dynamic_rotate %469 by %c241_i32_259 dim 1 : vector<2x256xf32>, i32 -> vector<2x256xf32>
    %497 = vector.extract_strided_slice %0 {offsets = [6, 0], sizes = [1, 256], strides = [1, 1]} : vector<9x256xf32> to vector<1x256xf32>
    %498 = vector.broadcast %497 : vector<1x256xf32> to vector<2x256xf32>
    %499 = arith.mulf %496, %498 : vector<2x256xf32>
    %c12_260 = arith.constant 12 : index
    %c0_261 = arith.constant 0 : index
    %500 = vector.load %arg34[%c12_260, %c0_261] : memref<18x256xf32, #tpu.memory_space<vmem>>, vector<2x256xf32>
    tpu.vector_store %arg34[%c12_260, %c0_261], %499 {strides = array<i32>} : memref<18x256xf32, #tpu.memory_space<vmem>>, vector<2x256xf32>,
    %c240_i32_262 = arith.constant 240 : i32
    %501 = tpu.dynamic_rotate %469 by %c240_i32_262 dim 1 : vector<2x256xf32>, i32 -> vector<2x256xf32>
    %502 = vector.extract_strided_slice %0 {offsets = [7, 0], sizes = [1, 256], strides = [1, 1]} : vector<9x256xf32> to vector<1x256xf32>
    %503 = vector.broadcast %502 : vector<1x256xf32> to vector<2x256xf32>
    %504 = arith.mulf %501, %503 : vector<2x256xf32>
    %c14_263 = arith.constant 14 : index
    %c0_264 = arith.constant 0 : index
    %505 = vector.load %arg34[%c14_263, %c0_264] : memref<18x256xf32, #tpu.memory_space<vmem>>, vector<2x256xf32>
    tpu.vector_store %arg34[%c14_263, %c0_264], %504 {strides = array<i32>} : memref<18x256xf32, #tpu.memory_space<vmem>>, vector<2x256xf32>,
    %c239_i32_265 = arith.constant 239 : i32
    %506 = tpu.dynamic_rotate %469 by %c239_i32_265 dim 1 : vector<2x256xf32>, i32 -> vector<2x256xf32>
    %507 = vector.extract_strided_slice %0 {offsets = [8, 0], sizes = [1, 256], strides = [1, 1]} : vector<9x256xf32> to vector<1x256xf32>
    %508 = vector.broadcast %507 : vector<1x256xf32> to vector<2x256xf32>
    %509 = arith.mulf %506, %508 : vector<2x256xf32>
    %c16_266 = arith.constant 16 : index
    %c0_267 = arith.constant 0 : index
    %510 = vector.load %arg34[%c16_266, %c0_267] : memref<18x256xf32, #tpu.memory_space<vmem>>, vector<2x256xf32>
    tpu.vector_store %arg34[%c16_266, %c0_267], %509 {strides = array<i32>} : memref<18x256xf32, #tpu.memory_space<vmem>>, vector<2x256xf32>,
    %c0_268 = arith.constant 0 : index
    %c0_269 = arith.constant 0 : index
    %511 = vector.load %arg34[%c0_268, %c0_269] : memref<18x256xf32, #tpu.memory_space<vmem>>, vector<18x256xf32>
    %cst_270 = arith.constant dense<0.000000e+00> : vector<32x256xf32>
    %512 = tpu.matmul %1, %511, %cst_270 {dimension_numbers = #tpu.dot_dimension_numbers<[1], [0], [0], [1], [0, 0, 1, 1], [], []>} : vector<32x18xf32>, vector<18x256xf32>, vector<32x256xf32> -> vector<32x256xf32>
    %cst_271 = arith.constant dense<0.000000e+00> : vector<32x256xf32>
    %513 = tpu.matmul %2, %396, %cst_271 {dimension_numbers = #tpu.dot_dimension_numbers<[1], [0], [0], [1], [0, 0, 1, 1], [], []>} : vector<32x72xf32>, vector<72x256xf32>, vector<32x256xf32> -> vector<32x256xf32>
    %514 = arith.addf %512, %513 : vector<32x256xf32>
    %515 = vector.broadcast %3 : vector<32x1xf32> to vector<32x256xf32>
    %516 = arith.addf %514, %515 : vector<32x256xf32>
    %517 = vector.extract_strided_slice %516 {offsets = [0, 0], sizes = [8, 256], strides = [1, 1]} : vector<32x256xf32> to vector<8x256xf32>
    %518 = arith.negf %517 : vector<8x256xf32>
    %519 = math.exp %518 : vector<8x256xf32>
    %cst_272 = arith.constant 1.000000e+00 : f32
    %520 = vector.broadcast %cst_272 : f32 to vector<8x256xf32>
    %521 = arith.addf %520, %519 : vector<8x256xf32>
    %522 = arith.divf %520, %521 : vector<8x256xf32>
    %523 = vector.extract_strided_slice %516 {offsets = [8, 0], sizes = [8, 256], strides = [1, 1]} : vector<32x256xf32> to vector<8x256xf32>
    %524 = arith.negf %523 : vector<8x256xf32>
    %525 = math.exp %524 : vector<8x256xf32>
    %cst_273 = arith.constant 1.000000e+00 : f32
    %526 = vector.broadcast %cst_273 : f32 to vector<8x256xf32>
    %527 = arith.addf %526, %525 : vector<8x256xf32>
    %528 = arith.divf %526, %527 : vector<8x256xf32>
    %529 = vector.extract_strided_slice %516 {offsets = [16, 0], sizes = [8, 256], strides = [1, 1]} : vector<32x256xf32> to vector<8x256xf32>
    %530 = arith.negf %529 : vector<8x256xf32>
    %531 = math.exp %530 : vector<8x256xf32>
    %cst_274 = arith.constant 1.000000e+00 : f32
    %532 = vector.broadcast %cst_274 : f32 to vector<8x256xf32>
    %533 = arith.addf %532, %531 : vector<8x256xf32>
    %534 = arith.divf %532, %533 : vector<8x256xf32>
    %535 = vector.extract_strided_slice %516 {offsets = [24, 0], sizes = [8, 256], strides = [1, 1]} : vector<32x256xf32> to vector<8x256xf32>
    %536 = math.tanh %535 : vector<8x256xf32>
    %537 = arith.mulf %528, %352 : vector<8x256xf32>
    %538 = arith.mulf %522, %536 : vector<8x256xf32>
    %539 = arith.addf %537, %538 : vector<8x256xf32>
    %540 = math.tanh %539 : vector<8x256xf32>
    %541 = arith.mulf %534, %540 : vector<8x256xf32>
    %c17_i32_275 = arith.constant 17 : i32
    %542 = tpu.dynamic_rotate %541 by %c17_i32_275 dim 1 : vector<8x256xf32>, i32 -> vector<8x256xf32>
    %543 = vector.extract_strided_slice %0 {offsets = [0, 0], sizes = [1, 256], strides = [1, 1]} : vector<9x256xf32> to vector<1x256xf32>
    %544 = vector.broadcast %543 : vector<1x256xf32> to vector<8x256xf32>
    %545 = arith.mulf %542, %544 : vector<8x256xf32>
    %c0_276 = arith.constant 0 : index
    %c0_277 = arith.constant 0 : index
    %546 = vector.load %arg35[%c0_276, %c0_277] : memref<72x256xf32, #tpu.memory_space<vmem>>, vector<8x256xf32>
    tpu.vector_store %arg35[%c0_276, %c0_277], %545 {strides = array<i32>} : memref<72x256xf32, #tpu.memory_space<vmem>>, vector<8x256xf32>,
    %c16_i32_278 = arith.constant 16 : i32
    %547 = tpu.dynamic_rotate %541 by %c16_i32_278 dim 1 : vector<8x256xf32>, i32 -> vector<8x256xf32>
    %548 = vector.extract_strided_slice %0 {offsets = [1, 0], sizes = [1, 256], strides = [1, 1]} : vector<9x256xf32> to vector<1x256xf32>
    %549 = vector.broadcast %548 : vector<1x256xf32> to vector<8x256xf32>
    %550 = arith.mulf %547, %549 : vector<8x256xf32>
    %c8_279 = arith.constant 8 : index
    %c0_280 = arith.constant 0 : index
    %551 = vector.load %arg35[%c8_279, %c0_280] : memref<72x256xf32, #tpu.memory_space<vmem>>, vector<8x256xf32>
    tpu.vector_store %arg35[%c8_279, %c0_280], %550 {strides = array<i32>} : memref<72x256xf32, #tpu.memory_space<vmem>>, vector<8x256xf32>,
    %c15_i32_281 = arith.constant 15 : i32
    %552 = tpu.dynamic_rotate %541 by %c15_i32_281 dim 1 : vector<8x256xf32>, i32 -> vector<8x256xf32>
    %553 = vector.extract_strided_slice %0 {offsets = [2, 0], sizes = [1, 256], strides = [1, 1]} : vector<9x256xf32> to vector<1x256xf32>
    %554 = vector.broadcast %553 : vector<1x256xf32> to vector<8x256xf32>
    %555 = arith.mulf %552, %554 : vector<8x256xf32>
    %c16_282 = arith.constant 16 : index
    %c0_283 = arith.constant 0 : index
    %556 = vector.load %arg35[%c16_282, %c0_283] : memref<72x256xf32, #tpu.memory_space<vmem>>, vector<8x256xf32>
    tpu.vector_store %arg35[%c16_282, %c0_283], %555 {strides = array<i32>} : memref<72x256xf32, #tpu.memory_space<vmem>>, vector<8x256xf32>,
    %c1_i32_284 = arith.constant 1 : i32
    %557 = tpu.dynamic_rotate %541 by %c1_i32_284 dim 1 : vector<8x256xf32>, i32 -> vector<8x256xf32>
    %558 = vector.extract_strided_slice %0 {offsets = [3, 0], sizes = [1, 256], strides = [1, 1]} : vector<9x256xf32> to vector<1x256xf32>
    %559 = vector.broadcast %558 : vector<1x256xf32> to vector<8x256xf32>
    %560 = arith.mulf %557, %559 : vector<8x256xf32>
    %c24_285 = arith.constant 24 : index
    %c0_286 = arith.constant 0 : index
    %561 = vector.load %arg35[%c24_285, %c0_286] : memref<72x256xf32, #tpu.memory_space<vmem>>, vector<8x256xf32>
    tpu.vector_store %arg35[%c24_285, %c0_286], %560 {strides = array<i32>} : memref<72x256xf32, #tpu.memory_space<vmem>>, vector<8x256xf32>,
    %c32_287 = arith.constant 32 : index
    %c0_288 = arith.constant 0 : index
    %562 = vector.load %arg35[%c32_287, %c0_288] : memref<72x256xf32, #tpu.memory_space<vmem>>, vector<8x256xf32>
    tpu.vector_store %arg35[%c32_287, %c0_288], %541 {strides = array<i32>} : memref<72x256xf32, #tpu.memory_space<vmem>>, vector<8x256xf32>,
    %c255_i32_289 = arith.constant 255 : i32
    %563 = tpu.dynamic_rotate %541 by %c255_i32_289 dim 1 : vector<8x256xf32>, i32 -> vector<8x256xf32>
    %564 = vector.extract_strided_slice %0 {offsets = [5, 0], sizes = [1, 256], strides = [1, 1]} : vector<9x256xf32> to vector<1x256xf32>
    %565 = vector.broadcast %564 : vector<1x256xf32> to vector<8x256xf32>
    %566 = arith.mulf %563, %565 : vector<8x256xf32>
    %c40_290 = arith.constant 40 : index
    %c0_291 = arith.constant 0 : index
    %567 = vector.load %arg35[%c40_290, %c0_291] : memref<72x256xf32, #tpu.memory_space<vmem>>, vector<8x256xf32>
    tpu.vector_store %arg35[%c40_290, %c0_291], %566 {strides = array<i32>} : memref<72x256xf32, #tpu.memory_space<vmem>>, vector<8x256xf32>,
    %c241_i32_292 = arith.constant 241 : i32
    %568 = tpu.dynamic_rotate %541 by %c241_i32_292 dim 1 : vector<8x256xf32>, i32 -> vector<8x256xf32>
    %569 = vector.extract_strided_slice %0 {offsets = [6, 0], sizes = [1, 256], strides = [1, 1]} : vector<9x256xf32> to vector<1x256xf32>
    %570 = vector.broadcast %569 : vector<1x256xf32> to vector<8x256xf32>
    %571 = arith.mulf %568, %570 : vector<8x256xf32>
    %c48_293 = arith.constant 48 : index
    %c0_294 = arith.constant 0 : index
    %572 = vector.load %arg35[%c48_293, %c0_294] : memref<72x256xf32, #tpu.memory_space<vmem>>, vector<8x256xf32>
    tpu.vector_store %arg35[%c48_293, %c0_294], %571 {strides = array<i32>} : memref<72x256xf32, #tpu.memory_space<vmem>>, vector<8x256xf32>,
    %c240_i32_295 = arith.constant 240 : i32
    %573 = tpu.dynamic_rotate %541 by %c240_i32_295 dim 1 : vector<8x256xf32>, i32 -> vector<8x256xf32>
    %574 = vector.extract_strided_slice %0 {offsets = [7, 0], sizes = [1, 256], strides = [1, 1]} : vector<9x256xf32> to vector<1x256xf32>
    %575 = vector.broadcast %574 : vector<1x256xf32> to vector<8x256xf32>
    %576 = arith.mulf %573, %575 : vector<8x256xf32>
    %c56_296 = arith.constant 56 : index
    %c0_297 = arith.constant 0 : index
    %577 = vector.load %arg35[%c56_296, %c0_297] : memref<72x256xf32, #tpu.memory_space<vmem>>, vector<8x256xf32>
    tpu.vector_store %arg35[%c56_296, %c0_297], %576 {strides = array<i32>} : memref<72x256xf32, #tpu.memory_space<vmem>>, vector<8x256xf32>,
    %c239_i32_298 = arith.constant 239 : i32
    %578 = tpu.dynamic_rotate %541 by %c239_i32_298 dim 1 : vector<8x256xf32>, i32 -> vector<8x256xf32>
    %579 = vector.extract_strided_slice %0 {offsets = [8, 0], sizes = [1, 256], strides = [1, 1]} : vector<9x256xf32> to vector<1x256xf32>
    %580 = vector.broadcast %579 : vector<1x256xf32> to vector<8x256xf32>
    %581 = arith.mulf %578, %580 : vector<8x256xf32>
    %c64_299 = arith.constant 64 : index
    %c0_300 = arith.constant 0 : index
    %582 = vector.load %arg35[%c64_299, %c0_300] : memref<72x256xf32, #tpu.memory_space<vmem>>, vector<8x256xf32>
    tpu.vector_store %arg35[%c64_299, %c0_300], %581 {strides = array<i32>} : memref<72x256xf32, #tpu.memory_space<vmem>>, vector<8x256xf32>,
    %c0_301 = arith.constant 0 : index
    %c0_302 = arith.constant 0 : index
    %583 = vector.load %arg35[%c0_301, %c0_302] : memref<72x256xf32, #tpu.memory_space<vmem>>, vector<72x256xf32>
    %cst_303 = arith.constant dense<0.000000e+00> : vector<32x256xf32>
    %584 = tpu.matmul %4, %583, %cst_303 {dimension_numbers = #tpu.dot_dimension_numbers<[1], [0], [0], [1], [0, 0, 1, 1], [], []>} : vector<32x72xf32>, vector<72x256xf32>, vector<32x256xf32> -> vector<32x256xf32>
    %cst_304 = arith.constant dense<0.000000e+00> : vector<32x256xf32>
    %585 = tpu.matmul %5, %468, %cst_304 {dimension_numbers = #tpu.dot_dimension_numbers<[1], [0], [0], [1], [0, 0, 1, 1], [], []>} : vector<32x72xf32>, vector<72x256xf32>, vector<32x256xf32> -> vector<32x256xf32>
    %586 = arith.addf %584, %585 : vector<32x256xf32>
    %587 = vector.broadcast %6 : vector<32x1xf32> to vector<32x256xf32>
    %588 = arith.addf %586, %587 : vector<32x256xf32>
    %589 = vector.extract_strided_slice %588 {offsets = [0, 0], sizes = [8, 256], strides = [1, 1]} : vector<32x256xf32> to vector<8x256xf32>
    %590 = arith.negf %589 : vector<8x256xf32>
    %591 = math.exp %590 : vector<8x256xf32>
    %cst_305 = arith.constant 1.000000e+00 : f32
    %592 = vector.broadcast %cst_305 : f32 to vector<8x256xf32>
    %593 = arith.addf %592, %591 : vector<8x256xf32>
    %594 = arith.divf %592, %593 : vector<8x256xf32>
    %595 = vector.extract_strided_slice %588 {offsets = [8, 0], sizes = [8, 256], strides = [1, 1]} : vector<32x256xf32> to vector<8x256xf32>
    %596 = arith.negf %595 : vector<8x256xf32>
    %597 = math.exp %596 : vector<8x256xf32>
    %cst_306 = arith.constant 1.000000e+00 : f32
    %598 = vector.broadcast %cst_306 : f32 to vector<8x256xf32>
    %599 = arith.addf %598, %597 : vector<8x256xf32>
    %600 = arith.divf %598, %599 : vector<8x256xf32>
    %601 = vector.extract_strided_slice %588 {offsets = [16, 0], sizes = [8, 256], strides = [1, 1]} : vector<32x256xf32> to vector<8x256xf32>
    %602 = arith.negf %601 : vector<8x256xf32>
    %603 = math.exp %602 : vector<8x256xf32>
    %cst_307 = arith.constant 1.000000e+00 : f32
    %604 = vector.broadcast %cst_307 : f32 to vector<8x256xf32>
    %605 = arith.addf %604, %603 : vector<8x256xf32>
    %606 = arith.divf %604, %605 : vector<8x256xf32>
    %607 = vector.extract_strided_slice %588 {offsets = [24, 0], sizes = [8, 256], strides = [1, 1]} : vector<32x256xf32> to vector<8x256xf32>
    %608 = math.tanh %607 : vector<8x256xf32>
    %609 = arith.mulf %600, %424 : vector<8x256xf32>
    %610 = arith.mulf %594, %608 : vector<8x256xf32>
    %611 = arith.addf %609, %610 : vector<8x256xf32>
    %612 = math.tanh %611 : vector<8x256xf32>
    %613 = arith.mulf %606, %612 : vector<8x256xf32>
    %c17_i32_308 = arith.constant 17 : i32
    %614 = tpu.dynamic_rotate %613 by %c17_i32_308 dim 1 : vector<8x256xf32>, i32 -> vector<8x256xf32>
    %615 = vector.extract_strided_slice %0 {offsets = [0, 0], sizes = [1, 256], strides = [1, 1]} : vector<9x256xf32> to vector<1x256xf32>
    %616 = vector.broadcast %615 : vector<1x256xf32> to vector<8x256xf32>
    %617 = arith.mulf %614, %616 : vector<8x256xf32>
    %c0_309 = arith.constant 0 : index
    %c0_310 = arith.constant 0 : index
    %618 = vector.load %arg36[%c0_309, %c0_310] : memref<72x256xf32, #tpu.memory_space<vmem>>, vector<8x256xf32>
    tpu.vector_store %arg36[%c0_309, %c0_310], %617 {strides = array<i32>} : memref<72x256xf32, #tpu.memory_space<vmem>>, vector<8x256xf32>,
    %c16_i32_311 = arith.constant 16 : i32
    %619 = tpu.dynamic_rotate %613 by %c16_i32_311 dim 1 : vector<8x256xf32>, i32 -> vector<8x256xf32>
    %620 = vector.extract_strided_slice %0 {offsets = [1, 0], sizes = [1, 256], strides = [1, 1]} : vector<9x256xf32> to vector<1x256xf32>
    %621 = vector.broadcast %620 : vector<1x256xf32> to vector<8x256xf32>
    %622 = arith.mulf %619, %621 : vector<8x256xf32>
    %c8_312 = arith.constant 8 : index
    %c0_313 = arith.constant 0 : index
    %623 = vector.load %arg36[%c8_312, %c0_313] : memref<72x256xf32, #tpu.memory_space<vmem>>, vector<8x256xf32>
    tpu.vector_store %arg36[%c8_312, %c0_313], %622 {strides = array<i32>} : memref<72x256xf32, #tpu.memory_space<vmem>>, vector<8x256xf32>,
    %c15_i32_314 = arith.constant 15 : i32
    %624 = tpu.dynamic_rotate %613 by %c15_i32_314 dim 1 : vector<8x256xf32>, i32 -> vector<8x256xf32>
    %625 = vector.extract_strided_slice %0 {offsets = [2, 0], sizes = [1, 256], strides = [1, 1]} : vector<9x256xf32> to vector<1x256xf32>
    %626 = vector.broadcast %625 : vector<1x256xf32> to vector<8x256xf32>
    %627 = arith.mulf %624, %626 : vector<8x256xf32>
    %c16_315 = arith.constant 16 : index
    %c0_316 = arith.constant 0 : index
    %628 = vector.load %arg36[%c16_315, %c0_316] : memref<72x256xf32, #tpu.memory_space<vmem>>, vector<8x256xf32>
    tpu.vector_store %arg36[%c16_315, %c0_316], %627 {strides = array<i32>} : memref<72x256xf32, #tpu.memory_space<vmem>>, vector<8x256xf32>,
    %c1_i32_317 = arith.constant 1 : i32
    %629 = tpu.dynamic_rotate %613 by %c1_i32_317 dim 1 : vector<8x256xf32>, i32 -> vector<8x256xf32>
    %630 = vector.extract_strided_slice %0 {offsets = [3, 0], sizes = [1, 256], strides = [1, 1]} : vector<9x256xf32> to vector<1x256xf32>
    %631 = vector.broadcast %630 : vector<1x256xf32> to vector<8x256xf32>
    %632 = arith.mulf %629, %631 : vector<8x256xf32>
    %c24_318 = arith.constant 24 : index
    %c0_319 = arith.constant 0 : index
    %633 = vector.load %arg36[%c24_318, %c0_319] : memref<72x256xf32, #tpu.memory_space<vmem>>, vector<8x256xf32>
    tpu.vector_store %arg36[%c24_318, %c0_319], %632 {strides = array<i32>} : memref<72x256xf32, #tpu.memory_space<vmem>>, vector<8x256xf32>,
    %c32_320 = arith.constant 32 : index
    %c0_321 = arith.constant 0 : index
    %634 = vector.load %arg36[%c32_320, %c0_321] : memref<72x256xf32, #tpu.memory_space<vmem>>, vector<8x256xf32>
    tpu.vector_store %arg36[%c32_320, %c0_321], %613 {strides = array<i32>} : memref<72x256xf32, #tpu.memory_space<vmem>>, vector<8x256xf32>,
    %c255_i32_322 = arith.constant 255 : i32
    %635 = tpu.dynamic_rotate %613 by %c255_i32_322 dim 1 : vector<8x256xf32>, i32 -> vector<8x256xf32>
    %636 = vector.extract_strided_slice %0 {offsets = [5, 0], sizes = [1, 256], strides = [1, 1]} : vector<9x256xf32> to vector<1x256xf32>
    %637 = vector.broadcast %636 : vector<1x256xf32> to vector<8x256xf32>
    %638 = arith.mulf %635, %637 : vector<8x256xf32>
    %c40_323 = arith.constant 40 : index
    %c0_324 = arith.constant 0 : index
    %639 = vector.load %arg36[%c40_323, %c0_324] : memref<72x256xf32, #tpu.memory_space<vmem>>, vector<8x256xf32>
    tpu.vector_store %arg36[%c40_323, %c0_324], %638 {strides = array<i32>} : memref<72x256xf32, #tpu.memory_space<vmem>>, vector<8x256xf32>,
    %c241_i32_325 = arith.constant 241 : i32
    %640 = tpu.dynamic_rotate %613 by %c241_i32_325 dim 1 : vector<8x256xf32>, i32 -> vector<8x256xf32>
    %641 = vector.extract_strided_slice %0 {offsets = [6, 0], sizes = [1, 256], strides = [1, 1]} : vector<9x256xf32> to vector<1x256xf32>
    %642 = vector.broadcast %641 : vector<1x256xf32> to vector<8x256xf32>
    %643 = arith.mulf %640, %642 : vector<8x256xf32>
    %c48_326 = arith.constant 48 : index
    %c0_327 = arith.constant 0 : index
    %644 = vector.load %arg36[%c48_326, %c0_327] : memref<72x256xf32, #tpu.memory_space<vmem>>, vector<8x256xf32>
    tpu.vector_store %arg36[%c48_326, %c0_327], %643 {strides = array<i32>} : memref<72x256xf32, #tpu.memory_space<vmem>>, vector<8x256xf32>,
    %c240_i32_328 = arith.constant 240 : i32
    %645 = tpu.dynamic_rotate %613 by %c240_i32_328 dim 1 : vector<8x256xf32>, i32 -> vector<8x256xf32>
    %646 = vector.extract_strided_slice %0 {offsets = [7, 0], sizes = [1, 256], strides = [1, 1]} : vector<9x256xf32> to vector<1x256xf32>
    %647 = vector.broadcast %646 : vector<1x256xf32> to vector<8x256xf32>
    %648 = arith.mulf %645, %647 : vector<8x256xf32>
    %c56_329 = arith.constant 56 : index
    %c0_330 = arith.constant 0 : index
    %649 = vector.load %arg36[%c56_329, %c0_330] : memref<72x256xf32, #tpu.memory_space<vmem>>, vector<8x256xf32>
    tpu.vector_store %arg36[%c56_329, %c0_330], %648 {strides = array<i32>} : memref<72x256xf32, #tpu.memory_space<vmem>>, vector<8x256xf32>,
    %c239_i32_331 = arith.constant 239 : i32
    %650 = tpu.dynamic_rotate %613 by %c239_i32_331 dim 1 : vector<8x256xf32>, i32 -> vector<8x256xf32>
    %651 = vector.extract_strided_slice %0 {offsets = [8, 0], sizes = [1, 256], strides = [1, 1]} : vector<9x256xf32> to vector<1x256xf32>
    %652 = vector.broadcast %651 : vector<1x256xf32> to vector<8x256xf32>
    %653 = arith.mulf %650, %652 : vector<8x256xf32>
    %c64_332 = arith.constant 64 : index
    %c0_333 = arith.constant 0 : index
    %654 = vector.load %arg36[%c64_332, %c0_333] : memref<72x256xf32, #tpu.memory_space<vmem>>, vector<8x256xf32>
    tpu.vector_store %arg36[%c64_332, %c0_333], %653 {strides = array<i32>} : memref<72x256xf32, #tpu.memory_space<vmem>>, vector<8x256xf32>,
    %c0_334 = arith.constant 0 : index
    %c0_335 = arith.constant 0 : index
    %655 = vector.load %arg36[%c0_334, %c0_335] : memref<72x256xf32, #tpu.memory_space<vmem>>, vector<72x256xf32>
    %c0_336 = arith.constant 0 : index
    %c768 = arith.constant 768 : index
    %656 = vector.load %arg0[%c0_336, %c768] : memref<2x1024xf32, #tpu.memory_space<vmem>>, vector<2x256xf32>
    %c17_i32_337 = arith.constant 17 : i32
    %657 = tpu.dynamic_rotate %656 by %c17_i32_337 dim 1 : vector<2x256xf32>, i32 -> vector<2x256xf32>
    %658 = vector.extract_strided_slice %0 {offsets = [0, 0], sizes = [1, 256], strides = [1, 1]} : vector<9x256xf32> to vector<1x256xf32>
    %659 = vector.broadcast %658 : vector<1x256xf32> to vector<2x256xf32>
    %660 = arith.mulf %657, %659 : vector<2x256xf32>
    %c0_338 = arith.constant 0 : index
    %c0_339 = arith.constant 0 : index
    %661 = vector.load %arg34[%c0_338, %c0_339] : memref<18x256xf32, #tpu.memory_space<vmem>>, vector<2x256xf32>
    tpu.vector_store %arg34[%c0_338, %c0_339], %660 {strides = array<i32>} : memref<18x256xf32, #tpu.memory_space<vmem>>, vector<2x256xf32>,
    %c16_i32_340 = arith.constant 16 : i32
    %662 = tpu.dynamic_rotate %656 by %c16_i32_340 dim 1 : vector<2x256xf32>, i32 -> vector<2x256xf32>
    %663 = vector.extract_strided_slice %0 {offsets = [1, 0], sizes = [1, 256], strides = [1, 1]} : vector<9x256xf32> to vector<1x256xf32>
    %664 = vector.broadcast %663 : vector<1x256xf32> to vector<2x256xf32>
    %665 = arith.mulf %662, %664 : vector<2x256xf32>
    %c2_341 = arith.constant 2 : index
    %c0_342 = arith.constant 0 : index
    %666 = vector.load %arg34[%c2_341, %c0_342] : memref<18x256xf32, #tpu.memory_space<vmem>>, vector<2x256xf32>
    tpu.vector_store %arg34[%c2_341, %c0_342], %665 {strides = array<i32>} : memref<18x256xf32, #tpu.memory_space<vmem>>, vector<2x256xf32>,
    %c15_i32_343 = arith.constant 15 : i32
    %667 = tpu.dynamic_rotate %656 by %c15_i32_343 dim 1 : vector<2x256xf32>, i32 -> vector<2x256xf32>
    %668 = vector.extract_strided_slice %0 {offsets = [2, 0], sizes = [1, 256], strides = [1, 1]} : vector<9x256xf32> to vector<1x256xf32>
    %669 = vector.broadcast %668 : vector<1x256xf32> to vector<2x256xf32>
    %670 = arith.mulf %667, %669 : vector<2x256xf32>
    %c4_344 = arith.constant 4 : index
    %c0_345 = arith.constant 0 : index
    %671 = vector.load %arg34[%c4_344, %c0_345] : memref<18x256xf32, #tpu.memory_space<vmem>>, vector<2x256xf32>
    tpu.vector_store %arg34[%c4_344, %c0_345], %670 {strides = array<i32>} : memref<18x256xf32, #tpu.memory_space<vmem>>, vector<2x256xf32>,
    %c1_i32_346 = arith.constant 1 : i32
    %672 = tpu.dynamic_rotate %656 by %c1_i32_346 dim 1 : vector<2x256xf32>, i32 -> vector<2x256xf32>
    %673 = vector.extract_strided_slice %0 {offsets = [3, 0], sizes = [1, 256], strides = [1, 1]} : vector<9x256xf32> to vector<1x256xf32>
    %674 = vector.broadcast %673 : vector<1x256xf32> to vector<2x256xf32>
    %675 = arith.mulf %672, %674 : vector<2x256xf32>
    %c6_347 = arith.constant 6 : index
    %c0_348 = arith.constant 0 : index
    %676 = vector.load %arg34[%c6_347, %c0_348] : memref<18x256xf32, #tpu.memory_space<vmem>>, vector<2x256xf32>
    tpu.vector_store %arg34[%c6_347, %c0_348], %675 {strides = array<i32>} : memref<18x256xf32, #tpu.memory_space<vmem>>, vector<2x256xf32>,
    %c8_349 = arith.constant 8 : index
    %c0_350 = arith.constant 0 : index
    %677 = vector.load %arg34[%c8_349, %c0_350] : memref<18x256xf32, #tpu.memory_space<vmem>>, vector<2x256xf32>
    tpu.vector_store %arg34[%c8_349, %c0_350], %656 {strides = array<i32>} : memref<18x256xf32, #tpu.memory_space<vmem>>, vector<2x256xf32>,
    %c255_i32_351 = arith.constant 255 : i32
    %678 = tpu.dynamic_rotate %656 by %c255_i32_351 dim 1 : vector<2x256xf32>, i32 -> vector<2x256xf32>
    %679 = vector.extract_strided_slice %0 {offsets = [5, 0], sizes = [1, 256], strides = [1, 1]} : vector<9x256xf32> to vector<1x256xf32>
    %680 = vector.broadcast %679 : vector<1x256xf32> to vector<2x256xf32>
    %681 = arith.mulf %678, %680 : vector<2x256xf32>
    %c10_352 = arith.constant 10 : index
    %c0_353 = arith.constant 0 : index
    %682 = vector.load %arg34[%c10_352, %c0_353] : memref<18x256xf32, #tpu.memory_space<vmem>>, vector<2x256xf32>
    tpu.vector_store %arg34[%c10_352, %c0_353], %681 {strides = array<i32>} : memref<18x256xf32, #tpu.memory_space<vmem>>, vector<2x256xf32>,
    %c241_i32_354 = arith.constant 241 : i32
    %683 = tpu.dynamic_rotate %656 by %c241_i32_354 dim 1 : vector<2x256xf32>, i32 -> vector<2x256xf32>
    %684 = vector.extract_strided_slice %0 {offsets = [6, 0], sizes = [1, 256], strides = [1, 1]} : vector<9x256xf32> to vector<1x256xf32>
    %685 = vector.broadcast %684 : vector<1x256xf32> to vector<2x256xf32>
    %686 = arith.mulf %683, %685 : vector<2x256xf32>
    %c12_355 = arith.constant 12 : index
    %c0_356 = arith.constant 0 : index
    %687 = vector.load %arg34[%c12_355, %c0_356] : memref<18x256xf32, #tpu.memory_space<vmem>>, vector<2x256xf32>
    tpu.vector_store %arg34[%c12_355, %c0_356], %686 {strides = array<i32>} : memref<18x256xf32, #tpu.memory_space<vmem>>, vector<2x256xf32>,
    %c240_i32_357 = arith.constant 240 : i32
    %688 = tpu.dynamic_rotate %656 by %c240_i32_357 dim 1 : vector<2x256xf32>, i32 -> vector<2x256xf32>
    %689 = vector.extract_strided_slice %0 {offsets = [7, 0], sizes = [1, 256], strides = [1, 1]} : vector<9x256xf32> to vector<1x256xf32>
    %690 = vector.broadcast %689 : vector<1x256xf32> to vector<2x256xf32>
    %691 = arith.mulf %688, %690 : vector<2x256xf32>
    %c14_358 = arith.constant 14 : index
    %c0_359 = arith.constant 0 : index
    %692 = vector.load %arg34[%c14_358, %c0_359] : memref<18x256xf32, #tpu.memory_space<vmem>>, vector<2x256xf32>
    tpu.vector_store %arg34[%c14_358, %c0_359], %691 {strides = array<i32>} : memref<18x256xf32, #tpu.memory_space<vmem>>, vector<2x256xf32>,
    %c239_i32_360 = arith.constant 239 : i32
    %693 = tpu.dynamic_rotate %656 by %c239_i32_360 dim 1 : vector<2x256xf32>, i32 -> vector<2x256xf32>
    %694 = vector.extract_strided_slice %0 {offsets = [8, 0], sizes = [1, 256], strides = [1, 1]} : vector<9x256xf32> to vector<1x256xf32>
    %695 = vector.broadcast %694 : vector<1x256xf32> to vector<2x256xf32>
    %696 = arith.mulf %693, %695 : vector<2x256xf32>
    %c16_361 = arith.constant 16 : index
    %c0_362 = arith.constant 0 : index
    %697 = vector.load %arg34[%c16_361, %c0_362] : memref<18x256xf32, #tpu.memory_space<vmem>>, vector<2x256xf32>
    tpu.vector_store %arg34[%c16_361, %c0_362], %696 {strides = array<i32>} : memref<18x256xf32, #tpu.memory_space<vmem>>, vector<2x256xf32>,
    %c0_363 = arith.constant 0 : index
    %c0_364 = arith.constant 0 : index
    %698 = vector.load %arg34[%c0_363, %c0_364] : memref<18x256xf32, #tpu.memory_space<vmem>>, vector<18x256xf32>
    %cst_365 = arith.constant dense<0.000000e+00> : vector<32x256xf32>
    %699 = tpu.matmul %1, %698, %cst_365 {dimension_numbers = #tpu.dot_dimension_numbers<[1], [0], [0], [1], [0, 0, 1, 1], [], []>} : vector<32x18xf32>, vector<18x256xf32>, vector<32x256xf32> -> vector<32x256xf32>
    %cst_366 = arith.constant dense<0.000000e+00> : vector<32x256xf32>
    %700 = tpu.matmul %2, %583, %cst_366 {dimension_numbers = #tpu.dot_dimension_numbers<[1], [0], [0], [1], [0, 0, 1, 1], [], []>} : vector<32x72xf32>, vector<72x256xf32>, vector<32x256xf32> -> vector<32x256xf32>
    %701 = arith.addf %699, %700 : vector<32x256xf32>
    %702 = vector.broadcast %3 : vector<32x1xf32> to vector<32x256xf32>
    %703 = arith.addf %701, %702 : vector<32x256xf32>
    %704 = vector.extract_strided_slice %703 {offsets = [0, 0], sizes = [8, 256], strides = [1, 1]} : vector<32x256xf32> to vector<8x256xf32>
    %705 = arith.negf %704 : vector<8x256xf32>
    %706 = math.exp %705 : vector<8x256xf32>
    %cst_367 = arith.constant 1.000000e+00 : f32
    %707 = vector.broadcast %cst_367 : f32 to vector<8x256xf32>
    %708 = arith.addf %707, %706 : vector<8x256xf32>
    %709 = arith.divf %707, %708 : vector<8x256xf32>
    %710 = vector.extract_strided_slice %703 {offsets = [8, 0], sizes = [8, 256], strides = [1, 1]} : vector<32x256xf32> to vector<8x256xf32>
    %711 = arith.negf %710 : vector<8x256xf32>
    %712 = math.exp %711 : vector<8x256xf32>
    %cst_368 = arith.constant 1.000000e+00 : f32
    %713 = vector.broadcast %cst_368 : f32 to vector<8x256xf32>
    %714 = arith.addf %713, %712 : vector<8x256xf32>
    %715 = arith.divf %713, %714 : vector<8x256xf32>
    %716 = vector.extract_strided_slice %703 {offsets = [16, 0], sizes = [8, 256], strides = [1, 1]} : vector<32x256xf32> to vector<8x256xf32>
    %717 = arith.negf %716 : vector<8x256xf32>
    %718 = math.exp %717 : vector<8x256xf32>
    %cst_369 = arith.constant 1.000000e+00 : f32
    %719 = vector.broadcast %cst_369 : f32 to vector<8x256xf32>
    %720 = arith.addf %719, %718 : vector<8x256xf32>
    %721 = arith.divf %719, %720 : vector<8x256xf32>
    %722 = vector.extract_strided_slice %703 {offsets = [24, 0], sizes = [8, 256], strides = [1, 1]} : vector<32x256xf32> to vector<8x256xf32>
    %723 = math.tanh %722 : vector<8x256xf32>
    %724 = arith.mulf %715, %539 : vector<8x256xf32>
    %725 = arith.mulf %709, %723 : vector<8x256xf32>
    %726 = arith.addf %724, %725 : vector<8x256xf32>
    %727 = math.tanh %726 : vector<8x256xf32>
    %728 = arith.mulf %721, %727 : vector<8x256xf32>
    %c17_i32_370 = arith.constant 17 : i32
    %729 = tpu.dynamic_rotate %728 by %c17_i32_370 dim 1 : vector<8x256xf32>, i32 -> vector<8x256xf32>
    %730 = vector.extract_strided_slice %0 {offsets = [0, 0], sizes = [1, 256], strides = [1, 1]} : vector<9x256xf32> to vector<1x256xf32>
    %731 = vector.broadcast %730 : vector<1x256xf32> to vector<8x256xf32>
    %732 = arith.mulf %729, %731 : vector<8x256xf32>
    %c0_371 = arith.constant 0 : index
    %c0_372 = arith.constant 0 : index
    %733 = vector.load %arg35[%c0_371, %c0_372] : memref<72x256xf32, #tpu.memory_space<vmem>>, vector<8x256xf32>
    tpu.vector_store %arg35[%c0_371, %c0_372], %732 {strides = array<i32>} : memref<72x256xf32, #tpu.memory_space<vmem>>, vector<8x256xf32>,
    %c16_i32_373 = arith.constant 16 : i32
    %734 = tpu.dynamic_rotate %728 by %c16_i32_373 dim 1 : vector<8x256xf32>, i32 -> vector<8x256xf32>
    %735 = vector.extract_strided_slice %0 {offsets = [1, 0], sizes = [1, 256], strides = [1, 1]} : vector<9x256xf32> to vector<1x256xf32>
    %736 = vector.broadcast %735 : vector<1x256xf32> to vector<8x256xf32>
    %737 = arith.mulf %734, %736 : vector<8x256xf32>
    %c8_374 = arith.constant 8 : index
    %c0_375 = arith.constant 0 : index
    %738 = vector.load %arg35[%c8_374, %c0_375] : memref<72x256xf32, #tpu.memory_space<vmem>>, vector<8x256xf32>
    tpu.vector_store %arg35[%c8_374, %c0_375], %737 {strides = array<i32>} : memref<72x256xf32, #tpu.memory_space<vmem>>, vector<8x256xf32>,
    %c15_i32_376 = arith.constant 15 : i32
    %739 = tpu.dynamic_rotate %728 by %c15_i32_376 dim 1 : vector<8x256xf32>, i32 -> vector<8x256xf32>
    %740 = vector.extract_strided_slice %0 {offsets = [2, 0], sizes = [1, 256], strides = [1, 1]} : vector<9x256xf32> to vector<1x256xf32>
    %741 = vector.broadcast %740 : vector<1x256xf32> to vector<8x256xf32>
    %742 = arith.mulf %739, %741 : vector<8x256xf32>
    %c16_377 = arith.constant 16 : index
    %c0_378 = arith.constant 0 : index
    %743 = vector.load %arg35[%c16_377, %c0_378] : memref<72x256xf32, #tpu.memory_space<vmem>>, vector<8x256xf32>
    tpu.vector_store %arg35[%c16_377, %c0_378], %742 {strides = array<i32>} : memref<72x256xf32, #tpu.memory_space<vmem>>, vector<8x256xf32>,
    %c1_i32_379 = arith.constant 1 : i32
    %744 = tpu.dynamic_rotate %728 by %c1_i32_379 dim 1 : vector<8x256xf32>, i32 -> vector<8x256xf32>
    %745 = vector.extract_strided_slice %0 {offsets = [3, 0], sizes = [1, 256], strides = [1, 1]} : vector<9x256xf32> to vector<1x256xf32>
    %746 = vector.broadcast %745 : vector<1x256xf32> to vector<8x256xf32>
    %747 = arith.mulf %744, %746 : vector<8x256xf32>
    %c24_380 = arith.constant 24 : index
    %c0_381 = arith.constant 0 : index
    %748 = vector.load %arg35[%c24_380, %c0_381] : memref<72x256xf32, #tpu.memory_space<vmem>>, vector<8x256xf32>
    tpu.vector_store %arg35[%c24_380, %c0_381], %747 {strides = array<i32>} : memref<72x256xf32, #tpu.memory_space<vmem>>, vector<8x256xf32>,
    %c32_382 = arith.constant 32 : index
    %c0_383 = arith.constant 0 : index
    %749 = vector.load %arg35[%c32_382, %c0_383] : memref<72x256xf32, #tpu.memory_space<vmem>>, vector<8x256xf32>
    tpu.vector_store %arg35[%c32_382, %c0_383], %728 {strides = array<i32>} : memref<72x256xf32, #tpu.memory_space<vmem>>, vector<8x256xf32>,
    %c255_i32_384 = arith.constant 255 : i32
    %750 = tpu.dynamic_rotate %728 by %c255_i32_384 dim 1 : vector<8x256xf32>, i32 -> vector<8x256xf32>
    %751 = vector.extract_strided_slice %0 {offsets = [5, 0], sizes = [1, 256], strides = [1, 1]} : vector<9x256xf32> to vector<1x256xf32>
    %752 = vector.broadcast %751 : vector<1x256xf32> to vector<8x256xf32>
    %753 = arith.mulf %750, %752 : vector<8x256xf32>
    %c40_385 = arith.constant 40 : index
    %c0_386 = arith.constant 0 : index
    %754 = vector.load %arg35[%c40_385, %c0_386] : memref<72x256xf32, #tpu.memory_space<vmem>>, vector<8x256xf32>
    tpu.vector_store %arg35[%c40_385, %c0_386], %753 {strides = array<i32>} : memref<72x256xf32, #tpu.memory_space<vmem>>, vector<8x256xf32>,
    %c241_i32_387 = arith.constant 241 : i32
    %755 = tpu.dynamic_rotate %728 by %c241_i32_387 dim 1 : vector<8x256xf32>, i32 -> vector<8x256xf32>
    %756 = vector.extract_strided_slice %0 {offsets = [6, 0], sizes = [1, 256], strides = [1, 1]} : vector<9x256xf32> to vector<1x256xf32>
    %757 = vector.broadcast %756 : vector<1x256xf32> to vector<8x256xf32>
    %758 = arith.mulf %755, %757 : vector<8x256xf32>
    %c48_388 = arith.constant 48 : index
    %c0_389 = arith.constant 0 : index
    %759 = vector.load %arg35[%c48_388, %c0_389] : memref<72x256xf32, #tpu.memory_space<vmem>>, vector<8x256xf32>
    tpu.vector_store %arg35[%c48_388, %c0_389], %758 {strides = array<i32>} : memref<72x256xf32, #tpu.memory_space<vmem>>, vector<8x256xf32>,
    %c240_i32_390 = arith.constant 240 : i32
    %760 = tpu.dynamic_rotate %728 by %c240_i32_390 dim 1 : vector<8x256xf32>, i32 -> vector<8x256xf32>
    %761 = vector.extract_strided_slice %0 {offsets = [7, 0], sizes = [1, 256], strides = [1, 1]} : vector<9x256xf32> to vector<1x256xf32>
    %762 = vector.broadcast %761 : vector<1x256xf32> to vector<8x256xf32>
    %763 = arith.mulf %760, %762 : vector<8x256xf32>
    %c56_391 = arith.constant 56 : index
    %c0_392 = arith.constant 0 : index
    %764 = vector.load %arg35[%c56_391, %c0_392] : memref<72x256xf32, #tpu.memory_space<vmem>>, vector<8x256xf32>
    tpu.vector_store %arg35[%c56_391, %c0_392], %763 {strides = array<i32>} : memref<72x256xf32, #tpu.memory_space<vmem>>, vector<8x256xf32>,
    %c239_i32_393 = arith.constant 239 : i32
    %765 = tpu.dynamic_rotate %728 by %c239_i32_393 dim 1 : vector<8x256xf32>, i32 -> vector<8x256xf32>
    %766 = vector.extract_strided_slice %0 {offsets = [8, 0], sizes = [1, 256], strides = [1, 1]} : vector<9x256xf32> to vector<1x256xf32>
    %767 = vector.broadcast %766 : vector<1x256xf32> to vector<8x256xf32>
    %768 = arith.mulf %765, %767 : vector<8x256xf32>
    %c64_394 = arith.constant 64 : index
    %c0_395 = arith.constant 0 : index
    %769 = vector.load %arg35[%c64_394, %c0_395] : memref<72x256xf32, #tpu.memory_space<vmem>>, vector<8x256xf32>
    tpu.vector_store %arg35[%c64_394, %c0_395], %768 {strides = array<i32>} : memref<72x256xf32, #tpu.memory_space<vmem>>, vector<8x256xf32>,
    %c0_396 = arith.constant 0 : index
    %c0_397 = arith.constant 0 : index
    %770 = vector.load %arg35[%c0_396, %c0_397] : memref<72x256xf32, #tpu.memory_space<vmem>>, vector<72x256xf32>
    %cst_398 = arith.constant dense<0.000000e+00> : vector<32x256xf32>
    %771 = tpu.matmul %4, %770, %cst_398 {dimension_numbers = #tpu.dot_dimension_numbers<[1], [0], [0], [1], [0, 0, 1, 1], [], []>} : vector<32x72xf32>, vector<72x256xf32>, vector<32x256xf32> -> vector<32x256xf32>
    %cst_399 = arith.constant dense<0.000000e+00> : vector<32x256xf32>
    %772 = tpu.matmul %5, %655, %cst_399 {dimension_numbers = #tpu.dot_dimension_numbers<[1], [0], [0], [1], [0, 0, 1, 1], [], []>} : vector<32x72xf32>, vector<72x256xf32>, vector<32x256xf32> -> vector<32x256xf32>
    %773 = arith.addf %771, %772 : vector<32x256xf32>
    %774 = vector.broadcast %6 : vector<32x1xf32> to vector<32x256xf32>
    %775 = arith.addf %773, %774 : vector<32x256xf32>
    %776 = vector.extract_strided_slice %775 {offsets = [0, 0], sizes = [8, 256], strides = [1, 1]} : vector<32x256xf32> to vector<8x256xf32>
    %777 = arith.negf %776 : vector<8x256xf32>
    %778 = math.exp %777 : vector<8x256xf32>
    %cst_400 = arith.constant 1.000000e+00 : f32
    %779 = vector.broadcast %cst_400 : f32 to vector<8x256xf32>
    %780 = arith.addf %779, %778 : vector<8x256xf32>
    %781 = arith.divf %779, %780 : vector<8x256xf32>
    %782 = vector.extract_strided_slice %775 {offsets = [8, 0], sizes = [8, 256], strides = [1, 1]} : vector<32x256xf32> to vector<8x256xf32>
    %783 = arith.negf %782 : vector<8x256xf32>
    %784 = math.exp %783 : vector<8x256xf32>
    %cst_401 = arith.constant 1.000000e+00 : f32
    %785 = vector.broadcast %cst_401 : f32 to vector<8x256xf32>
    %786 = arith.addf %785, %784 : vector<8x256xf32>
    %787 = arith.divf %785, %786 : vector<8x256xf32>
    %788 = vector.extract_strided_slice %775 {offsets = [16, 0], sizes = [8, 256], strides = [1, 1]} : vector<32x256xf32> to vector<8x256xf32>
    %789 = arith.negf %788 : vector<8x256xf32>
    %790 = math.exp %789 : vector<8x256xf32>
    %cst_402 = arith.constant 1.000000e+00 : f32
    %791 = vector.broadcast %cst_402 : f32 to vector<8x256xf32>
    %792 = arith.addf %791, %790 : vector<8x256xf32>
    %793 = arith.divf %791, %792 : vector<8x256xf32>
    %794 = vector.extract_strided_slice %775 {offsets = [24, 0], sizes = [8, 256], strides = [1, 1]} : vector<32x256xf32> to vector<8x256xf32>
    %795 = math.tanh %794 : vector<8x256xf32>
    %796 = arith.mulf %787, %611 : vector<8x256xf32>
    %797 = arith.mulf %781, %795 : vector<8x256xf32>
    %798 = arith.addf %796, %797 : vector<8x256xf32>
    %799 = math.tanh %798 : vector<8x256xf32>
    %800 = arith.mulf %793, %799 : vector<8x256xf32>
    %c0_403 = arith.constant 0 : index
    %c0_404 = arith.constant 0 : index
    %801 = vector.load %arg8[%c0_403, %c0_404] : memref<256x196xf32, #tpu.memory_space<vmem>>, vector<256x196xf32>
    %cst_405 = arith.constant dense<0.000000e+00> : vector<8x196xf32>
    %802 = tpu.matmul %800, %801, %cst_405 {dimension_numbers = #tpu.dot_dimension_numbers<[1], [0], [0], [1], [0, 0, 1, 1], [], []>} : vector<8x256xf32>, vector<256x196xf32>, vector<8x196xf32> -> vector<8x196xf32>
    %c0_406 = arith.constant 0 : index
    %c0_407 = arith.constant 0 : index
    %803 = vector.load %arg9[%c0_406, %c0_407] : memref<16x8xf32, #tpu.memory_space<vmem>>, vector<16x8xf32>
    %cst_408 = arith.constant dense<0.000000e+00> : vector<16x196xf32>
    %804 = tpu.matmul %803, %802, %cst_408 {dimension_numbers = #tpu.dot_dimension_numbers<[1], [0], [0], [1], [0, 0, 1, 1], [], []>} : vector<16x8xf32>, vector<8x196xf32>, vector<16x196xf32> -> vector<16x196xf32>
    %c0_409 = arith.constant 0 : index
    %c0_410 = arith.constant 0 : index
    %805 = vector.load %arg10[%c0_409, %c0_410] : memref<16x1xf32, #tpu.memory_space<vmem>>, vector<16x1xf32>
    %806 = vector.broadcast %805 : vector<16x1xf32> to vector<16x196xf32>
    %807 = arith.addf %804, %806 : vector<16x196xf32>
    %cst_411 = arith.constant 0.000000e+00 : f32
    %808 = vector.broadcast %cst_411 : f32 to vector<16x196xf32>
    %809 = arith.maximumf %807, %808 : vector<16x196xf32>
    %c0_412 = arith.constant 0 : index
    %c0_413 = arith.constant 0 : index
    %810 = vector.load %arg11[%c0_412, %c0_413] : memref<196x144xf32, #tpu.memory_space<vmem>>, vector<196x144xf32>
    %cst_414 = arith.constant dense<0.000000e+00> : vector<16x144xf32>
    %811 = tpu.matmul %809, %810, %cst_414 {dimension_numbers = #tpu.dot_dimension_numbers<[1], [0], [0], [1], [0, 0, 1, 1], [], []>} : vector<16x196xf32>, vector<196x144xf32>, vector<16x144xf32> -> vector<16x144xf32>
    %c0_415 = arith.constant 0 : index
    %c0_416 = arith.constant 0 : index
    %812 = vector.load %arg12[%c0_415, %c0_416] : memref<16x16xf32, #tpu.memory_space<vmem>>, vector<16x16xf32>
    %cst_417 = arith.constant dense<0.000000e+00> : vector<16x144xf32>
    %813 = tpu.matmul %812, %811, %cst_417 {dimension_numbers = #tpu.dot_dimension_numbers<[1], [0], [0], [1], [0, 0, 1, 1], [], []>} : vector<16x16xf32>, vector<16x144xf32>, vector<16x144xf32> -> vector<16x144xf32>
    %c0_418 = arith.constant 0 : index
    %c0_419 = arith.constant 0 : index
    %814 = vector.load %arg13[%c0_418, %c0_419] : memref<16x1xf32, #tpu.memory_space<vmem>>, vector<16x1xf32>
    %815 = vector.broadcast %814 : vector<16x1xf32> to vector<16x144xf32>
    %816 = arith.addf %813, %815 : vector<16x144xf32>
    %cst_420 = arith.constant 0.000000e+00 : f32
    %817 = vector.broadcast %cst_420 : f32 to vector<16x144xf32>
    %818 = arith.maximumf %816, %817 : vector<16x144xf32>
    %c0_421 = arith.constant 0 : index
    %c0_422 = arith.constant 0 : index
    %819 = vector.load %arg14[%c0_421, %c0_422] : memref<144x100xf32, #tpu.memory_space<vmem>>, vector<144x100xf32>
    %cst_423 = arith.constant dense<0.000000e+00> : vector<16x100xf32>
    %820 = tpu.matmul %818, %819, %cst_423 {dimension_numbers = #tpu.dot_dimension_numbers<[1], [0], [0], [1], [0, 0, 1, 1], [], []>} : vector<16x144xf32>, vector<144x100xf32>, vector<16x100xf32> -> vector<16x100xf32>
    %c0_424 = arith.constant 0 : index
    %c0_425 = arith.constant 0 : index
    %821 = vector.load %arg15[%c0_424, %c0_425] : memref<16x16xf32, #tpu.memory_space<vmem>>, vector<16x16xf32>
    %cst_426 = arith.constant dense<0.000000e+00> : vector<16x100xf32>
    %822 = tpu.matmul %821, %820, %cst_426 {dimension_numbers = #tpu.dot_dimension_numbers<[1], [0], [0], [1], [0, 0, 1, 1], [], []>} : vector<16x16xf32>, vector<16x100xf32>, vector<16x100xf32> -> vector<16x100xf32>
    %c0_427 = arith.constant 0 : index
    %c0_428 = arith.constant 0 : index
    %823 = vector.load %arg16[%c0_427, %c0_428] : memref<16x1xf32, #tpu.memory_space<vmem>>, vector<16x1xf32>
    %824 = vector.broadcast %823 : vector<16x1xf32> to vector<16x100xf32>
    %825 = arith.addf %822, %824 : vector<16x100xf32>
    %cst_429 = arith.constant 0.000000e+00 : f32
    %826 = vector.broadcast %cst_429 : f32 to vector<16x100xf32>
    %827 = arith.maximumf %825, %826 : vector<16x100xf32>
    %c0_430 = arith.constant 0 : index
    %c0_431 = arith.constant 0 : index
    %828 = vector.load %arg17[%c0_430, %c0_431] : memref<100x64xf32, #tpu.memory_space<vmem>>, vector<100x64xf32>
    %cst_432 = arith.constant dense<0.000000e+00> : vector<16x64xf32>
    %829 = tpu.matmul %827, %828, %cst_432 {dimension_numbers = #tpu.dot_dimension_numbers<[1], [0], [0], [1], [0, 0, 1, 1], [], []>} : vector<16x100xf32>, vector<100x64xf32>, vector<16x64xf32> -> vector<16x64xf32>
    %c0_433 = arith.constant 0 : index
    %c0_434 = arith.constant 0 : index
    %830 = vector.load %arg18[%c0_433, %c0_434] : memref<16x16xf32, #tpu.memory_space<vmem>>, vector<16x16xf32>
    %cst_435 = arith.constant dense<0.000000e+00> : vector<16x64xf32>
    %831 = tpu.matmul %830, %829, %cst_435 {dimension_numbers = #tpu.dot_dimension_numbers<[1], [0], [0], [1], [0, 0, 1, 1], [], []>} : vector<16x16xf32>, vector<16x64xf32>, vector<16x64xf32> -> vector<16x64xf32>
    %c0_436 = arith.constant 0 : index
    %c0_437 = arith.constant 0 : index
    %832 = vector.load %arg19[%c0_436, %c0_437] : memref<16x1xf32, #tpu.memory_space<vmem>>, vector<16x1xf32>
    %833 = vector.broadcast %832 : vector<16x1xf32> to vector<16x64xf32>
    %834 = arith.addf %831, %833 : vector<16x64xf32>
    %cst_438 = arith.constant 0.000000e+00 : f32
    %835 = vector.broadcast %cst_438 : f32 to vector<16x64xf32>
    %836 = arith.maximumf %834, %835 : vector<16x64xf32>
    %c0_439 = arith.constant 0 : index
    %c0_440 = arith.constant 0 : index
    %837 = vector.load %arg20[%c0_439, %c0_440] : memref<64x1xf32, #tpu.memory_space<vmem>>, vector<64x1xf32>
    %cst_441 = arith.constant dense<0.000000e+00> : vector<16x1xf32>
    %838 = tpu.matmul %836, %837, %cst_441 {dimension_numbers = #tpu.dot_dimension_numbers<[1], [0], [0], [1], [0, 0, 1, 1], [], []>} : vector<16x64xf32>, vector<64x1xf32>, vector<16x1xf32> -> vector<16x1xf32>
    %c0_442 = arith.constant 0 : index
    %c0_443 = arith.constant 0 : index
    %839 = vector.load %arg21[%c0_442, %c0_443] : memref<128x16xf32, #tpu.memory_space<vmem>>, vector<128x16xf32>
    %cst_444 = arith.constant dense<0.000000e+00> : vector<128x1xf32>
    %840 = tpu.matmul %839, %838, %cst_444 {dimension_numbers = #tpu.dot_dimension_numbers<[1], [0], [0], [1], [0, 0, 1, 1], [], []>} : vector<128x16xf32>, vector<16x1xf32>, vector<128x1xf32> -> vector<128x1xf32>
    %c0_445 = arith.constant 0 : index
    %c0_446 = arith.constant 0 : index
    %841 = vector.load %arg22[%c0_445, %c0_446] : memref<128x1xf32, #tpu.memory_space<vmem>>, vector<128x1xf32>
    %842 = arith.addf %840, %841 : vector<128x1xf32>
    %cst_447 = arith.constant 0.000000e+00 : f32
    %843 = vector.broadcast %cst_447 : f32 to vector<128x1xf32>
    %844 = arith.maximumf %842, %843 : vector<128x1xf32>
    %c0_448 = arith.constant 0 : index
    %c0_449 = arith.constant 0 : index
    %845 = vector.load %arg23[%c0_448, %c0_449] : memref<102x128xf32, #tpu.memory_space<vmem>>, vector<102x128xf32>
    %cst_450 = arith.constant dense<0.000000e+00> : vector<102x1xf32>
    %846 = tpu.matmul %845, %844, %cst_450 {dimension_numbers = #tpu.dot_dimension_numbers<[1], [0], [0], [1], [0, 0, 1, 1], [], []>} : vector<102x128xf32>, vector<128x1xf32>, vector<102x1xf32> -> vector<102x1xf32>
    %c0_451 = arith.constant 0 : index
    %c0_452 = arith.constant 0 : index
    %847 = vector.load %arg24[%c0_451, %c0_452] : memref<102x1xf32, #tpu.memory_space<vmem>>, vector<102x1xf32>
    %848 = arith.addf %846, %847 : vector<102x1xf32>
    %cst_453 = arith.constant 0.000000e+00 : f32
    %849 = vector.broadcast %cst_453 : f32 to vector<102x1xf32>
    %850 = arith.maximumf %848, %849 : vector<102x1xf32>
    %c0_454 = arith.constant 0 : index
    %c0_455 = arith.constant 0 : index
    %851 = vector.load %arg25[%c0_454, %c0_455] : memref<50x102xf32, #tpu.memory_space<vmem>>, vector<50x102xf32>
    %cst_456 = arith.constant dense<0.000000e+00> : vector<50x1xf32>
    %852 = tpu.matmul %851, %850, %cst_456 {dimension_numbers = #tpu.dot_dimension_numbers<[1], [0], [0], [1], [0, 0, 1, 1], [], []>} : vector<50x102xf32>, vector<102x1xf32>, vector<50x1xf32> -> vector<50x1xf32>
    %c0_457 = arith.constant 0 : index
    %c0_458 = arith.constant 0 : index
    %853 = vector.load %arg26[%c0_457, %c0_458] : memref<50x1xf32, #tpu.memory_space<vmem>>, vector<50x1xf32>
    %854 = arith.addf %852, %853 : vector<50x1xf32>
    %cst_459 = arith.constant 0.000000e+00 : f32
    %855 = vector.broadcast %cst_459 : f32 to vector<50x1xf32>
    %856 = arith.maximumf %854, %855 : vector<50x1xf32>
    %c0_460 = arith.constant 0 : index
    %c0_461 = arith.constant 0 : index
    %857 = vector.load %arg27[%c0_460, %c0_461] : memref<24x50xf32, #tpu.memory_space<vmem>>, vector<24x50xf32>
    %cst_462 = arith.constant dense<0.000000e+00> : vector<24x1xf32>
    %858 = tpu.matmul %857, %856, %cst_462 {dimension_numbers = #tpu.dot_dimension_numbers<[1], [0], [0], [1], [0, 0, 1, 1], [], []>} : vector<24x50xf32>, vector<50x1xf32>, vector<24x1xf32> -> vector<24x1xf32>
    %c0_463 = arith.constant 0 : index
    %c0_464 = arith.constant 0 : index
    %859 = vector.load %arg28[%c0_463, %c0_464] : memref<24x1xf32, #tpu.memory_space<vmem>>, vector<24x1xf32>
    %860 = arith.addf %858, %859 : vector<24x1xf32>
    %cst_465 = arith.constant 0.000000e+00 : f32
    %861 = vector.broadcast %cst_465 : f32 to vector<24x1xf32>
    %862 = arith.maximumf %860, %861 : vector<24x1xf32>
    %c0_466 = arith.constant 0 : index
    %c0_467 = arith.constant 0 : index
    %863 = vector.load %arg29[%c0_466, %c0_467] : memref<6x24xf32, #tpu.memory_space<vmem>>, vector<6x24xf32>
    %cst_468 = arith.constant dense<0.000000e+00> : vector<6x1xf32>
    %864 = tpu.matmul %863, %862, %cst_468 {dimension_numbers = #tpu.dot_dimension_numbers<[1], [0], [0], [1], [0, 0, 1, 1], [], []>} : vector<6x24xf32>, vector<24x1xf32>, vector<6x1xf32> -> vector<6x1xf32>
    %c0_469 = arith.constant 0 : index
    %c0_470 = arith.constant 0 : index
    %865 = vector.load %arg30[%c0_469, %c0_470] : memref<6x1xf32, #tpu.memory_space<vmem>>, vector<6x1xf32>
    %866 = arith.addf %864, %865 : vector<6x1xf32>
    %cst_471 = arith.constant 0.000000e+00 : f32
    %867 = vector.broadcast %cst_471 : f32 to vector<6x1xf32>
    %868 = arith.maximumf %866, %867 : vector<6x1xf32>
    %c0_472 = arith.constant 0 : index
    %c0_473 = arith.constant 0 : index
    %869 = vector.load %arg31[%c0_472, %c0_473] : memref<2x6xf32, #tpu.memory_space<vmem>>, vector<2x6xf32>
    %cst_474 = arith.constant dense<0.000000e+00> : vector<2x1xf32>
    %870 = tpu.matmul %869, %868, %cst_474 {dimension_numbers = #tpu.dot_dimension_numbers<[1], [0], [0], [1], [0, 0, 1, 1], [], []>} : vector<2x6xf32>, vector<6x1xf32>, vector<2x1xf32> -> vector<2x1xf32>
    %c0_475 = arith.constant 0 : index
    %c0_476 = arith.constant 0 : index
    %871 = vector.load %arg32[%c0_475, %c0_476] : memref<2x1xf32, #tpu.memory_space<vmem>>, vector<2x1xf32>
    %872 = arith.addf %870, %871 : vector<2x1xf32>
    %c0_477 = arith.constant 0 : index
    %c0_478 = arith.constant 0 : index
    %873 = vector.load %arg33[%c0_477, %c0_478] : memref<2x1xf32, #tpu.memory_space<vmem>>, vector<2x1xf32>
    tpu.vector_store %arg33[%c0_477, %c0_478], %872 {strides = array<i32>} : memref<2x1xf32, #tpu.memory_space<vmem>>, vector<2x1xf32>,
    return
  }
}

</mosaic_0001>

<bundles_post_ra>
// kernel: kamnet_forward.1
= control target key start
LH: loop header
LB: loop body
LE: loop exit
PB: predicated region body
PF: predicated region fallthrough
CT: control target
= control target key end

     0   :  { %v6772_v0 = vmov 0.1   ;;  %s6773_s3 = smov 17   ;;  %s6774_s4 = smov 15   ;;  %v8744_v3 = vmov 0.0   ;;  %v6782_v4 = vmov 0   ;;  %v168_v9 = vlaneseq  ;;  %s8743_s0 = inlined_call_operand.smem [shape: u32[34], index: -1, kind: input, shape index: {}] }
   0x1   :  { %166 = vrot.lane.b32.xlu0 %v6772_v0, %s6773_s3  ;;  %198 = vrot.lane.b32.xlu1 %v6772_v0, %s6774_s4  ;;  %s6826_s7 = sld [smem:[%s8743_s0]]   ;;  %s6775_s8 = smov 16   ;;  %vm480_vm7 = vcmask 588800   ;;  %vm595_vm9 = vcmask 1041408   ;;  %vm582_vm10 = vcmask 146432   ;;  %vm3724_vm11 = vcmask 64512  }
   0x2   :  { %s6776_s9 = smov 1   ;;  %s6777_s10 = smov 127   ;;  %557 = vmatprep.mubr.f32.mxu0 %v8744_v3  ;;  %943 = vmatprep.mubr.f32.mxu1 %v8744_v3  ;;  %v172_v10 = vshrl.u32 %v168_v9, 7  ;;  %v6900_v48 = vand.u32 127, %v168_v9  ;;  %vm3869_vm12 = vcmask 1043456   ;;  %vm3862_vm13 = vcmask 556032  }
   0x3   :  { %s6778_s11 = smov 113   ;;  %s6779_s12 = smov 112   ;;  %6490 = vset.pattern.permute.xlu0 %v6782_v4  ;;  %6491 = vset.pattern.permute.xlu1 %v6782_v4  ;;  %vm3967_vm14 = vcmask 130048   ;;  %vm4264_vm15 = vcmask 818176  }
   0x4   :  { %s6781_s13 = smov 111   ;;  %s6783_s14 = smov 4   ;;  %v173_v11 = vsub.s32 0, %v172_v10  ;;  %v218_v13 = vsub.s32 3, %v172_v10  ;;  %v188_v14 = vsub.s32 1, %v172_v10  ;;  %v203_v16 = vsub.s32 2, %v172_v10 }
   0x5   :  { %183 = vrot.lane.b32.xlu0 %v6772_v0, %s6775_s8  ;;  %213 = vrot.lane.b32.xlu1 %v6772_v0, %s6776_s9  ;;  %s5360_s17 = sld [smem:[%s8743_s0 + %s6783_s14]]   ;;  %v235_v19 = vsub.s32 5, %v172_v10  ;;  %v265_v31 = vsub.s32 7, %v172_v10  ;;  %v250_v38 = vsub.s32 6, %v172_v10  ;;  %vm185_vm0 = vcmp.lt.s32.totalorder %v6900_v48, 16  ;;  %s6784_s21 = smov 3  }
   0x6   :  { %s6866_s20 = sld [smem:[%s8743_s0 + %s6776_s9]]   ;;  %vm200_vm1 = vcmp.lt.s32.totalorder %v6900_v48, 15  ;;  %vm215_vm2 = vcmp.lt.s32.totalorder %v6900_v48, 1  ;;  %vm232_vm3 = vcmp.lt.s32.totalorder %v6900_v48, 127  ;;  %vm247_vm4 = vcmp.lt.s32.totalorder %v6900_v48, 113  ;;  %s6785_s25 = smov 2  }
   0x7   :  { %v5392_v1 = vld.sshfl [vmem:[%s6826_s7] sm:$0x33 pattern:$0x76325410]  ;;  %s6948_s24 = sld [smem:[%s8743_s0 + %s6784_s21]]   ;;  %vm262_vm5 = vcmp.lt.s32.totalorder %v6900_v48, 112  ;;  %vm170_vm6 = vcmp.lt.s32.totalorder %v6900_v48, 17 }
   0x8   :  { %414 = vst [vmem:[#allocation2 + $0x10] sm:$0x3] %v5392_v1  ;;  %v353_v2 = vcombine.high %v5392_v1, %v5392_v1  ;;  %vm277_vm8 = vcmp.lt.s32.totalorder %v6900_v48, 111  ;;  %s7005_s28 = sld [smem:[%s8743_s0 + %s6785_s25]]   ;;  %s6786_s29 = smov 6  }
   0x9   :  { %230 = vrot.lane.b32.xlu0 %v6772_v0, %s6777_s10  ;;  %245 = vrot.lane.b32.xlu1 %v6772_v0, %s6778_s11  ;;  %s7124_s2 = sld [smem:[%s8743_s0 + %s6786_s29]]   ;;  %s6787_s5 = smov 7  }
   0xa   :  { %415 = vst [vmem:[#allocation2 + $0x18] sm:$0x3] %v353_v2  ;;  %s5363_s15 = sld [smem:[%s8743_s0 + %s6787_s5]]   ;;  %s6788_s16 = smov 5  }
   0xb   :  { %v150_v5 = vld [vmem:[%s5360_s17] sm:$0xff]  ;;  %v151_v6 = vld [vmem:[%s5360_s17 + $0x8] sm:$0xff]  ;;  %v152_v7 = vld [vmem:[%s5360_s17 + $0x10] sm:$0xff]  ;;  %s7236_s19 = sld [smem:[%s8743_s0 + %s6788_s16]]   ;;  %s6808_s30 = smov 28  }
   0xc   :  { %v153_v8 = vld [vmem:[%s5360_s17 + $0x18] sm:$0xff]  ;;  %v139_v12 = vld [vmem:[%s6866_s20 + $0x8] sm:$0xff]  ;;  %v138_v15 = vld [vmem:[%s6866_s20] sm:$0xff]  ;;  %s5372_s26 = sld [smem:[%s8743_s0 + %s6775_s8]]   ;;  %s6809_s6 = smov 29  }
   0xd   :  { %260 = vrot.lane.b32.xlu0 %v6772_v0, %s6779_s12  ;;  %366 = vrot.lane.b32.xlu1 %v5392_v1, %s6775_s8  ;;  %v6870_v20 = vrot.slane %v139_v12, %v173_v11  ;;  %v6872_v21 = vrot.slane %v139_v12, %v218_v13  ;;  %v6874_v22 = vrot.slane %v139_v12, %v188_v14  ;;  %s5371_s25 = sld [smem:[%s8743_s0 + %s6774_s4]]   ;;  %s6810_s17 = smov 30  }
   0xe   :  { %v6876_v23 = vrot.slane %v138_v15, %v173_v11  ;;  %v6878_v24 = vrot.slane %v138_v15, %v188_v14  ;;  %v6880_v25 = vrot.slane %v139_v12, %v203_v16  ;;  %v6882_v28 = vrot.slane %v138_v15, %v218_v13  ;;  %s8496_s27 = sld [smem:[%s8743_s0 + %s6773_s3]]   ;;  %s6812_s23 = smov 32  }
   0xf   :  { %v6884_v29 = vrot.slane %v139_v12, %v235_v19  ;;  %v6891_v36 = vrot.slane %v138_v15, %v203_v16  ;;  %v6895_v43 = vrot.slane %v138_v15, %v235_v19  ;;  %v6898_v47 = vrot.slane %v139_v12, %v265_v31  ;;  %s5384_s5 = sld [smem:[%s8743_s0 + %s6808_s30]]  }
  0x10   :  { %v6903_v50 = vrot.slane %v139_v12, %v250_v38  ;;  %v6906_v53 = vrot.slane %v138_v15, %v265_v31  ;;  %v6910_v58 = vrot.slane %v138_v15, %v250_v38  ;;  %s5385_s16 = sld [smem:[%s8743_s0 + %s6809_s6]]  }
  0x11   :  { %382 = vrot.lane.b32.xlu1 %v5392_v1, %s6774_s4  ;;  %368 = vrot.lane.b32.xlu0 %v353_v2, %s6775_s8 }
  0x15   :  { %398 = vrot.lane.b32.xlu1 %v5392_v1, %s6776_s9  ;;  %384 = vrot.lane.b32.xlu0 %v353_v2, %s6774_s4 }
  0x19   :  { %416 = vrot.lane.b32.xlu1 %v5392_v1, %s6777_s10  ;;  %400 = vrot.lane.b32.xlu0 %v353_v2, %s6776_s9 }
  0x1d   :  { %432 = vrot.lane.b32.xlu1 %v5392_v1, %s6778_s11  ;;  %418 = vrot.lane.b32.xlu0 %v353_v2, %s6777_s10 }
  0x21   :  { %448 = vrot.lane.b32.xlu1 %v5392_v1, %s6779_s12  ;;  %434 = vrot.lane.b32.xlu0 %v353_v2, %s6778_s11 }
  0x25   :  { %275 = vrot.lane.b32.xlu1 %v6772_v0, %s6781_s13  ;;  %450 = vrot.lane.b32.xlu0 %v353_v2, %s6779_s12 }
  0x29   :  { %358 = vrot.lane.b32.xlu1 %v353_v2, %s6773_s3  ;;  %356 = vrot.lane.b32.xlu0 %v5392_v1, %s6773_s3 }
  0x2d   :  { %466 = vrot.lane.b32.xlu1 %v353_v2, %s6781_s13  ;;  %464 = vrot.lane.b32.xlu0 %v5392_v1, %s6781_s13 }
  0x31   :  { %693 = vperm.xlu0 %6490, %v150_v5   ;;  %698 = vperm.xlu1 %6491, %v151_v6  }
  0x35   :  { %703 = vperm.xlu1 %6491, %v152_v7   ;;  %708 = vperm.xlu0 %6490, %v153_v8  }
  0x73   :  { %v167_v17 = vpop.permute.xlu0 %166  ;;  %v199_v18 = vpop.permute.xlu1 %198 }
  0x74   :  { %v180_v30 = vmul.f32 %v6870_v20, %v167_v17  ;;  %v179_v34 = vmul.f32 %v6876_v23, %v167_v17  ;;  %v210_v37 = vmul.f32 %v6880_v25, %v199_v18  ;;  %v209_v49 = vmul.f32 %v6891_v36, %v199_v18 }
  0x77   :  { %v184_v26 = vpop.permute.xlu0 %183  ;;  %v214_v27 = vpop.permute.xlu1 %213 }
  0x78   :  { %v225_v32 = vmul.f32 %v6872_v21, %v214_v27  ;;  %v195_v33 = vmul.f32 %v6874_v22, %v184_v26  ;;  %v194_v35 = vmul.f32 %v6878_v24, %v184_v26  ;;  %v224_v41 = vmul.f32 %v6882_v28, %v214_v27 }
  0x7a   :  { %v5927_v39 = vpack.c.bf16 %v195_v33, %v180_v30  ;;  %v5929_v40 = vpack.c.bf16 %v194_v35, %v179_v34  ;;  %v5931_v46 = vpack.c.bf16 %v225_v32, %v210_v37  ;;  %v5933_v55 = vpack.c.bf16 %v224_v41, %v209_v49 }
  0x7b   :  { %v231_v42 = vpop.permute.xlu0 %230  ;;  %v246_v44 = vpop.permute.xlu1 %245 }
  0x7c   :  { %v242_v45 = vmul.f32 %v6884_v29, %v231_v42  ;;  %5928 = vmatprep.subr.bf16.mxu0 %v5927_v39  ;;  %5948 = vmatprep.subr.bf16.mxu1 %v5927_v39  ;;  %v241_v51 = vmul.f32 %v6895_v43, %v231_v42  ;;  %v257_v59 = vmul.f32 %v6903_v50, %v246_v44 }
  0x7d   :  { %5930 = vmatpush1.bf16.msra.mxu0 %v5929_v40  ;;  %5950 = vmatpush1.bf16.msra.mxu1 %v5929_v40  ;;  %v256_v5 = vmul.f32 %v6910_v58, %v246_v44 }
  0x7e   :  { %5932 = vmatprep.subr.bf16.mxu0 %v5931_v46  ;;  %5952 = vmatprep.subr.bf16.mxu1 %v5931_v46  ;;  %v5935_v57 = vpack.c.bf16 %v242_v45, %v6772_v0  ;;  %v5937_v63 = vpack.c.bf16 %v241_v51, %v6772_v0 }
  0x7f   :  { %v261_v52 = vpop.permute.xlu0 %260  ;;  %v367_v54 = vpop.permute.xlu1 %366 }
  0x80   :  { %v272_v56 = vmul.f32 %v6898_v47, %v261_v52  ;;  %v271_v60 = vmul.f32 %v6906_v53, %v261_v52 }
  0x81   :  { %5934 = vmatpush1.bf16.msra.mxu0 %v5933_v55  ;;  %5954 = vmatpush1.bf16.msra.mxu1 %v5933_v55  ;;  %v6960_v55 = vld [vmem:[%s6866_s20 + $0x18] ss:$0 sm:$0xff] }
  0x82   :  { %5936 = vmatprep.subr.bf16.mxu0 %v5935_v57  ;;  %5956 = vmatprep.subr.bf16.mxu1 %v5935_v57  ;;  %v5939_v4 = vpack.c.bf16 %v272_v56, %v257_v59  ;;  %v5941_v11 = vpack.c.bf16 %v271_v60, %v256_v5  ;;  %v6973_v5 = vld [vmem:[%s6948_s24] sm:$0xff] }
  0x83   :  { %v383_v61 = vpop.permute.xlu1 %382  ;;  %v369_v62 = vpop.permute.xlu0 %368 }
  0x84   :  { %v370_v1 = vsel %vm185_vm0, %v367_v54, %v369_v62  ;;  %v371_v2 = vsel %vm185_vm0, %v369_v62, %v367_v54  ;;  %v6957_v54 = vld [vmem:[%s6866_s20 + $0x10] ss:$0 sm:$0xff] }
  0x85   :  { %v372_v6 = vmul.f32 %v371_v2, %v6878_v24  ;;  %v373_v7 = vmul.f32 %v370_v1, %v6874_v22  ;;  %5938 = vmatpush1.bf16.msra.mxu0 %v5937_v63  ;;  %5958 = vmatpush1.bf16.msra.mxu1 %v5937_v63 }
  0x86   :  { %5940 = vmatprep.subr.bf16.mxu0 %v5939_v4  ;;  %5960 = vmatprep.subr.bf16.mxu1 %v5939_v4 }
  0x87   :  { %v376_v8 = vrot.slane %v372_v6, 6  ;;  %v377_v0 = vrot.slane %v373_v7, 6  ;;  %v399_v9 = vpop.permute.xlu1 %398  ;;  %v385_v10 = vpop.permute.xlu0 %384 }
  0x88   :  { %v386_v12 = vsel %vm200_vm1, %v383_v61, %v385_v10  ;;  %v387_v13 = vsel %vm200_vm1, %v385_v10, %v383_v61 }
  0x89   :  { %380 = vst [vmem:[#allocation2] sm:$0xc] %v376_v8  ;;  %381 = vst [vmem:[#allocation2 + $0x8] sm:$0xc] %v377_v0  ;;  %v388_v14 = vmul.f32 %v387_v13, %v6891_v36  ;;  %v389_v15 = vmul.f32 %v386_v12, %v6880_v25  ;;  %5942 = vmatpush1.bf16.msra.mxu0 %v5941_v11  ;;  %5962 = vmatpush1.bf16.msra.mxu1 %v5941_v11  ;;  %v6986_v13 = vld [vmem:[%s6948_s24 + $0x8] sm:$0xff] }
  0x8b   :  { %v392_v16 = vrot.slane %v388_v14, 4  ;;  %v393_v17 = vrot.slane %v389_v15, 4  ;;  %v417_v18 = vpop.permute.xlu1 %416  ;;  %v401_v19 = vpop.permute.xlu0 %400 }
  0x8c   :  { %v402_v26 = vsel %vm215_vm2, %v399_v9, %v401_v19  ;;  %v403_v27 = vsel %vm215_vm2, %v401_v19, %v399_v9 }
  0x8d   :  { %396 = vst [vmem:[#allocation2] sm:$0x30] %v392_v16  ;;  %397 = vst [vmem:[#allocation2 + $0x8] sm:$0x30] %v393_v17  ;;  %v404_v30 = vmul.f32 %v403_v27, %v6882_v28  ;;  %v405_v31 = vmul.f32 %v402_v26, %v6872_v21  ;;  %v6998_v26 = vld [vmem:[%s6948_s24 + $0x10] sm:$0xff] }
  0x8f   :  { %v408_v32 = vrot.slane %v404_v30, 2  ;;  %v409_v33 = vrot.slane %v405_v31, 2  ;;  %v433_v34 = vpop.permute.xlu1 %432  ;;  %v419_v35 = vpop.permute.xlu0 %418  ;;  %v7009_v30 = vld [vmem:[%s6948_s24 + $0x18] sm:$0xff] }
  0x90   :  { %v420_v37 = vsel %vm232_vm3, %v417_v18, %v419_v35  ;;  %v421_v38 = vsel %vm232_vm3, %v419_v35, %v417_v18 }
  0x91   :  { %412 = vst [vmem:[#allocation2] sm:$0xc0] %v408_v32  ;;  %413 = vst [vmem:[#allocation2 + $0x8] sm:$0xc0] %v409_v33  ;;  %v422_v39 = vmul.f32 %v420_v37, %v6895_v43  ;;  %v423_v40 = vmul.f32 %v421_v38, %v6884_v29 }
  0x93   :  { %v426_v41 = vrot.slane %v422_v39, 6  ;;  %v427_v42 = vrot.slane %v423_v40, 6  ;;  %v449_v44 = vpop.permute.xlu1 %448  ;;  %v435_v45 = vpop.permute.xlu0 %434  ;;  %v7016_v39 = vld [vmem:[%s7005_s28] sm:$0xff]  ;;  %v7023_v40 = vld [vmem:[%s7005_s28 + $0x8] sm:$0xff] }
  0x94   :  { %v436_v46 = vsel %vm247_vm4, %v433_v34, %v435_v45  ;;  %v437_v49 = vsel %vm247_vm4, %v435_v45, %v433_v34 }
  0x95   :  { %430 = vst [vmem:[#allocation2 + $0x10] sm:$0xc] %v426_v41  ;;  %431 = vst [vmem:[#allocation2 + $0x18] sm:$0xc] %v427_v42  ;;  %v438_v51 = vmul.f32 %v436_v46, %v6910_v58  ;;  %v439_v52 = vmul.f32 %v437_v49, %v6903_v50  ;;  %v7029_v41 = vld [vmem:[%s7005_s28 + $0x10] sm:$0xff]  ;;  %v7035_v42 = vld [vmem:[%s7005_s28 + $0x18] sm:$0xff] }
  0x97   :  { %v442_v56 = vrot.slane %v438_v51, 4  ;;  %v443_v57 = vrot.slane %v439_v52, 4  ;;  %v276_v59 = vpop.permute.xlu1 %275  ;;  %v451_v60 = vpop.permute.xlu0 %450 }
  0x98   :  { %v286_v61 = vmul.f32 %v6957_v54, %v276_v59  ;;  %v287_v62 = vmul.f32 %v6960_v55, %v276_v59  ;;  %v452_v63 = vsel %vm262_vm5, %v449_v44, %v451_v60  ;;  %v453_v1 = vsel %vm262_vm5, %v451_v60, %v449_v44  ;;  %v7041_v44 = vld.sshfl [vmem:[%s6826_s7 + $0x4] sm:$0x33 pattern:$0x76325410] }
  0x99   :  { %446 = vst [vmem:[#allocation2 + $0x10] sm:$0x30] %v442_v56  ;;  %447 = vst [vmem:[#allocation2 + $0x18] sm:$0x30] %v443_v57  ;;  %v454_v2 = vmul.f32 %v452_v63, %v6906_v53  ;;  %v455_v4 = vmul.f32 %v453_v1, %v6898_v47  ;;  %1267 = vrot.lane.b32.xlu1 %v7041_v44, %s6775_s8  ;;  %v7048_v45 = vcombine.high %v7041_v44, %v7041_v44 }
  0x9a   :  { %509 = vmatprep.subr.mxu0 %v287_v62  ;;  %895 = vmatprep.subr.mxu1 %v287_v62 }
  0x9b   :  { %v458_v6 = vrot.slane %v454_v2, 2  ;;  %v459_v7 = vrot.slane %v455_v4, 2  ;;  %510 = vmatpush1.msra.mxu0 %v286_v61  ;;  %896 = vmatpush1.msra.mxu1 %v286_v61  ;;  %v359_v8 = vpop.permute.xlu1 %358  ;;  %v357_v0 = vpop.permute.xlu0 %356 }
  0x9c   :  { %v360_v9 = vsel %vm170_vm6, %v357_v0, %v359_v8  ;;  %v361_v10 = vsel %vm170_vm6, %v359_v8, %v357_v0  ;;  %5393 = vmatmul.mubr.msk.f32.vlgmr.msra.gmra.mrb[0].mxu0 %vm480_vm7, %v6973_v5  ;;  %1269 = vrot.lane.b32.xlu0 %v7048_v45, %s6775_s8 }
  0x9d   :  { %462 = vst [vmem:[#allocation2 + $0x10] sm:$0xc0] %v458_v6  ;;  %463 = vst [vmem:[#allocation2 + $0x18] sm:$0xc0] %v459_v7  ;;  %v362_v11 = vmul.f32 %v361_v10, %v6876_v23  ;;  %v363_v12 = vmul.f32 %v360_v9, %v6870_v20  ;;  %563 = vmatprep.mubr.f32.mxu0 %v8744_v3  ;;  %1283 = vrot.lane.b32.xlu1 %v7041_v44, %s6774_s4 }
  0x9f   :  { %364 = vst [vmem:[#allocation2] sm:$0x3] %v362_v11  ;;  %365 = vst [vmem:[#allocation2 + $0x8] sm:$0x3] %v363_v12  ;;  %v467_v14 = vpop.permute.xlu1 %466  ;;  %v465_v15 = vpop.permute.xlu0 %464 }
  0xa0   :  { %v468_v16 = vsel %vm277_vm8, %v465_v15, %v467_v14  ;;  %v469_v17 = vsel %vm277_vm8, %v467_v14, %v465_v15  ;;  %5394 = vmatmul.mubr.msk.f32.gmra.mrb[2].mxu0 %vm480_vm7, %v6986_v13  ;;  %1285 = vrot.lane.b32.xlu0 %v7048_v45, %s6774_s4 }
  0xa1   :  { %v470_v18 = vmul.f32 %v6957_v54, %v468_v16  ;;  %v471_v19 = vmul.f32 %v6960_v55, %v469_v17  ;;  %569 = vmatprep.mubr.f32.mxu0 %v8744_v3  ;;  %1299 = vrot.lane.b32.xlu1 %v7041_v44, %s6776_s9 }
  0xa3   :  { %472 = vst [vmem:[#allocation2 + $0x20] sm:$0x3] %v470_v18  ;;  %473 = vst [vmem:[#allocation2 + $0x28] sm:$0x3] %v471_v19 }
  0xa4   :  { %5395 = vmatmul.mubr.msk.f32.gmra.mrb[4].mxu0 %vm480_vm7, %v6998_v26  ;;  %v476_v27 = vld [vmem:[#allocation2 + $0x10] sm:$0xff]  ;;  %v477_v31 = vld [vmem:[#allocation2 + $0x18] sm:$0xff]  ;;  %1301 = vrot.lane.b32.xlu0 %v7048_v45, %s6776_s9 }
  0xa5   :  { %575 = vmatprep.mubr.f32.mxu0 %v8744_v3  ;;  %1315 = vst [vmem:[#allocation2 + $0x10] sm:$0x3] %v7041_v44  ;;  %1316 = vst [vmem:[#allocation2 + $0x18] sm:$0x3] %v7048_v45  ;;  %1317 = vrot.lane.b32.xlu1 %v7041_v44, %s6777_s10 }
  0xa6   :  { %v474_v32 = vld [vmem:[#allocation2] sm:$0xff]  ;;  %v475_v33 = vld [vmem:[#allocation2 + $0x8] sm:$0xff] }
  0xa7   :  { %v5943_v34 = vpack.c.bf16 %v477_v31, %v475_v33  ;;  %v5945_v35 = vpack.c.bf16 %v476_v27, %v474_v32 }
  0xa8   :  { %5396 = vmatmul.mubr.msk.f32.gmra.mrb[6].mxu0 %vm480_vm7, %v7009_v30  ;;  %1319 = vrot.lane.b32.xlu0 %v7048_v45, %s6777_s10 }
  0xa9   :  { %5944 = vmatprep.subr.bf16.mxu0 %v5943_v34  ;;  %666 = vmatprep.mubr.f32.mxu0 %v8744_v3 }
  0xaa   :  { %5946 = vmatpush1.bf16.msra.mxu0 %v5945_v35  ;;  %v479_v37 = vld [vmem:[#allocation2 + $0x28] sm:$0x3]  ;;  %v478_v38 = vld [vmem:[#allocation2 + $0x20] sm:$0x3]  ;;  %1333 = vrot.lane.b32.xlu1 %v7041_v44, %s6778_s11 }
  0xab   :  { %5397 = vmatprep.subr.msk.mxu0 %vm595_vm9, %v479_v37 }
  0xac   :  { %1335 = vrot.lane.b32.xlu0 %v7048_v45, %s6778_s11 }
  0xae   :  { %5398 = vmatpush1.msk.msra.mxu0 %vm595_vm9, %v478_v38 }
  0xaf   :  { %5399 = vmatmul.mubr.msk.f32.vlgmr.msra.gmra.mrb[0].mxu0 %vm582_vm10, %v7016_v39 }
  0xb0   :  { %672 = vmatprep.mubr.f32.mxu0 %v8744_v3  ;;  %v7069_v46 = vpop.permute.xlu0 %693  ;;  %v7072_v56 = vpop.permute.xlu1 %698 }
  0xb1   :  { %8748 = vst [vmem:[#allocation5_spill] sm:$0xff] %v7072_v56 }
  0xb3   :  { %5400 = vmatmul.mubr.msk.f32.gmra.mrb[2].mxu0 %vm582_vm10, %v7023_v40 }
  0xb4   :  { %678 = vmatprep.mubr.f32.mxu0 %v8744_v3  ;;  %v7077_v4 = vpop.permute.xlu1 %703  ;;  %v7081_v11 = vpop.permute.xlu0 %708 }
  0xb7   :  { %5401 = vmatmul.mubr.msk.f32.gmra.mrb[4].mxu0 %vm582_vm10, %v7029_v41 }
  0xb8   :  { %684 = vmatprep.mubr.f32.mxu0 %v8744_v3 }
  0xbb   :  { %5402 = vmatmul.mubr.msk.f32.gmra.mrb[6].mxu0 %vm582_vm10, %v7035_v42 }
  0xbc   :  { %1445 = vmatprep.mubr.f32.mxu0 %v8744_v3 }
 0x10b   :  { %v1268_v31 = vpop.permute.xlu1 %1267 }
 0x10e   :  { %v1270_v33 = vpop.permute.xlu0 %1269 }
 0x10f   :  { %v1271_v35 = vsel %vm185_vm0, %v1268_v31, %v1270_v33  ;;  %v1272_v37 = vsel %vm185_vm0, %v1270_v33, %v1268_v31 }
 0x182   :  { %v668_v49 = vpop.f32.mrb[0].mxu0 }
 0x183   :  { %v711_v51 = vadd.f32 %v7069_v46, %v668_v49  ;;  %v670_v52 = vpop.f32.mrb[1].mxu0 }
 0x184   :  { %v712_v57 = vadd.f32 %v7069_v46, %v670_v52  ;;  %v1274_v52 = vmul.f32 %v1271_v35, %v6874_v22 }
 0x185   :  { %v5403_v59 = vmul.f32 -1.442695, %v711_v51  ;;  %v1273_v51 = vmul.f32 %v1272_v37, %v6878_v24 }
 0x186   :  { %v5404_v60 = vmul.f32 -1.442695, %v712_v57  ;;  %v674_v61 = vpop.f32.mrb[2].mxu0  ;;  %v1284_v57 = vpop.permute.xlu1 %1283 }
 0x187   :  { %6492 = vpow2.f32 %v5403_v59  ;;  %v713_v62 = vadd.f32 %v7072_v56, %v674_v61  ;;  %v676_v63 = vpop.f32.mrb[3].mxu0  ;;  %v1278_v61 = vrot.slane %v1274_v52, 6 }
 0x188   :  { %6494 = vpow2.f32 %v5404_v60  ;;  %v714_v1 = vadd.f32 %v7072_v56, %v676_v63  ;;  %v1277_v60 = vrot.slane %v1273_v51, 6 }
 0x189   :  { %v5405_v2 = vmul.f32 -1.442695, %v713_v62  ;;  %v1286_v62 = vpop.permute.xlu0 %1285  ;;  %1282 = vst [vmem:[#allocation2 + $0x8] sm:$0xc] %v1278_v61 }
 0x18a   :  { %v5406_v6 = vmul.f32 -1.442695, %v714_v1  ;;  %v680_v7 = vpop.f32.mrb[4].mxu0  ;;  %v1287_v63 = vsel %vm200_vm1, %v1284_v57, %v1286_v62  ;;  %v1288_v1 = vsel %vm200_vm1, %v1286_v62, %v1284_v57  ;;  %1281 = vst [vmem:[#allocation2] sm:$0xc] %v1277_v60 }
 0x18b   :  { %6496 = vpow2.f32 %v5405_v2  ;;  %v715_v8 = vadd.f32 %v7077_v4, %v680_v7  ;;  %v682_v0 = vpop.f32.mrb[5].mxu0  ;;  %v1290_v7 = vmul.f32 %v1287_v63, %v6880_v25 }
 0x18c   :  { %6498 = vpow2.f32 %v5406_v6  ;;  %v716_v9 = vadd.f32 %v7077_v4, %v682_v0  ;;  %v1289_v6 = vmul.f32 %v1288_v1, %v6891_v36 }
 0x18d   :  { %v5407_v10 = vmul.f32 -1.442695, %v715_v8  ;;  %v1300_v8 = vpop.permute.xlu1 %1299 }
 0x18e   :  { %v5408_v12 = vmul.f32 -1.442695, %v716_v9  ;;  %v686_v14 = vpop.f32.mrb[6].mxu0 }
 0x18f   :  { %v717_v15 = vadd.f32 %v7081_v11, %v686_v14  ;;  %v688_v16 = vpop.f32.mrb[7].mxu0  ;;  %6500 = vpow2.f32 %v5407_v10  ;;  %v1293_v10 = vrot.slane %v1289_v6, 4  ;;  %v1302_v14 = vpop.permute.xlu0 %1301 }
 0x190   :  { %v718_v17 = vadd.f32 %v7081_v11, %v688_v16  ;;  %6502 = vpow2.f32 %v5408_v12  ;;  %v1294_v12 = vrot.slane %v1290_v7, 4  ;;  %v1303_v16 = vsel %vm215_vm2, %v1300_v8, %v1302_v14 }
 0x191   :  { %v6493_v18 = vpop.eup %6492  ;;  %6504 = vtanh.f32 %v717_v15  ;;  %1297 = vst [vmem:[#allocation2] sm:$0x30] %v1293_v10  ;;  %v1318_v31 = vpop.permute.xlu1 %1317 }
 0x192   :  { %v6495_v19 = vpop.eup %6494  ;;  %v725_v27 = vadd.f32 1.0, %v6493_v18  ;;  %6506 = vtanh.f32 %v718_v17  ;;  %v1304_v17 = vsel %vm215_vm2, %v1302_v14, %v1300_v8  ;;  %1298 = vst [vmem:[#allocation2 + $0x8] sm:$0x30] %v1294_v12 }
 0x193   :  { %v726_v32 = vadd.f32 1.0, %v6495_v19  ;;  %v1305_v19 = vmul.f32 %v1304_v17, %v6882_v28 }
 0x194   :  { %6508 = vrcp.f32 %v725_v27  ;;  %v1306_v27 = vmul.f32 %v1303_v16, %v6872_v21 }
 0x195   :  { %v6497_v34 = vpop.eup %6496  ;;  %6510 = vrcp.f32 %v726_v32  ;;  %v1309_v35 = vrot.slane %v1305_v19, 2  ;;  %v1334_v62 = vpop.permute.xlu1 %1333 }
 0x196   :  { %v6499_v38 = vpop.eup %6498  ;;  %v737_v49 = vadd.f32 1.0, %v6497_v34  ;;  %v1310_v37 = vrot.slane %v1306_v27, 2 }
 0x197   :  { %v738_v59 = vadd.f32 1.0, %v6499_v38  ;;  %v1320_v38 = vpop.permute.xlu0 %1319  ;;  %1313 = vst [vmem:[#allocation2] sm:$0xc0] %v1309_v35  ;;  %v159_v35 = vld [vmem:[%s7124_s2 + $0x8] sm:$0xff] }
 0x198   :  { %6512 = vrcp.f32 %v737_v49  ;;  %v1321_v51 = vsel %vm232_vm3, %v1318_v31, %v1320_v38  ;;  %v1322_v52 = vsel %vm232_vm3, %v1320_v38, %v1318_v31  ;;  %1314 = vst [vmem:[#allocation2 + $0x8] sm:$0xc0] %v1310_v37  ;;  %v160_v37 = vld [vmem:[%s7124_s2 + $0x10] sm:$0xff]  ;;  %v161_v38 = vld [vmem:[%s7124_s2 + $0x18] sm:$0xff] }
 0x199   :  { %6514 = vrcp.f32 %v738_v59  ;;  %v6501_v2 = vpop.eup %6500  ;;  %v1323_v60 = vmul.f32 %v1321_v51, %v6895_v43  ;;  %v1324_v61 = vmul.f32 %v1322_v52, %v6884_v29  ;;  %v163_v51 = vld [vmem:[%s5363_s15 + $0x8] sm:$0xff]  ;;  %v164_v52 = vld [vmem:[%s5363_s15 + $0x10] sm:$0xff] }
 0x19a   :  { %v6503_v0 = vpop.eup %6502  ;;  %v749_v49 = vadd.f32 1.0, %v6501_v2 }
 0x19b   :  { %v6505_v9 = vpop.eup %6504  ;;  %v750_v59 = vadd.f32 1.0, %v6503_v0  ;;  %v1327_v7 = vrot.slane %v1323_v60, 6  ;;  %v1328_v2 = vrot.slane %v1324_v61, 6  ;;  %v1336_v8 = vpop.permute.xlu0 %1335 }
 0x19c   :  { %v6507_v15 = vpop.eup %6506  ;;  %6516 = vrcp.f32 %v749_v49  ;;  %v1337_v10 = vsel %vm247_vm4, %v1334_v62, %v1336_v8  ;;  %v1338_v0 = vsel %vm247_vm4, %v1336_v8, %v1334_v62  ;;  %v162_v49 = vld [vmem:[%s5363_s15] sm:$0xff] }
 0x19d   :  { %6518 = vrcp.f32 %v750_v59  ;;  %1331 = vst [vmem:[#allocation2 + $0x10] sm:$0xc] %v1327_v7  ;;  %1332 = vst [vmem:[#allocation2 + $0x18] sm:$0xc] %v1328_v2  ;;  %v1339_v14 = vmul.f32 %v1337_v10, %v6910_v58 }
 0x19e   :  { %v6509_v18 = vpop.eup %6508 }
 0x19f   :  { %v6511_v32 = vpop.eup %6510  ;;  %v759_v33 = vmul.f32 %v6509_v18, %v6505_v9  ;;  %v1343_v16 = vrot.slane %v1339_v14, 4 }
 0x1a0   :  { %v760_v34 = vmul.f32 %v6511_v32, %v6507_v15  ;;  %v1340_v15 = vmul.f32 %v1338_v0, %v6903_v50 }
 0x1a1   :  { %1347 = vst [vmem:[#allocation2 + $0x10] sm:$0x30] %v1343_v16 }
 0x1a2   :  { %v6513_v57 = vpop.eup %6512  ;;  %v1344_v17 = vrot.slane %v1340_v15, 4 }
 0x1a3   :  { %v6515_v63 = vpop.eup %6514  ;;  %v757_v1 = vmul.f32 0.1, %v6513_v57  ;;  %v165_v57 = vld [vmem:[%s5363_s15 + $0x18] sm:$0xff]  ;;  %s6794_s15 = smov 9  }
 0x1a4   :  { %v758_v6 = vmul.f32 0.1, %v6515_v63  ;;  %1348 = vst [vmem:[#allocation2 + $0x18] sm:$0x30] %v1344_v17  ;;  %s5365_s18 = sld [smem:[%s8743_s0 + %s6794_s15]]   ;;  %s6802_s15 = smov 22  }
 0x1a5   :  { %v7109_v9 = vadd.f32 %v759_v33, %v757_v1  ;;  %v158_v33 = vld [vmem:[%s7124_s2] sm:$0xff] }
 0x1a6   :  { %v7115_v12 = vadd.f32 %v760_v34, %v758_v6  ;;  %v6517_v18 = vpop.eup %6516  ;;  %5409 = vmatmul.mubr.msk.f32.vlgmr.msra.gmra.mrb[0].mxu1 %vm480_vm7, %v158_v33 }
 0x1a7   :  { %6520 = vtanh.f32 %v7109_v9  ;;  %v6519_v19 = vpop.eup %6518  ;;  %949 = vmatprep.mubr.f32.mxu1 %v8744_v3 }
 0x1a8   :  { %6522 = vtanh.f32 %v7115_v12 }
 0x1aa   :  { %5410 = vmatmul.mubr.msk.f32.gmra.mrb[2].mxu1 %vm480_vm7, %v159_v35 }
 0x1ab   :  { %955 = vmatprep.mubr.f32.mxu1 %v8744_v3 }
 0x1ae   :  { %5411 = vmatmul.mubr.msk.f32.gmra.mrb[4].mxu1 %vm480_vm7, %v160_v37 }
 0x1af   :  { %961 = vmatprep.mubr.f32.mxu1 %v8744_v3 }
 0x1b1   :  { %v6521_v27 = vpop.eup %6520 }
 0x1b2   :  { %v6523_v31 = vpop.eup %6522  ;;  %v7126_v32 = vmul.f32 %v6521_v27, %v6517_v18  ;;  %5412 = vmatmul.mubr.msk.f32.gmra.mrb[6].mxu1 %vm480_vm7, %v161_v38 }
 0x1b3   :  { %v7129_v34 = vmul.f32 %v6523_v31, %v6519_v19  ;;  %1044 = vmatprep.mubr.f32.mxu1 %v8744_v3 }
 0x1b4   :  { %767 = vrot.lane.b32.xlu1 %v7126_v32, %s6773_s3 }
 0x1b5   :  { %769 = vrot.lane.b32.xlu0 %v7129_v34, %s6773_s3 }
 0x1b8   :  { %777 = vrot.lane.b32.xlu1 %v7126_v32, %s6775_s8 }
 0x1b9   :  { %779 = vrot.lane.b32.xlu0 %v7129_v34, %s6775_s8 }
 0x1bc   :  { %787 = vrot.lane.b32.xlu1 %v7126_v32, %s6774_s4 }
 0x1bd   :  { %789 = vrot.lane.b32.xlu0 %v7129_v34, %s6774_s4 }
 0x1c0   :  { %797 = vrot.lane.b32.xlu1 %v7126_v32, %s6776_s9 }
 0x1c1   :  { %799 = vrot.lane.b32.xlu0 %v7129_v34, %s6776_s9 }
 0x1c4   :  { %809 = vrot.lane.b32.xlu1 %v7126_v32, %s6777_s10 }
 0x1c5   :  { %811 = vrot.lane.b32.xlu0 %v7129_v34, %s6777_s10 }
 0x1c8   :  { %819 = vrot.lane.b32.xlu1 %v7126_v32, %s6778_s11 }
 0x1c9   :  { %821 = vrot.lane.b32.xlu0 %v7129_v34, %s6778_s11 }
 0x1cc   :  { %829 = vrot.lane.b32.xlu1 %v7126_v32, %s6779_s12 }
 0x1cd   :  { %831 = vrot.lane.b32.xlu0 %v7129_v34, %s6779_s12 }
 0x1d0   :  { %1349 = vrot.lane.b32.xlu1 %v7041_v44, %s6779_s12 }
 0x1d1   :  { %1351 = vrot.lane.b32.xlu0 %v7048_v45, %s6779_s12 }
 0x1d4   :  { %839 = vrot.lane.b32.xlu1 %v7126_v32, %s6781_s13 }
 0x1d5   :  { %841 = vrot.lane.b32.xlu0 %v7129_v34, %s6781_s13 }
 0x1d8   :  { %1257 = vrot.lane.b32.xlu1 %v7041_v44, %s6773_s3 }
 0x1d9   :  { %1259 = vrot.lane.b32.xlu0 %v7048_v45, %s6773_s3 }
 0x1dc   :  { %1365 = vrot.lane.b32.xlu1 %v7041_v44, %s6781_s13 }
 0x1dd   :  { %1367 = vrot.lane.b32.xlu0 %v7048_v45, %s6781_s13 }
 0x1e0   :  { %1071 = vperm.xlu1 %6491, %v162_v49  }
 0x1e1   :  { %1076 = vperm.xlu0 %6490, %v163_v51  }
 0x1e4   :  { %1081 = vperm.xlu1 %6491, %v164_v52  }
 0x1e5   :  { %1086 = vperm.xlu0 %6490, %v165_v57  }
 0x226   :  { %v768_v59 = vpop.permute.xlu1 %767 }
 0x227   :  { %v770_v60 = vpop.permute.xlu0 %769 }
 0x228   :  { %v771_v61 = vsel %vm170_vm6, %v768_v59, %v770_v60  ;;  %v772_v62 = vsel %vm170_vm6, %v770_v60, %v768_v59 }
 0x229   :  { %v773_v6 = vmul.f32 %v772_v62, %v6876_v23  ;;  %v774_v7 = vmul.f32 %v771_v61, %v6870_v20 }
 0x22a   :  { %v778_v44 = vpop.permute.xlu1 %777 }
 0x22b   :  { %v780_v63 = vpop.permute.xlu0 %779 }
 0x22c   :  { %v781_v45 = vsel %vm185_vm0, %v778_v44, %v780_v63  ;;  %v782_v1 = vsel %vm185_vm0, %v780_v63, %v778_v44 }
 0x22d   :  { %v783_v2 = vmul.f32 %v782_v1, %v6878_v24  ;;  %v784_v8 = vmul.f32 %v781_v45, %v6874_v22 }
 0x22e   :  { %v788_v10 = vpop.permute.xlu1 %787 }
 0x22f   :  { %v5965_v0 = vpack.c.bf16 %v783_v2, %v773_v6  ;;  %v790_v14 = vpop.permute.xlu0 %789  ;;  %v5963_v15 = vpack.c.bf16 %v784_v8, %v774_v7 }
 0x230   :  { %v791_v16 = vsel %vm200_vm1, %v788_v10, %v790_v14  ;;  %v792_v17 = vsel %vm200_vm1, %v790_v14, %v788_v10 }
 0x231   :  { %5964 = vmatprep.subr.bf16.mxu1 %v5963_v15  ;;  %5980 = vmatprep.subr.bf16.mxu0 %v5963_v15  ;;  %v793_v33 = vmul.f32 %v792_v17, %v6891_v36  ;;  %v794_v35 = vmul.f32 %v791_v16, %v6880_v25 }
 0x232   :  { %v798_v18 = vpop.permute.xlu1 %797  ;;  %5966 = vmatpush1.bf16.msra.mxu1 %v5965_v0  ;;  %5982 = vmatpush1.bf16.msra.mxu0 %v5965_v0 }
 0x233   :  { %v800_v19 = vpop.permute.xlu0 %799 }
 0x234   :  { %v801_v27 = vsel %vm215_vm2, %v798_v18, %v800_v19  ;;  %v802_v31 = vsel %vm215_vm2, %v800_v19, %v798_v18 }
 0x235   :  { %v803_v37 = vmul.f32 %v802_v31, %v6882_v28  ;;  %v804_v38 = vmul.f32 %v801_v27, %v6872_v21 }
 0x236   :  { %v810_v49 = vpop.permute.xlu1 %809 }
 0x237   :  { %v5969_v51 = vpack.c.bf16 %v803_v37, %v793_v33  ;;  %v812_v52 = vpop.permute.xlu0 %811  ;;  %v5967_v57 = vpack.c.bf16 %v804_v38, %v794_v35 }
 0x238   :  { %v813_v59 = vsel %vm232_vm3, %v810_v49, %v812_v52  ;;  %v814_v60 = vsel %vm232_vm3, %v812_v52, %v810_v49 }
 0x239   :  { %v815_v61 = vmul.f32 %v813_v59, %v6895_v43  ;;  %v816_v62 = vmul.f32 %v814_v60, %v6884_v29  ;;  %5968 = vmatprep.subr.bf16.mxu1 %v5967_v57  ;;  %5984 = vmatprep.subr.bf16.mxu0 %v5967_v57 }
 0x23a   :  { %v820_v44 = vpop.permute.xlu1 %819  ;;  %5970 = vmatpush1.bf16.msra.mxu1 %v5969_v51  ;;  %5986 = vmatpush1.bf16.msra.mxu0 %v5969_v51 }
 0x23b   :  { %v5973_v63 = vpack.c.bf16 %v815_v61, %v7126_v32  ;;  %v822_v45 = vpop.permute.xlu0 %821  ;;  %v5971_v1 = vpack.c.bf16 %v816_v62, %v7129_v34  ;;  %v7251_v62 = vld [vmem:[%s7236_s19] sm:$0xff] }
 0x23c   :  { %v823_v6 = vsel %vm247_vm4, %v820_v44, %v822_v45  ;;  %v824_v7 = vsel %vm247_vm4, %v822_v45, %v820_v44 }
 0x23d   :  { %5972 = vmatprep.subr.bf16.mxu1 %v5971_v1  ;;  %5988 = vmatprep.subr.bf16.mxu0 %v5971_v1  ;;  %v825_v34 = vmul.f32 %v823_v6, %v6910_v58  ;;  %v826_v0 = vmul.f32 %v824_v7, %v6903_v50 }
 0x23e   :  { %v830_v2 = vpop.permute.xlu1 %829  ;;  %5974 = vmatpush1.bf16.msra.mxu1 %v5973_v63  ;;  %5990 = vmatpush1.bf16.msra.mxu0 %v5973_v63 }
 0x23f   :  { %v832_v8 = vpop.permute.xlu0 %831 }
 0x240   :  { %v833_v10 = vsel %vm262_vm5, %v830_v2, %v832_v8  ;;  %v834_v32 = vsel %vm262_vm5, %v832_v8, %v830_v2  ;;  %v7265_v2 = vld [vmem:[%s7236_s19 + $0x8] sm:$0xff] }
 0x241   :  { %v835_v14 = vmul.f32 %v833_v10, %v6906_v53  ;;  %v836_v15 = vmul.f32 %v834_v32, %v6898_v47 }
 0x242   :  { %v1350_v16 = vpop.permute.xlu1 %1349 }
 0x243   :  { %v5977_v17 = vpack.c.bf16 %v835_v14, %v825_v34  ;;  %v1352_v18 = vpop.permute.xlu0 %1351  ;;  %v5975_v19 = vpack.c.bf16 %v836_v15, %v826_v0  ;;  %v7280_v0 = vld [vmem:[%s7236_s19 + $0x10] sm:$0xff] }
 0x244   :  { %v1353_v27 = vsel %vm262_vm5, %v1350_v16, %v1352_v18  ;;  %v1354_v31 = vsel %vm262_vm5, %v1352_v18, %v1350_v16 }
 0x245   :  { %v1355_v33 = vmul.f32 %v1353_v27, %v6906_v53  ;;  %v1356_v35 = vmul.f32 %v1354_v31, %v6898_v47  ;;  %5976 = vmatprep.subr.bf16.mxu1 %v5975_v19  ;;  %5992 = vmatprep.subr.bf16.mxu0 %v5975_v19 }
 0x246   :  { %v840_v37 = vpop.permute.xlu1 %839  ;;  %5978 = vmatpush1.bf16.msra.mxu1 %v5977_v17  ;;  %5994 = vmatpush1.bf16.msra.mxu0 %v5977_v17 }
 0x247   :  { %v1359_v38 = vrot.slane %v1355_v33, 2  ;;  %v1360_v49 = vrot.slane %v1356_v35, 2  ;;  %v842_v51 = vpop.permute.xlu0 %841 }
 0x248   :  { %v843_v52 = vsel %vm277_vm8, %v840_v37, %v842_v51  ;;  %v844_v57 = vsel %vm277_vm8, %v842_v51, %v840_v37 }
 0x249   :  { %1363 = vst [vmem:[#allocation2 + $0x10] sm:$0xc0] %v1359_v38  ;;  %1364 = vst [vmem:[#allocation2 + $0x18] sm:$0xc0] %v1360_v49  ;;  %v845_v59 = vmul.f32 %v6957_v54, %v843_v52  ;;  %v846_v60 = vmul.f32 %v6960_v55, %v844_v57 }
 0x24a   :  { %v1258_v61 = vpop.permute.xlu1 %1257 }
 0x24b   :  { %996 = vmatprep.subr.mxu1 %v846_v60  ;;  %1397 = vmatprep.subr.mxu0 %v846_v60  ;;  %v1260_v44 = vpop.permute.xlu0 %1259 }
 0x24c   :  { %v1261_v63 = vsel %vm170_vm6, %v1258_v61, %v1260_v44  ;;  %v1262_v45 = vsel %vm170_vm6, %v1260_v44, %v1258_v61  ;;  %997 = vmatpush1.msra.mxu1 %v845_v59  ;;  %1398 = vmatpush1.msra.mxu0 %v845_v59 }
 0x24d   :  { %v1263_v1 = vmul.f32 %v1262_v45, %v6876_v23  ;;  %v1264_v6 = vmul.f32 %v1261_v63, %v6870_v20  ;;  %5413 = vmatmul.mubr.msk.f32.vlgmr.msra.gmra.mrb[0].mxu1 %vm480_vm7, %v7251_v62  ;;  %5424 = vmatmul.mubr.msk.f32.vlgmr.msra.gmra.mrb[8].mxu0 %vm480_vm7, %v6973_v5 }
 0x24e   :  { %1050 = vmatprep.mubr.f32.mxu1 %v8744_v3  ;;  %v1366_v7 = vpop.permute.xlu1 %1365  ;;  %1451 = vmatprep.mubr.f32.mxu0 %v8744_v3 }
 0x24f   :  { %1265 = vst [vmem:[#allocation2] sm:$0x3] %v1263_v1  ;;  %1266 = vst [vmem:[#allocation2 + $0x8] sm:$0x3] %v1264_v6  ;;  %v1368_v8 = vpop.permute.xlu0 %1367 }
 0x250   :  { %v1369_v10 = vsel %vm277_vm8, %v1366_v7, %v1368_v8  ;;  %v1370_v32 = vsel %vm277_vm8, %v1368_v8, %v1366_v7  ;;  %v1377_v15 = vld [vmem:[#allocation2 + $0x10] sm:$0xff] }
 0x251   :  { %5414 = vmatmul.mubr.msk.f32.gmra.mrb[2].mxu1 %vm480_vm7, %v7265_v2  ;;  %v1371_v5 = vmul.f32 %v6957_v54, %v1369_v10  ;;  %v1372_v34 = vmul.f32 %v6960_v55, %v1370_v32  ;;  %5425 = vmatmul.mubr.msk.f32.gmra.mrb[10].mxu0 %vm480_vm7, %v6986_v13  ;;  %v7288_v54 = vld [vmem:[%s7236_s19 + $0x18] sm:$0xff] }
 0x252   :  { %1056 = vmatprep.mubr.f32.mxu1 %v8744_v3  ;;  %1457 = vmatprep.mubr.f32.mxu0 %v8744_v3  ;;  %v1378_v55 = vld [vmem:[#allocation2 + $0x18] sm:$0xff] }
 0x253   :  { %1373 = vst [vmem:[#allocation2 + $0x20] sm:$0x3] %v1371_v5  ;;  %1374 = vst [vmem:[#allocation2 + $0x28] sm:$0x3] %v1372_v34 }
 0x255   :  { %5415 = vmatmul.mubr.msk.f32.gmra.mrb[4].mxu1 %vm480_vm7, %v7280_v0  ;;  %5426 = vmatmul.mubr.msk.f32.gmra.mrb[12].mxu0 %vm480_vm7, %v6998_v26 }
 0x256   :  { %1062 = vmatprep.mubr.f32.mxu1 %v8744_v3  ;;  %v1376_v13 = vld [vmem:[#allocation2 + $0x8] sm:$0xff]  ;;  %1463 = vmatprep.mubr.f32.mxu0 %v8744_v3  ;;  %v1375_v14 = vld [vmem:[#allocation2] sm:$0xff] }
 0x257   :  { %v5995_v16 = vpack.c.bf16 %v1378_v55, %v1376_v13  ;;  %v5997_v17 = vpack.c.bf16 %v1377_v15, %v1375_v14 }
 0x259   :  { %5416 = vmatmul.mubr.msk.f32.gmra.mrb[6].mxu1 %vm480_vm7, %v7288_v54  ;;  %5996 = vmatprep.subr.bf16.mxu0 %v5995_v16 }
 0x25a   :  { %5998 = vmatpush1.bf16.msra.mxu0 %v5997_v17  ;;  %v1380_v18 = vld [vmem:[#allocation2 + $0x28] sm:$0x3]  ;;  %1785 = vmatprep.mubr.f32.mxu1 %v8744_v3  ;;  %v1379_v26 = vld [vmem:[#allocation2 + $0x20] sm:$0x3] }
 0x25b   :  { %5427 = vmatmul.mubr.msk.f32.gmra.mrb[14].mxu0 %vm480_vm7, %v7009_v30  ;;  %5428 = vmatprep.subr.msk.mxu0 %vm595_vm9, %v1380_v18  ;;  %v7313_v30 = vld.sshfl [vmem:[%s6826_s7 + $0x8] sm:$0x33 pattern:$0x76325410] }
 0x25c   :  { %1540 = vmatprep.mubr.f32.mxu0 %v8744_v3  ;;  %2077 = vrot.lane.b32.xlu1 %v7313_v30, %s6775_s8  ;;  %2125 = vst [vmem:[#allocation2 + $0x10] sm:$0x3] %v7313_v30 }
 0x25e   :  { %5429 = vmatpush1.msk.msra.mxu0 %vm595_vm9, %v1379_v26 }
 0x25f   :  { %5430 = vmatmul.mubr.msk.f32.vlgmr.msra.gmra.mrb[8].mxu0 %vm582_vm10, %v7016_v39  ;;  %v7320_v39 = vcombine.high %v7313_v30, %v7313_v30 }
 0x260   :  { %1546 = vmatprep.mubr.f32.mxu0 %v8744_v3  ;;  %2093 = vrot.lane.b32.xlu1 %v7313_v30, %s6774_s4  ;;  %v7345_v33 = vpop.permute.xlu0 %1076 }
 0x261   :  { %2079 = vrot.lane.b32.xlu0 %v7320_v39, %s6775_s8  ;;  %2126 = vst [vmem:[#allocation2 + $0x18] sm:$0x3] %v7320_v39 }
 0x263   :  { %5431 = vmatmul.mubr.msk.f32.gmra.mrb[10].mxu0 %vm582_vm10, %v7023_v40  ;;  %v7341_v40 = vpop.permute.xlu1 %1071 }
 0x264   :  { %1552 = vmatprep.mubr.f32.mxu0 %v8744_v3  ;;  %2109 = vrot.lane.b32.xlu1 %v7313_v30, %s6776_s9  ;;  %v7353_v1 = vpop.permute.xlu0 %1086 }
 0x265   :  { %2095 = vrot.lane.b32.xlu0 %v7320_v39, %s6774_s4 }
 0x267   :  { %5432 = vmatmul.mubr.msk.f32.gmra.mrb[12].mxu0 %vm582_vm10, %v7029_v41  ;;  %v7349_v57 = vpop.permute.xlu1 %1081 }
 0x268   :  { %1558 = vmatprep.mubr.f32.mxu0 %v8744_v3  ;;  %2127 = vrot.lane.b32.xlu1 %v7313_v30, %s6777_s10 }
 0x269   :  { %2111 = vrot.lane.b32.xlu0 %v7320_v39, %s6776_s9 }
 0x26b   :  { %5433 = vmatmul.mubr.msk.f32.gmra.mrb[14].mxu0 %vm582_vm10, %v7035_v42 }
 0x26c   :  { %2255 = vmatprep.mubr.f32.mxu0 %v8744_v3  ;;  %2143 = vrot.lane.b32.xlu1 %v7313_v30, %s6778_s11 }
 0x26d   :  { %2129 = vrot.lane.b32.xlu0 %v7320_v39, %s6777_s10 }
 0x271   :  { %2145 = vrot.lane.b32.xlu0 %v7320_v39, %s6778_s11 }
 0x2ce   :  { %v2078_v15 = vpop.permute.xlu1 %2077 }
 0x320   :  { %v1046_v41 = vpop.f32.mrb[0].mxu1 }
 0x321   :  { %v1089_v42 = vadd.f32 %v7341_v40, %v1046_v41  ;;  %v1048_v19 = vpop.f32.mrb[1].mxu1 }
 0x322   :  { %v1090_v27 = vadd.f32 %v7341_v40, %v1048_v19  ;;  %v2080_v19 = vpop.permute.xlu0 %2079 }
 0x323   :  { %v5417_v31 = vmul.f32 -1.442695, %v1089_v42 }
 0x324   :  { %v5418_v35 = vmul.f32 -1.442695, %v1090_v27  ;;  %v1052_v37 = vpop.f32.mrb[2].mxu1 }
 0x325   :  { %6524 = vpow2.f32 %v5417_v31  ;;  %v1091_v38 = vadd.f32 %v7345_v33, %v1052_v37  ;;  %v1054_v49 = vpop.f32.mrb[3].mxu1  ;;  %v2082_v37 = vsel %vm185_vm0, %v2080_v19, %v2078_v15 }
 0x326   :  { %6526 = vpow2.f32 %v5418_v35  ;;  %v1092_v51 = vadd.f32 %v7345_v33, %v1054_v49  ;;  %v2081_v35 = vsel %vm185_vm0, %v2078_v15, %v2080_v19 }
 0x327   :  { %v5419_v52 = vmul.f32 -1.442695, %v1091_v38 }
 0x328   :  { %v5420_v59 = vmul.f32 -1.442695, %v1092_v51  ;;  %v1058_v60 = vpop.f32.mrb[4].mxu1  ;;  %v2083_v51 = vmul.f32 %v2082_v37, %v6878_v24 }
 0x329   :  { %6528 = vpow2.f32 %v5419_v52  ;;  %v1093_v61 = vadd.f32 %v7349_v57, %v1058_v60  ;;  %v1060_v44 = vpop.f32.mrb[5].mxu1  ;;  %v2084_v52 = vmul.f32 %v2081_v35, %v6874_v22 }
 0x32a   :  { %6530 = vpow2.f32 %v5420_v59  ;;  %v1094_v63 = vadd.f32 %v7349_v57, %v1060_v44  ;;  %v2094_v59 = vpop.permute.xlu1 %2093 }
 0x32b   :  { %v5421_v45 = vmul.f32 -1.442695, %v1093_v61 }
 0x32c   :  { %v5422_v6 = vmul.f32 -1.442695, %v1094_v63  ;;  %v1064_v7 = vpop.f32.mrb[6].mxu1 }
 0x32d   :  { %v1095_v8 = vadd.f32 %v7353_v1, %v1064_v7  ;;  %v1066_v10 = vpop.f32.mrb[7].mxu1  ;;  %6532 = vpow2.f32 %v5421_v45  ;;  %v2087_v45 = vrot.slane %v2083_v51, 6 }
 0x32e   :  { %v1096_v32 = vadd.f32 %v7353_v1, %v1066_v10  ;;  %6534 = vpow2.f32 %v5422_v6  ;;  %v2096_v6 = vpop.permute.xlu0 %2095  ;;  %v2088_v10 = vrot.slane %v2084_v52, 6 }
 0x32f   :  { %v6525_v5 = vpop.eup %6524  ;;  %6536 = vtanh.f32 %v1095_v8  ;;  %2091 = vst [vmem:[#allocation2] sm:$0xc] %v2087_v45 }
 0x330   :  { %v6527_v34 = vpop.eup %6526  ;;  %v1103_v55 = vadd.f32 1.0, %v6525_v5  ;;  %6538 = vtanh.f32 %v1096_v32  ;;  %2092 = vst [vmem:[#allocation2 + $0x8] sm:$0xc] %v2088_v10 }
 0x331   :  { %v1104_v13 = vadd.f32 1.0, %v6527_v34 }
 0x332   :  { %6540 = vrcp.f32 %v1103_v55  ;;  %v1542_v14 = vpop.f32.mrb[8].mxu0  ;;  %v2097_v55 = vsel %vm200_vm1, %v2094_v59, %v2096_v6 }
 0x333   :  { %v6529_v16 = vpop.eup %6528  ;;  %6542 = vrcp.f32 %v1104_v13  ;;  %v1565_v17 = vadd.f32 %v1542_v14, %v7069_v46  ;;  %v1544_v18 = vpop.f32.mrb[9].mxu0  ;;  %v2098_v13 = vsel %vm200_vm1, %v2096_v6, %v2094_v59 }
 0x334   :  { %v6531_v26 = vpop.eup %6530  ;;  %v1115_v41 = vadd.f32 1.0, %v6529_v16  ;;  %v1566_v42 = vadd.f32 %v1544_v18, %v7069_v46  ;;  %v2110_v14 = vpop.permute.xlu1 %2109  ;;  %v2100_v18 = vmul.f32 %v2097_v55, %v6880_v25 }
 0x335   :  { %v1116_v27 = vadd.f32 1.0, %v6531_v26  ;;  %v5434_v31 = vmul.f32 -1.442695, %v1565_v17  ;;  %v2099_v17 = vmul.f32 %v2098_v13, %v6891_v36 }
 0x336   :  { %6544 = vrcp.f32 %v1115_v41  ;;  %v5435_v38 = vmul.f32 -1.442695, %v1566_v42  ;;  %v1548_v49 = vpop.f32.mrb[10].mxu0  ;;  %v2112_v42 = vpop.permute.xlu0 %2111 }
 0x337   :  { %6546 = vrcp.f32 %v1116_v27  ;;  %v1567_v60 = vadd.f32 %v1548_v49, %v7072_v56  ;;  %v1550_v61 = vpop.f32.mrb[11].mxu0  ;;  %v6533_v44 = vpop.eup %6532  ;;  %v2103_v35 = vrot.slane %v2099_v17, 4  ;;  %v2104_v49 = vrot.slane %v2100_v18, 4 }
 0x338   :  { %6548 = vpow2.f32 %v5434_v31  ;;  %v1568_v63 = vadd.f32 %v1550_v61, %v7072_v56  ;;  %v6535_v7 = vpop.eup %6534  ;;  %v1127_v41 = vadd.f32 1.0, %v6533_v44  ;;  %v2113_v51 = vsel %vm215_vm2, %v2110_v14, %v2112_v42  ;;  %v2128_v52 = vpop.permute.xlu1 %2127 }
 0x339   :  { %6550 = vpow2.f32 %v5435_v38  ;;  %v5436_v8 = vmul.f32 -1.442695, %v1567_v60  ;;  %v6537_v32 = vpop.eup %6536  ;;  %v1128_v27 = vadd.f32 1.0, %v6535_v7  ;;  %2107 = vst [vmem:[#allocation2] sm:$0x30] %v2103_v35  ;;  %v2114_v61 = vsel %vm215_vm2, %v2112_v42, %v2110_v14 }
 0x33a   :  { %v5437_v5 = vmul.f32 -1.442695, %v1568_v63  ;;  %v7367_v34 = vpop.f32.mrb[12].mxu0  ;;  %v6539_v15 = vpop.eup %6538  ;;  %v2116_v44 = vmul.f32 %v2113_v51, %v6872_v21  ;;  %2108 = vst [vmem:[#allocation2 + $0x8] sm:$0x30] %v2104_v49  ;;  %v2115_v6 = vmul.f32 %v2114_v61, %v6882_v28 }
 0x33b   :  { %v7373_v16 = vpop.f32.mrb[13].mxu0  ;;  %6552 = vpow2.f32 %v5436_v8  ;;  %v2130_v7 = vpop.permute.xlu0 %2129 }
 0x33c   :  { %v6541_v26 = vpop.eup %6540  ;;  %6554 = vpow2.f32 %v5437_v5  ;;  %v2131_v5 = vsel %vm232_vm3, %v2128_v52, %v2130_v7  ;;  %v2119_v14 = vrot.slane %v2115_v6, 2  ;;  %v2144_v17 = vpop.permute.xlu1 %2143 }
 0x33d   :  { %v6543_v19 = vpop.eup %6542  ;;  %v1137_v31 = vmul.f32 %v6541_v26, %v6537_v32  ;;  %6556 = vrcp.f32 %v1127_v41  ;;  %v2120_v32 = vrot.slane %v2116_v44, 2  ;;  %v2133_v42 = vmul.f32 %v2131_v5, %v6895_v43 }
 0x33e   :  { %v1138_v37 = vmul.f32 %v6543_v19, %v6539_v15  ;;  %v1560_v38 = vpop.f32.mrb[14].mxu0  ;;  %6558 = vrcp.f32 %v1128_v27  ;;  %v2132_v15 = vsel %vm232_vm3, %v2130_v7, %v2128_v52  ;;  %2123 = vst [vmem:[#allocation2] sm:$0xc0] %v2119_v14  ;;  %v1570_v5 = vadd.f32 %v7373_v16, %v7077_v4 }
 0x33f   :  { %v1571_v59 = vadd.f32 %v1560_v38, %v7081_v11  ;;  %v1562_v60 = vpop.f32.mrb[15].mxu0  ;;  %2124 = vst [vmem:[#allocation2 + $0x8] sm:$0xc0] %v2120_v32  ;;  %v2134_v19 = vmul.f32 %v2132_v15, %v6884_v29  ;;  %v2146_v38 = vpop.permute.xlu0 %2145  ;;  %v2137_v49 = vrot.slane %v2133_v42, 6  ;;  %v1569_v32 = vadd.f32 %v7367_v34, %v7077_v4 }
 0x340   :  { %v6545_v63 = vpop.eup %6544  ;;  %v1572_v45 = vadd.f32 %v1562_v60, %v7081_v11  ;;  %v5439_v42 = vmul.f32 -1.442695, %v1570_v5 }
 0x341   :  { %v6547_v8 = vpop.eup %6546  ;;  %v1135_v10 = vmul.f32 0.1, %v6545_v63  ;;  %6560 = vtanh.f32 %v1571_v59  ;;  %v2138_v51 = vrot.slane %v2134_v19, 6  ;;  %v2148_v59 = vsel %vm247_vm4, %v2146_v38, %v2144_v17  ;;  %2141 = vst [vmem:[#allocation2 + $0x10] sm:$0xc] %v2137_v49 }
 0x342   :  { %v6549_v55 = vpop.eup %6548  ;;  %v1136_v13 = vmul.f32 0.1, %v6547_v8  ;;  %6562 = vtanh.f32 %v1572_v45  ;;  %v2150_v44 = vmul.f32 %v2148_v59, %v6903_v50 }
 0x343   :  { %v6551_v18 = vpop.eup %6550  ;;  %v7389_v26 = vadd.f32 %v1137_v31, %v1135_v10  ;;  %v1579_v41 = vadd.f32 1.0, %v6549_v55  ;;  %v2147_v31 = vsel %vm247_vm4, %v2144_v17, %v2146_v38  ;;  %2142 = vst [vmem:[#allocation2 + $0x18] sm:$0xc] %v2138_v51  ;;  %v5438_v17 = vmul.f32 -1.442695, %v1569_v32 }
 0x344   :  { %v7393_v27 = vadd.f32 %v1138_v37, %v1136_v13  ;;  %v1580_v35 = vadd.f32 1.0, %v6551_v18  ;;  %v2149_v37 = vmul.f32 %v2147_v31, %v6910_v58  ;;  %v2154_v6 = vrot.slane %v2150_v44, 4 }
 0x345   :  { %6564 = vtanh.f32 %v7389_v26  ;;  %v6553_v52 = vpop.eup %6552 }
 0x346   :  { %6566 = vtanh.f32 %v7393_v27  ;;  %v6555_v60 = vpop.eup %6554  ;;  %v1591_v61 = vadd.f32 1.0, %v6553_v52  ;;  %v2153_v45 = vrot.slane %v2149_v37, 4  ;;  %2158 = vst [vmem:[#allocation2 + $0x18] sm:$0x30] %v2154_v6 }
 0x347   :  { %6568 = vrcp.f32 %v1579_v41  ;;  %v1592_v63 = vadd.f32 1.0, %v6555_v60  ;;  %v6557_v7 = vpop.eup %6556 }
 0x348   :  { %6570 = vrcp.f32 %v1580_v35  ;;  %2157 = vst [vmem:[#allocation2 + $0x10] sm:$0x30] %v2153_v45  ;;  %v6559_v8 = vpop.eup %6558 }
 0x349   :  { %6572 = vrcp.f32 %v1591_v61 }
 0x34a   :  { %6574 = vrcp.f32 %v1592_v63 }
 0x34b   :  { %v6561_v10 = vpop.eup %6560  ;;  %6576 = vpow2.f32 %v5438_v17 }
 0x34c   :  { %v6563_v55 = vpop.eup %6562  ;;  %6578 = vpow2.f32 %v5439_v42 }
 0x34f   :  { %v6565_v13 = vpop.eup %6564 }
 0x350   :  { %v6567_v14 = vpop.eup %6566  ;;  %v7407_v15 = vmul.f32 %v6565_v13, %v6557_v7  ;;  %v7496_v7 = vld.sshfl [vmem:[%s6826_s7 + $0xc] sm:$0x33 pattern:$0x76325410]  ;;  %s6789_s7 = smov 10  }
 0x351   :  { %v6569_v18 = vpop.eup %6568  ;;  %v7409_v41 = vmul.f32 %v6567_v14, %v6559_v8  ;;  %v7504_v8 = vcombine.high %v7496_v7, %v7496_v7  ;;  %s5366_s22 = sld [smem:[%s8743_s0 + %s6789_s7]]  }
 0x352   :  { %v6571_v19 = vpop.eup %6570  ;;  %v1613_v35 = vmul.f32 %v6569_v18, %v6561_v10  ;;  %1145 = vrot.lane.b32.xlu1 %v7407_v15, %s6773_s3  ;;  %s5386_s7 = sld [smem:[%s8743_s0 + %s6810_s17]]  }
 0x353   :  { %v6573_v38 = vpop.eup %6572  ;;  %v1614_v34 = vmul.f32 %v6571_v19, %v6563_v55  ;;  %1147 = vrot.lane.b32.xlu0 %v7409_v41, %s6773_s3 }
 0x354   :  { %v6575_v16 = vpop.eup %6574  ;;  %v1611_v49 = vmul.f32 %v6573_v38, %v7109_v9 }
 0x355   :  { %v1612_v51 = vmul.f32 %v6575_v16, %v7115_v12  ;;  %v6577_v9 = vpop.eup %6576 }
 0x356   :  { %v7417_v31 = vadd.f32 %v1613_v35, %v1611_v49  ;;  %1155 = vrot.lane.b32.xlu1 %v7407_v15, %s6775_s8  ;;  %v6579_v12 = vpop.eup %6578  ;;  %v1603_v59 = vadd.f32 1.0, %v6577_v9 }
 0x357   :  { %v7421_v52 = vadd.f32 %v1614_v34, %v1612_v51  ;;  %1157 = vrot.lane.b32.xlu0 %v7409_v41, %s6775_s8  ;;  %v1604_v37 = vadd.f32 1.0, %v6579_v12 }
 0x358   :  { %6580 = vtanh.f32 %v7417_v31 }
 0x359   :  { %6582 = vtanh.f32 %v7421_v52 }
 0x35a   :  { %1165 = vrot.lane.b32.xlu1 %v7407_v15, %s6774_s4  ;;  %6584 = vrcp.f32 %v1603_v59 }
 0x35b   :  { %1167 = vrot.lane.b32.xlu0 %v7409_v41, %s6774_s4  ;;  %6586 = vrcp.f32 %v1604_v37 }
 0x35e   :  { %1175 = vrot.lane.b32.xlu1 %v7407_v15, %s6776_s9 }
 0x35f   :  { %1177 = vrot.lane.b32.xlu0 %v7409_v41, %s6776_s9 }
 0x362   :  { %1187 = vrot.lane.b32.xlu1 %v7407_v15, %s6777_s10  ;;  %v6581_v60 = vpop.eup %6580 }
 0x363   :  { %1189 = vrot.lane.b32.xlu0 %v7409_v41, %s6777_s10  ;;  %v6583_v61 = vpop.eup %6582 }
 0x364   :  { %v6585_v44 = vpop.eup %6584 }
 0x365   :  { %v6587_v63 = vpop.eup %6586  ;;  %v7451_v45 = vmul.f32 %v6585_v44, %v6581_v60 }
 0x366   :  { %1197 = vrot.lane.b32.xlu1 %v7407_v15, %s6778_s11  ;;  %v7453_v6 = vmul.f32 %v6587_v63, %v6583_v61 }
 0x367   :  { %1199 = vrot.lane.b32.xlu0 %v7409_v41, %s6778_s11 }
 0x36a   :  { %1207 = vrot.lane.b32.xlu1 %v7407_v15, %s6779_s12 }
 0x36b   :  { %1209 = vrot.lane.b32.xlu0 %v7409_v41, %s6779_s12 }
 0x36e   :  { %1217 = vrot.lane.b32.xlu1 %v7407_v15, %s6781_s13 }
 0x36f   :  { %1219 = vrot.lane.b32.xlu0 %v7409_v41, %s6781_s13 }
 0x372   :  { %1621 = vrot.lane.b32.xlu1 %v7451_v45, %s6773_s3 }
 0x373   :  { %1623 = vrot.lane.b32.xlu0 %v7453_v6, %s6773_s3 }
 0x376   :  { %1631 = vrot.lane.b32.xlu1 %v7451_v45, %s6775_s8 }
 0x377   :  { %1633 = vrot.lane.b32.xlu0 %v7453_v6, %s6775_s8 }
 0x37a   :  { %1641 = vrot.lane.b32.xlu1 %v7451_v45, %s6774_s4 }
 0x37b   :  { %1643 = vrot.lane.b32.xlu0 %v7453_v6, %s6774_s4 }
 0x37e   :  { %1651 = vrot.lane.b32.xlu1 %v7451_v45, %s6776_s9 }
 0x37f   :  { %1653 = vrot.lane.b32.xlu0 %v7453_v6, %s6776_s9 }
 0x382   :  { %1663 = vrot.lane.b32.xlu1 %v7451_v45, %s6777_s10 }
 0x383   :  { %1665 = vrot.lane.b32.xlu0 %v7453_v6, %s6777_s10 }
 0x386   :  { %1673 = vrot.lane.b32.xlu1 %v7451_v45, %s6778_s11 }
 0x387   :  { %1675 = vrot.lane.b32.xlu0 %v7453_v6, %s6778_s11 }
 0x38a   :  { %1683 = vrot.lane.b32.xlu1 %v7451_v45, %s6779_s12 }
 0x38b   :  { %1685 = vrot.lane.b32.xlu0 %v7453_v6, %s6779_s12 }
 0x38e   :  { %2159 = vrot.lane.b32.xlu1 %v7313_v30, %s6779_s12 }
 0x38f   :  { %2161 = vrot.lane.b32.xlu0 %v7320_v39, %s6779_s12 }
 0x392   :  { %1693 = vrot.lane.b32.xlu1 %v7451_v45, %s6781_s13 }
 0x393   :  { %1695 = vrot.lane.b32.xlu0 %v7453_v6, %s6781_s13 }
 0x396   :  { %2067 = vrot.lane.b32.xlu1 %v7313_v30, %s6773_s3 }
 0x397   :  { %2069 = vrot.lane.b32.xlu0 %v7320_v39, %s6773_s3 }
 0x39a   :  { %2175 = vrot.lane.b32.xlu1 %v7313_v30, %s6781_s13 }
 0x39b   :  { %2177 = vrot.lane.b32.xlu0 %v7320_v39, %s6781_s13 }
 0x39e   :  { %2887 = vrot.lane.b32.xlu1 %v7496_v7, %s6775_s8 }
 0x39f   :  { %2889 = vrot.lane.b32.xlu0 %v7504_v8, %s6775_s8 }
 0x3a2   :  { %2903 = vrot.lane.b32.xlu1 %v7496_v7, %s6774_s4 }
 0x3a3   :  { %2905 = vrot.lane.b32.xlu0 %v7504_v8, %s6774_s4 }
 0x3a6   :  { %2919 = vrot.lane.b32.xlu1 %v7496_v7, %s6776_s9 }
 0x3a7   :  { %2921 = vrot.lane.b32.xlu0 %v7504_v8, %s6776_s9 }
 0x3aa   :  { %2937 = vrot.lane.b32.xlu1 %v7496_v7, %s6777_s10 }
 0x3ab   :  { %2939 = vrot.lane.b32.xlu0 %v7504_v8, %s6777_s10 }
 0x3ae   :  { %2953 = vrot.lane.b32.xlu1 %v7496_v7, %s6778_s11 }
 0x3af   :  { %2955 = vrot.lane.b32.xlu0 %v7504_v8, %s6778_s11 }
 0x3c4   :  { %v1146_v30 = vpop.permute.xlu1 %1145 }
 0x3c5   :  { %v1148_v39 = vpop.permute.xlu0 %1147 }
 0x3c6   :  { %v1149_v10 = vsel %vm170_vm6, %v1146_v30, %v1148_v39  ;;  %v1150_v32 = vsel %vm170_vm6, %v1148_v39, %v1146_v30 }
 0x3c7   :  { %v1151_v17 = vmul.f32 %v1150_v32, %v6876_v23  ;;  %v1152_v18 = vmul.f32 %v1149_v10, %v6870_v20 }
 0x3c8   :  { %v1156_v5 = vpop.permute.xlu1 %1155 }
 0x3c9   :  { %v1158_v55 = vpop.permute.xlu0 %1157 }
 0x3ca   :  { %v1159_v13 = vsel %vm185_vm0, %v1156_v5, %v1158_v55  ;;  %v1160_v14 = vsel %vm185_vm0, %v1158_v55, %v1156_v5 }
 0x3cb   :  { %v1161_v42 = vmul.f32 %v1160_v14, %v6878_v24  ;;  %v1162_v19 = vmul.f32 %v1159_v13, %v6874_v22 }
 0x3cc   :  { %v1166_v35 = vpop.permute.xlu1 %1165 }
 0x3cd   :  { %v6001_v38 = vpack.c.bf16 %v1161_v42, %v1151_v17  ;;  %v1168_v34 = vpop.permute.xlu0 %1167  ;;  %v5999_v16 = vpack.c.bf16 %v1162_v19, %v1152_v18 }
 0x3ce   :  { %v1169_v49 = vsel %vm200_vm1, %v1166_v35, %v1168_v34  ;;  %v1170_v51 = vsel %vm200_vm1, %v1168_v34, %v1166_v35 }
 0x3cf   :  { %6000 = vmatprep.subr.bf16.mxu1 %v5999_v16  ;;  %v1171_v60 = vmul.f32 %v1170_v51, %v6891_v36  ;;  %v1172_v61 = vmul.f32 %v1169_v49, %v6880_v25 }
 0x3d0   :  { %v1176_v9 = vpop.permute.xlu1 %1175  ;;  %6002 = vmatpush1.bf16.msra.mxu1 %v6001_v38 }
 0x3d1   :  { %v1178_v12 = vpop.permute.xlu0 %1177 }
 0x3d2   :  { %v1179_v59 = vsel %vm215_vm2, %v1176_v9, %v1178_v12  ;;  %v1180_v37 = vsel %vm215_vm2, %v1178_v12, %v1176_v9 }
 0x3d3   :  { %v1181_v44 = vmul.f32 %v1180_v37, %v6882_v28  ;;  %v1182_v63 = vmul.f32 %v1179_v59, %v6872_v21 }
 0x3d4   :  { %v1188_v30 = vpop.permute.xlu1 %1187 }
 0x3d5   :  { %v6005_v39 = vpack.c.bf16 %v1181_v44, %v1171_v60  ;;  %v1190_v10 = vpop.permute.xlu0 %1189  ;;  %v6003_v32 = vpack.c.bf16 %v1182_v63, %v1172_v61 }
 0x3d6   :  { %v1191_v5 = vsel %vm232_vm3, %v1188_v30, %v1190_v10  ;;  %v1192_v55 = vsel %vm232_vm3, %v1190_v10, %v1188_v30  ;;  %v7575_v30 = vld [vmem:[%s6866_s20 + $0x18] ss:$0 sm:$0xff] }
 0x3d7   :  { %v1193_v13 = vmul.f32 %v1191_v5, %v6895_v43  ;;  %v1194_v14 = vmul.f32 %v1192_v55, %v6884_v29  ;;  %6004 = vmatprep.subr.bf16.mxu1 %v6003_v32  ;;  %v7579_v5 = vld [vmem:[%s6866_s20 + $0x10] ss:$0 sm:$0xff] }
 0x3d8   :  { %v1198_v17 = vpop.permute.xlu1 %1197  ;;  %6006 = vmatpush1.bf16.msra.mxu1 %v6005_v39 }
 0x3d9   :  { %v6009_v18 = vpack.c.bf16 %v1193_v13, %v7407_v15  ;;  %v1200_v42 = vpop.permute.xlu0 %1199  ;;  %v6007_v19 = vpack.c.bf16 %v1194_v14, %v7409_v41 }
 0x3da   :  { %v1201_v35 = vsel %vm247_vm4, %v1198_v17, %v1200_v42  ;;  %v1202_v38 = vsel %vm247_vm4, %v1200_v42, %v1198_v17  ;;  %v7587_v42 = vld [vmem:[%s7124_s2] sm:$0xff] }
 0x3db   :  { %6008 = vmatprep.subr.bf16.mxu1 %v6007_v19  ;;  %v1203_v51 = vmul.f32 %v1201_v35, %v6910_v58  ;;  %v1204_v41 = vmul.f32 %v1202_v38, %v6903_v50 }
 0x3dc   :  { %v1208_v34 = vpop.permute.xlu1 %1207  ;;  %6010 = vmatpush1.bf16.msra.mxu1 %v6009_v18 }
 0x3dd   :  { %v1210_v16 = vpop.permute.xlu0 %1209 }
 0x3de   :  { %v1211_v49 = vsel %vm262_vm5, %v1208_v34, %v1210_v16  ;;  %v1212_v15 = vsel %vm262_vm5, %v1210_v16, %v1208_v34 }
 0x3df   :  { %v1213_v9 = vmul.f32 %v1211_v49, %v6906_v53  ;;  %v1214_v12 = vmul.f32 %v1212_v15, %v6898_v47 }
 0x3e0   :  { %v1218_v59 = vpop.permute.xlu1 %1217 }
 0x3e1   :  { %v6013_v37 = vpack.c.bf16 %v1213_v9, %v1203_v51  ;;  %v1220_v60 = vpop.permute.xlu0 %1219  ;;  %v6011_v61 = vpack.c.bf16 %v1214_v12, %v1204_v41  ;;  %v7601_v12 = vld [vmem:[%s7124_s2 + $0x8] sm:$0xff] }
 0x3e2   :  { %v1222_v44 = vsel %vm277_vm8, %v1220_v60, %v1218_v59  ;;  %v1221_v63 = vsel %vm277_vm8, %v1218_v59, %v1220_v60 }
 0x3e3   :  { %6012 = vmatprep.subr.bf16.mxu1 %v6011_v61  ;;  %v1224_v39 = vmul.f32 %v7575_v30, %v1222_v44  ;;  %v1223_v55 = vmul.f32 %v7579_v5, %v1221_v63  ;;  %v7611_v44 = vld [vmem:[%s7124_s2 + $0x10] sm:$0xff] }
 0x3e4   :  { %v1622_v10 = vpop.permute.xlu1 %1621  ;;  %6014 = vmatpush1.bf16.msra.mxu1 %v6013_v37 }
 0x3e5   :  { %1737 = vmatprep.subr.mxu1 %v1224_v39  ;;  %v1624_v32 = vpop.permute.xlu0 %1623 }
 0x3e6   :  { %v1625_v13 = vsel %vm170_vm6, %v1622_v10, %v1624_v32  ;;  %v1626_v14 = vsel %vm170_vm6, %v1624_v32, %v1622_v10 }
 0x3e7   :  { %v1627_v38 = vmul.f32 %v1626_v14, %v6876_v23  ;;  %v1628_v34 = vmul.f32 %v1625_v13, %v6870_v20 }
 0x3e8   :  { %v1632_v17 = vpop.permute.xlu1 %1631  ;;  %1738 = vmatpush1.msra.mxu1 %v1223_v55 }
 0x3e9   :  { %v1634_v18 = vpop.permute.xlu0 %1633  ;;  %5440 = vmatmul.mubr.msk.f32.vlgmr.msra.gmra.mrb[8].mxu1 %vm480_vm7, %v7587_v42 }
 0x3ea   :  { %v1635_v19 = vsel %vm185_vm0, %v1632_v17, %v1634_v18  ;;  %v1636_v35 = vsel %vm185_vm0, %v1634_v18, %v1632_v17  ;;  %1791 = vmatprep.mubr.f32.mxu1 %v8744_v3 }
 0x3eb   :  { %v1637_v16 = vmul.f32 %v1636_v35, %v6878_v24  ;;  %v1638_v49 = vmul.f32 %v1635_v19, %v6874_v22  ;;  %v7625_v35 = vld [vmem:[%s7124_s2 + $0x18] sm:$0xff] }
 0x3ec   :  { %v1642_v15 = vpop.permute.xlu1 %1641 }
 0x3ed   :  { %v6017_v51 = vpack.c.bf16 %v1637_v16, %v1627_v38  ;;  %v1644_v41 = vpop.permute.xlu0 %1643  ;;  %v6015_v9 = vpack.c.bf16 %v1638_v49, %v1628_v34  ;;  %5441 = vmatmul.mubr.msk.f32.gmra.mrb[10].mxu1 %vm480_vm7, %v7601_v12 }
 0x3ee   :  { %1797 = vmatprep.mubr.f32.mxu1 %v8744_v3  ;;  %v1645_v59 = vsel %vm200_vm1, %v1642_v15, %v1644_v41  ;;  %v1646_v37 = vsel %vm200_vm1, %v1644_v41, %v1642_v15 }
 0x3ef   :  { %6016 = vmatprep.subr.bf16.mxu1 %v6015_v9  ;;  %6032 = vmatprep.subr.bf16.mxu0 %v6015_v9  ;;  %v1647_v10 = vmul.f32 %v1646_v37, %v6891_v36  ;;  %v1648_v32 = vmul.f32 %v1645_v59, %v6880_v25 }
 0x3f0   :  { %v1652_v60 = vpop.permute.xlu1 %1651  ;;  %6018 = vmatpush1.bf16.msra.mxu1 %v6017_v51  ;;  %6034 = vmatpush1.bf16.msra.mxu0 %v6017_v51 }
 0x3f1   :  { %v1654_v61 = vpop.permute.xlu0 %1653  ;;  %5442 = vmatmul.mubr.msk.f32.gmra.mrb[12].mxu1 %vm480_vm7, %v7611_v44 }
 0x3f2   :  { %v1655_v63 = vsel %vm215_vm2, %v1652_v60, %v1654_v61  ;;  %v1656_v39 = vsel %vm215_vm2, %v1654_v61, %v1652_v60  ;;  %1803 = vmatprep.mubr.f32.mxu1 %v8744_v3 }
 0x3f3   :  { %v1657_v55 = vmul.f32 %v1656_v39, %v6882_v28  ;;  %v1658_v13 = vmul.f32 %v1655_v63, %v6872_v21 }
 0x3f4   :  { %v1664_v14 = vpop.permute.xlu1 %1663 }
 0x3f5   :  { %v6021_v17 = vpack.c.bf16 %v1657_v55, %v1647_v10  ;;  %v1666_v18 = vpop.permute.xlu0 %1665  ;;  %v6019_v19 = vpack.c.bf16 %v1658_v13, %v1648_v32  ;;  %5443 = vmatmul.mubr.msk.f32.gmra.mrb[14].mxu1 %vm480_vm7, %v7625_v35 }
 0x3f6   :  { %v1667_v38 = vsel %vm232_vm3, %v1664_v14, %v1666_v18  ;;  %v1668_v34 = vsel %vm232_vm3, %v1666_v18, %v1664_v14  ;;  %1874 = vmatprep.mubr.f32.mxu1 %v8744_v3 }
 0x3f7   :  { %v1669_v16 = vmul.f32 %v1667_v38, %v6895_v43  ;;  %v1670_v49 = vmul.f32 %v1668_v34, %v6884_v29  ;;  %6020 = vmatprep.subr.bf16.mxu1 %v6019_v19  ;;  %6036 = vmatprep.subr.bf16.mxu0 %v6019_v19 }
 0x3f8   :  { %v1674_v15 = vpop.permute.xlu1 %1673  ;;  %6022 = vmatpush1.bf16.msra.mxu1 %v6021_v17  ;;  %6038 = vmatpush1.bf16.msra.mxu0 %v6021_v17 }
 0x3f9   :  { %v6025_v51 = vpack.c.bf16 %v1669_v16, %v7451_v45  ;;  %v1676_v41 = vpop.permute.xlu0 %1675  ;;  %v6023_v9 = vpack.c.bf16 %v1670_v49, %v7453_v6 }
 0x3fa   :  { %v1677_v59 = vsel %vm247_vm4, %v1674_v15, %v1676_v41  ;;  %v1678_v37 = vsel %vm247_vm4, %v1676_v41, %v1674_v15 }
 0x3fb   :  { %6024 = vmatprep.subr.bf16.mxu1 %v6023_v9  ;;  %6040 = vmatprep.subr.bf16.mxu0 %v6023_v9  ;;  %v1679_v6 = vmul.f32 %v1677_v59, %v6910_v58  ;;  %v1680_v39 = vmul.f32 %v1678_v37, %v6903_v50 }
 0x3fc   :  { %v1684_v60 = vpop.permute.xlu1 %1683  ;;  %6026 = vmatpush1.bf16.msra.mxu1 %v6025_v51  ;;  %6042 = vmatpush1.bf16.msra.mxu0 %v6025_v51 }
 0x3fd   :  { %v1686_v61 = vpop.permute.xlu0 %1685 }
 0x3fe   :  { %v1687_v63 = vsel %vm262_vm5, %v1684_v60, %v1686_v61  ;;  %v1688_v45 = vsel %vm262_vm5, %v1686_v61, %v1684_v60 }
 0x3ff   :  { %v1689_v10 = vmul.f32 %v1687_v63, %v6906_v53  ;;  %v1690_v32 = vmul.f32 %v1688_v45, %v6898_v47 }
 0x400   :  { %v2160_v55 = vpop.permute.xlu1 %2159 }
 0x401   :  { %v6029_v13 = vpack.c.bf16 %v1689_v10, %v1679_v6  ;;  %v2162_v14 = vpop.permute.xlu0 %2161  ;;  %v6027_v17 = vpack.c.bf16 %v1690_v32, %v1680_v39  ;;  %v7671_v10 = vld [vmem:[%s6948_s24] sm:$0xff] }
 0x402   :  { %v2163_v18 = vsel %vm262_vm5, %v2160_v55, %v2162_v14  ;;  %v2164_v19 = vsel %vm262_vm5, %v2162_v14, %v2160_v55 }
 0x403   :  { %v2165_v38 = vmul.f32 %v2163_v18, %v6906_v53  ;;  %v2166_v34 = vmul.f32 %v2164_v19, %v6898_v47  ;;  %6028 = vmatprep.subr.bf16.mxu1 %v6027_v17  ;;  %6044 = vmatprep.subr.bf16.mxu0 %v6027_v17 }
 0x404   :  { %v1694_v16 = vpop.permute.xlu1 %1693  ;;  %6030 = vmatpush1.bf16.msra.mxu1 %v6029_v13  ;;  %6046 = vmatpush1.bf16.msra.mxu0 %v6029_v13 }
 0x405   :  { %v2169_v49 = vrot.slane %v2165_v38, 2  ;;  %v2170_v15 = vrot.slane %v2166_v34, 2  ;;  %v1696_v51 = vpop.permute.xlu0 %1695  ;;  %v7686_v38 = vld [vmem:[%s6948_s24 + $0x8] sm:$0xff] }
 0x406   :  { %v1697_v41 = vsel %vm277_vm8, %v1694_v16, %v1696_v51  ;;  %v1698_v9 = vsel %vm277_vm8, %v1696_v51, %v1694_v16  ;;  %v7707_v51 = vld [vmem:[%s6948_s24 + $0x18] sm:$0xff] }
 0x407   :  { %2173 = vst [vmem:[#allocation2 + $0x10] sm:$0xc0] %v2169_v49  ;;  %2174 = vst [vmem:[#allocation2 + $0x18] sm:$0xc0] %v2170_v15  ;;  %v1699_v59 = vmul.f32 %v7579_v5, %v1697_v41  ;;  %v1700_v37 = vmul.f32 %v7575_v30, %v1698_v9  ;;  %v7721_v9 = vld [vmem:[%s7005_s28 + $0x8] sm:$0xff] }
 0x408   :  { %v2068_v60 = vpop.permute.xlu1 %2067 }
 0x409   :  { %1826 = vmatprep.subr.mxu1 %v1700_v37  ;;  %2207 = vmatprep.subr.mxu0 %v1700_v37  ;;  %v2070_v61 = vpop.permute.xlu0 %2069  ;;  %v7733_v37 = vld [vmem:[%s7005_s28 + $0x18] sm:$0xff] }
 0x40a   :  { %v2071_v63 = vsel %vm170_vm6, %v2068_v60, %v2070_v61  ;;  %v2072_v45 = vsel %vm170_vm6, %v2070_v61, %v2068_v60  ;;  %1827 = vmatpush1.msra.mxu1 %v1699_v59  ;;  %2208 = vmatpush1.msra.mxu0 %v1699_v59  ;;  %v7727_v59 = vld [vmem:[%s7005_s28 + $0x10] sm:$0xff] }
 0x40b   :  { %v2073_v6 = vmul.f32 %v2072_v45, %v6876_v23  ;;  %v2074_v39 = vmul.f32 %v2071_v63, %v6870_v20  ;;  %5444 = vmatmul.mubr.msk.f32.vlgmr.msra.gmra.mrb[8].mxu1 %vm480_vm7, %v7251_v62  ;;  %5455 = vmatmul.mubr.msk.f32.vlgmr.msra.gmra.mrb[16].mxu0 %vm480_vm7, %v7671_v10 }
 0x40c   :  { %1880 = vmatprep.mubr.f32.mxu1 %v8744_v3  ;;  %v2176_v32 = vpop.permute.xlu1 %2175  ;;  %2261 = vmatprep.mubr.f32.mxu0 %v8744_v3 }
 0x40d   :  { %2075 = vst [vmem:[#allocation2] sm:$0x3] %v2073_v6  ;;  %2076 = vst [vmem:[#allocation2 + $0x8] sm:$0x3] %v2074_v39  ;;  %v2178_v55 = vpop.permute.xlu0 %2177 }
 0x40e   :  { %v2179_v13 = vsel %vm277_vm8, %v2176_v32, %v2178_v55  ;;  %v2180_v62 = vsel %vm277_vm8, %v2178_v55, %v2176_v32  ;;  %v2188_v14 = vld [vmem:[#allocation2 + $0x18] sm:$0xff]  ;;  %v2187_v17 = vld [vmem:[#allocation2 + $0x10] sm:$0xff] }
 0x40f   :  { %5445 = vmatmul.mubr.msk.f32.gmra.mrb[10].mxu1 %vm480_vm7, %v7265_v2  ;;  %v2181_v18 = vmul.f32 %v7579_v5, %v2179_v13  ;;  %v2182_v19 = vmul.f32 %v7575_v30, %v2180_v62  ;;  %5456 = vmatmul.mubr.msk.f32.gmra.mrb[18].mxu0 %vm480_vm7, %v7686_v38  ;;  %2936 = vst [vmem:[#allocation2 + $0x18] sm:$0x3] %v7504_v8  ;;  %2935 = vst [vmem:[#allocation2 + $0x10] sm:$0x3] %v7496_v7  ;;  %v7697_v2 = vld [vmem:[%s6948_s24 + $0x10] sm:$0xff] }
 0x410   :  { %1886 = vmatprep.mubr.f32.mxu1 %v8744_v3  ;;  %2267 = vmatprep.mubr.f32.mxu0 %v8744_v3  ;;  %v2888_v60 = vpop.permute.xlu1 %2887 }
 0x411   :  { %2183 = vst [vmem:[#allocation2 + $0x20] sm:$0x3] %v2181_v18  ;;  %2184 = vst [vmem:[#allocation2 + $0x28] sm:$0x3] %v2182_v19  ;;  %v2890_v61 = vpop.permute.xlu0 %2889 }
 0x412   :  { %v2891_v63 = vsel %vm185_vm0, %v2888_v60, %v2890_v61  ;;  %v2892_v45 = vsel %vm185_vm0, %v2890_v61, %v2888_v60 }
 0x413   :  { %5446 = vmatmul.mubr.msk.f32.gmra.mrb[12].mxu1 %vm480_vm7, %v7280_v0  ;;  %5457 = vmatmul.mubr.msk.f32.gmra.mrb[20].mxu0 %vm480_vm7, %v7697_v2  ;;  %v2893_v6 = vmul.f32 %v2892_v45, %v6878_v24  ;;  %v2894_v39 = vmul.f32 %v2891_v63, %v6874_v22 }
 0x414   :  { %1892 = vmatprep.mubr.f32.mxu1 %v8744_v3  ;;  %v2186_v34 = vld [vmem:[#allocation2 + $0x8] sm:$0xff]  ;;  %2273 = vmatprep.mubr.f32.mxu0 %v8744_v3  ;;  %v2185_v16 = vld [vmem:[#allocation2] sm:$0xff]  ;;  %v2904_v13 = vpop.permute.xlu1 %2903 }
 0x415   :  { %v6047_v49 = vpack.c.bf16 %v2188_v14, %v2186_v34  ;;  %v6049_v15 = vpack.c.bf16 %v2187_v17, %v2185_v16  ;;  %v2897_v32 = vrot.slane %v2893_v6, 6  ;;  %v2898_v55 = vrot.slane %v2894_v39, 6  ;;  %v2906_v62 = vpop.permute.xlu0 %2905 }
 0x416   :  { %v2907_v17 = vsel %vm200_vm1, %v2904_v13, %v2906_v62  ;;  %v2908_v18 = vsel %vm200_vm1, %v2906_v62, %v2904_v13 }
 0x417   :  { %5447 = vmatmul.mubr.msk.f32.gmra.mrb[14].mxu1 %vm480_vm7, %v7288_v54  ;;  %6048 = vmatprep.subr.bf16.mxu0 %v6047_v49  ;;  %v7715_v54 = vld [vmem:[%s7005_s28] sm:$0xff]  ;;  %2901 = vst [vmem:[#allocation2] sm:$0xc] %v2897_v32  ;;  %2902 = vst [vmem:[#allocation2 + $0x8] sm:$0xc] %v2898_v55  ;;  %v2909_v16 = vmul.f32 %v2908_v18, %v6891_v36  ;;  %v2910_v49 = vmul.f32 %v2907_v17, %v6880_v25  ;;  %s6807_s28 = smov 27  }
 0x418   :  { %6050 = vmatpush1.bf16.msra.mxu0 %v6049_v15  ;;  %v2190_v0 = vld [vmem:[#allocation2 + $0x28] sm:$0x3]  ;;  %2595 = vmatprep.mubr.f32.mxu1 %v8744_v3  ;;  %v2189_v41 = vld [vmem:[#allocation2 + $0x20] sm:$0x3]  ;;  %v2920_v61 = vpop.permute.xlu1 %2919 }
 0x419   :  { %5458 = vmatmul.mubr.msk.f32.gmra.mrb[22].mxu0 %vm480_vm7, %v7707_v51  ;;  %5459 = vmatprep.subr.msk.mxu0 %vm595_vm9, %v2190_v0  ;;  %v2914_v60 = vrot.slane %v2910_v49, 4  ;;  %v2922_v63 = vpop.permute.xlu0 %2921 }
 0x41a   :  { %2350 = vmatprep.mubr.f32.mxu0 %v8744_v3  ;;  %v2923_v39 = vsel %vm215_vm2, %v2920_v61, %v2922_v63  ;;  %v2924_v32 = vsel %vm215_vm2, %v2922_v63, %v2920_v61 }
 0x41b   :  { %2918 = vst [vmem:[#allocation2 + $0x8] sm:$0x30] %v2914_v60  ;;  %v2925_v62 = vmul.f32 %v2924_v32, %v6882_v28 }
 0x41c   :  { %5460 = vmatpush1.msk.msra.mxu0 %vm595_vm9, %v2189_v41  ;;  %v2913_v41 = vrot.slane %v2909_v16, 4  ;;  %v2938_v16 = vpop.permute.xlu1 %2937 }
 0x41d   :  { %5461 = vmatmul.mubr.msk.f32.vlgmr.msra.gmra.mrb[16].mxu0 %vm582_vm10, %v7715_v54  ;;  %v2940_v49 = vpop.permute.xlu0 %2939 }
 0x41e   :  { %2356 = vmatprep.mubr.f32.mxu0 %v8744_v3  ;;  %2917 = vst [vmem:[#allocation2] sm:$0x30] %v2913_v41  ;;  %v2942_v41 = vsel %vm232_vm3, %v2940_v49, %v2938_v16 }
 0x421   :  { %5462 = vmatmul.mubr.msk.f32.gmra.mrb[18].mxu0 %vm582_vm10, %v7721_v9 }
 0x422   :  { %2362 = vmatprep.mubr.f32.mxu0 %v8744_v3 }
 0x425   :  { %5463 = vmatmul.mubr.msk.f32.gmra.mrb[20].mxu0 %vm582_vm10, %v7727_v59 }
 0x426   :  { %2368 = vmatprep.mubr.f32.mxu0 %v8744_v3 }
 0x429   :  { %5464 = vmatmul.mubr.msk.f32.gmra.mrb[22].mxu0 %vm582_vm10, %v7733_v37 }
 0x42a   :  { %3065 = vmatprep.mubr.f32.mxu0 %v8744_v3 }
 0x4de   :  { %v1876_v14 = vpop.f32.mrb[8].mxu1 }
 0x4df   :  { %v1899_v19 = vadd.f32 %v1876_v14, %v7341_v40  ;;  %v1878_v34 = vpop.f32.mrb[9].mxu1  ;;  %v2926_v14 = vmul.f32 %v2923_v39, %v6872_v21 }
 0x4e0   :  { %v1900_v15 = vadd.f32 %v1878_v34, %v7341_v40 }
 0x4e1   :  { %v5448_v0 = vmul.f32 -1.442695, %v1899_v19  ;;  %v2929_v19 = vrot.slane %v2925_v62, 2  ;;  %v2930_v34 = vrot.slane %v2926_v14, 2  ;;  %v2954_v62 = vpop.permute.xlu1 %2953  ;;  %v2956_v14 = vpop.permute.xlu0 %2955 }
 0x4e2   :  { %v5449_v45 = vmul.f32 -1.442695, %v1900_v15  ;;  %v1882_v6 = vpop.f32.mrb[10].mxu1 }
 0x4e3   :  { %6588 = vpow2.f32 %v5448_v0  ;;  %v1901_v55 = vadd.f32 %v1882_v6, %v7345_v33  ;;  %v1884_v13 = vpop.f32.mrb[11].mxu1  ;;  %v2941_v0 = vsel %vm232_vm3, %v2938_v16, %v2940_v49  ;;  %2933 = vst [vmem:[#allocation2] sm:$0xc0] %v2929_v19  ;;  %2934 = vst [vmem:[#allocation2 + $0x8] sm:$0xc0] %v2930_v34  ;;  %v2944_v6 = vmul.f32 %v2942_v41, %v6884_v29 }
 0x4e4   :  { %6590 = vpow2.f32 %v5449_v45  ;;  %v1902_v17 = vadd.f32 %v1884_v13, %v7345_v33  ;;  %v2943_v45 = vmul.f32 %v2941_v0, %v6895_v43  ;;  %v2958_v19 = vsel %vm247_vm4, %v2956_v14, %v2954_v62 }
 0x4e5   :  { %v5450_v18 = vmul.f32 -1.442695, %v1901_v55  ;;  %v2948_v13 = vrot.slane %v2944_v6, 6 }
 0x4e6   :  { %v5451_v15 = vmul.f32 -1.442695, %v1902_v17  ;;  %v1888_v61 = vpop.f32.mrb[12].mxu1  ;;  %v2947_v55 = vrot.slane %v2943_v45, 6 }
 0x4e7   :  { %6592 = vpow2.f32 %v5450_v18  ;;  %v1903_v60 = vadd.f32 %v1888_v61, %v7349_v57  ;;  %v1890_v63 = vpop.f32.mrb[13].mxu1  ;;  %v2957_v18 = vsel %vm247_vm4, %v2954_v62, %v2956_v14  ;;  %2952 = vst [vmem:[#allocation2 + $0x18] sm:$0xc] %v2948_v13  ;;  %v2960_v61 = vmul.f32 %v2958_v19, %v6903_v50 }
 0x4e8   :  { %6594 = vpow2.f32 %v5451_v15  ;;  %v1904_v39 = vadd.f32 %v1890_v63, %v7349_v57  ;;  %2951 = vst [vmem:[#allocation2 + $0x10] sm:$0xc] %v2947_v55  ;;  %v2959_v15 = vmul.f32 %v2957_v18, %v6910_v58 }
 0x4e9   :  { %v5452_v32 = vmul.f32 -1.442695, %v1903_v60  ;;  %v2964_v63 = vrot.slane %v2960_v61, 4 }
 0x4ea   :  { %v5453_v17 = vmul.f32 -1.442695, %v1904_v39  ;;  %v1894_v16 = vpop.f32.mrb[14].mxu1  ;;  %v2963_v60 = vrot.slane %v2959_v15, 4 }
 0x4eb   :  { %v1905_v34 = vadd.f32 %v1894_v16, %v7353_v1  ;;  %v1896_v49 = vpop.f32.mrb[15].mxu1  ;;  %6596 = vpow2.f32 %v5452_v32  ;;  %2968 = vst [vmem:[#allocation2 + $0x18] sm:$0x30] %v2964_v63 }
 0x4ec   :  { %v1906_v0 = vadd.f32 %v1896_v49, %v7353_v1  ;;  %6598 = vpow2.f32 %v5453_v17  ;;  %2967 = vst [vmem:[#allocation2 + $0x10] sm:$0x30] %v2963_v60 }
 0x4ed   :  { %v6589_v41 = vpop.eup %6588  ;;  %6600 = vtanh.f32 %v1905_v34 }
 0x4ee   :  { %v6591_v45 = vpop.eup %6590  ;;  %v1913_v6 = vadd.f32 1.0, %v6589_v41  ;;  %6602 = vtanh.f32 %v1906_v0 }
 0x4ef   :  { %v1914_v39 = vadd.f32 1.0, %v6591_v45 }
 0x4f0   :  { %6604 = vrcp.f32 %v1913_v6  ;;  %v2352_v55 = vpop.f32.mrb[16].mxu0 }
 0x4f1   :  { %v6593_v13 = vpop.eup %6592  ;;  %6606 = vrcp.f32 %v1914_v39  ;;  %v2375_v62 = vadd.f32 %v2352_v55, %v7069_v46  ;;  %v2354_v32 = vpop.f32.mrb[17].mxu0 }
 0x4f2   :  { %v6595_v14 = vpop.eup %6594  ;;  %v1925_v16 = vadd.f32 1.0, %v6593_v13  ;;  %v2376_v17 = vadd.f32 %v2354_v32, %v7069_v46 }
 0x4f3   :  { %v1926_v18 = vadd.f32 1.0, %v6595_v14  ;;  %v5465_v19 = vmul.f32 -1.442695, %v2375_v62 }
 0x4f4   :  { %6608 = vrcp.f32 %v1925_v16  ;;  %v5466_v49 = vmul.f32 -1.442695, %v2376_v17  ;;  %v2358_v34 = vpop.f32.mrb[18].mxu0 }
 0x4f5   :  { %6610 = vrcp.f32 %v1926_v18  ;;  %v2377_v15 = vadd.f32 %v2358_v34, %v7072_v56  ;;  %v2360_v61 = vpop.f32.mrb[19].mxu0  ;;  %v6597_v0 = vpop.eup %6596 }
 0x4f6   :  { %6612 = vpow2.f32 %v5465_v19  ;;  %v2378_v41 = vadd.f32 %v2360_v61, %v7072_v56  ;;  %v6599_v60 = vpop.eup %6598  ;;  %v1937_v14 = vadd.f32 1.0, %v6597_v0 }
 0x4f7   :  { %6614 = vpow2.f32 %v5466_v49  ;;  %v5467_v63 = vmul.f32 -1.442695, %v2377_v15  ;;  %v6601_v45 = vpop.eup %6600  ;;  %v1938_v17 = vadd.f32 1.0, %v6599_v60 }
 0x4f8   :  { %v5468_v6 = vmul.f32 -1.442695, %v2378_v41  ;;  %v2364_v39 = vpop.f32.mrb[20].mxu0  ;;  %v6603_v55 = vpop.eup %6602 }
 0x4f9   :  { %v2366_v13 = vpop.f32.mrb[21].mxu0  ;;  %6616 = vpow2.f32 %v5467_v63 }
 0x4fa   :  { %v6605_v62 = vpop.eup %6604  ;;  %6618 = vpow2.f32 %v5468_v6 }
 0x4fb   :  { %v6607_v32 = vpop.eup %6606  ;;  %v1947_v16 = vmul.f32 %v6605_v62, %v6601_v45  ;;  %6620 = vrcp.f32 %v1937_v14 }
 0x4fc   :  { %v1948_v18 = vmul.f32 %v6607_v32, %v6603_v55  ;;  %v2370_v34 = vpop.f32.mrb[22].mxu0  ;;  %6622 = vrcp.f32 %v1938_v17  ;;  %v2380_v17 = vadd.f32 %v2366_v13, %v7077_v4 }
 0x4fd   :  { %v2381_v19 = vadd.f32 %v2370_v34, %v7081_v11  ;;  %v2372_v61 = vpop.f32.mrb[23].mxu0 }
 0x4fe   :  { %v6609_v3 = vpop.eup %6608  ;;  %v2382_v49 = vadd.f32 %v2372_v61, %v7081_v11 }
 0x4ff   :  { %v6611_v15 = vpop.eup %6610  ;;  %v1945_v41 = vmul.f32 %v6609_v3, %v7389_v26  ;;  %6624 = vtanh.f32 %v2381_v19 }
 0x500   :  { %v6613_v56 = vpop.eup %6612  ;;  %v1946_v63 = vmul.f32 %v6611_v15, %v7393_v27  ;;  %6626 = vtanh.f32 %v2382_v49 }
 0x501   :  { %v6615_v0 = vpop.eup %6614  ;;  %v7784_v45 = vadd.f32 %v1947_v16, %v1945_v41  ;;  %v2389_v60 = vadd.f32 1.0, %v6613_v56  ;;  %v2379_v56 = vadd.f32 %v2364_v39, %v7077_v4 }
 0x502   :  { %v7786_v6 = vadd.f32 %v1948_v18, %v1946_v63  ;;  %v2390_v55 = vadd.f32 1.0, %v6615_v0  ;;  %v5470_v63 = vmul.f32 -1.442695, %v2380_v17 }
 0x503   :  { %6628 = vtanh.f32 %v7784_v45  ;;  %v6617_v62 = vpop.eup %6616  ;;  %v5469_v49 = vmul.f32 -1.442695, %v2379_v56 }
 0x504   :  { %6630 = vtanh.f32 %v7786_v6  ;;  %v6619_v3 = vpop.eup %6618  ;;  %v2401_v26 = vadd.f32 1.0, %v6617_v62 }
 0x505   :  { %6632 = vrcp.f32 %v2389_v60  ;;  %v2402_v27 = vadd.f32 1.0, %v6619_v3  ;;  %v6621_v32 = vpop.eup %6620 }
 0x506   :  { %6634 = vrcp.f32 %v2390_v55  ;;  %v6623_v14 = vpop.eup %6622 }
 0x507   :  { %6636 = vrcp.f32 %v2401_v26 }
 0x508   :  { %6638 = vrcp.f32 %v2402_v27 }
 0x509   :  { %v6625_v16 = vpop.eup %6624  ;;  %6640 = vpow2.f32 %v5469_v49 }
 0x50a   :  { %v6627_v18 = vpop.eup %6626  ;;  %6642 = vpow2.f32 %v5470_v63 }
 0x50d   :  { %v6629_v34 = vpop.eup %6628 }
 0x50e   :  { %v6631_v19 = vpop.eup %6630  ;;  %v7792_v61 = vmul.f32 %v6629_v34, %v6621_v32 }
 0x50f   :  { %v6633_v15 = vpop.eup %6632  ;;  %v7794_v41 = vmul.f32 %v6631_v19, %v6623_v14 }
 0x510   :  { %v6635_v0 = vpop.eup %6634  ;;  %v2423_v60 = vmul.f32 %v6633_v15, %v6625_v16  ;;  %1955 = vrot.lane.b32.xlu1 %v7792_v61, %s6773_s3 }
 0x511   :  { %v6637_v55 = vpop.eup %6636  ;;  %v2424_v39 = vmul.f32 %v6635_v0, %v6627_v18  ;;  %1957 = vrot.lane.b32.xlu0 %v7794_v41, %s6773_s3 }
 0x512   :  { %v6639_v13 = vpop.eup %6638  ;;  %v2421_v62 = vmul.f32 %v6637_v55, %v7417_v31 }
 0x513   :  { %v2422_v3 = vmul.f32 %v6639_v13, %v7421_v52  ;;  %v6641_v31 = vpop.eup %6640 }
 0x514   :  { %v7802_v26 = vadd.f32 %v2423_v60, %v2421_v62  ;;  %1965 = vrot.lane.b32.xlu1 %v7792_v61, %s6775_s8  ;;  %v6643_v52 = vpop.eup %6642  ;;  %v2413_v32 = vadd.f32 1.0, %v6641_v31 }
 0x515   :  { %v7806_v27 = vadd.f32 %v2424_v39, %v2422_v3  ;;  %1967 = vrot.lane.b32.xlu0 %v7794_v41, %s6775_s8  ;;  %v2414_v14 = vadd.f32 1.0, %v6643_v52 }
 0x516   :  { %6644 = vtanh.f32 %v7802_v26 }
 0x517   :  { %6646 = vtanh.f32 %v7806_v27 }
 0x518   :  { %1975 = vrot.lane.b32.xlu1 %v7792_v61, %s6774_s4  ;;  %6648 = vrcp.f32 %v2413_v32 }
 0x519   :  { %1977 = vrot.lane.b32.xlu0 %v7794_v41, %s6774_s4  ;;  %6650 = vrcp.f32 %v2414_v14 }
 0x51c   :  { %1985 = vrot.lane.b32.xlu1 %v7792_v61, %s6776_s9 }
 0x51d   :  { %1987 = vrot.lane.b32.xlu0 %v7794_v41, %s6776_s9 }
 0x520   :  { %1997 = vrot.lane.b32.xlu1 %v7792_v61, %s6777_s10  ;;  %v6645_v56 = vpop.eup %6644 }
 0x521   :  { %1999 = vrot.lane.b32.xlu0 %v7794_v41, %s6777_s10  ;;  %v6647_v16 = vpop.eup %6646 }
 0x522   :  { %v6649_v17 = vpop.eup %6648 }
 0x523   :  { %v6651_v18 = vpop.eup %6650  ;;  %v7836_v34 = vmul.f32 %v6649_v17, %v6645_v56 }
 0x524   :  { %2007 = vrot.lane.b32.xlu1 %v7792_v61, %s6778_s11  ;;  %v7838_v19 = vmul.f32 %v6651_v18, %v6647_v16 }
 0x525   :  { %2009 = vrot.lane.b32.xlu0 %v7794_v41, %s6778_s11 }
 0x528   :  { %2017 = vrot.lane.b32.xlu1 %v7792_v61, %s6779_s12 }
 0x529   :  { %2019 = vrot.lane.b32.xlu0 %v7794_v41, %s6779_s12 }
 0x52c   :  { %2027 = vrot.lane.b32.xlu1 %v7792_v61, %s6781_s13 }
 0x52d   :  { %2029 = vrot.lane.b32.xlu0 %v7794_v41, %s6781_s13 }
 0x530   :  { %2431 = vrot.lane.b32.xlu1 %v7836_v34, %s6773_s3 }
 0x531   :  { %2433 = vrot.lane.b32.xlu0 %v7838_v19, %s6773_s3 }
 0x534   :  { %2441 = vrot.lane.b32.xlu1 %v7836_v34, %s6775_s8 }
 0x535   :  { %2443 = vrot.lane.b32.xlu0 %v7838_v19, %s6775_s8 }
 0x538   :  { %2451 = vrot.lane.b32.xlu1 %v7836_v34, %s6774_s4 }
 0x539   :  { %2453 = vrot.lane.b32.xlu0 %v7838_v19, %s6774_s4 }
 0x53c   :  { %2461 = vrot.lane.b32.xlu1 %v7836_v34, %s6776_s9 }
 0x53d   :  { %2463 = vrot.lane.b32.xlu0 %v7838_v19, %s6776_s9 }
 0x540   :  { %2473 = vrot.lane.b32.xlu1 %v7836_v34, %s6777_s10 }
 0x541   :  { %2475 = vrot.lane.b32.xlu0 %v7838_v19, %s6777_s10 }
 0x544   :  { %2483 = vrot.lane.b32.xlu1 %v7836_v34, %s6778_s11 }
 0x545   :  { %2485 = vrot.lane.b32.xlu0 %v7838_v19, %s6778_s11 }
 0x548   :  { %2493 = vrot.lane.b32.xlu1 %v7836_v34, %s6779_s12 }
 0x549   :  { %2495 = vrot.lane.b32.xlu0 %v7838_v19, %s6779_s12 }
 0x54c   :  { %2969 = vrot.lane.b32.xlu1 %v7496_v7, %s6779_s12 }
 0x54d   :  { %2971 = vrot.lane.b32.xlu0 %v7504_v8, %s6779_s12 }
 0x550   :  { %2503 = vrot.lane.b32.xlu1 %v7836_v34, %s6781_s13 }
 0x551   :  { %2505 = vrot.lane.b32.xlu0 %v7838_v19, %s6781_s13 }
 0x554   :  { %2877 = vrot.lane.b32.xlu1 %v7496_v7, %s6773_s3 }
 0x555   :  { %2879 = vrot.lane.b32.xlu0 %v7504_v8, %s6773_s3 }
 0x558   :  { %2985 = vrot.lane.b32.xlu1 %v7496_v7, %s6781_s13 }
 0x559   :  { %2987 = vrot.lane.b32.xlu0 %v7504_v8, %s6781_s13 }
 0x582   :  { %v1956_v49 = vpop.permute.xlu1 %1955 }
 0x583   :  { %v1958_v15 = vpop.permute.xlu0 %1957 }
 0x584   :  { %v1959_v63 = vsel %vm170_vm6, %v1956_v49, %v1958_v15  ;;  %v1960_v0 = vsel %vm170_vm6, %v1958_v15, %v1956_v49 }
 0x585   :  { %v1961_v7 = vmul.f32 %v1960_v0, %v6876_v23  ;;  %v1962_v8 = vmul.f32 %v1959_v63, %v6870_v20 }
 0x586   :  { %v1966_v60 = vpop.permute.xlu1 %1965 }
 0x587   :  { %v1968_v55 = vpop.permute.xlu0 %1967 }
 0x588   :  { %v1969_v39 = vsel %vm185_vm0, %v1966_v60, %v1968_v55  ;;  %v1970_v13 = vsel %vm185_vm0, %v1968_v55, %v1966_v60 }
 0x589   :  { %v1971_v62 = vmul.f32 %v1970_v13, %v6878_v24  ;;  %v1972_v3 = vmul.f32 %v1969_v39, %v6874_v22 }
 0x58a   :  { %v1976_v31 = vpop.permute.xlu1 %1975 }
 0x58b   :  { %v6053_v52 = vpack.c.bf16 %v1971_v62, %v1961_v7  ;;  %v1978_v32 = vpop.permute.xlu0 %1977  ;;  %v6051_v14 = vpack.c.bf16 %v1972_v3, %v1962_v8 }
 0x58c   :  { %v1979_v56 = vsel %vm200_vm1, %v1976_v31, %v1978_v32  ;;  %v1980_v16 = vsel %vm200_vm1, %v1978_v32, %v1976_v31 }
 0x58d   :  { %6052 = vmatprep.subr.bf16.mxu1 %v6051_v14  ;;  %v1981_v63 = vmul.f32 %v1980_v16, %v6891_v36  ;;  %v1982_v0 = vmul.f32 %v1979_v56, %v6880_v25 }
 0x58e   :  { %v1986_v17 = vpop.permute.xlu1 %1985  ;;  %6054 = vmatpush1.bf16.msra.mxu1 %v6053_v52 }
 0x58f   :  { %v1988_v18 = vpop.permute.xlu0 %1987 }
 0x590   :  { %v1989_v49 = vsel %vm215_vm2, %v1986_v17, %v1988_v18  ;;  %v1990_v15 = vsel %vm215_vm2, %v1988_v18, %v1986_v17 }
 0x591   :  { %v1991_v60 = vmul.f32 %v1990_v15, %v6882_v28  ;;  %v1992_v55 = vmul.f32 %v1989_v49, %v6872_v21 }
 0x592   :  { %v1998_v39 = vpop.permute.xlu1 %1997 }
 0x593   :  { %v6057_v13 = vpack.c.bf16 %v1991_v60, %v1981_v63  ;;  %v2000_v7 = vpop.permute.xlu0 %1999  ;;  %v6055_v8 = vpack.c.bf16 %v1992_v55, %v1982_v0 }
 0x594   :  { %v2001_v62 = vsel %vm232_vm3, %v1998_v39, %v2000_v7  ;;  %v2002_v3 = vsel %vm232_vm3, %v2000_v7, %v1998_v39 }
 0x595   :  { %v2003_v31 = vmul.f32 %v2001_v62, %v6895_v43  ;;  %v2004_v52 = vmul.f32 %v2002_v3, %v6884_v29  ;;  %6056 = vmatprep.subr.bf16.mxu1 %v6055_v8 }
 0x596   :  { %v2008_v32 = vpop.permute.xlu1 %2007  ;;  %6058 = vmatpush1.bf16.msra.mxu1 %v6057_v13 }
 0x597   :  { %v6061_v14 = vpack.c.bf16 %v2003_v31, %v7792_v61  ;;  %v2010_v56 = vpop.permute.xlu0 %2009  ;;  %v6059_v16 = vpack.c.bf16 %v2004_v52, %v7794_v41 }
 0x598   :  { %v2011_v17 = vsel %vm247_vm4, %v2008_v32, %v2010_v56  ;;  %v2012_v18 = vsel %vm247_vm4, %v2010_v56, %v2008_v32 }
 0x599   :  { %6060 = vmatprep.subr.bf16.mxu1 %v6059_v16  ;;  %v2013_v61 = vmul.f32 %v2011_v17, %v6910_v58  ;;  %v2014_v41 = vmul.f32 %v2012_v18, %v6903_v50 }
 0x59a   :  { %v2018_v49 = vpop.permute.xlu1 %2017  ;;  %6062 = vmatpush1.bf16.msra.mxu1 %v6061_v14 }
 0x59b   :  { %v2020_v15 = vpop.permute.xlu0 %2019 }
 0x59c   :  { %v2021_v63 = vsel %vm262_vm5, %v2018_v49, %v2020_v15  ;;  %v2022_v0 = vsel %vm262_vm5, %v2020_v15, %v2018_v49  ;;  %v8749_v15 = vmov 0.0  }
 0x59d   :  { %v2023_v60 = vmul.f32 %v2021_v63, %v6906_v53  ;;  %v2024_v55 = vmul.f32 %v2022_v0, %v6898_v47 }
 0x59e   :  { %v2028_v39 = vpop.permute.xlu1 %2027 }
 0x59f   :  { %v6065_v13 = vpack.c.bf16 %v2023_v60, %v2013_v61  ;;  %v2030_v7 = vpop.permute.xlu0 %2029  ;;  %v6063_v8 = vpack.c.bf16 %v2024_v55, %v2014_v41 }
 0x5a0   :  { %v2032_v62 = vsel %vm277_vm8, %v2030_v7, %v2028_v39  ;;  %v2031_v3 = vsel %vm277_vm8, %v2028_v39, %v2030_v7 }
 0x5a1   :  { %v2034_v31 = vmul.f32 %v7575_v30, %v2032_v62  ;;  %6064 = vmatprep.subr.bf16.mxu1 %v6063_v8  ;;  %v2033_v14 = vmul.f32 %v7579_v5, %v2031_v3 }
 0x5a2   :  { %v2432_v52 = vpop.permute.xlu1 %2431  ;;  %6066 = vmatpush1.bf16.msra.mxu1 %v6065_v13 }
 0x5a3   :  { %2547 = vmatprep.subr.mxu1 %v2034_v31  ;;  %v2434_v32 = vpop.permute.xlu0 %2433 }
 0x5a4   :  { %v2435_v56 = vsel %vm170_vm6, %v2432_v52, %v2434_v32  ;;  %v2436_v16 = vsel %vm170_vm6, %v2434_v32, %v2432_v52 }
 0x5a5   :  { %v2437_v5 = vmul.f32 %v2436_v16, %v6876_v23  ;;  %v2438_v63 = vmul.f32 %v2435_v56, %v6870_v20 }
 0x5a6   :  { %v2442_v17 = vpop.permute.xlu1 %2441  ;;  %2548 = vmatpush1.msra.mxu1 %v2033_v14 }
 0x5a7   :  { %v2444_v18 = vpop.permute.xlu0 %2443  ;;  %5471 = vmatmul.mubr.msk.f32.vlgmr.msra.gmra.mrb[16].mxu1 %vm480_vm7, %v7587_v42 }
 0x5a8   :  { %v2445_v30 = vsel %vm185_vm0, %v2442_v17, %v2444_v18  ;;  %v2446_v49 = vsel %vm185_vm0, %v2444_v18, %v2442_v17  ;;  %2601 = vmatprep.mubr.f32.mxu1 %v8749_v15 }
 0x5a9   :  { %v2447_v0 = vmul.f32 %v2446_v49, %v6878_v24  ;;  %v2448_v61 = vmul.f32 %v2445_v30, %v6874_v22 }
 0x5aa   :  { %v2452_v41 = vpop.permute.xlu1 %2451 }
 0x5ab   :  { %v6069_v60 = vpack.c.bf16 %v2447_v0, %v2437_v5  ;;  %v2454_v55 = vpop.permute.xlu0 %2453  ;;  %v6067_v42 = vpack.c.bf16 %v2448_v61, %v2438_v63  ;;  %5472 = vmatmul.mubr.msk.f32.gmra.mrb[18].mxu1 %vm480_vm7, %v7601_v12 }
 0x5ac   :  { %2607 = vmatprep.mubr.f32.mxu1 %v8749_v15  ;;  %v2455_v39 = vsel %vm200_vm1, %v2452_v41, %v2454_v55  ;;  %v2456_v13 = vsel %vm200_vm1, %v2454_v55, %v2452_v41 }
 0x5ad   :  { %6068 = vmatprep.subr.bf16.mxu1 %v6067_v42  ;;  %6084 = vmatprep.subr.bf16.mxu0 %v6067_v42  ;;  %v2457_v3 = vmul.f32 %v2456_v13, %v6891_v36  ;;  %v2458_v31 = vmul.f32 %v2455_v39, %v6880_v25 }
 0x5ae   :  { %v2462_v7 = vpop.permute.xlu1 %2461  ;;  %6070 = vmatpush1.bf16.msra.mxu1 %v6069_v60  ;;  %6086 = vmatpush1.bf16.msra.mxu0 %v6069_v60 }
 0x5af   :  { %v2464_v8 = vpop.permute.xlu0 %2463  ;;  %5473 = vmatmul.mubr.msk.f32.gmra.mrb[20].mxu1 %vm480_vm7, %v7611_v44 }
 0x5b0   :  { %v2465_v12 = vsel %vm215_vm2, %v2462_v7, %v2464_v8  ;;  %v2466_v62 = vsel %vm215_vm2, %v2464_v8, %v2462_v7  ;;  %2613 = vmatprep.mubr.f32.mxu1 %v8749_v15 }
 0x5b1   :  { %v2467_v52 = vmul.f32 %v2466_v62, %v6882_v28  ;;  %v2468_v32 = vmul.f32 %v2465_v12, %v6872_v21 }
 0x5b2   :  { %v2474_v14 = vpop.permute.xlu1 %2473 }
 0x5b3   :  { %v6073_v56 = vpack.c.bf16 %v2467_v52, %v2457_v3  ;;  %v2476_v16 = vpop.permute.xlu0 %2475  ;;  %v6071_v44 = vpack.c.bf16 %v2468_v32, %v2458_v31  ;;  %5474 = vmatmul.mubr.msk.f32.gmra.mrb[22].mxu1 %vm480_vm7, %v7625_v35 }
 0x5b4   :  { %v2477_v17 = vsel %vm232_vm3, %v2474_v14, %v2476_v16  ;;  %v2478_v18 = vsel %vm232_vm3, %v2476_v16, %v2474_v14  ;;  %2684 = vmatprep.mubr.f32.mxu1 %v8749_v15 }
 0x5b5   :  { %v2479_v30 = vmul.f32 %v2477_v17, %v6895_v43  ;;  %v2480_v49 = vmul.f32 %v2478_v18, %v6884_v29  ;;  %6072 = vmatprep.subr.bf16.mxu1 %v6071_v44  ;;  %6088 = vmatprep.subr.bf16.mxu0 %v6071_v44 }
 0x5b6   :  { %v2484_v5 = vpop.permute.xlu1 %2483  ;;  %6074 = vmatpush1.bf16.msra.mxu1 %v6073_v56  ;;  %6090 = vmatpush1.bf16.msra.mxu0 %v6073_v56 }
 0x5b7   :  { %v6077_v63 = vpack.c.bf16 %v2479_v30, %v7836_v34  ;;  %v2486_v35 = vpop.permute.xlu0 %2485  ;;  %v6075_v0 = vpack.c.bf16 %v2480_v49, %v7838_v19  ;;  %v8001_v49 = vld [vmem:[%s6866_s20 + $0x10] ss:$0 sm:$0xff] }
 0x5b8   :  { %v2487_v61 = vsel %vm247_vm4, %v2484_v5, %v2486_v35  ;;  %v2488_v41 = vsel %vm247_vm4, %v2486_v35, %v2484_v5 }
 0x5b9   :  { %6076 = vmatprep.subr.bf16.mxu1 %v6075_v0  ;;  %6092 = vmatprep.subr.bf16.mxu0 %v6075_v0  ;;  %v2489_v19 = vmul.f32 %v2487_v61, %v6910_v58  ;;  %v2490_v39 = vmul.f32 %v2488_v41, %v6903_v50 }
 0x5ba   :  { %v2494_v60 = vpop.permute.xlu1 %2493  ;;  %6078 = vmatpush1.bf16.msra.mxu1 %v6077_v63  ;;  %6094 = vmatpush1.bf16.msra.mxu0 %v6077_v63  ;;  %v8005_v63 = vld [vmem:[%s6866_s20 + $0x18] ss:$0 sm:$0xff]  ;;  %s6811_s20 = smov 31  }
 0x5bb   :  { %v2496_v55 = vpop.permute.xlu0 %2495 }
 0x5bc   :  { %v2497_v42 = vsel %vm262_vm5, %v2494_v60, %v2496_v55  ;;  %v2498_v34 = vsel %vm262_vm5, %v2496_v55, %v2494_v60 }
 0x5bd   :  { %v2499_v13 = vmul.f32 %v2497_v42, %v6906_v53  ;;  %v2500_v7 = vmul.f32 %v2498_v34, %v6898_v47  ;;  %v8015_v34 = vld [vmem:[%s7236_s19] sm:$0xff] }
 0x5be   :  { %v2970_v8 = vpop.permute.xlu1 %2969 }
 0x5bf   :  { %v6081_v12 = vpack.c.bf16 %v2499_v13, %v2489_v19  ;;  %v2972_v62 = vpop.permute.xlu0 %2971  ;;  %v6079_v3 = vpack.c.bf16 %v2500_v7, %v2490_v39 }
 0x5c0   :  { %v2973_v31 = vsel %vm262_vm5, %v2970_v8, %v2972_v62  ;;  %v2974_v52 = vsel %vm262_vm5, %v2972_v62, %v2970_v8  ;;  %v8028_v8 = vld [vmem:[%s7236_s19 + $0x8] sm:$0xff]  ;;  %v8039_v62 = vld [vmem:[%s7236_s19 + $0x10] sm:$0xff] }
 0x5c1   :  { %v2975_v32 = vmul.f32 %v2973_v31, %v6906_v53  ;;  %v2976_v14 = vmul.f32 %v2974_v52, %v6898_v47  ;;  %6080 = vmatprep.subr.bf16.mxu1 %v6079_v3  ;;  %6096 = vmatprep.subr.bf16.mxu0 %v6079_v3 }
 0x5c2   :  { %v2504_v56 = vpop.permute.xlu1 %2503  ;;  %6082 = vmatpush1.bf16.msra.mxu1 %v6081_v12  ;;  %6098 = vmatpush1.bf16.msra.mxu0 %v6081_v12 }
 0x5c3   :  { %v2979_v16 = vrot.slane %v2975_v32, 2  ;;  %v2980_v44 = vrot.slane %v2976_v14, 2  ;;  %v2506_v17 = vpop.permute.xlu0 %2505 }
 0x5c4   :  { %v2507_v18 = vsel %vm277_vm8, %v2504_v56, %v2506_v17  ;;  %v2508_v30 = vsel %vm277_vm8, %v2506_v17, %v2504_v56  ;;  %v8048_v56 = vld [vmem:[%s7236_s19 + $0x18] sm:$0xff]  ;;  %s6795_s19 = smov 14  }
 0x5c5   :  { %2983 = vst [vmem:[#allocation2 + $0x10] sm:$0xc0] %v2979_v16  ;;  %2984 = vst [vmem:[#allocation2 + $0x18] sm:$0xc0] %v2980_v44  ;;  %v2509_v5 = vmul.f32 %v8001_v49, %v2507_v18  ;;  %v2510_v35 = vmul.f32 %v8005_v63, %v2508_v30  ;;  %s8450_s21 = sld [smem:[%s8743_s0 + %s6795_s19]]   ;;  %s6803_s19 = smov 23  }
 0x5c6   :  { %v2878_v0 = vpop.permute.xlu1 %2877 }
 0x5c7   :  { %2636 = vmatprep.subr.mxu1 %v2510_v35  ;;  %3017 = vmatprep.subr.mxu0 %v2510_v35  ;;  %v2880_v61 = vpop.permute.xlu0 %2879 }
 0x5c8   :  { %v2881_v41 = vsel %vm170_vm6, %v2878_v0, %v2880_v61  ;;  %v2882_v60 = vsel %vm170_vm6, %v2880_v61, %v2878_v0  ;;  %2637 = vmatpush1.msra.mxu1 %v2509_v5  ;;  %3018 = vmatpush1.msra.mxu0 %v2509_v5 }
 0x5c9   :  { %v2883_v55 = vmul.f32 %v2882_v60, %v6876_v23  ;;  %v2884_v42 = vmul.f32 %v2881_v41, %v6870_v20  ;;  %5475 = vmatmul.mubr.msk.f32.vlgmr.msra.gmra.mrb[16].mxu1 %vm480_vm7, %v8015_v34  ;;  %5486 = vmatmul.mubr.msk.f32.vlgmr.msra.gmra.mrb[24].mxu0 %vm480_vm7, %v7671_v10 }
 0x5ca   :  { %2690 = vmatprep.mubr.f32.mxu1 %v8749_v15  ;;  %v2986_v19 = vpop.permute.xlu1 %2985  ;;  %3071 = vmatprep.mubr.f32.mxu0 %v8749_v15 }
 0x5cb   :  { %2885 = vst [vmem:[#allocation2] sm:$0x3] %v2883_v55  ;;  %2886 = vst [vmem:[#allocation2 + $0x8] sm:$0x3] %v2884_v42  ;;  %v2988_v39 = vpop.permute.xlu0 %2987 }
 0x5cc   :  { %v2989_v13 = vsel %vm277_vm8, %v2986_v19, %v2988_v39  ;;  %v2990_v7 = vsel %vm277_vm8, %v2988_v39, %v2986_v19  ;;  %v2998_v3 = vld [vmem:[#allocation2 + $0x18] sm:$0xff]  ;;  %v2997_v52 = vld [vmem:[#allocation2 + $0x10] sm:$0xff] }
 0x5cd   :  { %5476 = vmatmul.mubr.msk.f32.gmra.mrb[18].mxu1 %vm480_vm7, %v8028_v8  ;;  %v2991_v10 = vmul.f32 %v8001_v49, %v2989_v13  ;;  %v2992_v12 = vmul.f32 %v8005_v63, %v2990_v7  ;;  %5487 = vmatmul.mubr.msk.f32.gmra.mrb[26].mxu0 %vm480_vm7, %v7686_v38 }
 0x5ce   :  { %2696 = vmatprep.mubr.f32.mxu1 %v8749_v15  ;;  %3077 = vmatprep.mubr.f32.mxu0 %v8749_v15 }
 0x5cf   :  { %2993 = vst [vmem:[#allocation2 + $0x20] sm:$0x3] %v2991_v10  ;;  %2994 = vst [vmem:[#allocation2 + $0x28] sm:$0x3] %v2992_v12 }
 0x5d1   :  { %5477 = vmatmul.mubr.msk.f32.gmra.mrb[20].mxu1 %vm480_vm7, %v8039_v62  ;;  %5488 = vmatmul.mubr.msk.f32.gmra.mrb[28].mxu0 %vm480_vm7, %v7697_v2 }
 0x5d2   :  { %2702 = vmatprep.mubr.f32.mxu1 %v8749_v15  ;;  %v2996_v31 = vld [vmem:[#allocation2 + $0x8] sm:$0xff]  ;;  %3083 = vmatprep.mubr.f32.mxu0 %v8749_v15  ;;  %v2995_v38 = vld [vmem:[#allocation2] sm:$0xff] }
 0x5d3   :  { %v6099_v32 = vpack.c.bf16 %v2998_v3, %v2996_v31  ;;  %v6101_v14 = vpack.c.bf16 %v2997_v52, %v2995_v38 }
 0x5d5   :  { %5478 = vmatmul.mubr.msk.f32.gmra.mrb[22].mxu1 %vm480_vm7, %v8048_v56  ;;  %6100 = vmatprep.subr.bf16.mxu0 %v6099_v32 }
 0x5d6   :  { %6102 = vmatpush1.bf16.msra.mxu0 %v6101_v14  ;;  %v3000_v16 = vld [vmem:[#allocation2 + $0x28] sm:$0x3]  ;;  %3405 = vmatprep.mubr.f32.mxu1 %v8749_v15  ;;  %v2999_v2 = vld [vmem:[#allocation2 + $0x20] sm:$0x3] }
 0x5d7   :  { %5489 = vmatmul.mubr.msk.f32.gmra.mrb[30].mxu0 %vm480_vm7, %v7707_v51  ;;  %5490 = vmatprep.subr.msk.mxu0 %vm595_vm9, %v3000_v16 }
 0x5d8   :  { %3160 = vmatprep.mubr.f32.mxu0 %v8749_v15 }
 0x5da   :  { %5491 = vmatpush1.msk.msra.mxu0 %vm595_vm9, %v2999_v2 }
 0x5db   :  { %5492 = vmatmul.mubr.msk.f32.vlgmr.msra.gmra.mrb[24].mxu0 %vm582_vm10, %v7715_v54 }
 0x5dc   :  { %3166 = vmatprep.mubr.f32.mxu0 %v8749_v15 }
 0x5df   :  { %5493 = vmatmul.mubr.msk.f32.gmra.mrb[26].mxu0 %vm582_vm10, %v7721_v9 }
 0x5e0   :  { %3172 = vmatprep.mubr.f32.mxu0 %v8749_v15 }
 0x5e3   :  { %5494 = vmatmul.mubr.msk.f32.gmra.mrb[28].mxu0 %vm582_vm10, %v7727_v59 }
 0x5e4   :  { %3178 = vmatprep.mubr.f32.mxu0 %v8749_v15 }
 0x5e7   :  { %5495 = vmatmul.mubr.msk.f32.gmra.mrb[30].mxu0 %vm582_vm10, %v7733_v37 }
 0x69c   :  { %v2686_v51 = vpop.f32.mrb[16].mxu1 }
 0x69d   :  { %v2709_v44 = vadd.f32 %v2686_v51, %v7341_v40  ;;  %v2688_v17 = vpop.f32.mrb[17].mxu1 }
 0x69e   :  { %v2710_v54 = vadd.f32 %v2688_v17, %v7341_v40 }
 0x69f   :  { %v5479_v18 = vmul.f32 -1.442695, %v2709_v44 }
 0x6a0   :  { %v5480_v30 = vmul.f32 -1.442695, %v2710_v54  ;;  %v2692_v5 = vpop.f32.mrb[18].mxu1 }
 0x6a1   :  { %6652 = vpow2.f32 %v5479_v18  ;;  %v2711_v9 = vadd.f32 %v2692_v5, %v7345_v33  ;;  %v2694_v35 = vpop.f32.mrb[19].mxu1  ;;  %v8750_v5 = vld [vmem:[#allocation5_spill] sm:$0xff] }
 0x6a2   :  { %6654 = vpow2.f32 %v5480_v30  ;;  %v2712_v59 = vadd.f32 %v2694_v35, %v7345_v33 }
 0x6a3   :  { %v5481_v0 = vmul.f32 -1.442695, %v2711_v9 }
 0x6a4   :  { %v5482_v61 = vmul.f32 -1.442695, %v2712_v59  ;;  %v2698_v41 = vpop.f32.mrb[20].mxu1 }
 0x6a5   :  { %6656 = vpow2.f32 %v5481_v0  ;;  %v2713_v37 = vadd.f32 %v2698_v41, %v7349_v57  ;;  %v2700_v60 = vpop.f32.mrb[21].mxu1 }
 0x6a6   :  { %6658 = vpow2.f32 %v5482_v61  ;;  %v2714_v55 = vadd.f32 %v2700_v60, %v7349_v57 }
 0x6a7   :  { %v5483_v42 = vmul.f32 -1.442695, %v2713_v37 }
 0x6a8   :  { %v5484_v19 = vmul.f32 -1.442695, %v2714_v55  ;;  %v2704_v39 = vpop.f32.mrb[22].mxu1 }
 0x6a9   :  { %v2715_v13 = vadd.f32 %v2704_v39, %v7353_v1  ;;  %v2706_v7 = vpop.f32.mrb[23].mxu1  ;;  %6660 = vpow2.f32 %v5483_v42 }
 0x6aa   :  { %v2716_v10 = vadd.f32 %v2706_v7, %v7353_v1  ;;  %6662 = vpow2.f32 %v5484_v19 }
 0x6ab   :  { %v6653_v12 = vpop.eup %6652  ;;  %6664 = vtanh.f32 %v2715_v13 }
 0x6ac   :  { %v6655_v3 = vpop.eup %6654  ;;  %v2723_v31 = vadd.f32 1.0, %v6653_v12  ;;  %6666 = vtanh.f32 %v2716_v10 }
 0x6ad   :  { %v2724_v38 = vadd.f32 1.0, %v6655_v3 }
 0x6ae   :  { %6668 = vrcp.f32 %v2723_v31  ;;  %v3162_v52 = vpop.f32.mrb[24].mxu0 }
 0x6af   :  { %v6657_v32 = vpop.eup %6656  ;;  %6670 = vrcp.f32 %v2724_v38  ;;  %v3185_v14 = vadd.f32 %v3162_v52, %v7069_v46  ;;  %v3164_v16 = vpop.f32.mrb[25].mxu0 }
 0x6b0   :  { %v6659_v2 = vpop.eup %6658  ;;  %v2735_v51 = vadd.f32 1.0, %v6657_v32  ;;  %v3186_v44 = vadd.f32 %v3164_v16, %v7069_v46 }
 0x6b1   :  { %v2736_v17 = vadd.f32 1.0, %v6659_v2  ;;  %v5496_v54 = vmul.f32 -1.442695, %v3185_v14 }
 0x6b2   :  { %6672 = vrcp.f32 %v2735_v51  ;;  %v5497_v18 = vmul.f32 -1.442695, %v3186_v44  ;;  %v3168_v30 = vpop.f32.mrb[26].mxu0 }
 0x6b3   :  { %6674 = vrcp.f32 %v2736_v17  ;;  %v3187_v9 = vadd.f32 %v3168_v30, %v8750_v5  ;;  %v3170_v35 = vpop.f32.mrb[27].mxu0  ;;  %v6661_v59 = vpop.eup %6660 }
 0x6b4   :  { %6676 = vpow2.f32 %v5496_v54  ;;  %v3188_v0 = vadd.f32 %v3170_v35, %v8750_v5  ;;  %v6663_v61 = vpop.eup %6662  ;;  %v2747_v42 = vadd.f32 1.0, %v6661_v59 }
 0x6b5   :  { %6678 = vpow2.f32 %v5497_v18  ;;  %v5498_v41 = vmul.f32 -1.442695, %v3187_v9  ;;  %v6665_v37 = vpop.eup %6664  ;;  %v2748_v7 = vadd.f32 1.0, %v6663_v61 }
 0x6b6   :  { %v5499_v60 = vmul.f32 -1.442695, %v3188_v0  ;;  %v3174_v55 = vpop.f32.mrb[28].mxu0  ;;  %v6667_v46 = vpop.eup %6666 }
 0x6b7   :  { %v3189_v19 = vadd.f32 %v3174_v55, %v7077_v4  ;;  %v3176_v39 = vpop.f32.mrb[29].mxu0  ;;  %6680 = vpow2.f32 %v5498_v41 }
 0x6b8   :  { %v6669_v13 = vpop.eup %6668  ;;  %v3190_v10 = vadd.f32 %v3176_v39, %v7077_v4  ;;  %6682 = vpow2.f32 %v5499_v60 }
 0x6b9   :  { %v6671_v12 = vpop.eup %6670  ;;  %v2757_v3 = vmul.f32 %v6669_v13, %v6665_v37  ;;  %v5500_v31 = vmul.f32 -1.442695, %v3189_v19  ;;  %6684 = vrcp.f32 %v2747_v42 }
 0x6ba   :  { %v2758_v38 = vmul.f32 %v6671_v12, %v6667_v46  ;;  %v5501_v52 = vmul.f32 -1.442695, %v3190_v10  ;;  %v3180_v32 = vpop.f32.mrb[30].mxu0  ;;  %6686 = vrcp.f32 %v2748_v7 }
 0x6bb   :  { %v3191_v14 = vadd.f32 %v3180_v32, %v7081_v11  ;;  %v3182_v16 = vpop.f32.mrb[31].mxu0  ;;  %6688 = vpow2.f32 %v5500_v31 }
 0x6bc   :  { %v6673_v2 = vpop.eup %6672  ;;  %v3192_v51 = vadd.f32 %v3182_v16, %v7081_v11  ;;  %6690 = vpow2.f32 %v5501_v52 }
 0x6bd   :  { %v6675_v44 = vpop.eup %6674  ;;  %v2755_v17 = vmul.f32 %v6673_v2, %v7784_v45  ;;  %6692 = vtanh.f32 %v3191_v14 }
 0x6be   :  { %v6677_v4 = vpop.eup %6676  ;;  %v2756_v54 = vmul.f32 %v6675_v44, %v7786_v6  ;;  %6694 = vtanh.f32 %v3192_v51 }
 0x6bf   :  { %v6679_v18 = vpop.eup %6678  ;;  %v8087_v30 = vadd.f32 %v2757_v3, %v2755_v17  ;;  %v3199_v5 = vadd.f32 1.0, %v6677_v4 }
 0x6c0   :  { %v8089_v9 = vadd.f32 %v2758_v38, %v2756_v54  ;;  %v3200_v35 = vadd.f32 1.0, %v6679_v18  ;;  %v3712_v54 = vld [vmem:[%s5366_s22] sm:$0xff]  ;;  %v3713_v18 = vld [vmem:[%s5366_s22 + $0x8] sm:$0xff]  ;;  %s6796_s22 = smov 12  }
 0x6c1   :  { %6696 = vtanh.f32 %v8087_v30  ;;  %v6681_v11 = vpop.eup %6680 }
 0x6c2   :  { %6698 = vtanh.f32 %v8089_v9  ;;  %v6683_v45 = vpop.eup %6682  ;;  %v3211_v59 = vadd.f32 1.0, %v6681_v11  ;;  %v4156_v11 = vld [vmem:[%s5372_s26] sm:$0xff] }
 0x6c3   :  { %6700 = vrcp.f32 %v3199_v5  ;;  %v3212_v6 = vadd.f32 1.0, %v6683_v45  ;;  %v6685_v0 = vpop.eup %6684  ;;  %v4157_v45 = vld [vmem:[%s5372_s26 + $0x8] sm:$0xff] }
 0x6c4   :  { %6702 = vrcp.f32 %v3200_v35  ;;  %v6687_v61 = vpop.eup %6686 }
 0x6c5   :  { %6704 = vrcp.f32 %v3211_v59  ;;  %v6689_v41 = vpop.eup %6688 }
 0x6c6   :  { %6706 = vrcp.f32 %v3212_v6  ;;  %v6691_v37 = vpop.eup %6690  ;;  %v3223_v10 = vadd.f32 1.0, %v6689_v41 }
 0x6c7   :  { %v6693_v60 = vpop.eup %6692  ;;  %v3224_v31 = vadd.f32 1.0, %v6691_v37 }
 0x6c8   :  { %v6695_v55 = vpop.eup %6694  ;;  %6708 = vrcp.f32 %v3223_v10 }
 0x6c9   :  { %6710 = vrcp.f32 %v3224_v31 }
 0x6cb   :  { %v6697_v46 = vpop.eup %6696 }
 0x6cc   :  { %v6699_v42 = vpop.eup %6698  ;;  %v8093_v19 = vmul.f32 %v6697_v46, %v6685_v0 }
 0x6cd   :  { %v6701_v39 = vpop.eup %6700  ;;  %v8095_v13 = vmul.f32 %v6699_v42, %v6687_v61 }
 0x6ce   :  { %v6703_v7 = vpop.eup %6702  ;;  %v3233_v12 = vmul.f32 %v6701_v39, %v6693_v60  ;;  %2765 = vrot.lane.b32.xlu1 %v8093_v19, %s6773_s3 }
 0x6cf   :  { %v6705_v3 = vpop.eup %6704  ;;  %v3234_v38 = vmul.f32 %v6703_v7, %v6695_v55  ;;  %2767 = vrot.lane.b32.xlu0 %v8095_v13, %s6773_s3 }
 0x6d0   :  { %v6707_v52 = vpop.eup %6706  ;;  %v3231_v32 = vmul.f32 %v6705_v3, %v7802_v26 }
 0x6d1   :  { %v3232_v14 = vmul.f32 %v6707_v52, %v7806_v27 }
 0x6d2   :  { %v3235_v16 = vadd.f32 %v3233_v12, %v3231_v32  ;;  %2775 = vrot.lane.b32.xlu1 %v8093_v19, %s6775_s8  ;;  %v6709_v26 = vpop.eup %6708 }
 0x6d3   :  { %v3236_v2 = vadd.f32 %v3234_v38, %v3232_v14  ;;  %2777 = vrot.lane.b32.xlu0 %v8095_v13, %s6775_s8  ;;  %v6711_v27 = vpop.eup %6710 }
 0x6d4   :  { %6712 = vtanh.f32 %v3235_v16 }
 0x6d5   :  { %6714 = vtanh.f32 %v3236_v2 }
 0x6d6   :  { %2785 = vrot.lane.b32.xlu1 %v8093_v19, %s6774_s4 }
 0x6d7   :  { %2787 = vrot.lane.b32.xlu0 %v8095_v13, %s6774_s4 }
 0x6da   :  { %2795 = vrot.lane.b32.xlu1 %v8093_v19, %s6776_s9 }
 0x6db   :  { %2797 = vrot.lane.b32.xlu0 %v8095_v13, %s6776_s9 }
 0x6de   :  { %v6713_v51 = vpop.eup %6712  ;;  %2807 = vrot.lane.b32.xlu1 %v8093_v19, %s6777_s10 }
 0x6df   :  { %v6715_v44 = vpop.eup %6714  ;;  %v8117_v17 = vmul.f32 %v6713_v51, %v6709_v26  ;;  %2809 = vrot.lane.b32.xlu0 %v8095_v13, %s6777_s10 }
 0x6e0   :  { %v8121_v4 = vmul.f32 %v6715_v44, %v6711_v27 }
 0x6e2   :  { %2817 = vrot.lane.b32.xlu1 %v8093_v19, %s6778_s11 }
 0x6e3   :  { %2819 = vrot.lane.b32.xlu0 %v8095_v13, %s6778_s11 }
 0x6e6   :  { %2827 = vrot.lane.b32.xlu1 %v8093_v19, %s6779_s12 }
 0x6e7   :  { %2829 = vrot.lane.b32.xlu0 %v8095_v13, %s6779_s12 }
 0x6ea   :  { %2837 = vrot.lane.b32.xlu1 %v8093_v19, %s6781_s13 }
 0x6eb   :  { %2839 = vrot.lane.b32.xlu0 %v8095_v13, %s6781_s13 }
 0x6ee   :  { %3241 = vrot.lane.b32.xlu1 %v8117_v17, %s6773_s3 }
 0x6ef   :  { %3243 = vrot.lane.b32.xlu0 %v8121_v4, %s6773_s3  ;;  %s6798_s3 = smov 18  }
 0x6f2   :  { %3251 = vrot.lane.b32.xlu1 %v8117_v17, %s6775_s8 }
 0x6f3   :  { %3253 = vrot.lane.b32.xlu0 %v8121_v4, %s6775_s8  ;;  %s6792_s8 = smov 8  }
 0x6f4   :  { %s8183_s1 = sld [smem:[%s8743_s0 + %s6792_s8]]   ;;  %s6799_s8 = smov 20  }
 0x6f6   :  { %3261 = vrot.lane.b32.xlu1 %v8117_v17, %s6774_s4 }
 0x6f7   :  { %3263 = vrot.lane.b32.xlu0 %v8121_v4, %s6774_s4 }
 0x6fa   :  { %3271 = vrot.lane.b32.xlu1 %v8117_v17, %s6776_s9  ;;  %v3576_v0 = vld [vmem:[%s8183_s1 + $0x8] sm:$0xff]  ;;  %v3578_v61 = vld [vmem:[%s8183_s1 + $0x18] sm:$0xff]  ;;  %v3575_v41 = vld [vmem:[%s8183_s1] sm:$0xff] }
 0x6fb   :  { %3273 = vrot.lane.b32.xlu0 %v8121_v4, %s6776_s9  ;;  %s6790_s9 = smov 13   ;;  %v6135_v37 = vpack.c.bf16 %v3578_v61, %v3576_v0  ;;  %v3577_v60 = vld [vmem:[%s8183_s1 + $0x10] sm:$0xff]  ;;  %v3580_v55 = vld [vmem:[%s8183_s1 + $0x28] sm:$0xff]  ;;  %v3582_v46 = vld [vmem:[%s8183_s1 + $0x38] sm:$0xff] }
 0x6fc   :  { %s5369_s24 = sld [smem:[%s8743_s0 + %s6790_s9]]   ;;  %v6137_v42 = vpack.c.bf16 %v3577_v60, %v3575_v41  ;;  %v6139_v39 = vpack.c.bf16 %v3582_v46, %v3580_v55  ;;  %v3579_v7 = vld [vmem:[%s8183_s1 + $0x20] sm:$0xff]  ;;  %v3581_v10 = vld [vmem:[%s8183_s1 + $0x30] sm:$0xff]  ;;  %v3584_v12 = vld [vmem:[%s8183_s1 + $0x48] sm:$0xff] }
 0x6fd   :  { %6136 = vmatprep.subr.bf16.mxu0 %v6135_v37  ;;  %v3586_v3 = vld [vmem:[%s8183_s1 + $0x58] sm:$0xff]  ;;  %v6141_v31 = vpack.c.bf16 %v3581_v10, %v3579_v7  ;;  %v3583_v52 = vld [vmem:[%s8183_s1 + $0x40] sm:$0xff]  ;;  %v3585_v32 = vld [vmem:[%s8183_s1 + $0x50] sm:$0xff]  ;;  %s5387_s9 = sld [smem:[%s8743_s0 + %s6811_s20]]  }
 0x6fe   :  { %3283 = vrot.lane.b32.xlu1 %v8117_v17, %s6777_s10  ;;  %6138 = vmatpush1.bf16.msra.mxu0 %v6137_v42  ;;  %v6143_v38 = vpack.c.bf16 %v3586_v3, %v3584_v12  ;;  %v6145_v14 = vpack.c.bf16 %v3585_v32, %v3583_v52  ;;  %v3588_v48 = vld [vmem:[%s8183_s1 + $0x68] sm:$0xff] }
 0x6ff   :  { %3285 = vrot.lane.b32.xlu0 %v8121_v4, %s6777_s10  ;;  %6140 = vmatprep.subr.bf16.mxu0 %v6139_v39  ;;  %s5368_s10 = sld [smem:[%s8743_s0 + %s6796_s22]]   ;;  %s6804_s22 = smov 24  }
 0x702   :  { %3293 = vrot.lane.b32.xlu1 %v8117_v17, %s6778_s11  ;;  %v3955_v5 = vld [vmem:[%s5369_s24] sm:$0xff]  ;;  %v3956_v35 = vld [vmem:[%s5369_s24 + $0x8] sm:$0xff]  ;;  %6142 = vmatpush1.bf16.msra.mxu0 %v6141_v31  ;;  %s6805_s24 = smov 25  }
 0x703   :  { %3295 = vrot.lane.b32.xlu0 %v8121_v4, %s6778_s11  ;;  %6144 = vmatprep.subr.bf16.mxu0 %v6143_v38  ;;  %s8660_s26 = sld [smem:[%s8743_s0 + %s6805_s24]]  }
 0x704   :  { %s5388_s11 = sld [smem:[%s8743_s0 + %s6812_s23]]  }
 0x706   :  { %3303 = vrot.lane.b32.xlu1 %v8117_v17, %s6779_s12  ;;  %6146 = vmatpush1.bf16.msra.mxu0 %v6145_v14 }
 0x707   :  { %3305 = vrot.lane.b32.xlu0 %v8121_v4, %s6779_s12  ;;  %s6791_s12 = smov 19  }
 0x708   :  { %s5375_s29 = sld [smem:[%s8743_s0 + %s6791_s12]]   ;;  %s6806_s12 = smov 26  }
 0x709   :  { %s8697_s4 = sld [smem:[%s8743_s0 + %s6806_s12]]  }
 0x70a   :  { %3313 = vrot.lane.b32.xlu1 %v8117_v17, %s6781_s13 }
 0x70b   :  { %3315 = vrot.lane.b32.xlu0 %v8121_v4, %s6781_s13  ;;  %s5383_s13 = sld [smem:[%s8743_s0 + %s6807_s28]]  }
 0x70e   :  { %3716 = vperm.xlu1 %6491, %v3712_v54   ;;  %v4351_v59 = vld [vmem:[%s5375_s29] sm:$0xff]  ;;  %v4352_v6 = vld [vmem:[%s5375_s29 + $0x8] sm:$0xff]  ;;  %s5374_s29 = sld [smem:[%s8743_s0 + %s6798_s3]]  }
 0x70f   :  { %3721 = vperm.xlu0 %6490, %v3713_v18  }
 0x712   :  { %3959 = vperm.xlu1 %6491, %v3955_v5  }
 0x713   :  { %3964 = vperm.xlu0 %6490, %v3956_v35  }
 0x716   :  { %4160 = vperm.xlu1 %6491, %v4156_v11  }
 0x717   :  { %4165 = vperm.xlu0 %6490, %v4157_v45  }
 0x71a   :  { %4355 = vperm.xlu1 %6491, %v4351_v59  }
 0x71b   :  { %4360 = vperm.xlu0 %6490, %v4352_v6  }
 0x740   :  { %v2766_v16 = vpop.permute.xlu1 %2765 }
 0x741   :  { %v2768_v2 = vpop.permute.xlu0 %2767 }
 0x742   :  { %v2769_v26 = vsel %vm170_vm6, %v2766_v16, %v2768_v2  ;;  %v2770_v27 = vsel %vm170_vm6, %v2768_v2, %v2766_v16 }
 0x743   :  { %v2771_v5 = vmul.f32 %v2770_v27, %v6876_v23  ;;  %v2772_v35 = vmul.f32 %v2769_v26, %v6870_v20 }
 0x744   :  { %v2776_v51 = vpop.permute.xlu1 %2775 }
 0x745   :  { %v2778_v44 = vpop.permute.xlu0 %2777 }
 0x746   :  { %v2779_v54 = vsel %vm185_vm0, %v2776_v51, %v2778_v44  ;;  %v2780_v18 = vsel %vm185_vm0, %v2778_v44, %v2776_v51 }
 0x747   :  { %v2781_v11 = vmul.f32 %v2780_v18, %v6878_v24  ;;  %v2782_v45 = vmul.f32 %v2779_v54, %v6874_v22 }
 0x748   :  { %v2786_v59 = vpop.permute.xlu1 %2785 }
 0x749   :  { %v6105_v6 = vpack.c.bf16 %v2781_v11, %v2771_v5  ;;  %v2788_v0 = vpop.permute.xlu0 %2787  ;;  %v6103_v61 = vpack.c.bf16 %v2782_v45, %v2772_v35 }
 0x74a   :  { %v2789_v41 = vsel %vm200_vm1, %v2786_v59, %v2788_v0  ;;  %v2790_v37 = vsel %vm200_vm1, %v2788_v0, %v2786_v59 }
 0x74b   :  { %6104 = vmatprep.subr.bf16.mxu1 %v6103_v61  ;;  %v2791_v39 = vmul.f32 %v2790_v37, %v6891_v36  ;;  %v2792_v7 = vmul.f32 %v2789_v41, %v6880_v25 }
 0x74c   :  { %v2796_v60 = vpop.permute.xlu1 %2795  ;;  %6106 = vmatpush1.bf16.msra.mxu1 %v6105_v6 }
 0x74d   :  { %v2798_v55 = vpop.permute.xlu0 %2797 }
 0x74e   :  { %v2799_v46 = vsel %vm215_vm2, %v2796_v60, %v2798_v55  ;;  %v2800_v42 = vsel %vm215_vm2, %v2798_v55, %v2796_v60 }
 0x74f   :  { %v2801_v10 = vmul.f32 %v2800_v42, %v6882_v28  ;;  %v2802_v12 = vmul.f32 %v2799_v46, %v6872_v21 }
 0x750   :  { %v2808_v3 = vpop.permute.xlu1 %2807 }
 0x751   :  { %v6109_v31 = vpack.c.bf16 %v2801_v10, %v2791_v39  ;;  %v2810_v38 = vpop.permute.xlu0 %2809  ;;  %v6107_v52 = vpack.c.bf16 %v2802_v12, %v2792_v7 }
 0x752   :  { %v2811_v32 = vsel %vm232_vm3, %v2808_v3, %v2810_v38  ;;  %v2812_v14 = vsel %vm232_vm3, %v2810_v38, %v2808_v3  ;;  %v6768_v38 = vld [vmem:[%s7124_s2] sm:$0xff] }
 0x753   :  { %v2813_v16 = vmul.f32 %v2811_v32, %v6895_v43  ;;  %v2814_v2 = vmul.f32 %v2812_v14, %v6884_v29  ;;  %6108 = vmatprep.subr.bf16.mxu1 %v6107_v52 }
 0x754   :  { %v2818_v26 = vpop.permute.xlu1 %2817  ;;  %6110 = vmatpush1.bf16.msra.mxu1 %v6109_v31 }
 0x755   :  { %v6113_v27 = vpack.c.bf16 %v2813_v16, %v8093_v19  ;;  %v2820_v51 = vpop.permute.xlu0 %2819  ;;  %v6111_v44 = vpack.c.bf16 %v2814_v2, %v8095_v13 }
 0x756   :  { %v2821_v54 = vsel %vm247_vm4, %v2818_v26, %v2820_v51  ;;  %v2822_v18 = vsel %vm247_vm4, %v2820_v51, %v2818_v26 }
 0x757   :  { %6112 = vmatprep.subr.bf16.mxu1 %v6111_v44  ;;  %v2823_v19 = vmul.f32 %v2821_v54, %v6910_v58  ;;  %v2824_v13 = vmul.f32 %v2822_v18, %v6903_v50  ;;  %v6769_v18 = vld [vmem:[%s7124_s2 + $0x8] sm:$0xff] }
 0x758   :  { %v2828_v5 = vpop.permute.xlu1 %2827  ;;  %6114 = vmatpush1.bf16.msra.mxu1 %v6113_v27 }
 0x759   :  { %v2830_v35 = vpop.permute.xlu0 %2829 }
 0x75a   :  { %v2831_v11 = vsel %vm262_vm5, %v2828_v5, %v2830_v35  ;;  %v2832_v45 = vsel %vm262_vm5, %v2830_v35, %v2828_v5 }
 0x75b   :  { %v2833_v59 = vmul.f32 %v2831_v11, %v6906_v53  ;;  %v2834_v6 = vmul.f32 %v2832_v45, %v6898_v47 }
 0x75c   :  { %v2838_v0 = vpop.permute.xlu1 %2837 }
 0x75d   :  { %v6117_v61 = vpack.c.bf16 %v2833_v59, %v2823_v19  ;;  %v2840_v41 = vpop.permute.xlu0 %2839  ;;  %v6115_v37 = vpack.c.bf16 %v2834_v6, %v2824_v13 }
 0x75e   :  { %v2842_v60 = vsel %vm277_vm8, %v2840_v41, %v2838_v0  ;;  %v2841_v55 = vsel %vm277_vm8, %v2838_v0, %v2840_v41 }
 0x75f   :  { %v2844_v46 = vmul.f32 %v8005_v63, %v2842_v60  ;;  %6116 = vmatprep.subr.bf16.mxu1 %v6115_v37  ;;  %v2843_v7 = vmul.f32 %v8001_v49, %v2841_v55  ;;  %v6771_v37 = vld [vmem:[%s7124_s2 + $0x18] sm:$0xff] }
 0x760   :  { %v3242_v42 = vpop.permute.xlu1 %3241  ;;  %6118 = vmatpush1.bf16.msra.mxu1 %v6117_v61 }
 0x761   :  { %3357 = vmatprep.subr.mxu1 %v2844_v46  ;;  %v3244_v39 = vpop.permute.xlu0 %3243 }
 0x762   :  { %v3245_v10 = vsel %vm170_vm6, %v3242_v42, %v3244_v39  ;;  %v3246_v12 = vsel %vm170_vm6, %v3244_v39, %v3242_v42  ;;  %vm5274_vm6 = vcmask 48128  }
 0x763   :  { %v3247_v14 = vmul.f32 %v3246_v12, %v6876_v23  ;;  %v3248_v16 = vmul.f32 %v3245_v10, %v6870_v20 }
 0x764   :  { %v3252_v3 = vpop.permute.xlu1 %3251  ;;  %3358 = vmatpush1.msra.mxu1 %v2843_v7 }
 0x765   :  { %v3254_v31 = vpop.permute.xlu0 %3253  ;;  %5502 = vmatmul.mubr.msk.f32.vlgmr.msra.gmra.mrb[24].mxu1 %vm480_vm7, %v6768_v38 }
 0x766   :  { %v3255_v52 = vsel %vm185_vm0, %v3252_v3, %v3254_v31  ;;  %v3256_v32 = vsel %vm185_vm0, %v3254_v31, %v3252_v3  ;;  %3411 = vmatprep.mubr.f32.mxu1 %v8749_v15  ;;  %vm4454_vm0 = vcmask 523264  }
 0x767   :  { %v3257_v2 = vmul.f32 %v3256_v32, %v6878_v24  ;;  %v3258_v26 = vmul.f32 %v3255_v52, %v6874_v22  ;;  %v6770_v24 = vld [vmem:[%s7124_s2 + $0x10] sm:$0xff]  ;;  %s6793_s2 = smov 11  }
 0x768   :  { %v3262_v27 = vpop.permute.xlu1 %3261  ;;  %s8387_s14 = sld [smem:[%s8743_s0 + %s6793_s2]]   ;;  %s6800_s2 = smov 21  }
 0x769   :  { %v6121_v51 = vpack.c.bf16 %v3257_v2, %v3247_v14  ;;  %v3264_v44 = vpop.permute.xlu0 %3263  ;;  %v6119_v54 = vpack.c.bf16 %v3258_v26, %v3248_v16  ;;  %5503 = vmatmul.mubr.msk.f32.gmra.mrb[26].mxu1 %vm480_vm7, %v6769_v18 }
 0x76a   :  { %3417 = vmatprep.mubr.f32.mxu1 %v8749_v15  ;;  %v3265_v23 = vsel %vm200_vm1, %v3262_v27, %v3264_v44  ;;  %v3266_v20 = vsel %vm200_vm1, %v3264_v44, %v3262_v27  ;;  %v3593_v27 = vld [vmem:[%s8183_s1 + $0x90] sm:$0xff]  ;;  %v3596_v44 = vld [vmem:[%s8183_s1 + $0xa8] sm:$0xff]  ;;  %vm6801_vm1 = vmmov 0  }
 0x76b   :  { %6120 = vmatprep.subr.bf16.mxu1 %v6119_v54  ;;  %v3267_v45 = vmul.f32 %v3266_v20, %v6891_v36  ;;  %v3268_v19 = vmul.f32 %v3265_v23, %v6880_v25  ;;  %v3598_v54 = vld [vmem:[%s8183_s1 + $0xb8] sm:$0xff]  ;;  %v3595_v23 = vld [vmem:[%s8183_s1 + $0xa0] sm:$0xff]  ;;  %v3597_v20 = vld [vmem:[%s8183_s1 + $0xb0] sm:$0xff] }
 0x76c   :  { %v3272_v5 = vpop.permute.xlu1 %3271  ;;  %6122 = vmatpush1.bf16.msra.mxu1 %v6121_v51  ;;  %v6155_v18 = vpack.c.bf16 %v3598_v54, %v3596_v44  ;;  %v3631_v44 = vld [vmem:[%s8183_s1 + $0x1c0] sm:$0xff]  ;;  %v3633_v54 = vld [vmem:[%s8183_s1 + $0x1d0] sm:$0xff] }
 0x76d   :  { %v3274_v22 = vpop.permute.xlu0 %3273  ;;  %5504 = vmatmul.mubr.msk.f32.gmra.mrb[28].mxu1 %vm480_vm7, %v6770_v24  ;;  %v3602_v24 = vld [vmem:[%s8183_s1 + $0xd8] sm:$0xff] }
 0x76e   :  { %v3275_v35 = vsel %vm215_vm2, %v3272_v5, %v3274_v22  ;;  %v3276_v11 = vsel %vm215_vm2, %v3274_v22, %v3272_v5  ;;  %3423 = vmatprep.mubr.f32.mxu1 %v8749_v15  ;;  %v6157_v5 = vpack.c.bf16 %v3597_v20, %v3595_v23  ;;  %v3600_v22 = vld [vmem:[%s8183_s1 + $0xc8] sm:$0xff]  ;;  %v3638_v23 = vld [vmem:[%s8183_s1 + $0x1f8] sm:$0xff]  ;;  %v6193_v20 = vpack.c.bf16 %v3633_v54, %v3631_v44  ;;  %v3812_v44 = vld [vmem:[%s8387_s14] sm:$0xff] }
 0x76f   :  { %v3277_v13 = vmul.f32 %v3276_v11, %v6882_v28  ;;  %v3278_v59 = vmul.f32 %v3275_v35, %v6872_v21  ;;  %v6159_v35 = vpack.c.bf16 %v3602_v24, %v3600_v22  ;;  %v3599_v11 = vld [vmem:[%s8183_s1 + $0xc0] sm:$0xff]  ;;  %v3637_v24 = vld [vmem:[%s8183_s1 + $0x1f0] sm:$0xff]  ;;  %vm4982_vm2 = vcmask 1045504  }
 0x770   :  { %v3284_v6 = vpop.permute.xlu1 %3283  ;;  %v3635_v22 = vld [vmem:[%s8183_s1 + $0x1e0] sm:$0xff]  ;;  %v3814_v54 = vld [vmem:[%s8387_s14 + $0x10] sm:$0xff] }
 0x771   :  { %v6125_v0 = vpack.c.bf16 %v3277_v13, %v3267_v45  ;;  %v3286_v61 = vpop.permute.xlu0 %3285  ;;  %v6123_v41 = vpack.c.bf16 %v3278_v59, %v3268_v19  ;;  %5505 = vmatmul.mubr.msk.f32.gmra.mrb[30].mxu1 %vm480_vm7, %v6771_v37  ;;  %v3601_v45 = vld [vmem:[%s8183_s1 + $0xd0] sm:$0xff]  ;;  %v3604_v13 = vld [vmem:[%s8183_s1 + $0xe8] sm:$0xff]  ;;  %v3606_v59 = vld [vmem:[%s8183_s1 + $0xf8] sm:$0xff] }
 0x772   :  { %v3287_v60 = vsel %vm232_vm3, %v3284_v6, %v3286_v61  ;;  %v3288_v55 = vsel %vm232_vm3, %v3286_v61, %v3284_v6  ;;  %3494 = vmatprep.mubr.f32.mxu1 %v8749_v15  ;;  %v6161_v19 = vpack.c.bf16 %v3601_v45, %v3599_v11  ;;  %v6163_v6 = vpack.c.bf16 %v3606_v59, %v3604_v13  ;;  %v3605_v61 = vld [vmem:[%s8183_s1 + $0xf0] sm:$0xff]  ;;  %v3608_v37 = vld [vmem:[%s8183_s1 + $0x108] sm:$0xff] }
 0x773   :  { %v3289_v25 = vmul.f32 %v3287_v60, %v6895_v43  ;;  %v3290_v28 = vmul.f32 %v3288_v55, %v6884_v29  ;;  %6124 = vmatprep.subr.bf16.mxu1 %v6123_v41  ;;  %v3610_v60 = vld [vmem:[%s8183_s1 + $0x118] sm:$0xff]  ;;  %vm4960_vm3 = vcmask 834560  }
 0x774   :  { %v3294_v21 = vpop.permute.xlu1 %3293  ;;  %6126 = vmatpush1.bf16.msra.mxu1 %v6125_v0  ;;  %v3603_v0 = vld [vmem:[%s8183_s1 + $0xe0] sm:$0xff]  ;;  %v6167_v55 = vpack.c.bf16 %v3610_v60, %v3608_v37 }
 0x775   :  { %v6129_v36 = vpack.c.bf16 %v3289_v25, %v8117_v17  ;;  %v3296_v46 = vpop.permute.xlu0 %3295  ;;  %v6127_v42 = vpack.c.bf16 %v3290_v28, %v8121_v4  ;;  %v6165_v41 = vpack.c.bf16 %v3605_v61, %v3603_v0  ;;  %v3607_v25 = vld [vmem:[%s8183_s1 + $0x100] sm:$0xff]  ;;  %v3609_v28 = vld [vmem:[%s8183_s1 + $0x110] sm:$0xff] }
 0x776   :  { %v3297_v39 = vsel %vm247_vm4, %v3294_v21, %v3296_v46  ;;  %v3298_v7 = vsel %vm247_vm4, %v3296_v46, %v3294_v21  ;;  %v6169_v21 = vpack.c.bf16 %v3609_v28, %v3607_v25  ;;  %v3614_v46 = vld [vmem:[%s8183_s1 + $0x138] sm:$0xff]  ;;  %vm5099_vm4 = vcmask 408576  }
 0x777   :  { %6128 = vmatprep.subr.bf16.mxu1 %v6127_v42  ;;  %v3299_v17 = vmul.f32 %v3297_v39, %v6910_v58  ;;  %v3300_v4 = vmul.f32 %v3298_v7, %v6903_v50  ;;  %v3590_v50 = vld [vmem:[%s8183_s1 + $0x78] sm:$0xff]  ;;  %v3611_v39 = vld [vmem:[%s8183_s1 + $0x120] sm:$0xff]  ;;  %v3613_v7 = vld [vmem:[%s8183_s1 + $0x130] sm:$0xff] }
 0x778   :  { %v3304_v10 = vpop.permute.xlu1 %3303  ;;  %6130 = vmatpush1.bf16.msra.mxu1 %v6129_v36  ;;  %v3612_v36 = vld [vmem:[%s8183_s1 + $0x128] sm:$0xff] }
 0x779   :  { %v3306_v43 = vpop.permute.xlu0 %3305  ;;  %v6171_v42 = vpack.c.bf16 %v3614_v46, %v3612_v36 }
 0x77a   :  { %v3307_v29 = vsel %vm262_vm5, %v3304_v10, %v3306_v43  ;;  %v3308_v12 = vsel %vm262_vm5, %v3306_v43, %v3304_v10  ;;  %v6173_v10 = vpack.c.bf16 %v3613_v7, %v3611_v39  ;;  %v3616_v43 = vld [vmem:[%s8183_s1 + $0x148] sm:$0xff]  ;;  %vm5197_vm5 = vcmask 195584  }
 0x77b   :  { %v3309_v3 = vmul.f32 %v3307_v29, %v6906_v53  ;;  %v3310_v31 = vmul.f32 %v3308_v12, %v6898_v47  ;;  %v6147_v53 = vpack.c.bf16 %v3590_v50, %v3588_v48  ;;  %v3618_v29 = vld [vmem:[%s8183_s1 + $0x158] sm:$0xff]  ;;  %v3623_v48 = vld [vmem:[%s8183_s1 + $0x180] sm:$0xff]  ;;  %v3625_v50 = vld [vmem:[%s8183_s1 + $0x190] sm:$0xff] }
 0x77c   :  { %v3314_v38 = vpop.permute.xlu1 %3313  ;;  %v6175_v12 = vpack.c.bf16 %v3618_v29, %v3616_v43 }
 0x77d   :  { %v6133_v52 = vpack.c.bf16 %v3309_v3, %v3299_v17  ;;  %v3316_v32 = vpop.permute.xlu0 %3315  ;;  %v6131_v14 = vpack.c.bf16 %v3310_v31, %v3300_v4  ;;  %6148 = vmatprep.subr.bf16.mxu0 %v6147_v53  ;;  %v3615_v17 = vld [vmem:[%s8183_s1 + $0x140] sm:$0xff]  ;;  %v3617_v4 = vld [vmem:[%s8183_s1 + $0x150] sm:$0xff]  ;;  %v3620_v31 = vld [vmem:[%s8183_s1 + $0x168] sm:$0xff]  ;;  %v6185_v53 = vpack.c.bf16 %v3625_v50, %v3623_v48 }
 0x77e   :  { %v3318_v16 = vsel %vm277_vm8, %v3316_v32, %v3314_v38  ;;  %v3317_v2 = vsel %vm277_vm8, %v3314_v38, %v3316_v32  ;;  %v6177_v3 = vpack.c.bf16 %v3617_v4, %v3615_v17  ;;  %v3622_v38 = vld [vmem:[%s8183_s1 + $0x178] sm:$0xff]  ;;  %v3619_v32 = vld [vmem:[%s8183_s1 + $0x160] sm:$0xff] }
 0x77f   :  { %v3320_v58 = vmul.f32 %v8005_v63, %v3318_v16  ;;  %6132 = vmatprep.subr.bf16.mxu1 %v6131_v14  ;;  %v3319_v47 = vmul.f32 %v8001_v49, %v3317_v2  ;;  %v3587_v49 = vld [vmem:[%s8183_s1 + $0x60] sm:$0xff]  ;;  %v3589_v63 = vld [vmem:[%s8183_s1 + $0x70] sm:$0xff]  ;;  %v3624_v2 = vld [vmem:[%s8183_s1 + $0x188] sm:$0xff] }
 0x780   :  { %6134 = vmatpush1.bf16.msra.mxu1 %v6133_v52  ;;  %v6179_v52 = vpack.c.bf16 %v3622_v38, %v3620_v31  ;;  %v3621_v14 = vld [vmem:[%s8183_s1 + $0x170] sm:$0xff] }
 0x781   :  { %3446 = vmatprep.subr.mxu1 %v3320_v58  ;;  %v6181_v16 = vpack.c.bf16 %v3621_v14, %v3619_v32  ;;  %v3626_v58 = vld [vmem:[%s8183_s1 + $0x198] sm:$0xff] }
 0x784   :  { %3447 = vmatpush1.msra.mxu1 %v3319_v47  ;;  %v6183_v47 = vpack.c.bf16 %v3626_v58, %v3624_v2 }
 0x785   :  { %5506 = vmatmul.mubr.msk.f32.vlgmr.msra.gmra.mrb[24].mxu1 %vm480_vm7, %v8015_v34  ;;  %v6149_v34 = vpack.c.bf16 %v3589_v63, %v3587_v49  ;;  %v3628_v49 = vld [vmem:[%s8183_s1 + $0x1a8] sm:$0xff]  ;;  %v3630_v63 = vld [vmem:[%s8183_s1 + $0x1b8] sm:$0xff] }
 0x786   :  { %3500 = vmatprep.mubr.f32.mxu1 %v8749_v15 }
 0x787   :  { %6150 = vmatpush1.bf16.msra.mxu0 %v6149_v34  ;;  %v3627_v34 = vld [vmem:[%s8183_s1 + $0x1a0] sm:$0xff] }
 0x789   :  { %5507 = vmatmul.mubr.msk.f32.gmra.mrb[26].mxu1 %vm480_vm7, %v8028_v8  ;;  %v3592_v8 = vld [vmem:[%s8183_s1 + $0x88] sm:$0xff] }
 0x78a   :  { %3506 = vmatprep.mubr.f32.mxu1 %v8749_v15 }
 0x78d   :  { %5508 = vmatmul.mubr.msk.f32.gmra.mrb[28].mxu1 %vm480_vm7, %v8039_v62  ;;  %v3594_v62 = vld [vmem:[%s8183_s1 + $0x98] sm:$0xff] }
 0x78e   :  { %3512 = vmatprep.mubr.f32.mxu1 %v8749_v15  ;;  %v6151_v26 = vpack.c.bf16 %v3594_v62, %v3592_v8  ;;  %v6187_v8 = vpack.c.bf16 %v3630_v63, %v3628_v49  ;;  %v3629_v62 = vld [vmem:[%s8183_s1 + $0x1b0] sm:$0xff] }
 0x790   :  { %6152 = vmatprep.subr.bf16.mxu0 %v6151_v26  ;;  %v3632_v26 = vld [vmem:[%s8183_s1 + $0x1c8] sm:$0xff] }
 0x791   :  { %5509 = vmatmul.mubr.msk.f32.gmra.mrb[30].mxu1 %vm480_vm7, %v8048_v56  ;;  %v3591_v56 = vld [vmem:[%s8183_s1 + $0x80] sm:$0xff]  ;;  %vm5351_vm7 = vcmask 1024  }
 0x792   :  { %3795 = vmatprep.mubr.f32.mxu1 %v8749_v15  ;;  %v6153_v51 = vpack.c.bf16 %v3593_v27, %v3591_v56  ;;  %v3634_v56 = vld [vmem:[%s8183_s1 + $0x1d8] sm:$0xff]  ;;  %v6189_v27 = vpack.c.bf16 %v3629_v62, %v3627_v34 }
 0x794   :  { %6154 = vmatpush1.bf16.msra.mxu0 %v6153_v51  ;;  %v6191_v51 = vpack.c.bf16 %v3634_v56, %v3632_v26 }
 0x795   :  { %6156 = vmatprep.subr.bf16.mxu0 %v6155_v18  ;;  %v3636_v18 = vld [vmem:[%s8183_s1 + $0x1e8] sm:$0xff]  ;;  %s5376_s1 = sld [smem:[%s8743_s0 + %s6799_s8]]  }
 0x798   :  { %6158 = vmatpush1.bf16.msra.mxu0 %v6157_v5  ;;  %v6195_v5 = vpack.c.bf16 %v3638_v23, %v3636_v18  ;;  %v3817_v18 = vld [vmem:[%s8387_s14 + $0x28] sm:$0xff]  ;;  %v3819_v23 = vld [vmem:[%s8387_s14 + $0x38] sm:$0xff] }
 0x799   :  { %6160 = vmatprep.subr.bf16.mxu0 %v6159_v35  ;;  %v6197_v35 = vpack.c.bf16 %v3637_v24, %v3635_v22  ;;  %v3710_v24 = vld [vmem:[%s5365_s18] sm:$0xff] }
 0x79c   :  { %6162 = vmatpush1.bf16.msra.mxu0 %v6161_v19 }
 0x79d   :  { %6164 = vmatprep.subr.bf16.mxu0 %v6163_v6 }
 0x7a0   :  { %6166 = vmatpush1.bf16.msra.mxu0 %v6165_v41 }
 0x7a1   :  { %6168 = vmatprep.subr.bf16.mxu0 %v6167_v55 }
 0x7a4   :  { %6170 = vmatpush1.bf16.msra.mxu0 %v6169_v21 }
 0x7a5   :  { %6172 = vmatprep.subr.bf16.mxu0 %v6171_v42 }
 0x7a8   :  { %6174 = vmatpush1.bf16.msra.mxu0 %v6173_v10 }
 0x7a9   :  { %6176 = vmatprep.subr.bf16.mxu0 %v6175_v12 }
 0x7ac   :  { %6178 = vmatpush1.bf16.msra.mxu0 %v6177_v3 }
 0x7ad   :  { %6180 = vmatprep.subr.bf16.mxu0 %v6179_v52 }
 0x7b0   :  { %6182 = vmatpush1.bf16.msra.mxu0 %v6181_v16 }
 0x7b1   :  { %6184 = vmatprep.subr.bf16.mxu0 %v6183_v47 }
 0x7b4   :  { %6186 = vmatpush1.bf16.msra.mxu0 %v6185_v53 }
 0x7b5   :  { %6188 = vmatprep.subr.bf16.mxu0 %v6187_v8 }
 0x7b8   :  { %6190 = vmatpush1.bf16.msra.mxu0 %v6189_v27 }
 0x7b9   :  { %6192 = vmatprep.subr.bf16.mxu0 %v6191_v51 }
 0x7bc   :  { %6194 = vmatpush1.bf16.msra.mxu0 %v6193_v20 }
 0x7bd   :  { %6196 = vmatprep.subr.bf16.mxu0 %v6195_v5 }
 0x7c0   :  { %6198 = vmatpush1.bf16.msra.mxu0 %v6197_v35  ;;  %v6201_v35 = vpack.c.bf16 %v3814_v54, %v3812_v44 }
 0x858   :  { %v3496_v11 = vpop.f32.mrb[24].mxu1 }
 0x859   :  { %v3519_v45 = vadd.f32 %v3496_v11, %v7341_v40  ;;  %v3498_v19 = vpop.f32.mrb[25].mxu1  ;;  %v6203_v11 = vpack.c.bf16 %v3819_v23, %v3817_v18  ;;  %v3852_v18 = vld [vmem:[%s8387_s14 + $0x140] sm:$0xff]  ;;  %v3854_v23 = vld [vmem:[%s8387_s14 + $0x150] sm:$0xff] }
 0x85a   :  { %v3520_v13 = vadd.f32 %v3498_v19, %v7341_v40  ;;  %v3818_v19 = vld [vmem:[%s8387_s14 + $0x30] sm:$0xff] }
 0x85b   :  { %v5510_v59 = vmul.f32 -1.442695, %v3519_v45  ;;  %v3816_v45 = vld [vmem:[%s8387_s14 + $0x20] sm:$0xff] }
 0x85c   :  { %v5511_v6 = vmul.f32 -1.442695, %v3520_v13  ;;  %v3502_v0 = vpop.f32.mrb[26].mxu1  ;;  %v3821_v13 = vld [vmem:[%s8387_s14 + $0x48] sm:$0xff] }
 0x85d   :  { %6716 = vpow2.f32 %v5510_v59  ;;  %v3521_v61 = vadd.f32 %v3502_v0, %v7345_v33  ;;  %v3504_v41 = vpop.f32.mrb[27].mxu1  ;;  %v3823_v59 = vld [vmem:[%s8387_s14 + $0x58] sm:$0xff]  ;;  %v6205_v0 = vpack.c.bf16 %v3818_v19, %v3816_v45  ;;  %v3861_v19 = vld [vmem:[%s8387_s14 + $0x188] sm:$0xf] }
 0x85e   :  { %6718 = vpow2.f32 %v5511_v6  ;;  %v3522_v37 = vadd.f32 %v3504_v41, %v7345_v33  ;;  %v3711_v6 = vld [vmem:[%s5365_s18 + $0x8] sm:$0xff]  ;;  %v3820_v41 = vld [vmem:[%s8387_s14 + $0x40] sm:$0xff]  ;;  %s8568_s18 = sld [smem:[%s8743_s0 + %s6802_s15]]  }
 0x85f   :  { %v5512_v60 = vmul.f32 -1.442695, %v3521_v61  ;;  %v6207_v61 = vpack.c.bf16 %v3823_v59, %v3821_v13  ;;  %v3860_v13 = vld [vmem:[%s8387_s14 + $0x180] sm:$0xf]  ;;  %v3717_v59 = vpop.permute.xlu1 %3716 }
 0x860   :  { %v5513_v55 = vmul.f32 -1.442695, %v3522_v37  ;;  %v3508_v25 = vpop.f32.mrb[28].mxu1  ;;  %v3822_v37 = vld [vmem:[%s8387_s14 + $0x50] sm:$0xff] }
 0x861   :  { %6720 = vpow2.f32 %v5512_v60  ;;  %v3523_v28 = vadd.f32 %v3508_v25, %v7349_v57  ;;  %v3510_v21 = vpop.f32.mrb[29].mxu1  ;;  %v3825_v60 = vld [vmem:[%s8387_s14 + $0x68] sm:$0xff]  ;;  %v6209_v25 = vpack.c.bf16 %v3822_v37, %v3820_v41  ;;  %v3722_v37 = vpop.permute.xlu0 %3721 }
 0x862   :  { %6722 = vpow2.f32 %v5513_v55  ;;  %v3524_v40 = vadd.f32 %v3510_v21, %v7349_v57  ;;  %v3827_v55 = vld [vmem:[%s8387_s14 + $0x78] sm:$0xff]  ;;  %v3824_v21 = vld [vmem:[%s8387_s14 + $0x60] sm:$0xff] }
 0x863   :  { %v5514_v36 = vmul.f32 -1.442695, %v3523_v28  ;;  %v6211_v28 = vpack.c.bf16 %v3827_v55, %v3825_v60 }
 0x864   :  { %v5515_v46 = vmul.f32 -1.442695, %v3524_v40  ;;  %v3514_v42 = vpop.f32.mrb[30].mxu1  ;;  %v3826_v40 = vld [vmem:[%s8387_s14 + $0x70] sm:$0xff] }
 0x865   :  { %v3525_v39 = vadd.f32 %v3514_v42, %v7353_v1  ;;  %v3516_v7 = vpop.f32.mrb[31].mxu1  ;;  %6724 = vpow2.f32 %v5514_v36  ;;  %v3829_v36 = vld [vmem:[%s8387_s14 + $0x88] sm:$0xff]  ;;  %v6213_v42 = vpack.c.bf16 %v3826_v40, %v3824_v21 }
 0x866   :  { %v3526_v10 = vadd.f32 %v3516_v7, %v7353_v1  ;;  %6726 = vpow2.f32 %v5515_v46  ;;  %v3831_v46 = vld [vmem:[%s8387_s14 + $0x98] sm:$0xff]  ;;  %v3828_v7 = vld [vmem:[%s8387_s14 + $0x80] sm:$0xff] }
 0x867   :  { %v6717_v33 = vpop.eup %6716  ;;  %6728 = vtanh.f32 %v3525_v39  ;;  %v6215_v39 = vpack.c.bf16 %v3831_v46, %v3829_v36 }
 0x868   :  { %v6719_v43 = vpop.eup %6718  ;;  %v3533_v29 = vadd.f32 1.0, %v6717_v33  ;;  %6730 = vtanh.f32 %v3526_v10  ;;  %v3830_v10 = vld [vmem:[%s8387_s14 + $0x90] sm:$0xff]  ;;  %v3833_v33 = vld [vmem:[%s8387_s14 + $0xa8] sm:$0xff] }
 0x869   :  { %v3534_v12 = vadd.f32 1.0, %v6719_v43  ;;  %v3835_v43 = vld [vmem:[%s8387_s14 + $0xb8] sm:$0xff] }
 0x86a   :  { %6732 = vrcp.f32 %v3533_v29  ;;  %v6217_v29 = vpack.c.bf16 %v3830_v10, %v3828_v7 }
 0x86b   :  { %v6721_v17 = vpop.eup %6720  ;;  %6734 = vrcp.f32 %v3534_v12  ;;  %v6219_v12 = vpack.c.bf16 %v3835_v43, %v3833_v33 }
 0x86c   :  { %v6723_v57 = vpop.eup %6722  ;;  %v3545_v4 = vadd.f32 1.0, %v6721_v17  ;;  %v3832_v17 = vld [vmem:[%s8387_s14 + $0xa0] sm:$0xff] }
 0x86d   :  { %v3546_v3 = vadd.f32 1.0, %v6723_v57  ;;  %v3834_v57 = vld [vmem:[%s8387_s14 + $0xb0] sm:$0xff] }
 0x86e   :  { %6736 = vrcp.f32 %v3545_v4  ;;  %v3837_v4 = vld [vmem:[%s8387_s14 + $0xc8] sm:$0xff] }
 0x86f   :  { %6738 = vrcp.f32 %v3546_v3  ;;  %v6725_v31 = vpop.eup %6724  ;;  %v3839_v3 = vld [vmem:[%s8387_s14 + $0xd8] sm:$0xff] }
 0x870   :  { %v6727_v38 = vpop.eup %6726  ;;  %v3557_v58 = vadd.f32 1.0, %v6725_v31  ;;  %v6221_v31 = vpack.c.bf16 %v3834_v57, %v3832_v17  ;;  %v3953_v17 = vld [vmem:[%s5368_s10] sm:$0xff] }
 0x871   :  { %v6729_v52 = vpop.eup %6728  ;;  %v3558_v48 = vadd.f32 1.0, %v6727_v38  ;;  %v6223_v38 = vpack.c.bf16 %v3839_v3, %v3837_v4  ;;  %v6797_v4 = vmov 0.0|0.0   ;;  %v4057_v3 = vld [vmem:[%s8450_s21 + $0x10] sm:$0xff] }
 0x872   :  { %v6731_v32 = vpop.eup %6730  ;;  %6740 = vrcp.f32 %v3557_v58  ;;  %v3840_v58 = vld [vmem:[%s8387_s14 + $0xe0] sm:$0xff] }
 0x873   :  { %6742 = vrcp.f32 %v3558_v48  ;;  %v3845_v48 = vld [vmem:[%s8387_s14 + $0x108] sm:$0xff] }
 0x874   :  { %v6733_v1 = vpop.eup %6732 }
 0x875   :  { %v6735_v14 = vpop.eup %6734  ;;  %v3567_v16 = vmul.f32 %v6733_v1, %v6729_v52  ;;  %v3836_v52 = vld [vmem:[%s8387_s14 + $0xc0] sm:$0xff]  ;;  %v3841_v1 = vld [vmem:[%s8387_s14 + $0xe8] sm:$0xff] }
 0x876   :  { %v3568_v2 = vmul.f32 %v6735_v14, %v6731_v32  ;;  %v3838_v32 = vld [vmem:[%s8387_s14 + $0xd0] sm:$0xff]  ;;  %v3843_v14 = vld [vmem:[%s8387_s14 + $0xf8] sm:$0xff] }
 0x878   :  { %v6737_v47 = vpop.eup %6736 }
 0x879   :  { %v6739_v50 = vpop.eup %6738  ;;  %v3565_v53 = vmul.f32 %v6737_v47, %v8087_v30  ;;  %v3813_v30 = vld [vmem:[%s8387_s14 + $0x8] sm:$0xff]  ;;  %v3842_v47 = vld [vmem:[%s8387_s14 + $0xf0] sm:$0xff] }
 0x87a   :  { %v3566_v49 = vmul.f32 %v6739_v50, %v8089_v9  ;;  %v3815_v9 = vld [vmem:[%s8387_s14 + $0x18] sm:$0xff] }
 0x87b   :  { %v3569_v63 = vadd.f32 %v3567_v16, %v3565_v53  ;;  %v6199_v5 = vpack.c.bf16 %v3815_v9, %v3813_v30  ;;  %v6225_v16 = vpack.c.bf16 %v3838_v32, %v3836_v52  ;;  %v3847_v50 = vld [vmem:[%s8387_s14 + $0x118] sm:$0xff]  ;;  %v6229_v53 = vpack.c.bf16 %v3842_v47, %v3840_v58  ;;  %v3853_v30 = vld [vmem:[%s8387_s14 + $0x148] sm:$0xff]  ;;  %v4059_v32 = vld [vmem:[%s8450_s21 + $0x20] sm:$0xff] }
 0x87c   :  { %v3570_v34 = vadd.f32 %v3568_v2, %v3566_v49  ;;  %v6741_v8 = vpop.eup %6740  ;;  %v6227_v2 = vpack.c.bf16 %v3843_v14, %v3841_v1  ;;  %v6231_v49 = vpack.c.bf16 %v3847_v50, %v3845_v48  ;;  %v3855_v9 = vld [vmem:[%s8387_s14 + $0x158] sm:$0xff]  ;;  %v4060_v1 = vld [vmem:[%s8450_s21 + $0x28] sm:$0xff]  ;;  %v4063_v47 = vld [vmem:[%s8450_s21 + $0x40] sm:$0xff] }
 0x87d   :  { %6744 = vtanh.f32 %v3569_v63  ;;  %v6743_v62 = vpop.eup %6742  ;;  %v3844_v63 = vld [vmem:[%s8387_s14 + $0x100] sm:$0xff]  ;;  %v6239_v54 = vpack.c.bf16 %v3855_v9, %v3853_v30  ;;  %v6258_v14 = vpack.c.bf16 %v4060_v1, %v4059_v32  ;;  %v4064_v48 = vld [vmem:[%s8450_s21 + $0x48] sm:$0xff] }
 0x87e   :  { %6746 = vtanh.f32 %v3570_v34  ;;  %v3846_v34 = vld [vmem:[%s8387_s14 + $0x110] sm:$0xff]  ;;  %v6264_v50 = vpack.c.bf16 %v4064_v48, %v4063_v47  ;;  %v4072_v30 = vld [vmem:[%s8450_s21 + $0x88] sm:$0xff]  ;;  %v4349_v48 = vld [vmem:[%s5374_s29] sm:$0xff] }
 0x887   :  { %v6745_v26 = vpop.eup %6744 }
 0x888   :  { %v6747_v56 = vpop.eup %6746  ;;  %v3573_v27 = vmul.f32 %v6745_v26, %v6741_v8  ;;  %v3849_v8 = vld [vmem:[%s8387_s14 + $0x128] sm:$0xff]  ;;  %v6233_v26 = vpack.c.bf16 %v3846_v34, %v3844_v63  ;;  %v4067_v34 = vld [vmem:[%s8450_s21 + $0x60] sm:$0xff] }
 0x889   :  { %v3574_v51 = vmul.f32 %v6747_v56, %v6743_v62  ;;  %v3851_v62 = vld [vmem:[%s8387_s14 + $0x138] sm:$0xff] }
 0x88a   :  { %v6235_v56 = vpack.c.bf16 %v3851_v62, %v3849_v8  ;;  %v4068_v8 = vld [vmem:[%s8450_s21 + $0x68] sm:$0xff] }
 0x88b   :  { %3703 = vmatprep.mubr.f32.mxu0 %v3574_v51  ;;  %v3850_v51 = vld [vmem:[%s8387_s14 + $0x130] sm:$0xff]  ;;  %v6270_v62 = vpack.c.bf16 %v4068_v8, %v4067_v34  ;;  %v4449_v34 = vld [vmem:[%s5376_s1 + $0x18] sm:$0xff] }
 0x88c   :  { %3704 = vmatmul.mubr.f32.vlgmr.msra.gmra.mrb[32].mxu0 %v3573_v27  ;;  %v3848_v27 = vld [vmem:[%s8387_s14 + $0x120] sm:$0xff] }
 0x88d   :  { %4038 = vmatprep.mubr.f32.mxu0 %v8749_v15  ;;  %v6237_v44 = vpack.c.bf16 %v3850_v51, %v3848_v27  ;;  %v4071_v51 = vld [vmem:[%s8450_s21 + $0x80] sm:$0xff] }
 0x88e   :  { %v6276_v9 = vpack.c.bf16 %v4072_v30, %v4071_v51 }
 0x95f   :  { %v3705_v20 = vpop.f32.mrb[32].mxu0 }
 0x960   :  { %v3707_v22 = vpop.f32.mrb[33].mxu0 }
 0x961   :  { %3731 = vmatprep.subr.mxu1 %v3707_v22  ;;  %v3859_v22 = vld [vmem:[%s8387_s14 + $0x178] sm:$0xff] }
 0x962   :  { %3732 = vmatpush1.msra.mxu1 %v3705_v20  ;;  %v6241_v20 = vpack.c.bf16 %v3854_v23, %v3852_v18 }
 0x963   :  { %5516 = vmatmul.mubr.msk.f32.vlgmr.msra.gmra.mrb[32].mxu1 %vm3724_vm11, %v3710_v24  ;;  %6200 = vmatprep.subr.bf16.mxu1 %v6199_v5  ;;  %v3857_v5 = vld [vmem:[%s8387_s14 + $0x168] sm:$0xff] }
 0x964   :  { %3801 = vmatprep.mubr.f32.mxu1 %v8749_v15  ;;  %6202 = vmatpush1.bf16.msra.mxu1 %v6201_v35  ;;  %v6243_v24 = vpack.c.bf16 %v3859_v22, %v3857_v5  ;;  %v3856_v35 = vld [vmem:[%s8387_s14 + $0x160] sm:$0xff]  ;;  %v3965_v5 = vpop.permute.xlu0 %3964 }
 0x965   :  { %6204 = vmatprep.subr.bf16.mxu1 %v6203_v11  ;;  %v3858_v11 = vld [vmem:[%s8387_s14 + $0x170] sm:$0xff]  ;;  %s8526_s14 = sld [smem:[%s8743_s0 + %s6800_s2]]  }
 0x966   :  { %v6245_v45 = vpack.c.bf16 %v3858_v11, %v3856_v35 }
 0x967   :  { %5517 = vmatmul.mubr.msk.f32.gmra.mrb[34].mxu1 %vm3724_vm11, %v3711_v6 }
 0x968   :  { %6206 = vmatpush1.bf16.msra.mxu1 %v6205_v0 }
 0x969   :  { %6208 = vmatprep.subr.bf16.mxu1 %v6207_v61 }
 0x96c   :  { %6210 = vmatpush1.bf16.msra.mxu1 %v6209_v25 }
 0x96d   :  { %6212 = vmatprep.subr.bf16.mxu1 %v6211_v28 }
 0x970   :  { %6214 = vmatpush1.bf16.msra.mxu1 %v6213_v42 }
 0x971   :  { %6216 = vmatprep.subr.bf16.mxu1 %v6215_v39 }
 0x974   :  { %6218 = vmatpush1.bf16.msra.mxu1 %v6217_v29  ;;  %v4055_v29 = vld [vmem:[%s8450_s21] sm:$0xff] }
 0x975   :  { %6220 = vmatprep.subr.bf16.mxu1 %v6219_v12  ;;  %v4056_v12 = vld [vmem:[%s8450_s21 + $0x8] sm:$0xff] }
 0x976   :  { %v6252_v57 = vpack.c.bf16 %v4056_v12, %v4055_v29  ;;  %v4259_v29 = vld [vmem:[%s8496_s27 + $0x40] sm:$0xff]  ;;  %v4260_v12 = vld [vmem:[%s8496_s27 + $0x48] sm:$0xff] }
 0x978   :  { %6222 = vmatpush1.bf16.msra.mxu1 %v6221_v31  ;;  %v4058_v31 = vld [vmem:[%s8450_s21 + $0x18] sm:$0xff] }
 0x979   :  { %6224 = vmatprep.subr.bf16.mxu1 %v6223_v38  ;;  %v3954_v38 = vld [vmem:[%s5368_s10 + $0x8] sm:$0xff]  ;;  %v6255_v52 = vpack.c.bf16 %v4058_v31, %v4057_v3  ;;  %v4262_v3 = vld [vmem:[%s8496_s27 + $0x58] sm:$0xff]  ;;  %s8638_s10 = sld [smem:[%s8743_s0 + %s6804_s22]]  }
 0x97c   :  { %6226 = vmatpush1.bf16.msra.mxu1 %v6225_v16  ;;  %v4061_v16 = vld [vmem:[%s8450_s21 + $0x30] sm:$0xff] }
 0x97d   :  { %6228 = vmatprep.subr.bf16.mxu1 %v6227_v2  ;;  %v4062_v2 = vld [vmem:[%s8450_s21 + $0x38] sm:$0xff] }
 0x97e   :  { %v6261_v58 = vpack.c.bf16 %v4062_v2, %v4061_v16 }
 0x980   :  { %6230 = vmatpush1.bf16.msra.mxu1 %v6229_v53  ;;  %v4065_v53 = vld [vmem:[%s8450_s21 + $0x50] sm:$0xff] }
 0x981   :  { %6232 = vmatprep.subr.bf16.mxu1 %v6231_v49  ;;  %v4066_v49 = vld [vmem:[%s8450_s21 + $0x58] sm:$0xff] }
 0x982   :  { %v6267_v63 = vpack.c.bf16 %v4066_v49, %v4065_v53  ;;  %v4447_v53 = vld [vmem:[%s5376_s1 + $0x8] sm:$0xff]  ;;  %v4448_v49 = vld [vmem:[%s5376_s1 + $0x10] sm:$0xff] }
 0x983   :  { %v6314_v8 = vpack.c.bf16 %v4449_v34, %v4448_v49 }
 0x984   :  { %6234 = vmatpush1.bf16.msra.mxu1 %v6233_v26  ;;  %v4069_v26 = vld [vmem:[%s8450_s21 + $0x70] sm:$0xff] }
 0x985   :  { %6236 = vmatprep.subr.bf16.mxu1 %v6235_v56  ;;  %v4070_v56 = vld [vmem:[%s8450_s21 + $0x78] sm:$0xff]  ;;  %s8594_s21 = sld [smem:[%s8743_s0 + %s6803_s19]]  }
 0x986   :  { %v6273_v27 = vpack.c.bf16 %v4070_v56, %v4069_v26  ;;  %v4451_v26 = vld [vmem:[%s5376_s1 + $0x28] sm:$0xff] }
 0x988   :  { %6238 = vmatpush1.bf16.msra.mxu1 %v6237_v44  ;;  %v3960_v44 = vpop.permute.xlu1 %3959 }
 0x989   :  { %6240 = vmatprep.subr.bf16.mxu1 %v6239_v54 }
 0x98c   :  { %6242 = vmatpush1.bf16.msra.mxu1 %v6241_v20  ;;  %v4161_v1 = vpop.permute.xlu1 %4160 }
 0x98d   :  { %6244 = vmatprep.subr.bf16.mxu1 %v6243_v24 }
 0x990   :  { %6246 = vmatpush1.bf16.msra.mxu1 %v6245_v45 }
 0x991   :  { %5518 = vmatprep.subr.msk.mxu1 %vm3869_vm12, %v3861_v19 }
 0x994   :  { %5519 = vmatpush1.msk.msra.mxu1 %vm3869_vm12, %v3860_v13 }
 0xa36   :  { %v3797_v6 = vpop.f32.mrb[32].mxu1 }
 0xa37   :  { %v3798_v0 = vadd.f32 %v3797_v6, %v3717_v59  ;;  %v3799_v61 = vpop.f32.mrb[33].mxu1  ;;  %v4154_v6 = vld [vmem:[%s5371_s25] sm:$0xff] }
 0xa38   :  { %v3800_v41 = vadd.f32 %v3799_v61, %v3717_v59 }
 0xa39   :  { %v3808_v25 = vmax.f32 %v3798_v0, 0.0 }
 0xa3a   :  { %v3809_v60 = vmax.f32 %v3800_v41, 0.0  ;;  %v3803_v55 = vpop.f32.mrb[34].mxu1  ;;  %v4251_v41 = vld [vmem:[%s8496_s27] sm:$0xff] }
 0xa3b   :  { %v3804_v28 = vadd.f32 %v3803_v55, %v3722_v37  ;;  %v3805_v21 = vpop.f32.mrb[35].mxu1 }
 0xa3c   :  { %v3806_v40 = vadd.f32 %v3805_v21, %v3722_v37  ;;  %5520 = vmatprep.mubr.msk.f32.mxu1 %vm3862_vm13, %v3809_v60  ;;  %v4252_v37 = vld [vmem:[%s8496_s27 + $0x8] sm:$0xff]  ;;  %v4253_v21 = vld [vmem:[%s8496_s27 + $0x10] sm:$0xff] }
 0xa3d   :  { %3941 = vmatmul.mubr.f32.vlgmr.msra.gmra.mrb[36].mxu1 %v3808_v25  ;;  %v3810_v46 = vmax.f32 %v3804_v28, 0.0  ;;  %v6282_v28 = vpack.c.bf16 %v4252_v37, %v4251_v41  ;;  %v4539_v41 = vld [vmem:[%s8526_s14 + $0x18] sm:$0xff]  ;;  %v4540_v37 = vld [vmem:[%s8526_s14 + $0x20] sm:$0xff] }
 0xa3e   :  { %v3811_v36 = vmax.f32 %v3806_v40, 0.0  ;;  %v4254_v40 = vld [vmem:[%s8496_s27 + $0x18] sm:$0xff] }
 0xa40   :  { %5521 = vmatprep.mubr.msk.f32.mxu1 %vm3862_vm13, %v3811_v36  ;;  %v4155_v36 = vld [vmem:[%s5371_s25 + $0x8] sm:$0xff]  ;;  %s6813_s25 = smov 33  }
 0xa41   :  { %3947 = vmatmul.mubr.f32.gmra.mrb[38].mxu1 %v3810_v46  ;;  %v6286_v46 = vpack.c.bf16 %v4254_v40, %v4253_v21  ;;  %v4545_v21 = vld [vmem:[%s8526_s14 + $0x48] sm:$0xff]  ;;  %v4546_v40 = vld [vmem:[%s8526_s14 + $0x50] sm:$0xff] }
 0xa42   :  { %5686 = vmatprep.mubr.msk.f32.mxu1 %vm3967_vm14, %v4154_v6 }
 0xb10   :  { %v3942_v42 = vpop.f32.mrb[36].mxu1 }
 0xb11   :  { %v3944_v39 = vpop.f32.mrb[37].mxu1 }
 0xb14   :  { %v3948_v7 = vpop.f32.mrb[38].mxu1 }
 0xb15   :  { %v6249_v10 = vpack.c.bf16 %v3948_v7, %v3942_v42  ;;  %v3950_v33 = vpop.f32.mrb[39].mxu1  ;;  %v4255_v42 = vld [vmem:[%s8496_s27 + $0x20] sm:$0xff] }
 0xb16   :  { %v6247_v43 = vpack.c.bf16 %v3950_v33, %v3944_v39  ;;  %v4256_v39 = vld [vmem:[%s8496_s27 + $0x28] sm:$0xff]  ;;  %v4258_v33 = vld [vmem:[%s8496_s27 + $0x38] sm:$0xff] }
 0xb17   :  { %v6290_v7 = vpack.c.bf16 %v4256_v39, %v4255_v42  ;;  %v4549_v42 = vld [vmem:[%s8526_s14 + $0x68] sm:$0xff]  ;;  %v4550_v39 = vld [vmem:[%s8526_s14 + $0x70] sm:$0xff] }
 0xb18   :  { %6248 = vmatprep.subr.bf16.mxu0 %v6247_v43 }
 0xb19   :  { %6250 = vmatpush1.bf16.msra.mxu0 %v6249_v10  ;;  %v4257_v10 = vld [vmem:[%s8496_s27 + $0x30] sm:$0xff] }
 0xb1a   :  { %6251 = vmatprep.subr.bf16.mxu0 %v6797_v4  ;;  %v6294_v43 = vpack.c.bf16 %v4258_v33, %v4257_v10  ;;  %v4553_v10 = vld [vmem:[%s8568_s18 + $0x8] sm:$0xff]  ;;  %v4552_v33 = vld [vmem:[%s8568_s18] sm:$0xff] }
 0xb1c   :  { %5522 = vmatmul.mubr.msk.f32.vlgmr.msra.gmra.mrb[34].mxu0 %vm3967_vm14, %v3953_v17  ;;  %v6298_v17 = vpack.c.bf16 %v4260_v12, %v4259_v29 }
 0xb1d   :  { %4044 = vmatprep.mubr.f32.mxu0 %v8749_v15  ;;  %6253 = vmatpush1.bf16.msra.mxu0 %v6252_v57  ;;  %v4261_v57 = vld [vmem:[%s8496_s27 + $0x50] sm:$0xff] }
 0xb1e   :  { %6254 = vmatprep.subr.bf16.mxu0 %v6797_v4  ;;  %v6302_v31 = vpack.c.bf16 %v4262_v3, %v4261_v57  ;;  %v4555_v57 = vld [vmem:[%s8568_s18 + $0x18] sm:$0xff] }
 0xb20   :  { %5523 = vmatmul.mubr.msk.f32.gmra.mrb[36].mxu0 %vm3967_vm14, %v3954_v38  ;;  %v4263_v38 = vld [vmem:[%s8496_s27 + $0x60] sm:$0xf]  ;;  %s5389_s27 = sld [smem:[%s8743_s0 + %s6813_s25]]  }
 0xb21   :  { %6256 = vmatpush1.bf16.msra.mxu0 %v6255_v52  ;;  %v4166_v52 = vpop.permute.xlu0 %4165 }
 0xb22   :  { %6257 = vmatprep.subr.bf16.mxu0 %v6797_v4 }
 0xb25   :  { %6259 = vmatpush1.bf16.msra.mxu0 %v6258_v14 }
 0xb26   :  { %6260 = vmatprep.subr.bf16.mxu0 %v6797_v4 }
 0xb29   :  { %6262 = vmatpush1.bf16.msra.mxu0 %v6261_v58 }
 0xb2a   :  { %6263 = vmatprep.subr.bf16.mxu0 %v6797_v4 }
 0xb2d   :  { %6265 = vmatpush1.bf16.msra.mxu0 %v6264_v50  ;;  %v4446_v50 = vld [vmem:[%s5376_s1] sm:$0xff] }
 0xb2e   :  { %6266 = vmatprep.subr.bf16.mxu0 %v6797_v4 }
 0xb31   :  { %6268 = vmatpush1.bf16.msra.mxu0 %v6267_v63  ;;  %v6310_v63 = vpack.c.bf16 %v4447_v53, %v4446_v50 }
 0xb32   :  { %6269 = vmatprep.subr.bf16.mxu0 %v6797_v4 }
 0xb35   :  { %6271 = vmatpush1.bf16.msra.mxu0 %v6270_v62  ;;  %v4450_v62 = vld [vmem:[%s5376_s1 + $0x20] sm:$0xff] }
 0xb36   :  { %6272 = vmatprep.subr.bf16.mxu0 %v6797_v4  ;;  %v6318_v56 = vpack.c.bf16 %v4451_v26, %v4450_v62  ;;  %v4558_v26 = vld [vmem:[%s8568_s18 + $0x30] sm:$0xff] }
 0xb39   :  { %6274 = vmatpush1.bf16.msra.mxu0 %v6273_v27 }
 0xb3a   :  { %6275 = vmatprep.subr.bf16.mxu0 %v6797_v4 }
 0xb3d   :  { %6277 = vmatpush1.bf16.msra.mxu0 %v6276_v9  ;;  %v4350_v9 = vld [vmem:[%s5374_s29 + $0x8] sm:$0xff] }
 0xbef   :  { %v4040_v54 = vpop.f32.mrb[34].mxu0 }
 0xbf0   :  { %v4041_v18 = vadd.f32 %v4040_v54, %v3960_v44  ;;  %v4042_v23 = vpop.f32.mrb[35].mxu0  ;;  %v4453_v54 = vld [vmem:[%s5376_s1 + $0x38] sm:$0xff] }
 0xbf1   :  { %v4043_v20 = vadd.f32 %v4042_v23, %v3960_v44  ;;  %v4452_v44 = vld [vmem:[%s5376_s1 + $0x30] sm:$0xff]  ;;  %v4361_v23 = vpop.permute.xlu0 %4360 }
 0xbf2   :  { %v4051_v35 = vmax.f32 %v4041_v18, 0.0  ;;  %v6322_v18 = vpack.c.bf16 %v4453_v54, %v4452_v44  ;;  %v4561_v54 = vld [vmem:[%s8568_s18 + $0x48] sm:$0xff] }
 0xbf3   :  { %v4052_v22 = vmax.f32 %v4043_v20, 0.0  ;;  %v4046_v24 = vpop.f32.mrb[36].mxu0 }
 0xbf4   :  { %v4047_v11 = vadd.f32 %v4046_v24, %v3965_v5  ;;  %v4048_v45 = vpop.f32.mrb[37].mxu0 }
 0xbf5   :  { %v4049_v19 = vadd.f32 %v4048_v45, %v3965_v5  ;;  %5524 = vmatprep.mubr.msk.f32.mxu0 %vm3967_vm14, %v4052_v22  ;;  %v4356_v5 = vpop.permute.xlu1 %4355 }
 0xbf6   :  { %4144 = vmatmul.mubr.f32.vlgmr.msra.gmra.mrb[38].mxu0 %v4051_v35  ;;  %v4053_v59 = vmax.f32 %v4047_v11, 0.0 }
 0xbf7   :  { %v4054_v13 = vmax.f32 %v4049_v19, 0.0  ;;  %v4536_v19 = vld [vmem:[%s8526_s14] sm:$0xff] }
 0xbf9   :  { %5525 = vmatprep.mubr.msk.f32.mxu0 %vm3967_vm14, %v4054_v13 }
 0xbfa   :  { %4149 = vmatmul.mubr.f32.gmra.mrb[40].mxu0 %v4053_v59 }
 0xbfb   :  { %5722 = vmatprep.mubr.msk.f32.mxu0 %vm3967_vm14, %v4349_v48 }
 0xcc9   :  { %v4145_v0 = vpop.f32.mrb[38].mxu0 }
 0xcca   :  { %v4147_v61 = vpop.f32.mrb[39].mxu0 }
 0xccb   :  { %v4538_v61 = vld [vmem:[%s8526_s14 + $0x10] sm:$0xff] }
 0xccd   :  { %v4150_v60 = vpop.f32.mrb[40].mxu0 }
 0xcce   :  { %v6278_v55 = vpack.c.bf16 %v4150_v60, %v4145_v0  ;;  %v4152_v25 = vpop.f32.mrb[41].mxu0  ;;  %v4537_v0 = vld [vmem:[%s8526_s14 + $0x8] sm:$0xff] }
 0xccf   :  { %v4541_v60 = vld [vmem:[%s8526_s14 + $0x28] sm:$0xff]  ;;  %v4543_v25 = vld [vmem:[%s8526_s14 + $0x38] sm:$0xff] }
 0xcd0   :  { %6279 = vmatprep.subr.bf16.mxu1 %v6278_v55 }
 0xcd1   :  { %6281 = vmatpush3.bf16.msra.mxu1 %v6278_v55  ;;  %v4542_v55 = vld [vmem:[%s8526_s14 + $0x30] sm:$0xff] }
 0xcd2   :  { %6283 = vmatprep.subr.bf16.mxu1 %v6282_v28 }
 0xcd4   :  { %5687 = vmatmul.mubr.msk.f32.vlgmr.msra.gmra.mrb[40].mxu1 %vm3967_vm14, %v4155_v36  ;;  %v4547_v36 = vld [vmem:[%s8526_s14 + $0x58] sm:$0xff] }
 0xcd5   :  { %6285 = vmatpush3.bf16.msra.mxu1 %v6282_v28  ;;  %v4544_v28 = vld [vmem:[%s8526_s14 + $0x40] sm:$0xff] }
 0xcd6   :  { %6287 = vmatprep.subr.bf16.mxu1 %v6286_v46 }
 0xcd9   :  { %6289 = vmatpush3.bf16.msra.mxu1 %v6286_v46  ;;  %v4548_v46 = vld [vmem:[%s8526_s14 + $0x60] sm:$0xff] }
 0xcda   :  { %6291 = vmatprep.subr.bf16.mxu1 %v6290_v7 }
 0xcdd   :  { %6293 = vmatpush3.bf16.msra.mxu1 %v6290_v7  ;;  %v4551_v7 = vld [vmem:[%s8526_s14 + $0x78] sm:$0xff] }
 0xcde   :  { %6295 = vmatprep.subr.bf16.mxu1 %v6294_v43 }
 0xce1   :  { %6297 = vmatpush3.bf16.msra.mxu1 %v6294_v43 }
 0xce2   :  { %6299 = vmatprep.subr.bf16.mxu1 %v6298_v17 }
 0xce5   :  { %6301 = vmatpush3.bf16.msra.mxu1 %v6298_v17 }
 0xce6   :  { %6303 = vmatprep.subr.bf16.mxu1 %v6302_v31 }
 0xce9   :  { %6305 = vmatpush3.bf16.msra.mxu1 %v6302_v31  ;;  %v4554_v31 = vld [vmem:[%s8568_s18 + $0x10] sm:$0xff] }
 0xcea   :  { %5713 = vmatprep.subr.msk.mxu1 %vm3869_vm12, %v4263_v38 }
 0xced   :  { %5714 = vmatpush3.msk.msra.mxu1 %vm3869_vm12, %v4263_v38 }
 0xcee   :  { %6311 = vmatprep.subr.bf16.mxu1 %v6310_v63 }
 0xda7   :  { %v5688_v32 = vpop.f32.mrb[40].mxu1 }
 0xda8   :  { %v4246_v14 = vadd.f32 %v5688_v32, %v4166_v52  ;;  %v4240_v16 = vpop.f32.mrb[41].mxu1 }
 0xda9   :  { %v4241_v2 = vadd.f32 %v4240_v16, %v4161_v1 }
 0xdaa   :  { %v4250_v47 = vmax.f32 %v4246_v14, 0.0 }
 0xdab   :  { %v4249_v58 = vmax.f32 %v4241_v2, 0.0  ;;  %v4557_v2 = vld [vmem:[%s8568_s18 + $0x28] sm:$0xff] }
 0xdad   :  { %5715 = vmatprep.mubr.msk.f32.mxu1 %vm4264_vm15, %v4249_v58 }
 0xdae   :  { %5716 = vmatmul.mubr.msk.f32.vlgmr.msra.gmra.mrb[42].mxu1 %vm4264_vm15, %v4250_v47  ;;  %v4556_v47 = vld [vmem:[%s8568_s18 + $0x20] sm:$0xff] }
 0xdaf   :  { %6313 = vmatpush3.bf16.msra.mxu1 %v6310_v63 }
 0xdb0   :  { %6315 = vmatprep.subr.bf16.mxu1 %v6314_v8 }
 0xdb3   :  { %6317 = vmatpush3.bf16.msra.mxu1 %v6314_v8  ;;  %v4559_v8 = vld [vmem:[%s8568_s18 + $0x38] sm:$0xff] }
 0xdb4   :  { %6319 = vmatprep.subr.bf16.mxu1 %v6318_v56 }
 0xdb7   :  { %6321 = vmatpush3.bf16.msra.mxu1 %v6318_v56 }
 0xdb8   :  { %6323 = vmatprep.subr.bf16.mxu1 %v6322_v18 }
 0xdbb   :  { %6325 = vmatpush3.bf16.msra.mxu1 %v6322_v18 }
 0xdbc   :  { %6354 = vmatprep.subr.bf16.mxu1 %v6797_v4 }
 0xe81   :  { %v5717_v27 = vpop.f32.mrb[42].mxu1 }
 0xe82   :  { %v4340_v51 = vpop.f32.mrb[43].mxu1 }
 0xe83   :  { %v6306_v30 = vpack.c.bf16 %v5717_v27, %v4340_v51 }
 0xe85   :  { %6307 = vmatprep.subr.bf16.mxu0 %v6306_v30 }
 0xe86   :  { %6309 = vmatpush3.bf16.msra.mxu0 %v6306_v30 }
 0xe89   :  { %5723 = vmatmul.mubr.msk.f32.vlgmr.msra.gmra.mrb[42].mxu0 %vm3967_vm14, %v4350_v9 }
 0xe8a   :  { %5748 = vmatprep.mubr.msk.f32.mxu0 %vm3967_vm14, %v4536_v19 }
 0xf5c   :  { %v5724_v20 = vpop.f32.mrb[42].mxu0 }
 0xf5d   :  { %v4441_v22 = vadd.f32 %v5724_v20, %v4361_v23  ;;  %v4435_v24 = vpop.f32.mrb[43].mxu0  ;;  %v4560_v23 = vld [vmem:[%s8568_s18 + $0x40] sm:$0xff] }
 0xf5e   :  { %v4436_v35 = vadd.f32 %v4435_v24, %v4356_v5 }
 0xf5f   :  { %v4445_v45 = vmax.f32 %v4441_v22, 0.0 }
 0xf60   :  { %v4444_v11 = vmax.f32 %v4436_v35, 0.0 }
 0xf62   :  { %5741 = vmatprep.mubr.msk.f32.mxu1 %vm4454_vm0, %v4444_v11 }
 0xf63   :  { %5742 = vmatmul.mubr.msk.f32.vlgmr.msra.gmra.mrb[44].mxu1 %vm4454_vm0, %v4445_v45  ;;  %v4563_v45 = vld [vmem:[%s8568_s18 + $0x58] sm:$0xff] }
 0xf64   :  { %5869 = vmatprep.mubr.msk.f32.mxu1 %vm6801_vm1, %v8749_v15 }
0x1036   :  { %v5743_v13 = vpop.f32.mrb[44].mxu1 }
0x1037   :  { %v4527_v59 = vpop.f32.mrb[45].mxu1 }
0x1038   :  { %v6326_v6 = vpack.c.bf16 %v5743_v13, %v4527_v59  ;;  %v4562_v13 = vld [vmem:[%s8568_s18 + $0x50] sm:$0xff] }
0x103a   :  { %6327 = vmatprep.subr.bf16.mxu0 %v6326_v6 }
0x103b   :  { %6329 = vmatpush3.bf16.msra.mxu0 %v6326_v6 }
0x103c   :  { %6330 = vmatprep.subr.bf16.mxu0 %v6797_v4 }
0x103e   :  { %5749 = vmatmul.mubr.msk.f32.vlgmr.msra.gmra.mrb[44].mxu0 %vm3967_vm14, %v4537_v0 }
0x103f   :  { %5751 = vmatprep.mubr.msk.f32.mxu0 %vm3967_vm14, %v4538_v61 }
0x1042   :  { %5752 = vmatmul.mubr.msk.f32.gmra.mrb[46].mxu0 %vm3967_vm14, %v4539_v41 }
0x1043   :  { %5754 = vmatprep.mubr.msk.f32.mxu0 %vm3967_vm14, %v4540_v37 }
0x1046   :  { %5755 = vmatmul.mubr.msk.f32.gmra.mrb[48].mxu0 %vm3967_vm14, %v4541_v60  ;;  %v4565_v60 = vld [vmem:[%s8568_s18 + $0x68] sm:$0xff] }
0x1047   :  { %5757 = vmatprep.mubr.msk.f32.mxu0 %vm3967_vm14, %v4542_v55 }
0x104a   :  { %5758 = vmatmul.mubr.msk.f32.gmra.mrb[50].mxu0 %vm3967_vm14, %v4543_v25  ;;  %v4564_v25 = vld [vmem:[%s8568_s18 + $0x60] sm:$0xff] }
0x104b   :  { %5760 = vmatprep.mubr.msk.f32.mxu0 %vm3967_vm14, %v4544_v28 }
0x104e   :  { %5761 = vmatmul.mubr.msk.f32.gmra.mrb[52].mxu0 %vm3967_vm14, %v4545_v21 }
0x104f   :  { %5763 = vmatprep.mubr.msk.f32.mxu0 %vm3967_vm14, %v4546_v40 }
0x1052   :  { %5764 = vmatmul.mubr.msk.f32.gmra.mrb[54].mxu0 %vm3967_vm14, %v4547_v36 }
0x1053   :  { %5766 = vmatprep.mubr.msk.f32.mxu0 %vm3967_vm14, %v4548_v46 }
0x1056   :  { %5767 = vmatmul.mubr.msk.f32.gmra.mrb[56].mxu0 %vm3967_vm14, %v4549_v42 }
0x1057   :  { %5769 = vmatprep.mubr.msk.f32.mxu0 %vm3967_vm14, %v4550_v39  ;;  %v4567_v39 = vld [vmem:[%s8568_s18 + $0x78] sm:$0xff] }
0x105a   :  { %5770 = vmatmul.mubr.msk.f32.gmra.mrb[58].mxu0 %vm3967_vm14, %v4551_v7 }
0x105b   :  { %5804 = vmatprep.mubr.msk.f32.mxu0 %vm6801_vm1, %v8749_v15 }
0x1111   :  { %v5750_v43 = vpop.f32.mrb[44].mxu0 }
0x1112   :  { %v4688_v29 = vadd.f32 %v5750_v43, %v4553_v10  ;;  %v4682_v12 = vpop.f32.mrb[45].mxu0  ;;  %v4566_v10 = vld [vmem:[%s8568_s18 + $0x70] sm:$0xff] }
0x1113   :  { %v4683_v17 = vadd.f32 %v4682_v12, %v4552_v33 }
0x1114   :  { %v4762_v3 = vmax.f32 %v4688_v29, 0.0 }
0x1115   :  { %v4761_v38 = vmax.f32 %v4683_v17, 0.0  ;;  %v5753_v52 = vpop.f32.mrb[46].mxu0 }
0x1116   :  { %v4698_v32 = vadd.f32 %v5753_v52, %v4555_v57  ;;  %v4692_v1 = vpop.f32.mrb[47].mxu0  ;;  %v4777_v52 = vld [vmem:[%s8594_s21] sm:$0xff] }
0x1117   :  { %v6331_v14 = vpack.c.bf16 %v4762_v3, %v4761_v38  ;;  %v4693_v16 = vadd.f32 %v4692_v1, %v4554_v31  ;;  %v4779_v1 = vld [vmem:[%s8594_s21 + $0x10] sm:$0xff] }
0x1118   :  { %v4764_v58 = vmax.f32 %v4698_v32, 0.0  ;;  %v4778_v32 = vld [vmem:[%s8594_s21 + $0x8] sm:$0xff] }
0x1119   :  { %v4763_v48 = vmax.f32 %v4693_v16, 0.0  ;;  %v5756_v50 = vpop.f32.mrb[48].mxu0  ;;  %6332 = vmatpush3.bf16.msra.mxu0 %v6331_v14  ;;  %v4780_v14 = vld [vmem:[%s8594_s21 + $0x18] sm:$0xff]  ;;  %v4781_v16 = vld [vmem:[%s8594_s21 + $0x20] sm:$0xff] }
0x111a   :  { %v4708_v53 = vadd.f32 %v5756_v50, %v4557_v2  ;;  %v4702_v49 = vpop.f32.mrb[49].mxu0  ;;  %6333 = vmatprep.subr.bf16.mxu0 %v6797_v4  ;;  %v4782_v2 = vld [vmem:[%s8594_s21 + $0x28] sm:$0xff] }
0x111b   :  { %v6334_v63 = vpack.c.bf16 %v4764_v58, %v4763_v48  ;;  %v4703_v34 = vadd.f32 %v4702_v49, %v4556_v47  ;;  %v4783_v58 = vld [vmem:[%s8594_s21 + $0x30] sm:$0xff]  ;;  %v4784_v47 = vld [vmem:[%s8594_s21 + $0x38] sm:$0xff]  ;;  %v4785_v48 = vld [vmem:[%s8594_s21 + $0x40] sm:$0xff] }
0x111c   :  { %v4766_v62 = vmax.f32 %v4708_v53, 0.0  ;;  %v4786_v50 = vld [vmem:[%s8594_s21 + $0x48] sm:$0xff]  ;;  %v4787_v53 = vld [vmem:[%s8594_s21 + $0x50] sm:$0xff]  ;;  %v4788_v49 = vld [vmem:[%s8594_s21 + $0x58] sm:$0xff] }
0x111d   :  { %v4765_v56 = vmax.f32 %v4703_v34, 0.0  ;;  %v5759_v27 = vpop.f32.mrb[50].mxu0  ;;  %6335 = vmatpush3.bf16.msra.mxu0 %v6334_v63  ;;  %v4789_v63 = vld [vmem:[%s8594_s21 + $0x60] sm:$0x3f] }
0x111e   :  { %v4718_v51 = vadd.f32 %v5759_v27, %v4559_v8  ;;  %v4712_v30 = vpop.f32.mrb[51].mxu0  ;;  %6336 = vmatprep.subr.bf16.mxu0 %v6797_v4  ;;  %v4790_v34 = vld [vmem:[%s8638_s10] sm:$0xff] }
0x111f   :  { %v6337_v9 = vpack.c.bf16 %v4766_v62, %v4765_v56  ;;  %v4713_v44 = vadd.f32 %v4712_v30, %v4558_v26  ;;  %v4791_v26 = vld [vmem:[%s8638_s10 + $0x8] sm:$0xff] }
0x1120   :  { %v4768_v18 = vmax.f32 %v4718_v51, 0.0 }
0x1121   :  { %v4767_v20 = vmax.f32 %v4713_v44, 0.0  ;;  %v5762_v5 = vpop.f32.mrb[52].mxu0  ;;  %6338 = vmatpush3.bf16.msra.mxu0 %v6337_v9 }
0x1122   :  { %v4728_v22 = vadd.f32 %v5762_v5, %v4561_v54  ;;  %v4722_v24 = vpop.f32.mrb[53].mxu0  ;;  %6339 = vmatprep.subr.bf16.mxu0 %v6797_v4  ;;  %v4792_v54 = vld [vmem:[%s8638_s10 + $0x10] sm:$0xff]  ;;  %v4793_v5 = vld [vmem:[%s8638_s10 + $0x18] sm:$0xff] }
0x1123   :  { %v6340_v35 = vpack.c.bf16 %v4768_v18, %v4767_v20  ;;  %v4723_v11 = vadd.f32 %v4722_v24, %v4560_v23 }
0x1124   :  { %v4770_v19 = vmax.f32 %v4728_v22, 0.0 }
0x1125   :  { %v4769_v59 = vmax.f32 %v4723_v11, 0.0  ;;  %v5765_v6 = vpop.f32.mrb[54].mxu0  ;;  %6341 = vmatpush3.bf16.msra.mxu0 %v6340_v35 }
0x1126   :  { %v4738_v0 = vadd.f32 %v5765_v6, %v4563_v45  ;;  %v4732_v61 = vpop.f32.mrb[55].mxu0  ;;  %6342 = vmatprep.subr.bf16.mxu0 %v6797_v4 }
0x1127   :  { %v6343_v41 = vpack.c.bf16 %v4770_v19, %v4769_v59  ;;  %v4733_v37 = vadd.f32 %v4732_v61, %v4562_v13  ;;  %v4794_v13 = vld [vmem:[%s8638_s10 + $0x20] sm:$0xff]  ;;  %v4795_v61 = vld [vmem:[%s8638_s10 + $0x28] sm:$0xff] }
0x1128   :  { %v4772_v55 = vmax.f32 %v4738_v0, 0.0 }
0x1129   :  { %v4771_v28 = vmax.f32 %v4733_v37, 0.0  ;;  %v5768_v21 = vpop.f32.mrb[56].mxu0  ;;  %6344 = vmatpush3.bf16.msra.mxu0 %v6343_v41 }
0x112a   :  { %v4748_v40 = vadd.f32 %v5768_v21, %v4565_v60  ;;  %v4742_v36 = vpop.f32.mrb[57].mxu0  ;;  %6345 = vmatprep.subr.bf16.mxu0 %v6797_v4  ;;  %v4796_v21 = vld [vmem:[%s8638_s10 + $0x30] sm:$0xff] }
0x112b   :  { %v6346_v46 = vpack.c.bf16 %v4772_v55, %v4771_v28  ;;  %v4743_v42 = vadd.f32 %v4742_v36, %v4564_v25 }
0x112c   :  { %v4774_v7 = vmax.f32 %v4748_v40, 0.0 }
0x112d   :  { %v4773_v33 = vmax.f32 %v4743_v42, 0.0  ;;  %v5771_v43 = vpop.f32.mrb[58].mxu0  ;;  %6347 = vmatpush3.bf16.msra.mxu0 %v6346_v46  ;;  %v4797_v42 = vld [vmem:[%s8638_s10 + $0x38] sm:$0xff] }
0x112e   :  { %v4758_v29 = vadd.f32 %v5771_v43, %v4567_v39  ;;  %v4752_v12 = vpop.f32.mrb[59].mxu0  ;;  %6348 = vmatprep.subr.bf16.mxu0 %v6797_v4 }
0x112f   :  { %v6349_v17 = vpack.c.bf16 %v4774_v7, %v4773_v33  ;;  %v4753_v57 = vadd.f32 %v4752_v12, %v4566_v10  ;;  %v4798_v12 = vld [vmem:[%s8638_s10 + $0x40] sm:$0xff] }
0x1130   :  { %v4776_v3 = vmax.f32 %v4758_v29, 0.0 }
0x1131   :  { %v4775_v31 = vmax.f32 %v4753_v57, 0.0  ;;  %6350 = vmatpush3.bf16.msra.mxu0 %v6349_v17 }
0x1132   :  { %6351 = vmatprep.subr.bf16.mxu0 %v6797_v4 }
0x1133   :  { %v6352_v38 = vpack.c.bf16 %v4776_v3, %v4775_v31  ;;  %v4799_v31 = vld [vmem:[%s8638_s10 + $0x48] sm:$0xff] }
0x1135   :  { %6353 = vmatpush3.bf16.msra.mxu0 %v6352_v38 }
0x1138   :  { %5805 = vmatmul.mubr.f32.vlgmr.msra.gmra.mrb[60].mxu0 %v4777_v52 }
0x1139   :  { %5807 = vmatprep.mubr.msk.f32.mxu0 %vm6801_vm1, %v8749_v15 }
0x113c   :  { %5808 = vmatmul.mubr.f32.gmra.mrb[62].mxu0 %v4778_v32 }
0x113d   :  { %5810 = vmatprep.mubr.msk.f32.mxu0 %vm6801_vm1, %v8749_v15 }
0x1140   :  { %5811 = vmatmul.mubr.f32.gmra.mrb[64].mxu0 %v4779_v1 }
0x1141   :  { %5813 = vmatprep.mubr.msk.f32.mxu0 %vm6801_vm1, %v8749_v15 }
0x1144   :  { %5814 = vmatmul.mubr.f32.gmra.mrb[66].mxu0 %v4780_v14 }
0x1145   :  { %5816 = vmatprep.mubr.msk.f32.mxu0 %vm6801_vm1, %v8749_v15 }
0x1148   :  { %5817 = vmatmul.mubr.f32.gmra.mrb[68].mxu0 %v4781_v16 }
0x1149   :  { %5819 = vmatprep.mubr.msk.f32.mxu0 %vm6801_vm1, %v8749_v15 }
0x114c   :  { %5820 = vmatmul.mubr.f32.gmra.mrb[70].mxu0 %v4782_v2  ;;  %v4800_v2 = vld [vmem:[%s8638_s10 + $0x50] sm:$0xff] }
0x114d   :  { %5822 = vmatprep.mubr.msk.f32.mxu0 %vm6801_vm1, %v8749_v15 }
0x1150   :  { %5823 = vmatmul.mubr.f32.gmra.mrb[72].mxu0 %v4783_v58 }
0x1151   :  { %5825 = vmatprep.mubr.msk.f32.mxu0 %vm6801_vm1, %v8749_v15 }
0x1154   :  { %5826 = vmatmul.mubr.f32.gmra.mrb[74].mxu0 %v4784_v47 }
0x1155   :  { %5828 = vmatprep.mubr.msk.f32.mxu0 %vm6801_vm1, %v8749_v15 }
0x1158   :  { %5829 = vmatmul.mubr.f32.gmra.mrb[76].mxu0 %v4785_v48 }
0x1159   :  { %5831 = vmatprep.mubr.msk.f32.mxu0 %vm6801_vm1, %v8749_v15 }
0x115c   :  { %5832 = vmatmul.mubr.f32.gmra.mrb[78].mxu0 %v4786_v50  ;;  %v4801_v50 = vld [vmem:[%s8638_s10 + $0x58] sm:$0xff] }
0x115d   :  { %5834 = vmatprep.mubr.msk.f32.mxu0 %vm6801_vm1, %v8749_v15 }
0x1160   :  { %5835 = vmatmul.mubr.f32.gmra.mrb[80].mxu0 %v4787_v53 }
0x1161   :  { %5837 = vmatprep.mubr.msk.f32.mxu0 %vm6801_vm1, %v8749_v15 }
0x1164   :  { %5838 = vmatmul.mubr.f32.gmra.mrb[82].mxu0 %v4788_v49 }
0x1165   :  { %5840 = vmatprep.mubr.msk.f32.mxu0 %vm6801_vm1, %v8749_v15 }
0x1168   :  { %5841 = vmatmul.mubr.f32.gmra.mrb[84].mxu0 %v4789_v63 }
0x120b   :  { %v4869_v8 = vpop.f32.mrb[60].mxu0 }
0x120c   :  { %v5806_v62 = vpop.f32.mrb[61].mxu0  ;;  %v4870_v56 = vadd.f32 %v4869_v8, %v4790_v34  ;;  %v4802_v8 = vld [vmem:[%s8638_s10 + $0x60] sm:$0x3f] }
0x120e   :  { %v4933_v9 = vmax.f32 %v4870_v56, 0.0 }
0x120f   :  { %v4874_v27 = vpop.f32.mrb[62].mxu0 }
0x1210   :  { %v4875_v51 = vadd.f32 %v4874_v27, %v4791_v26  ;;  %v5809_v30 = vpop.f32.mrb[63].mxu0 }
0x1212   :  { %v4934_v44 = vmax.f32 %v4875_v51, 0.0 }
0x1213   :  { %v4879_v18 = vpop.f32.mrb[64].mxu0 }
0x1214   :  { %v6355_v23 = vpack.c.bf16 %v4934_v44, %v4933_v9  ;;  %v5812_v20 = vpop.f32.mrb[65].mxu0  ;;  %v4880_v22 = vadd.f32 %v4879_v18, %v4792_v54  ;;  %v4946_v44 = vld [vmem:[%s8660_s26] sm:$0xff]  ;;  %v4947_v54 = vld [vmem:[%s8660_s26 + $0x8] sm:$0xff]  ;;  %v4948_v18 = vld [vmem:[%s8660_s26 + $0x10] sm:$0xff] }
0x1215   :  { %v4950_v20 = vld [vmem:[%s8660_s26 + $0x20] sm:$0xff] }
0x1216   :  { %6356 = vmatpush3.bf16.msra.mxu1 %v6355_v23  ;;  %v4935_v45 = vmax.f32 %v4880_v22, 0.0  ;;  %v4949_v23 = vld [vmem:[%s8660_s26 + $0x18] sm:$0xff]  ;;  %v4952_v22 = vld [vmem:[%s8660_s26 + $0x30] sm:$0x3] }
0x1217   :  { %v4884_v24 = vpop.f32.mrb[66].mxu0  ;;  %6357 = vmatprep.subr.bf16.mxu1 %v6797_v4 }
0x1218   :  { %v4885_v35 = vadd.f32 %v4884_v24, %v4793_v5  ;;  %v5815_v11 = vpop.f32.mrb[67].mxu0  ;;  %v4951_v5 = vld [vmem:[%s8660_s26 + $0x28] sm:$0xff]  ;;  %v4953_v24 = vld [vmem:[%s8697_s4] sm:$0xff] }
0x121a   :  { %v4936_v19 = vmax.f32 %v4885_v35, 0.0 }
0x121b   :  { %v4889_v59 = vpop.f32.mrb[68].mxu0 }
0x121c   :  { %v6358_v6 = vpack.c.bf16 %v4936_v19, %v4935_v45  ;;  %v5818_v0 = vpop.f32.mrb[69].mxu0  ;;  %v4890_v41 = vadd.f32 %v4889_v59, %v4794_v13  ;;  %v4954_v45 = vld [vmem:[%s8697_s4 + $0x8] sm:$0xff] }
0x121e   :  { %6359 = vmatpush3.bf16.msra.mxu1 %v6358_v6  ;;  %v4937_v25 = vmax.f32 %v4890_v41, 0.0  ;;  %v4955_v41 = vld [vmem:[%s8697_s4 + $0x10] sm:$0xff] }
0x121f   :  { %v4894_v37 = vpop.f32.mrb[70].mxu0  ;;  %6360 = vmatprep.subr.bf16.mxu1 %v6797_v4 }
0x1220   :  { %v4895_v60 = vadd.f32 %v4894_v37, %v4795_v61  ;;  %v5821_v55 = vpop.f32.mrb[71].mxu0 }
0x1222   :  { %v4938_v28 = vmax.f32 %v4895_v60, 0.0 }
0x1223   :  { %v4899_v40 = vpop.f32.mrb[72].mxu0 }
0x1224   :  { %v6361_v36 = vpack.c.bf16 %v4938_v28, %v4937_v25  ;;  %v5824_v46 = vpop.f32.mrb[73].mxu0  ;;  %v4900_v39 = vadd.f32 %v4899_v40, %v4796_v21  ;;  %v4956_v25 = vld [vmem:[%s8697_s4 + $0x18] sm:$0xff] }
0x1226   :  { %6362 = vmatpush3.bf16.msra.mxu1 %v6361_v36  ;;  %v4939_v43 = vmax.f32 %v4900_v39, 0.0  ;;  %v4957_v39 = vld [vmem:[%s8697_s4 + $0x20] sm:$0xff] }
0x1227   :  { %v4904_v7 = vpop.f32.mrb[74].mxu0  ;;  %6363 = vmatprep.subr.bf16.mxu1 %v6797_v4 }
0x1228   :  { %v4905_v10 = vadd.f32 %v4904_v7, %v4797_v42  ;;  %v5827_v33 = vpop.f32.mrb[75].mxu0 }
0x122a   :  { %v4940_v29 = vmax.f32 %v4905_v10, 0.0 }
0x122b   :  { %v4909_v17 = vpop.f32.mrb[76].mxu0 }
0x122c   :  { %v6364_v57 = vpack.c.bf16 %v4940_v29, %v4939_v43  ;;  %v5830_v3 = vpop.f32.mrb[77].mxu0  ;;  %v4910_v38 = vadd.f32 %v4909_v17, %v4798_v12  ;;  %v4958_v43 = vld [vmem:[%s8697_s4 + $0x28] sm:$0xff] }
0x122d   :  { %v4959_v3 = vld [vmem:[%s8697_s4 + $0x30] sm:$0x3] }
0x122e   :  { %6365 = vmatpush3.bf16.msra.mxu1 %v6364_v57  ;;  %v4941_v14 = vmax.f32 %v4910_v38, 0.0 }
0x122f   :  { %v4914_v52 = vpop.f32.mrb[78].mxu0  ;;  %6366 = vmatprep.subr.bf16.mxu1 %v6797_v4 }
0x1230   :  { %v4915_v32 = vadd.f32 %v4914_v52, %v4799_v31  ;;  %v5833_v1 = vpop.f32.mrb[79].mxu0 }
0x1232   :  { %v4942_v16 = vmax.f32 %v4915_v32, 0.0 }
0x1233   :  { %v4919_v58 = vpop.f32.mrb[80].mxu0 }
0x1234   :  { %v6367_v47 = vpack.c.bf16 %v4942_v16, %v4941_v14  ;;  %v5836_v48 = vpop.f32.mrb[81].mxu0  ;;  %v4920_v53 = vadd.f32 %v4919_v58, %v4800_v2  ;;  %v5093_v2 = vld [vmem:[%s5383_s13] sm:$0xff]  ;;  %v5094_v58 = vld [vmem:[%s5383_s13 + $0x8] sm:$0xff] }
0x1235   :  { %v5096_v48 = vld [vmem:[%s5384_s5] sm:$0xff] }
0x1236   :  { %6368 = vmatpush3.bf16.msra.mxu1 %v6367_v47  ;;  %v4943_v62 = vmax.f32 %v4920_v53, 0.0  ;;  %v5095_v47 = vld [vmem:[%s5383_s13 + $0x10] sm:$0xff]  ;;  %v5097_v53 = vld [vmem:[%s5384_s5 + $0x8] sm:$0xff] }
0x1237   :  { %v4924_v49 = vpop.f32.mrb[82].mxu0  ;;  %6369 = vmatprep.subr.bf16.mxu1 %v6797_v4 }
0x1238   :  { %v4925_v63 = vadd.f32 %v4924_v49, %v4801_v50  ;;  %v5839_v34 = vpop.f32.mrb[83].mxu0 }
0x123a   :  { %v4944_v26 = vmax.f32 %v4925_v63, 0.0 }
0x123b   :  { %v4929_v56 = vpop.f32.mrb[84].mxu0 }
0x123c   :  { %v6370_v27 = vpack.c.bf16 %v4944_v26, %v4943_v62  ;;  %v4930_v51 = vadd.f32 %v4929_v56, %v4802_v8  ;;  %v5842_v30 = vpop.f32.mrb[85].mxu0  ;;  %v5098_v62 = vld [vmem:[%s5384_s5 + $0x10] sm:$0xff] }
0x123e   :  { %v4945_v9 = vmax.f32 %v4930_v51, 0.0  ;;  %6371 = vmatpush3.bf16.msra.mxu1 %v6370_v27 }
0x123f   :  { %5867 = vmatprep.subr.mxu1 %v8749_v15 }
0x1242   :  { %5868 = vmatpush3.msk.msra.mxu1 %vm4982_vm2, %v4945_v9 }
0x1243   :  { %5870 = vmatmul.mubr.msk.f32.vlgmr.msra.gmra.mrb[46].mxu1 %vm4960_vm3, %v4946_v44  ;;  %6372 = vmatprep.subr.bf16.mxu1 %v6797_v4 }
0x1244   :  { %5872 = vmatprep.mubr.msk.f32.mxu1 %vm6801_vm1, %v8749_v15 }
0x1247   :  { %5873 = vmatmul.mubr.msk.f32.gmra.mrb[48].mxu1 %vm4960_vm3, %v4947_v54  ;;  %v5195_v54 = vld [vmem:[%s5385_s16] sm:$0x3f] }
0x1248   :  { %5875 = vmatprep.mubr.msk.f32.mxu1 %vm6801_vm1, %v8749_v15 }
0x124b   :  { %5876 = vmatmul.mubr.msk.f32.gmra.mrb[50].mxu1 %vm4960_vm3, %v4948_v18  ;;  %v5196_v18 = vld [vmem:[%s5386_s7] sm:$0x3f] }
0x124c   :  { %5878 = vmatprep.mubr.msk.f32.mxu1 %vm6801_vm1, %v8749_v15 }
0x124f   :  { %5879 = vmatmul.mubr.msk.f32.gmra.mrb[52].mxu1 %vm4960_vm3, %v4949_v23 }
0x1250   :  { %5881 = vmatprep.mubr.msk.f32.mxu1 %vm6801_vm1, %v8749_v15 }
0x1253   :  { %5882 = vmatmul.mubr.msk.f32.gmra.mrb[54].mxu1 %vm4960_vm3, %v4950_v20 }
0x1254   :  { %5884 = vmatprep.mubr.msk.f32.mxu1 %vm6801_vm1, %v8749_v15 }
0x1257   :  { %5885 = vmatmul.mubr.msk.f32.gmra.mrb[56].mxu1 %vm4960_vm3, %v4951_v5 }
0x1258   :  { %5887 = vmatprep.mubr.msk.f32.mxu1 %vm6801_vm1, %v8749_v15 }
0x125b   :  { %5888 = vmatmul.mubr.msk.f32.gmra.mrb[58].mxu1 %vm4960_vm3, %v4952_v22 }
0x125c   :  { %5904 = vmatprep.mubr.msk.f32.mxu1 %vm6801_vm1, %v8749_v15 }
0x1316   :  { %v5052_v35 = vpop.f32.mrb[46].mxu1 }
0x1317   :  { %v5871_v11 = vpop.f32.mrb[47].mxu1  ;;  %v5053_v19 = vadd.f32 %v5052_v35, %v4953_v24  ;;  %v5272_v24 = vld [vmem:[%s5387_s9] sm:$0x3] }
0x1319   :  { %v5086_v0 = vmax.f32 %v5053_v19, 0.0 }
0x131a   :  { %v5057_v13 = vpop.f32.mrb[48].mxu1 }
0x131b   :  { %v5058_v59 = vadd.f32 %v5057_v13, %v4954_v45  ;;  %v5874_v6 = vpop.f32.mrb[49].mxu1 }
0x131d   :  { %v5087_v61 = vmax.f32 %v5058_v59, 0.0 }
0x131e   :  { %v5062_v37 = vpop.f32.mrb[50].mxu1 }
0x131f   :  { %v6373_v60 = vpack.c.bf16 %v5087_v61, %v5086_v0  ;;  %v5877_v55 = vpop.f32.mrb[51].mxu1  ;;  %v5063_v28 = vadd.f32 %v5062_v37, %v4955_v41 }
0x1321   :  { %6374 = vmatpush3.bf16.msra.mxu1 %v6373_v60  ;;  %v5088_v46 = vmax.f32 %v5063_v28, 0.0 }
0x1322   :  { %v5067_v21 = vpop.f32.mrb[52].mxu1  ;;  %6375 = vmatprep.subr.bf16.mxu1 %v6797_v4 }
0x1323   :  { %v5068_v40 = vadd.f32 %v5067_v21, %v4956_v25  ;;  %v5880_v36 = vpop.f32.mrb[53].mxu1 }
0x1325   :  { %v5089_v42 = vmax.f32 %v5068_v40, 0.0 }
0x1326   :  { %v5072_v7 = vpop.f32.mrb[54].mxu1 }
0x1327   :  { %v6376_v10 = vpack.c.bf16 %v5089_v42, %v5088_v46  ;;  %v5883_v33 = vpop.f32.mrb[55].mxu1  ;;  %v5073_v29 = vadd.f32 %v5072_v7, %v4957_v39 }
0x1329   :  { %6377 = vmatpush3.bf16.msra.mxu1 %v6376_v10  ;;  %v5090_v31 = vmax.f32 %v5073_v29, 0.0 }
0x132a   :  { %v5077_v12 = vpop.f32.mrb[56].mxu1  ;;  %6378 = vmatprep.subr.bf16.mxu1 %v6797_v4 }
0x132b   :  { %v5078_v17 = vadd.f32 %v5077_v12, %v4958_v43  ;;  %v5886_v57 = vpop.f32.mrb[57].mxu1 }
0x132d   :  { %v5091_v38 = vmax.f32 %v5078_v17, 0.0 }
0x132e   :  { %v5082_v52 = vpop.f32.mrb[58].mxu1 }
0x132f   :  { %v6379_v32 = vpack.c.bf16 %v5091_v38, %v5090_v31  ;;  %v5083_v1 = vadd.f32 %v5082_v52, %v4959_v3  ;;  %v5889_v14 = vpop.f32.mrb[59].mxu1 }
0x1331   :  { %6380 = vmatpush3.bf16.msra.mxu1 %v6379_v32  ;;  %v5092_v16 = vmax.f32 %v5083_v1, 0.0 }
0x1332   :  { %5902 = vmatprep.subr.mxu1 %v8749_v15 }
0x1335   :  { %5903 = vmatpush3.msk.msra.mxu1 %vm595_vm9, %v5092_v16 }
0x1336   :  { %5905 = vmatmul.mubr.msk.f32.vlgmr.msra.gmra.mrb[60].mxu1 %vm5099_vm4, %v5093_v2  ;;  %6381 = vmatprep.subr.bf16.mxu1 %v6797_v4 }
0x1337   :  { %5907 = vmatprep.mubr.msk.f32.mxu1 %vm6801_vm1, %v8749_v15 }
0x133a   :  { %5908 = vmatmul.mubr.msk.f32.gmra.mrb[62].mxu1 %vm5099_vm4, %v5094_v58 }
0x133b   :  { %5910 = vmatprep.mubr.msk.f32.mxu1 %vm6801_vm1, %v8749_v15 }
0x133e   :  { %5911 = vmatmul.mubr.msk.f32.gmra.mrb[64].mxu1 %vm5099_vm4, %v5095_v47 }
0x133f   :  { %5919 = vmatprep.mubr.msk.f32.mxu1 %vm6801_vm1, %v8749_v15 }
0x1409   :  { %v5178_v4 = vpop.f32.mrb[60].mxu1 }
0x140a   :  { %v5906_v50 = vpop.f32.mrb[61].mxu1  ;;  %v5179_v49 = vadd.f32 %v5178_v4, %v5096_v48 }
0x140c   :  { %v5192_v26 = vmax.f32 %v5179_v49, 0.0 }
0x140d   :  { %v5183_v63 = vpop.f32.mrb[62].mxu1 }
0x140e   :  { %v5184_v34 = vadd.f32 %v5183_v63, %v5097_v53  ;;  %v5909_v8 = vpop.f32.mrb[63].mxu1 }
0x1410   :  { %v5193_v56 = vmax.f32 %v5184_v34, 0.0 }
0x1411   :  { %v5188_v27 = vpop.f32.mrb[64].mxu1 }
0x1412   :  { %v6382_v51 = vpack.c.bf16 %v5193_v56, %v5192_v26  ;;  %v5189_v30 = vadd.f32 %v5188_v27, %v5098_v62  ;;  %v5912_v9 = vpop.f32.mrb[65].mxu1 }
0x1414   :  { %6383 = vmatpush3.bf16.msra.mxu1 %v6382_v51  ;;  %v5194_v44 = vmax.f32 %v5189_v30, 0.0 }
0x1415   :  { %5917 = vmatprep.subr.mxu1 %v8749_v15 }
0x1418   :  { %5918 = vmatpush3.msra.mxu1 %v5194_v44 }
0x1419   :  { %5920 = vmatmul.mubr.msk.f32.vlgmr.msra.gmra.mrb[66].mxu1 %vm5197_vm5, %v5195_v54  ;;  %5922 = vmatprep.subr.mxu1 %v8749_v15 }
0x141a   :  { %5924 = vmatprep.mubr.msk.f32.mxu1 %vm6801_vm1, %v8749_v15  ;;  %v5273_v15 = vld [vmem:[%s5388_s11] sm:$0x3] }
0x14ec   :  { %v5267_v23 = vpop.f32.mrb[66].mxu1 }
0x14ed   :  { %v5268_v20 = vadd.f32 %v5267_v23, %v5196_v18  ;;  %v5921_v5 = vpop.f32.mrb[67].mxu1 }
0x14ef   :  { %v5271_v22 = vmax.f32 %v5268_v20, 0.0 }
0x14f1   :  { %5923 = vmatpush3.msk.msra.mxu1 %vm4982_vm2, %v5271_v22 }
0x14f2   :  { %5925 = vmatmul.mubr.msk.f32.vlgmr.msra.gmra.mrb[68].mxu1 %vm5274_vm6, %v5272_v24 }
0x15c5   :  { %v5347_v35 = vpop.f32.mrb[68].mxu1 }
0x15c6   :  { %v5348_v11 = vadd.f32 %v5347_v35, %v5273_v15  ;;  %v5926_v45 = vpop.f32.mrb[69].mxu1 }
0x15c8   :  { %5352 = vst.msk [vmem:[%s5389_s27] sm:$0x3] %vm5351_vm7, %v5348_v11 }

</bundles_post_ra>
